<compile_context>
chip_gen: v5e
topology: v5e:2x2
jax: 0.10.0
libtpu: 0.0.40
codegen_flags: <defaults>
</compile_context>

<pallas_src>
import jax
import jax.numpy as jnp
from jax.experimental import pallas as pl
from jax.experimental.pallas import tpu as pltpu

COND_SIZ = 8
HIDDEN_SIZ = 512
N_CLASSES = 29
N_LABELS = 4
SEQ_LEN = 1

_FC_K = HIDDEN_SIZ + COND_SIZ              # 520
_FC_K_PAD = ((_FC_K + 127) // 128) * 128   # 640 (lane-aligned K for the MXU)
_XH = 2 * HIDDEN_SIZ                       # 1024 (concat(x, h) width)
_GATES = 4 * HIDDEN_SIZ                    # 2048 (i, f, g, o)

_COMPILER_PARAMS = pltpu.CompilerParams(vmem_limit_bytes=32 << 20)


# --------------------------------------------------------------------------
# Pallas kernels
# --------------------------------------------------------------------------
def _lstm_epilogue(gates, c0):
    """PyTorch gate order (i, f, g, o); all f32 elementwise."""
    H = HIDDEN_SIZ
    i_g = jax.nn.sigmoid(gates[:, 0 * H:1 * H])
    f_g = jax.nn.sigmoid(gates[:, 1 * H:2 * H])
    g_g = jnp.tanh(gates[:, 2 * H:3 * H])
    o_g = jax.nn.sigmoid(gates[:, 3 * H:4 * H])
    c_new = f_g * c0 + i_g * g_g
    h_new = o_g * jnp.tanh(c_new)
    return h_new, c_new


def _encoder_label_kernel(x_ref, hcat_ref, fcw_ref, fcb_ref, w_ref, b_ref,
                          h_out_ref, c_out_ref, xh_ref):
    # init_cond_fc: h0 = hcat_pad @ fc_w_pad + fc_b  (bf16 operands, f32 acc).
    h0 = jnp.dot(hcat_ref[...].astype(jnp.bfloat16), fcw_ref[...],
                 preferred_element_type=jnp.float32) + fcb_ref[...]
    # The PyTorch module passes (hidden_state, hidden_state) as (h0, c0).
    c0 = h0
    # Merged LSTM matmul: gates = [x_emb, h0] @ [W_ih; W_hh] + b.
    xh_ref[:, :HIDDEN_SIZ] = x_ref[...].astype(jnp.bfloat16)
    xh_ref[:, HIDDEN_SIZ:] = h0.astype(jnp.bfloat16)
    gates = jnp.dot(xh_ref[...], w_ref[...],
                    preferred_element_type=jnp.float32) + b_ref[...]
    h_new, c_new = _lstm_epilogue(gates, c0)
    h_out_ref[...] = h_new
    c_out_ref[...] = c_new


def _encoder_state_kernel(x_ref, h_ref, c_ref, w_ref, b_ref,
                          h_out_ref, c_out_ref, xh_ref):
    # Merged LSTM matmul: gates = [x_emb, h] @ [W_ih; W_hh] + b.
    xh_ref[:, :HIDDEN_SIZ] = x_ref[...].astype(jnp.bfloat16)
    xh_ref[:, HIDDEN_SIZ:] = h_ref[...].astype(jnp.bfloat16)
    gates = jnp.dot(xh_ref[...], w_ref[...],
                    preferred_element_type=jnp.float32) + b_ref[...]
    h_new, c_new = _lstm_epilogue(gates, c_ref[...])
    h_out_ref[...] = h_new
    c_out_ref[...] = c_new


# --------------------------------------------------------------------------
# pallas_call wrappers (grid-less: single fused invocation per forward)
# --------------------------------------------------------------------------
def _full_spec(shape):
    ndim = len(shape)
    return pl.BlockSpec(shape, lambda: (0,) * ndim)


def encoder_label_call(x_emb, hcat_pad, fc_w_pad, fc_b, w_stack, b_lstm):
    B = x_emb.shape[0]
    return pl.pallas_call(
        _encoder_label_kernel,
        out_shape=(jax.ShapeDtypeStruct((B, HIDDEN_SIZ), jnp.float32),
                   jax.ShapeDtypeStruct((B, HIDDEN_SIZ), jnp.float32)),
        in_specs=[
            _full_spec((B, HIDDEN_SIZ)),          # x_emb        (f32)
            _full_spec((B, _FC_K_PAD)),           # hcat_pad     (f32)
            _full_spec((_FC_K_PAD, HIDDEN_SIZ)),  # fc_w_pad     (bf16)
            _full_spec((1, HIDDEN_SIZ)),          # fc_b         (f32)
            _full_spec((_XH, _GATES)),            # [W_ih; W_hh] (bf16)
            _full_spec((1, _GATES)),              # b_ih + b_hh  (f32)
        ],
        out_specs=(_full_spec((B, HIDDEN_SIZ)), _full_spec((B, HIDDEN_SIZ))),
        scratch_shapes=[pltpu.VMEM((B, _XH), jnp.bfloat16)],
        compiler_params=_COMPILER_PARAMS,
    )(x_emb, hcat_pad, fc_w_pad, fc_b, w_stack, b_lstm)


def encoder_state_call(x_emb, h0, c0, w_stack, b_lstm):
    B = x_emb.shape[0]
    return pl.pallas_call(
        _encoder_state_kernel,
        out_shape=(jax.ShapeDtypeStruct((B, HIDDEN_SIZ), jnp.float32),
                   jax.ShapeDtypeStruct((B, HIDDEN_SIZ), jnp.float32)),
        in_specs=[
            _full_spec((B, HIDDEN_SIZ)),          # x_emb        (f32)
            _full_spec((B, HIDDEN_SIZ)),          # h0           (f32)
            _full_spec((B, HIDDEN_SIZ)),          # c0           (f32)
            _full_spec((_XH, _GATES)),            # [W_ih; W_hh] (bf16)
            _full_spec((1, _GATES)),              # b_ih + b_hh  (f32)
        ],
        out_specs=(_full_spec((B, HIDDEN_SIZ)), _full_spec((B, HIDDEN_SIZ))),
        scratch_shapes=[pltpu.VMEM((B, _XH), jnp.bfloat16)],
        compiler_params=_COMPILER_PARAMS,
    )(x_emb, h0, c0, w_stack, b_lstm)


# --------------------------------------------------------------------------
# Parameter init (all per-call prep hoisted here; weights stored bf16)
# --------------------------------------------------------------------------
def init_params(key):
    ks = jax.random.split(key, 8)

    def unif(k, shape, fan_in):
        bound = 1.0 / jnp.sqrt(jnp.float32(fan_in))
        return jax.random.uniform(k, shape, jnp.float32, -bound, bound)

    fc_w = unif(ks[2], (_FC_K, HIDDEN_SIZ), _FC_K)             # (520, 512), (in, out)
    fc_w_pad = jnp.pad(fc_w, ((0, _FC_K_PAD - _FC_K), (0, 0))) # pad K once, at init
    w_ih = unif(ks[4], (HIDDEN_SIZ, _GATES), HIDDEN_SIZ)       # (512, 2048), (in, out)
    w_hh = unif(ks[5], (HIDDEN_SIZ, _GATES), HIDDEN_SIZ)
    b_ih = unif(ks[6], (_GATES,), HIDDEN_SIZ)
    b_hh = unif(ks[7], (_GATES,), HIDDEN_SIZ)

    return {
        # nn.Embedding default init ~ N(0, 1)
        "label_embedding": jax.random.normal(ks[0], (N_LABELS, COND_SIZ),
                                             jnp.float32),
        "input_embedding": jax.random.normal(ks[1], (N_CLASSES, HIDDEN_SIZ),
                                             jnp.float32),
        "fc_w_pad": fc_w_pad.astype(jnp.bfloat16),                  # (640, 512)
        "fc_b": unif(ks[3], (HIDDEN_SIZ,), _FC_K).reshape(1, HIDDEN_SIZ),
        "w_stack": jnp.concatenate([w_ih, w_hh], 0).astype(jnp.bfloat16),  # (1024, 2048)
        "b_lstm": (b_ih + b_hh).reshape(1, _GATES),
    }


# --------------------------------------------------------------------------
# Encoder forward (mirrors the PyTorch module's forward)
# --------------------------------------------------------------------------
def encoder_forward(params, x, hidden_state=None, cell_state=None, label=None):
    batch = x.shape[0]
    # input_embedding(x).view(SEQ_LEN, B, HIDDEN); SEQ_LEN == 1 so the single
    # LSTM step consumes the (B, HIDDEN) embedding directly.
    x_emb = jnp.take(params["input_embedding"], x.reshape(-1), axis=0)
    x_emb = x_emb.reshape(batch, HIDDEN_SIZ)

    if label is not None:
        assert hidden_state is not None
        lab = jnp.take(params["label_embedding"], label.reshape(-1), axis=0)
        lab = lab.reshape(batch, COND_SIZ)
        hcat = jnp.concatenate(
            [hidden_state.reshape(batch, HIDDEN_SIZ), lab], axis=1)
        # Zero-pad the tiny activation (B, 520) -> (B, 640); zeros contribute
        # nothing against the zero-padded weight rows.
        hcat_pad = jnp.pad(hcat, ((0, 0), (0, _FC_K_PAD - _FC_K)))
        h1, c1 = encoder_label_call(x_emb, hcat_pad, params["fc_w_pad"],
                                    params["fc_b"], params["w_stack"],
                                    params["b_lstm"])
    else:
        assert hidden_state is not None and cell_state is not None
        h1, c1 = encoder_state_call(
            x_emb, hidden_state.reshape(batch, HIDDEN_SIZ),
            cell_state.reshape(batch, HIDDEN_SIZ),
            params["w_stack"], params["b_lstm"])

    return (h1.reshape(SEQ_LEN, batch, HIDDEN_SIZ),
            c1.reshape(SEQ_LEN, batch, HIDDEN_SIZ))


def init_hidden(batch_siz):
    return jnp.zeros((SEQ_LEN, batch_siz, HIDDEN_SIZ), jnp.float32)


# --------------------------------------------------------------------------
# Pure-JAX reference (same bf16-stored params / bf16 MXU operands, f32 acc)
# --------------------------------------------------------------------------
def encoder_forward_ref(params, x, hidden_state=None, cell_state=None,
                        label=None):
    batch = x.shape[0]
    bf = lambda a: a.astype(jnp.bfloat16).astype(jnp.float32)
    fc_w = params["fc_w_pad"].astype(jnp.float32)
    w = params["w_stack"].astype(jnp.float32)

    x_emb = params["input_embedding"][x.reshape(-1)].reshape(batch, HIDDEN_SIZ)
    if label is not None:
        lab = params["label_embedding"][label.reshape(-1)].reshape(batch,
                                                                   COND_SIZ)
        hcat = jnp.concatenate(
            [hidden_state.reshape(batch, HIDDEN_SIZ), lab], axis=1)
        hcat_pad = jnp.pad(hcat, ((0, 0), (0, _FC_K_PAD - _FC_K)))
        h0 = bf(hcat_pad) @ fc_w + params["fc_b"]
        c0 = h0
    else:
        h0 = hidden_state.reshape(batch, HIDDEN_SIZ)
        c0 = cell_state.reshape(batch, HIDDEN_SIZ)

    xh = jnp.concatenate([bf(x_emb), bf(h0)], axis=1)
    gates = xh @ w + params["b_lstm"]
    H = HIDDEN_SIZ
    i = jax.nn.sigmoid(gates[:, 0 * H:1 * H])
    f = jax.nn.sigmoid(gates[:, 1 * H:2 * H])
    g = jnp.tanh(gates[:, 2 * H:3 * H])
    o = jax.nn.sigmoid(gates[:, 3 * H:4 * H])
    c1 = f * c0 + i * g
    h1 = o * jnp.tanh(c1)
    return (h1.reshape(SEQ_LEN, batch, HIDDEN_SIZ),
            c1.reshape(SEQ_LEN, batch, HIDDEN_SIZ))


# --------------------------------------------------------------------------
if __name__ == "__main__":
    key = jax.random.PRNGKey(0)
    pkey, xkey, lkey, hkey, ckey = jax.random.split(key, 5)

    params = init_params(pkey)

    B = 8
    x = jax.random.randint(xkey, (B,), 0, N_CLASSES, dtype=jnp.int32)
    label = jax.random.randint(lkey, (B,), 0, N_LABELS, dtype=jnp.int32)
    h_init = init_hidden(B)

    # Branch 1: conditioned on label (fused FC + LSTM cell, one pallas_call).
    h_out, c_out = encoder_forward(params, x, hidden_state=h_init, label=label)
    h_out, c_out = jax.block_until_ready((h_out, c_out))

    # Branch 2: explicit (hidden, cell) state (single fused LSTM-cell call).
    h_prev = jax.random.normal(hkey, (SEQ_LEN, B, HIDDEN_SIZ), jnp.float32)
    c_prev = jax.random.normal(ckey, (SEQ_LEN, B, HIDDEN_SIZ), jnp.float32)
    h_out2, c_out2 = encoder_forward(params, x, hidden_state=h_prev,
                                     cell_state=c_prev)
    h_out2, c_out2 = jax.block_until_ready((h_out2, c_out2))

    # Correctness vs pure-JAX reference (same bf16-stored weights).
    rh, rc = encoder_forward_ref(params, x, hidden_state=h_init, label=label)
    rh2, rc2 = encoder_forward_ref(params, x, hidden_state=h_prev,
                                   cell_state=c_prev)
    assert h_out.shape == (SEQ_LEN, B, HIDDEN_SIZ)
    assert c_out.shape == (SEQ_LEN, B, HIDDEN_SIZ)
    assert jnp.allclose(h_out, rh, atol=5e-3, rtol=5e-3)
    assert jnp.allclose(c_out, rc, atol=5e-3, rtol=5e-3)
    assert jnp.allclose(h_out2, rh2, atol=5e-3, rtol=5e-3)
    assert jnp.allclose(c_out2, rc2, atol=5e-3, rtol=5e-3)

    print("KERNEL_OK")
</pallas_src>

<mosaic_0001>
module attributes {stable_mosaic.version = 11 : i64} {
  func.func @_encoder_label_kernel(%arg0: memref<8x512xf32, #tpu.memory_space<vmem>>, %arg1: memref<8x640xf32, #tpu.memory_space<vmem>>, %arg2: memref<640x512xbf16, #tpu.memory_space<vmem>>, %arg3: memref<1x512xf32, #tpu.memory_space<vmem>>, %arg4: memref<1024x2048xbf16, #tpu.memory_space<vmem>>, %arg5: memref<1x2048xf32, #tpu.memory_space<vmem>>, %arg6: memref<8x512xf32, #tpu.memory_space<vmem>>, %arg7: memref<8x512xf32, #tpu.memory_space<vmem>>, %arg8: memref<8x1024xbf16, #tpu.memory_space<vmem>>) attributes {dimension_semantics = [], scalar_prefetch = 0 : i64, scratch_operands = 1 : i64, tpu.core_type = #tpu.core_type<tc>} {
    %c0 = arith.constant 0 : index
    %c0_0 = arith.constant 0 : index
    %0 = vector.load %arg1[%c0, %c0_0] : memref<8x640xf32, #tpu.memory_space<vmem>>, vector<8x640xf32>
    %1 = arith.truncf %0 : vector<8x640xf32> to vector<8x640xbf16>
    %c0_1 = arith.constant 0 : index
    %c0_2 = arith.constant 0 : index
    %2 = vector.load %arg2[%c0_1, %c0_2] : memref<640x512xbf16, #tpu.memory_space<vmem>>, vector<640x512xbf16>
    %cst = arith.constant dense<0.000000e+00> : vector<8x512xf32>
    %3 = tpu.matmul %1, %2, %cst {dimension_numbers = #tpu.dot_dimension_numbers<[1], [0], [0], [1], [0, 0, 1, 1], [], []>} : vector<8x640xbf16>, vector<640x512xbf16>, vector<8x512xf32> -> vector<8x512xf32>
    %c0_3 = arith.constant 0 : index
    %c0_4 = arith.constant 0 : index
    %4 = vector.load %arg3[%c0_3, %c0_4] : memref<1x512xf32, #tpu.memory_space<vmem>>, vector<1x512xf32>
    %5 = vector.broadcast %4 : vector<1x512xf32> to vector<8x512xf32>
    %6 = arith.addf %3, %5 : vector<8x512xf32>
    %c0_5 = arith.constant 0 : index
    %c0_6 = arith.constant 0 : index
    %7 = vector.load %arg0[%c0_5, %c0_6] : memref<8x512xf32, #tpu.memory_space<vmem>>, vector<8x512xf32>
    %8 = arith.truncf %7 : vector<8x512xf32> to vector<8x512xbf16>
    %c0_7 = arith.constant 0 : index
    %c0_8 = arith.constant 0 : index
    %9 = vector.load %arg8[%c0_7, %c0_8] : memref<8x1024xbf16, #tpu.memory_space<vmem>>, vector<8x512xbf16>
    tpu.vector_store %arg8[%c0_7, %c0_8], %8 {strides = array<i32>} : memref<8x1024xbf16, #tpu.memory_space<vmem>>, vector<8x512xbf16>,
    %10 = arith.truncf %6 : vector<8x512xf32> to vector<8x512xbf16>
    %c0_9 = arith.constant 0 : index
    %c512 = arith.constant 512 : index
    %11 = vector.load %arg8[%c0_9, %c512] : memref<8x1024xbf16, #tpu.memory_space<vmem>>, vector<8x512xbf16>
    tpu.vector_store %arg8[%c0_9, %c512], %10 {strides = array<i32>} : memref<8x1024xbf16, #tpu.memory_space<vmem>>, vector<8x512xbf16>,
    %c0_10 = arith.constant 0 : index
    %c0_11 = arith.constant 0 : index
    %12 = vector.load %arg8[%c0_10, %c0_11] : memref<8x1024xbf16, #tpu.memory_space<vmem>>, vector<8x1024xbf16>
    %c0_12 = arith.constant 0 : index
    %c0_13 = arith.constant 0 : index
    %13 = vector.load %arg4[%c0_12, %c0_13] : memref<1024x2048xbf16, #tpu.memory_space<vmem>>, vector<1024x2048xbf16>
    %cst_14 = arith.constant dense<0.000000e+00> : vector<8x2048xf32>
    %14 = tpu.matmul %12, %13, %cst_14 {dimension_numbers = #tpu.dot_dimension_numbers<[1], [0], [0], [1], [0, 0, 1, 1], [], []>} : vector<8x1024xbf16>, vector<1024x2048xbf16>, vector<8x2048xf32> -> vector<8x2048xf32>
    %c0_15 = arith.constant 0 : index
    %c0_16 = arith.constant 0 : index
    %15 = vector.load %arg5[%c0_15, %c0_16] : memref<1x2048xf32, #tpu.memory_space<vmem>>, vector<1x2048xf32>
    %16 = vector.broadcast %15 : vector<1x2048xf32> to vector<8x2048xf32>
    %17 = arith.addf %14, %16 : vector<8x2048xf32>
    %18 = vector.extract_strided_slice %17 {offsets = [0, 0], sizes = [8, 512], strides = [1, 1]} : vector<8x2048xf32> to vector<8x512xf32>
    %19 = arith.negf %18 : vector<8x512xf32>
    %20 = math.exp %19 : vector<8x512xf32>
    %cst_17 = arith.constant 1.000000e+00 : f32
    %21 = vector.broadcast %cst_17 : f32 to vector<8x512xf32>
    %22 = arith.addf %21, %20 : vector<8x512xf32>
    %23 = arith.divf %21, %22 : vector<8x512xf32>
    %24 = vector.extract_strided_slice %17 {offsets = [0, 512], sizes = [8, 512], strides = [1, 1]} : vector<8x2048xf32> to vector<8x512xf32>
    %25 = arith.negf %24 : vector<8x512xf32>
    %26 = math.exp %25 : vector<8x512xf32>
    %cst_18 = arith.constant 1.000000e+00 : f32
    %27 = vector.broadcast %cst_18 : f32 to vector<8x512xf32>
    %28 = arith.addf %27, %26 : vector<8x512xf32>
    %29 = arith.divf %27, %28 : vector<8x512xf32>
    %30 = vector.extract_strided_slice %17 {offsets = [0, 1024], sizes = [8, 512], strides = [1, 1]} : vector<8x2048xf32> to vector<8x512xf32>
    %31 = math.tanh %30 : vector<8x512xf32>
    %32 = vector.extract_strided_slice %17 {offsets = [0, 1536], sizes = [8, 512], strides = [1, 1]} : vector<8x2048xf32> to vector<8x512xf32>
    %33 = arith.negf %32 : vector<8x512xf32>
    %34 = math.exp %33 : vector<8x512xf32>
    %cst_19 = arith.constant 1.000000e+00 : f32
    %35 = vector.broadcast %cst_19 : f32 to vector<8x512xf32>
    %36 = arith.addf %35, %34 : vector<8x512xf32>
    %37 = arith.divf %35, %36 : vector<8x512xf32>
    %38 = arith.mulf %29, %6 : vector<8x512xf32>
    %39 = arith.mulf %23, %31 : vector<8x512xf32>
    %40 = arith.addf %38, %39 : vector<8x512xf32>
    %41 = math.tanh %40 : vector<8x512xf32>
    %42 = arith.mulf %37, %41 : vector<8x512xf32>
    %c0_20 = arith.constant 0 : index
    %c0_21 = arith.constant 0 : index
    %43 = vector.load %arg6[%c0_20, %c0_21] : memref<8x512xf32, #tpu.memory_space<vmem>>, vector<8x512xf32>
    tpu.vector_store %arg6[%c0_20, %c0_21], %42 {strides = array<i32>} : memref<8x512xf32, #tpu.memory_space<vmem>>, vector<8x512xf32>,
    %c0_22 = arith.constant 0 : index
    %c0_23 = arith.constant 0 : index
    %44 = vector.load %arg7[%c0_22, %c0_23] : memref<8x512xf32, #tpu.memory_space<vmem>>, vector<8x512xf32>
    tpu.vector_store %arg7[%c0_22, %c0_23], %40 {strides = array<i32>} : memref<8x512xf32, #tpu.memory_space<vmem>>, vector<8x512xf32>,
    return
  }
}

</mosaic_0001>

<bundles_post_ra>
// kernel: tpu_custom_call.1
= control target key start
LH: loop header
LB: loop body
LE: loop exit
PB: predicated region body
PF: predicated region fallthrough
CT: control target
= control target key end

     0   :  { %13 = vsyncpa [#allocation4], 0  ;;  %s16530_s0 = inlined_call_operand.hbm [shape: f32[8,512], index: 0, kind: input, shape index: {}]   ;;  %s16531_s1 = inlined_call_operand.hbm [shape: f32[8,640], index: 1, kind: input, shape index: {}]   ;;  %s16532_s2 = inlined_call_operand.hbm [shape: bf16[640,512], index: 2, kind: input, shape index: {}]   ;;  %s16533_s3 = inlined_call_operand.hbm [shape: f32[1,512], index: 3, kind: input, shape index: {}]   ;;  %s16534_s4 = inlined_call_operand.hbm [shape: bf16[1024,2048], index: 4, kind: input, shape index: {}]   ;;  %s16535_s5 = inlined_call_operand.hbm [shape: f32[1,2048], index: 5, kind: input, shape index: {}]   ;;  %s16536_s6 = inlined_call_operand.hbm [shape: f32[8,512], index: 6, kind: output, shape index: {0}]   ;;  %s16537_s7 = inlined_call_operand.hbm [shape: f32[8,512], index: 7, kind: output, shape index: {1}]  }
   0x1   :  { %14 = vsyncpa [#allocation7], 0 }
   0x2   :  { %15 = vsyncpa [#allocation10], 0 }
   0x3   :  { %16 = vsyncpa [#allocation13], 0 }
   0x4   :  { %17 = vsyncpa [#allocation5], 0  ;;  %s35_s26 = sshll.u32 %s16531_s1, 4  ;;  %s36_s26 = int_to_ptr.hbm [resolvable:$true] %s35_s26 }
   0x5   :  { %18 = vsyncpa [#allocation16], 0  ;;  %s15757_s27 = smov [#allocation6]   ;;  %s59_s8 = sshll.u32 %s16533_s3, 4  ;;  %s60_s8 = int_to_ptr.hbm [resolvable:$true] %s59_s8 }
   0x6   :  { %s37_s28 = sshll.u32 %s15757_s27, 4  ;;  %s15758_s9 = smov [#allocation9]   ;;  %s38_s28 = int_to_ptr.vmem [resolvable:$true] %s37_s28 }
   0x7   :  { %40 = dma.hbm_to_vmem [thread:$0]  %s36_s26, 640, %s38_s28, [#allocation7]  }
   0x8   :  { %s61_s10 = sshll.u32 %s15758_s9, 4  ;;  %s24_s13 = sshll.u32 %s16530_s0, 4  ;;  %s62_s10 = int_to_ptr.vmem [resolvable:$true] %s61_s10  ;;  %s25_s13 = int_to_ptr.hbm [resolvable:$true] %s24_s13 }
   0x9   :  { %64 = dma.hbm_to_vmem [thread:$0]  %s60_s8, 64, %s62_s10, [#allocation10]  }
   0xa   :  { %s45_s15 = sshll.u32 %s16532_s2, 4  ;;  %s15759_s16 = smov [#allocation3]   ;;  %s46_s15 = int_to_ptr.hbm [resolvable:$true] %s45_s15 }
   0xb   :  { %s26_s17 = sshll.u32 %s15759_s16, 4  ;;  %s15760_s3 = smov [#allocation8]   ;;  %s27_s17 = int_to_ptr.vmem [resolvable:$true] %s26_s17 }
   0xc   :  { %29 = dma.hbm_to_vmem [thread:$0]  %s25_s13, 512, %s27_s17, [#allocation4]  }
   0xd   :  { %s47_s18 = sshll.u32 %s15760_s3, 4  ;;  %s15761_s19 = smov 256   ;;  %s48_s18 = int_to_ptr.vmem [resolvable:$true] %s47_s18 }
   0xe   :  { %s15762_s20 = smov 16   ;;  %s69_s22 = sshll.u32 %s16534_s4, 4  ;;  %s70_s22 = int_to_ptr.hbm [resolvable:$true] %s69_s22 }
   0xf   :  { %53 = dma.hbm_to_vmem [thread:$0]  %s46_s15, 20480, %s48_s18, [#allocation7], %s15761_s19, %s15761_s19, %s15762_s20  }
  0x10   :  { %s15763_s23 = smov [#allocation11]   ;;  %s83_s26 = sshll.u32 %s16535_s5, 4  ;;  %s84_s26 = int_to_ptr.hbm [resolvable:$true] %s83_s26 }
  0x11   :  { %s71_s24 = sshll.u32 %s15763_s23, 4  ;;  %s15764_s27 = smov 1024   ;;  %s72_s24 = int_to_ptr.vmem [resolvable:$true] %s71_s24 }
  0x12   :  { %s15765_s28 = smov 64   ;;  %s15766_s29 = smov [#allocation12]  }
  0x13   :  { %77 = dma.hbm_to_vmem [thread:$0]  %s70_s22, 131072, %s72_s24, [#allocation10], %s15764_s27, %s15764_s27, %s15765_s28  }
  0x14   :  { %s85_s30 = sshll.u32 %s15766_s29, 4  ;;  %s86_s30 = int_to_ptr.vmem [resolvable:$true] %s85_s30 }
  0x15   :  { %88 = dma.hbm_to_vmem [thread:$0]  %s84_s26, 256, %s86_s30, [#allocation13]  }
  0x16   :  { %15745 = dma.done.wait [#allocation4], 512  }
  0x17   :  { %15746 = vsyncadd [#allocation4], 4294966784 }
  0x18   :  { %15747 = dma.done.wait [#allocation7], 21120  }
  0x19   :  { %15748 = vsyncadd [#allocation7], 4294946176 }
  0x1a   :  { %15749 = dma.done.wait [#allocation10], 131136  }
  0x1b   :  { %15750 = vsyncadd [#allocation10], 4294836160 }
  0x1c   :  { %15751 = dma.done.wait [#allocation13], 256  }
  0x1d   :  { %15752 = vsyncadd [#allocation13], 4294967040  ;;  %v9651_v0 = vld [vmem:[#allocation8 + $0xe0] sm:$0xf]  ;;  %v14315_v1 = vld [vmem:[#allocation8 + $0xec] sm:$0xf0] }
  0x1e   :  { %v9779_v2 = vld [vmem:[#allocation8 + $0x1e0] sm:$0xf]  ;;  %v9652_v3 = vor.u32 %v14315_v1, %v9651_v0  ;;  %v14347_v4 = vld [vmem:[#allocation8 + $0x1ec] sm:$0xf0]  ;;  %s15767_s4 = smov [#allocation15]   ;;  %s9519_s10 = sshll.u32 %s16537_s7, 4  ;;  %s9520_s10 = int_to_ptr.hbm [resolvable:$true] %s9519_s10 }
  0x1f   :  { %v9907_v5 = vld [vmem:[#allocation8 + $0x2e0] sm:$0xf]  ;;  %v14379_v6 = vld [vmem:[#allocation8 + $0x2ec] sm:$0xf0]  ;;  %v9780_v7 = vor.u32 %v14347_v4, %v9779_v2  ;;  %s9517_s5 = sshll.u32 %s15767_s4, 4  ;;  %s15768_s7 = smov [#allocation14]   ;;  %s9518_s5 = int_to_ptr.vmem [resolvable:$true] %s9517_s5 }
  0x20   :  { %v9908_v8 = vor.u32 %v14379_v6, %v9907_v5  ;;  %v10035_v9 = vld [vmem:[#allocation8 + $0x3e0] sm:$0xf]  ;;  %v14411_v10 = vld [vmem:[#allocation8 + $0x3ec] sm:$0xf0]  ;;  %1093 = vmatpush.bf16.msra.mxu0 %v9652_v3  ;;  %s9506_s11 = sshll.u32 %s15768_s7, 4  ;;  %s9508_s1 = sshll.u32 %s16536_s6, 4  ;;  %s9507_s11 = int_to_ptr.vmem [resolvable:$true] %s9506_s11  ;;  %s9509_s1 = int_to_ptr.hbm [resolvable:$true] %s9508_s1 }
  0x21   :  { %v9635_v11 = vld [vmem:[#allocation8 + $0xc0] sm:$0xf]  ;;  %v10036_v12 = vor.u32 %v14411_v10, %v10035_v9  ;;  %v14311_v13 = vld [vmem:[#allocation8 + $0xcc] sm:$0xf0]  ;;  %1106 = vmatpush.bf16.msra.mxu1 %v9780_v7 }
  0x22   :  { %v9763_v14 = vld [vmem:[#allocation8 + $0x1c0] sm:$0xf]  ;;  %v14343_v15 = vld [vmem:[#allocation8 + $0x1cc] sm:$0xf0]  ;;  %1119 = vmatpush.bf16.msra.mxu2 %v9908_v8  ;;  %v9636_v16 = vor.u32 %v14311_v13, %v9635_v11 }
  0x23   :  { %v9764_v17 = vor.u32 %v14343_v15, %v9763_v14  ;;  %v9891_v18 = vld [vmem:[#allocation8 + $0x2c0] sm:$0xf]  ;;  %v14375_v19 = vld [vmem:[#allocation8 + $0x2cc] sm:$0xf0]  ;;  %1132 = vmatpush.bf16.msra.mxu3 %v10036_v12 }
  0x24   :  { %v10019_v20 = vld [vmem:[#allocation8 + $0x3c0] sm:$0xf]  ;;  %v9892_v21 = vor.u32 %v14375_v19, %v9891_v18  ;;  %v14407_v22 = vld [vmem:[#allocation8 + $0x3cc] sm:$0xf0]  ;;  %1094 = vmatpush.bf16.msra.mxu0 %v9636_v16 }
  0x25   :  { %v9619_v23 = vld [vmem:[#allocation8 + $0xa0] sm:$0xf]  ;;  %v14307_v24 = vld [vmem:[#allocation8 + $0xac] sm:$0xf0]  ;;  %v10020_v25 = vor.u32 %v14407_v22, %v10019_v20  ;;  %1107 = vmatpush.bf16.msra.mxu1 %v9764_v17 }
  0x26   :  { %v9747_v26 = vld [vmem:[#allocation8 + $0x1a0] sm:$0xf]  ;;  %v14339_v27 = vld [vmem:[#allocation8 + $0x1ac] sm:$0xf0]  ;;  %v9620_v29 = vor.u32 %v14307_v24, %v9619_v23  ;;  %1120 = vmatpush.bf16.msra.mxu2 %v9892_v21 }
  0x27   :  { %v9875_v28 = vld [vmem:[#allocation8 + $0x2a0] sm:$0xf]  ;;  %v14371_v30 = vld [vmem:[#allocation8 + $0x2ac] sm:$0xf0]  ;;  %v9748_v33 = vor.u32 %v14339_v27, %v9747_v26  ;;  %1133 = vmatpush.bf16.msra.mxu3 %v10020_v25 }
  0x28   :  { %v10003_v31 = vld [vmem:[#allocation8 + $0x3a0] sm:$0xf]  ;;  %v14403_v32 = vld [vmem:[#allocation8 + $0x3ac] sm:$0xf0]  ;;  %v9876_v34 = vor.u32 %v14371_v30, %v9875_v28  ;;  %1095 = vmatpush.bf16.msra.mxu0 %v9620_v29  ;;  %v14313_v30 = vld [vmem:[#allocation8 + $0xe4] sm:$0xf] }
  0x29   :  { %v9603_v35 = vld [vmem:[#allocation8 + $0x80] sm:$0xf]  ;;  %v14303_v36 = vld [vmem:[#allocation8 + $0x8c] sm:$0xf0]  ;;  %v10004_v38 = vor.u32 %v14403_v32, %v10003_v31  ;;  %1108 = vmatpush.bf16.msra.mxu1 %v9748_v33  ;;  %v9653_v32 = vld [vmem:[#allocation8 + $0xf0] sm:$0xf0] }
  0x2a   :  { %v9731_v37 = vld [vmem:[#allocation8 + $0x180] sm:$0xf]  ;;  %v14335_v39 = vld [vmem:[#allocation8 + $0x18c] sm:$0xf0]  ;;  %v9604_v44 = vor.u32 %v14303_v36, %v9603_v35  ;;  %1121 = vmatpush.bf16.msra.mxu2 %v9876_v34  ;;  %v14345_v33 = vld [vmem:[#allocation8 + $0x1e4] sm:$0xf] }
  0x2b   :  { %v9859_v40 = vld [vmem:[#allocation8 + $0x280] sm:$0xf]  ;;  %v14367_v41 = vld [vmem:[#allocation8 + $0x28c] sm:$0xf0]  ;;  %v9732_v45 = vor.u32 %v14335_v39, %v9731_v37  ;;  %1134 = vmatpush.bf16.msra.mxu3 %v10004_v38  ;;  %v9781_v34 = vld [vmem:[#allocation8 + $0x1f0] sm:$0xf0] }
  0x2c   :  { %v9987_v42 = vld [vmem:[#allocation8 + $0x380] sm:$0xf]  ;;  %v14399_v43 = vld [vmem:[#allocation8 + $0x38c] sm:$0xf0]  ;;  %v9860_v46 = vor.u32 %v14367_v41, %v9859_v40  ;;  %1096 = vmatpush.bf16.msra.mxu0 %v9604_v44  ;;  %v14377_v37 = vld [vmem:[#allocation8 + $0x2e4] sm:$0xf]  ;;  %v9656_v41 = vor.u32 %v14313_v30, %v9653_v32 }
  0x2d   :  { %v9587_v47 = vld [vmem:[#allocation8 + $0x60] sm:$0xf]  ;;  %v14299_v48 = vld [vmem:[#allocation8 + $0x6c] sm:$0xf0]  ;;  %v9988_v50 = vor.u32 %v14399_v43, %v9987_v42  ;;  %1109 = vmatpush.bf16.msra.mxu1 %v9732_v45  ;;  %v9909_v38 = vld [vmem:[#allocation8 + $0x2f0] sm:$0xf0]  ;;  %v9784_v42 = vor.u32 %v14345_v33, %v9781_v34 }
  0x2e   :  { %v9715_v49 = vld [vmem:[#allocation8 + $0x160] sm:$0xf]  ;;  %v14331_v51 = vld [vmem:[#allocation8 + $0x16c] sm:$0xf0]  ;;  %v9588_v56 = vor.u32 %v14299_v48, %v9587_v47  ;;  %1122 = vmatpush.bf16.msra.mxu2 %v9860_v46  ;;  %v14309_v45 = vld [vmem:[#allocation8 + $0xc4] sm:$0xf]  ;;  %v9912_v46 = vor.u32 %v14377_v37, %v9909_v38 }
  0x2f   :  { %v9843_v52 = vld [vmem:[#allocation8 + $0x260] sm:$0xf]  ;;  %v14363_v53 = vld [vmem:[#allocation8 + $0x26c] sm:$0xf0]  ;;  %v9716_v57 = vor.u32 %v14331_v51, %v9715_v49  ;;  %1135 = vmatpush.bf16.msra.mxu3 %v9988_v50  ;;  %v9637_v47 = vld [vmem:[#allocation8 + $0xd0] sm:$0xf0] }
  0x30   :  { %v9971_v54 = vld [vmem:[#allocation8 + $0x360] sm:$0xf]  ;;  %v14395_v55 = vld [vmem:[#allocation8 + $0x36c] sm:$0xf0]  ;;  %v9844_v58 = vor.u32 %v14363_v53, %v9843_v52  ;;  %1097 = vmatpush.bf16.msra.mxu0 %v9588_v56  ;;  %v14341_v48 = vld [vmem:[#allocation8 + $0x1c4] sm:$0xf] }
  0x31   :  { %v9571_v59 = vld [vmem:[#allocation8 + $0x40] sm:$0xf]  ;;  %v14295_v60 = vld [vmem:[#allocation8 + $0x4c] sm:$0xf0]  ;;  %v9972_v62 = vor.u32 %v14395_v55, %v9971_v54  ;;  %1110 = vmatpush.bf16.msra.mxu1 %v9716_v57  ;;  %v9765_v49 = vld [vmem:[#allocation8 + $0x1d0] sm:$0xf0]  ;;  %v9640_v54 = vor.u32 %v14309_v45, %v9637_v47 }
  0x32   :  { %v9699_v61 = vld [vmem:[#allocation8 + $0x140] sm:$0xf]  ;;  %v14327_v63 = vld [vmem:[#allocation8 + $0x14c] sm:$0xf0]  ;;  %v9572_v4 = vor.u32 %v14295_v60, %v9571_v59  ;;  %1123 = vmatpush.bf16.msra.mxu2 %v9844_v58  ;;  %v14373_v50 = vld [vmem:[#allocation8 + $0x2c4] sm:$0xf]  ;;  %v9768_v55 = vor.u32 %v14341_v48, %v9765_v49 }
  0x33   :  { %v9827_v0 = vld [vmem:[#allocation8 + $0x240] sm:$0xf]  ;;  %v14359_v1 = vld [vmem:[#allocation8 + $0x24c] sm:$0xf0]  ;;  %v9700_v5 = vor.u32 %v14327_v63, %v9699_v61  ;;  %1136 = vmatpush.bf16.msra.mxu3 %v9972_v62  ;;  %v9893_v51 = vld [vmem:[#allocation8 + $0x2d0] sm:$0xf0] }
  0x34   :  { %v9955_v2 = vld [vmem:[#allocation8 + $0x340] sm:$0xf]  ;;  %v14391_v3 = vld [vmem:[#allocation8 + $0x34c] sm:$0xf0]  ;;  %v9828_v6 = vor.u32 %v14359_v1, %v9827_v0  ;;  %1098 = vmatpush.bf16.msra.mxu0 %v9572_v4  ;;  %v14305_v57 = vld [vmem:[#allocation8 + $0xa4] sm:$0xf]  ;;  %v9896_v59 = vor.u32 %v14373_v50, %v9893_v51 }
  0x35   :  { %v9555_v7 = vld [vmem:[#allocation8 + $0x20] sm:$0xf]  ;;  %v14291_v8 = vld [vmem:[#allocation8 + $0x2c] sm:$0xf0]  ;;  %v9956_v10 = vor.u32 %v14391_v3, %v9955_v2  ;;  %1111 = vmatpush.bf16.msra.mxu1 %v9700_v5  ;;  %v9621_v58 = vld [vmem:[#allocation8 + $0xb0] sm:$0xf0] }
  0x36   :  { %v9683_v9 = vld [vmem:[#allocation8 + $0x120] sm:$0xf]  ;;  %v14323_v11 = vld [vmem:[#allocation8 + $0x12c] sm:$0xf0]  ;;  %v9556_v16 = vor.u32 %v14291_v8, %v9555_v7  ;;  %1124 = vmatpush.bf16.msra.mxu2 %v9828_v6  ;;  %v14337_v60 = vld [vmem:[#allocation8 + $0x1a4] sm:$0xf]  ;;  %v9624_v1 = vor.u32 %v14305_v57, %v9621_v58 }
  0x37   :  { %v9811_v12 = vld [vmem:[#allocation8 + $0x220] sm:$0xf]  ;;  %v14355_v13 = vld [vmem:[#allocation8 + $0x22c] sm:$0xf0]  ;;  %v9684_v19 = vor.u32 %v14323_v11, %v9683_v9  ;;  %1137 = vmatpush.bf16.msra.mxu3 %v9956_v10  ;;  %v9749_v61 = vld [vmem:[#allocation8 + $0x1b0] sm:$0xf0] }
  0x38   :  { %v9939_v14 = vld [vmem:[#allocation8 + $0x320] sm:$0xf]  ;;  %v14387_v15 = vld [vmem:[#allocation8 + $0x32c] sm:$0xf0]  ;;  %v9812_v20 = vor.u32 %v14355_v13, %v9811_v12  ;;  %1099 = vmatpush.bf16.msra.mxu0 %v9556_v16  ;;  %v14369_v62 = vld [vmem:[#allocation8 + $0x2a4] sm:$0xf]  ;;  %v9752_v5 = vor.u32 %v14337_v60, %v9749_v61 }
  0x39   :  { %v9539_v17 = vld [vmem:[#allocation8] sm:$0xf]  ;;  %v14287_v18 = vld [vmem:[#allocation8 + $0xc] sm:$0xf0]  ;;  %v9940_v24 = vor.u32 %v14387_v15, %v9939_v14  ;;  %1112 = vmatpush.bf16.msra.mxu1 %v9684_v19  ;;  %v9877_v63 = vld [vmem:[#allocation8 + $0x2b0] sm:$0xf0] }
  0x3a   :  { %v9667_v21 = vld [vmem:[#allocation8 + $0x100] sm:$0xf]  ;;  %v14319_v22 = vld [vmem:[#allocation8 + $0x10c] sm:$0xf0]  ;;  %v9540_v31 = vor.u32 %v14287_v18, %v9539_v17  ;;  %1125 = vmatpush.bf16.msra.mxu2 %v9812_v20  ;;  %v115_v3 = vld [vmem:[#allocation6 + $0x10] sm:$0xff]  ;;  %v9880_v11 = vor.u32 %v14369_v62, %v9877_v63 }
  0x3b   :  { %v9795_v23 = vld [vmem:[#allocation8 + $0x200] sm:$0xf]  ;;  %v14351_v25 = vld [vmem:[#allocation8 + $0x20c] sm:$0xf0]  ;;  %v9668_v35 = vor.u32 %v14319_v22, %v9667_v21  ;;  %1138 = vmatpush.bf16.msra.mxu3 %v9940_v24  ;;  %v113_v4 = vld [vmem:[#allocation6] sm:$0xff]  ;;  %v15827_v8 = vpack.c.bf16 %v115_v3, %v115_v3 }
  0x3c   :  { %v9923_v26 = vld [vmem:[#allocation8 + $0x300] sm:$0xf]  ;;  %v14383_v27 = vld [vmem:[#allocation8 + $0x30c] sm:$0xf0]  ;;  %v9796_v36 = vor.u32 %v14351_v25, %v9795_v23  ;;  %1100 = vmatpush.bf16.msra.mxu0 %v9540_v31  ;;  %v14301_v7 = vld [vmem:[#allocation8 + $0x84] sm:$0xf]  ;;  %v15829_v9 = vpack.c.bf16 %v113_v4, %v113_v4 }
  0x3d   :  { %v10163_v28 = vld [vmem:[#allocation8 + $0x4e0] sm:$0xf]  ;;  %v14443_v29 = vld [vmem:[#allocation8 + $0x4ec] sm:$0xf0]  ;;  %v9924_v39 = vor.u32 %v14383_v27, %v9923_v26  ;;  %1113 = vmatpush.bf16.msra.mxu1 %v9668_v35  ;;  %v9605_v12 = vld [vmem:[#allocation8 + $0x90] sm:$0xf0] }
  0x3e   :  { %v10164_v40 = vor.u32 %v14443_v29, %v10163_v28  ;;  %v10147_v43 = vld [vmem:[#allocation8 + $0x4c0] sm:$0xf]  ;;  %v14439_v44 = vld [vmem:[#allocation8 + $0x4cc] sm:$0xf0]  ;;  %1126 = vmatpush.bf16.msra.mxu2 %v9796_v36  ;;  %v14333_v13 = vld [vmem:[#allocation8 + $0x184] sm:$0xf]  ;;  %v9608_v20 = vor.u32 %v14301_v7, %v9605_v12 }
  0x3f   :  { %1139 = vmatpush.bf16.msra.mxu3 %v9924_v39  ;;  %v10148_v52 = vor.u32 %v14439_v44, %v10147_v43  ;;  %v10131_v53 = vld [vmem:[#allocation8 + $0x4a0] sm:$0xf]  ;;  %v14435_v56 = vld [vmem:[#allocation8 + $0x4ac] sm:$0xf0]  ;;  %v9733_v14 = vld [vmem:[#allocation8 + $0x190] sm:$0xf0]  ;;  %1101 = vmatmul.bf16.vlgmr.msra.gmra.mxu0 %v15829_v9 }
  0x40   :  { %1145 = vmatpush.bf16.msrb.mxu0 %v10164_v40  ;;  %v10132_v0 = vor.u32 %v14435_v56, %v10131_v53  ;;  %v10115_v2 = vld [vmem:[#allocation8 + $0x480] sm:$0xf]  ;;  %v14431_v6 = vld [vmem:[#allocation8 + $0x48c] sm:$0xf0]  ;;  %v14365_v16 = vld [vmem:[#allocation8 + $0x284] sm:$0xf]  ;;  %v9736_v21 = vor.u32 %v14333_v13, %v9733_v14 }
  0x41   :  { %1158 = vmatpush.bf16.msrb.mxu1 %v9656_v41  ;;  %v116_v10 = vld [vmem:[#allocation6 + $0x18] sm:$0xff]  ;;  %1127 = vmatmul.bf16.vlgmr.msra.gmra.mxu2 %v15827_v8  ;;  %v10116_v18 = vor.u32 %v14431_v6, %v10115_v2  ;;  %v114_v19 = vld [vmem:[#allocation6 + $0x8] sm:$0xff]  ;;  %v14316_v12 = vld [vmem:[#allocation8 + $0xf4] sm:$0xf0] }
  0x42   :  { %1171 = vmatpush.bf16.msrb.mxu2 %v9784_v42  ;;  %v15831_v15 = vpack.c.bf16 %v116_v10, %v116_v10  ;;  %v9861_v17 = vld [vmem:[#allocation8 + $0x290] sm:$0xf0]  ;;  %v10099_v22 = vld [vmem:[#allocation8 + $0x460] sm:$0xf]  ;;  %v14427_v23 = vld [vmem:[#allocation8 + $0x46c] sm:$0xf0]  ;;  %v15836_v25 = vpack.c.bf16 %v114_v19, %v114_v19 }
  0x43   :  { %1184 = vmatpush.bf16.msrb.mxu3 %v9912_v46  ;;  %v14297_v24 = vld [vmem:[#allocation8 + $0x64] sm:$0xf]  ;;  %v9864_v26 = vor.u32 %v14365_v16, %v9861_v17  ;;  %v9589_v27 = vld [vmem:[#allocation8 + $0x70] sm:$0xf0]  ;;  %v10100_v32 = vor.u32 %v14427_v23, %v10099_v22  ;;  %v10083_v35 = vld [vmem:[#allocation8 + $0x440] sm:$0xf] }
  0x44   :  { %1146 = vmatpush.bf16.msrb.mxu0 %v10148_v52  ;;  %1140 = vmatmul.bf16.vlgmr.msra.gmra.mxu3 %v15831_v15  ;;  %v14329_v28 = vld [vmem:[#allocation8 + $0x164] sm:$0xf]  ;;  %v9717_v29 = vld [vmem:[#allocation8 + $0x170] sm:$0xf0]  ;;  %v9592_v33 = vor.u32 %v14297_v24, %v9589_v27  ;;  %v14423_v36 = vld [vmem:[#allocation8 + $0x44c] sm:$0xf0] }
  0x45   :  { %1159 = vmatpush.bf16.msrb.mxu1 %v9640_v54  ;;  %v14361_v30 = vld [vmem:[#allocation8 + $0x264] sm:$0xf]  ;;  %v9845_v31 = vld [vmem:[#allocation8 + $0x270] sm:$0xf0]  ;;  %v9720_v34 = vor.u32 %v14329_v28, %v9717_v29  ;;  %v10084_v44 = vor.u32 %v14423_v36, %v10083_v35  ;;  %v10067_v47 = vld [vmem:[#allocation8 + $0x420] sm:$0xf] }
  0x46   :  { %1172 = vmatpush.bf16.msrb.mxu2 %v9768_v55  ;;  %1114 = vmatmul.bf16.vlgmr.msra.gmra.mxu1 %v15836_v25  ;;  %v14293_v37 = vld [vmem:[#allocation8 + $0x44] sm:$0xf]  ;;  %v9848_v38 = vor.u32 %v14361_v30, %v9845_v31  ;;  %v9573_v39 = vld [vmem:[#allocation8 + $0x50] sm:$0xf0]  ;;  %v14419_v48 = vld [vmem:[#allocation8 + $0x42c] sm:$0xf0] }
  0x47   :  { %1185 = vmatpush.bf16.msrb.mxu3 %v9896_v59  ;;  %v14325_v40 = vld [vmem:[#allocation8 + $0x144] sm:$0xf]  ;;  %v9701_v41 = vld [vmem:[#allocation8 + $0x150] sm:$0xf0]  ;;  %v9576_v45 = vor.u32 %v14293_v37, %v9573_v39  ;;  %v10068_v56 = vor.u32 %v14419_v48, %v10067_v47  ;;  %v10051_v57 = vld [vmem:[#allocation8 + $0x400] sm:$0xf] }
  0x48   :  { %1147 = vmatpush.bf16.msrb.mxu0 %v10132_v0  ;;  %v14357_v42 = vld [vmem:[#allocation8 + $0x244] sm:$0xf]  ;;  %v9829_v43 = vld [vmem:[#allocation8 + $0x250] sm:$0xf0]  ;;  %v9704_v46 = vor.u32 %v14325_v40, %v9701_v41  ;;  %v14415_v58 = vld [vmem:[#allocation8 + $0x40c] sm:$0xf0] }
  0x49   :  { %1160 = vmatpush.bf16.msrb.mxu1 %v9624_v1  ;;  %v14289_v49 = vld [vmem:[#allocation8 + $0x24] sm:$0xf]  ;;  %v9832_v50 = vor.u32 %v14357_v42, %v9829_v43  ;;  %v9557_v51 = vld [vmem:[#allocation8 + $0x30] sm:$0xf0]  ;;  %v10052_v7 = vor.u32 %v14415_v58, %v10051_v57  ;;  %v9787_v16 = vld [vmem:[#allocation8 + $0x1e8] sm:$0xf] }
  0x4a   :  { %1173 = vmatpush.bf16.msrb.mxu2 %v9752_v5  ;;  %v14321_v52 = vld [vmem:[#allocation8 + $0x124] sm:$0xf]  ;;  %v9685_v53 = vld [vmem:[#allocation8 + $0x130] sm:$0xf0]  ;;  %v9560_v59 = vor.u32 %v14289_v49, %v9557_v51  ;;  %v14348_v17 = vld [vmem:[#allocation8 + $0x1f4] sm:$0xf0] }
  0x4b   :  { %1186 = vmatpush.bf16.msrb.mxu3 %v9880_v11  ;;  %v14353_v54 = vld [vmem:[#allocation8 + $0x224] sm:$0xf]  ;;  %v9813_v55 = vld [vmem:[#allocation8 + $0x230] sm:$0xf0]  ;;  %v9688_v60 = vor.u32 %v14321_v52, %v9685_v53  ;;  %v9659_v11 = vld [vmem:[#allocation8 + $0xe8] sm:$0xf]  ;;  %v9788_v27 = vor.u32 %v14348_v17, %v9787_v16 }
  0x4c   :  { %1148 = vmatpush.bf16.msrb.mxu0 %v10116_v18  ;;  %v14285_v61 = vld [vmem:[#allocation8 + $0x4] sm:$0xf]  ;;  %v9541_v62 = vld [vmem:[#allocation8 + $0x10] sm:$0xf0]  ;;  %v9816_v0 = vor.u32 %v14353_v54, %v9813_v55  ;;  %v117_v18 = vld [vmem:[#allocation6 + $0x20] sm:$0xff]  ;;  %v9660_v22 = vor.u32 %v14316_v12, %v9659_v11 }
  0x4d   :  { %1161 = vmatpush.bf16.msrb.mxu1 %v9608_v20  ;;  %v14317_v63 = vld [vmem:[#allocation8 + $0x104] sm:$0xf]  ;;  %v9669_v1 = vld [vmem:[#allocation8 + $0x110] sm:$0xf0]  ;;  %v9544_v13 = vor.u32 %v14285_v61, %v9541_v62  ;;  %v9643_v29 = vld [vmem:[#allocation8 + $0xc8] sm:$0xf]  ;;  %v15839_v31 = vpack.c.bf16 %v117_v18, %v117_v18 }
  0x4e   :  { %1174 = vmatpush.bf16.msrb.mxu2 %v9736_v21  ;;  %v14349_v2 = vld [vmem:[#allocation8 + $0x204] sm:$0xf]  ;;  %v9797_v3 = vld [vmem:[#allocation8 + $0x210] sm:$0xf0]  ;;  %v9672_v14 = vor.u32 %v14317_v63, %v9669_v1  ;;  %v14312_v30 = vld [vmem:[#allocation8 + $0xd4] sm:$0xf0] }
  0x4f   :  { %1187 = vmatpush.bf16.msrb.mxu3 %v9864_v26  ;;  %v14409_v4 = vld [vmem:[#allocation8 + $0x3e4] sm:$0xf]  ;;  %v10037_v5 = vld [vmem:[#allocation8 + $0x3f0] sm:$0xf0]  ;;  %v9800_v19 = vor.u32 %v14349_v2, %v9797_v3  ;;  %v9644_v36 = vor.u32 %v14312_v30, %v9643_v29  ;;  %v9627_v42 = vld [vmem:[#allocation8 + $0xa8] sm:$0xf] }
  0x50   :  { %1149 = vmatpush.bf16.msrb.mxu0 %v10100_v32  ;;  %v14441_v6 = vld [vmem:[#allocation8 + $0x4e4] sm:$0xf]  ;;  %v10165_v10 = vld [vmem:[#allocation8 + $0x4f0] sm:$0xf0]  ;;  %v10040_v20 = vor.u32 %v14409_v4, %v10037_v5  ;;  %v9771_v32 = vld [vmem:[#allocation8 + $0x1c8] sm:$0xf] }
  0x51   :  { %1162 = vmatpush.bf16.msrb.mxu1 %v9592_v33  ;;  %v10168_v21 = vor.u32 %v14441_v6, %v10165_v10  ;;  %v14405_v23 = vld [vmem:[#allocation8 + $0x3c4] sm:$0xf]  ;;  %v10021_v24 = vld [vmem:[#allocation8 + $0x3d0] sm:$0xf0]  ;;  %v14344_v33 = vld [vmem:[#allocation8 + $0x1d4] sm:$0xf0] }
  0x52   :  { %1175 = vmatpush.bf16.msrb.mxu2 %v9720_v34  ;;  %v14437_v26 = vld [vmem:[#allocation8 + $0x4c4] sm:$0xf]  ;;  %v10149_v28 = vld [vmem:[#allocation8 + $0x4d0] sm:$0xf0]  ;;  %v10024_v34 = vor.u32 %v14405_v23, %v10021_v24  ;;  %v9772_v40 = vor.u32 %v14344_v33, %v9771_v32  ;;  %v14308_v43 = vld [vmem:[#allocation8 + $0xb4] sm:$0xf0] }
  0x53   :  { %1188 = vmatpush.bf16.msrb.mxu3 %v9848_v38  ;;  %v10152_v35 = vor.u32 %v14437_v26, %v10149_v28  ;;  %v14401_v37 = vld [vmem:[#allocation8 + $0x3a4] sm:$0xf]  ;;  %v10005_v38 = vld [vmem:[#allocation8 + $0x3b0] sm:$0xf0]  ;;  %v9628_v48 = vor.u32 %v14308_v43, %v9627_v42  ;;  %v9611_v54 = vld [vmem:[#allocation8 + $0x88] sm:$0xf] }
  0x54   :  { %1150 = vmatpush.bf16.msrb.mxu0 %v10084_v44  ;;  %v14433_v39 = vld [vmem:[#allocation8 + $0x4a4] sm:$0xf]  ;;  %v10133_v41 = vld [vmem:[#allocation8 + $0x4b0] sm:$0xf0]  ;;  %v9755_v44 = vld [vmem:[#allocation8 + $0x1a8] sm:$0xf] }
  0x55   :  { %1163 = vmatpush.bf16.msrb.mxu1 %v9576_v45  ;;  %v14340_v45 = vld [vmem:[#allocation8 + $0x1b4] sm:$0xf0]  ;;  %v10136_v47 = vor.u32 %v14433_v39, %v10133_v41  ;;  %v14397_v49 = vld [vmem:[#allocation8 + $0x384] sm:$0xf]  ;;  %v10117_v53 = vld [vmem:[#allocation8 + $0x490] sm:$0xf0] }
  0x56   :  { %1176 = vmatpush.bf16.msrb.mxu2 %v9704_v46  ;;  %v10008_v46 = vor.u32 %v14401_v37, %v10005_v38  ;;  %v14429_v51 = vld [vmem:[#allocation8 + $0x484] sm:$0xf]  ;;  %v9756_v52 = vor.u32 %v14340_v45, %v9755_v44  ;;  %v14304_v55 = vld [vmem:[#allocation8 + $0x94] sm:$0xf0]  ;;  %v9973_v62 = vld [vmem:[#allocation8 + $0x370] sm:$0xf0] }
  0x57   :  { %1189 = vmatpush.bf16.msrb.mxu3 %v9832_v50  ;;  %v9989_v50 = vld [vmem:[#allocation8 + $0x390] sm:$0xf0]  ;;  %v14336_v57 = vld [vmem:[#allocation8 + $0x194] sm:$0xf0]  ;;  %v14393_v61 = vld [vmem:[#allocation8 + $0x364] sm:$0xf] }
  0x58   :  { %1151 = vmatpush.bf16.msrb.mxu0 %v10068_v56  ;;  %v9739_v56 = vld [vmem:[#allocation8 + $0x188] sm:$0xf]  ;;  %v9992_v58 = vor.u32 %v14397_v49, %v9989_v50  ;;  %v14425_v63 = vld [vmem:[#allocation8 + $0x464] sm:$0xf]  ;;  %v10101_v1 = vld [vmem:[#allocation8 + $0x470] sm:$0xf0]  ;;  %v9976_v6 = vor.u32 %v14393_v61, %v9973_v62 }
  0x59   :  { %1164 = vmatpush.bf16.msrb.mxu1 %v9560_v59  ;;  %v10120_v59 = vor.u32 %v14429_v51, %v10117_v53  ;;  %v9595_v2 = vld [vmem:[#allocation8 + $0x68] sm:$0xf]  ;;  %v14300_v3 = vld [vmem:[#allocation8 + $0x74] sm:$0xf0]  ;;  %v14389_v11 = vld [vmem:[#allocation8 + $0x344] sm:$0xf] }
  0x5a   :  { %1177 = vmatpush.bf16.msrb.mxu2 %v9688_v60  ;;  %v9612_v60 = vor.u32 %v14304_v55, %v9611_v54  ;;  %v9723_v4 = vld [vmem:[#allocation8 + $0x168] sm:$0xf]  ;;  %v14332_v5 = vld [vmem:[#allocation8 + $0x174] sm:$0xf0]  ;;  %v9596_v10 = vor.u32 %v14300_v3, %v9595_v2  ;;  %v9957_v12 = vld [vmem:[#allocation8 + $0x350] sm:$0xf0] }
  0x5b   :  { %1190 = vmatpush.bf16.msrb.mxu3 %v9816_v0  ;;  %v9740_v0 = vor.u32 %v14336_v57, %v9739_v56  ;;  %v10085_v16 = vld [vmem:[#allocation8 + $0x450] sm:$0xf0]  ;;  %v9579_v17 = vld [vmem:[#allocation8 + $0x48] sm:$0xf]  ;;  %v14296_v18 = vld [vmem:[#allocation8 + $0x54] sm:$0xf0] }
  0x5c   :  { %1152 = vmatpush.bf16.msrb.mxu0 %v10052_v7  ;;  %v10104_v7 = vor.u32 %v14425_v63, %v10101_v1  ;;  %v9580_v23 = vor.u32 %v14296_v18, %v9579_v17  ;;  %v14385_v24 = vld [vmem:[#allocation8 + $0x324] sm:$0xf]  ;;  %v9941_v26 = vld [vmem:[#allocation8 + $0x330] sm:$0xf0]  ;;  %v9563_v30 = vld [vmem:[#allocation8 + $0x28] sm:$0xf] }
  0x5d   :  { %1165 = vmatpush.bf16.msrb.mxu1 %v9544_v13  ;;  %v14421_v13 = vld [vmem:[#allocation8 + $0x444] sm:$0xf]  ;;  %v10069_v29 = vld [vmem:[#allocation8 + $0x430] sm:$0xf0]  ;;  %v14292_v32 = vld [vmem:[#allocation8 + $0x34] sm:$0xf0] }
  0x5e   :  { %1178 = vmatpush.bf16.msrb.mxu2 %v9672_v14  ;;  %v9724_v14 = vor.u32 %v14332_v5, %v9723_v4  ;;  %v9691_v33 = vld [vmem:[#allocation8 + $0x128] sm:$0xf]  ;;  %v9925_v37 = vld [vmem:[#allocation8 + $0x310] sm:$0xf0]  ;;  %v9564_v39 = vor.u32 %v14292_v32, %v9563_v30  ;;  %v14288_v44 = vld [vmem:[#allocation8 + $0x14] sm:$0xf0] }
  0x5f   :  { %1191 = vmatpush.bf16.msrb.mxu3 %v9800_v19  ;;  %1153 = vmatmul.bf16.vlgmr.msrb.gmra.mxu0 %v15839_v31  ;;  %v9707_v19 = vld [vmem:[#allocation8 + $0x148] sm:$0xf]  ;;  %v10053_v41 = vld [vmem:[#allocation8 + $0x410] sm:$0xf0]  ;;  %v14412_v51 = vld [vmem:[#allocation8 + $0x3f4] sm:$0xf0] }
  0x60   :  { %1197 = vmatpush.bf16.msra.mxu0 %v10040_v20  ;;  %1166 = vmatmul.bf16.vlgmr.msrb.gmra.mxu1 %v15829_v9  ;;  %v14328_v20 = vld [vmem:[#allocation8 + $0x154] sm:$0xf0]  ;;  %v9547_v42 = vld [vmem:[#allocation8 + $0x8] sm:$0xf]  ;;  %v14314_v56 = vld [vmem:[#allocation8 + $0xec] sm:$0xf] }
  0x61   :  { %1210 = vmatpush.bf16.msra.mxu1 %v10168_v21  ;;  %1179 = vmatmul.bf16.vlgmr.msrb.gmra.mxu2 %v15836_v25  ;;  %v9960_v21 = vor.u32 %v14389_v11, %v9957_v12  ;;  %v9708_v28 = vor.u32 %v14328_v20, %v9707_v19  ;;  %v9675_v45 = vld [vmem:[#allocation8 + $0x108] sm:$0xf]  ;;  %v14444_v53 = vld [vmem:[#allocation8 + $0x4f4] sm:$0xf0]  ;;  %v9548_v55 = vor.u32 %v14288_v44, %v9547_v42  ;;  %v9661_v57 = vld [vmem:[#allocation8 + $0xf8] sm:$0xf0] }
  0x62   :  { %1223 = vmatpush.bf16.msra.mxu2 %v9660_v22  ;;  %1192 = vmatmul.bf16.vlgmr.msrb.gmra.mxu3 %v15827_v8  ;;  %v10088_v22 = vor.u32 %v14421_v13, %v10085_v16  ;;  %v10043_v49 = vld [vmem:[#allocation8 + $0x3e8] sm:$0xf]  ;;  %v14376_v63 = vld [vmem:[#allocation8 + $0x2d4] sm:$0xf0]  ;;  %v9664_v1 = vor.u32 %v14314_v56, %v9661_v57  ;;  %v14310_v5 = vld [vmem:[#allocation8 + $0xcc] sm:$0xf] }
  0x63   :  { %1236 = vmatpush.bf16.msra.mxu3 %v9788_v27  ;;  %v14417_v27 = vld [vmem:[#allocation8 + $0x424] sm:$0xf]  ;;  %v9899_v62 = vld [vmem:[#allocation8 + $0x2c8] sm:$0xf]  ;;  %v14408_v2 = vld [vmem:[#allocation8 + $0x3d4] sm:$0xf0] }
  0x64   :  { %1198 = vmatpush.bf16.msra.mxu0 %v10024_v34  ;;  %v14324_v34 = vld [vmem:[#allocation8 + $0x134] sm:$0xf0]  ;;  %v10072_v38 = vor.u32 %v14417_v27, %v10069_v29  ;;  %v10155_v3 = vld [vmem:[#allocation8 + $0x4c8] sm:$0xf]  ;;  %v14306_v20 = vld [vmem:[#allocation8 + $0xac] sm:$0xf] }
  0x65   :  { %1211 = vmatpush.bf16.msra.mxu1 %v10152_v35  ;;  %v9944_v35 = vor.u32 %v14385_v24, %v9941_v26  ;;  %v9692_v43 = vor.u32 %v14324_v34, %v9691_v33  ;;  %v14440_v4 = vld [vmem:[#allocation8 + $0x4d4] sm:$0xf0]  ;;  %v9883_v12 = vld [vmem:[#allocation8 + $0x2a8] sm:$0xf]  ;;  %v14302_v34 = vld [vmem:[#allocation8 + $0x8c] sm:$0xf] }
  0x66   :  { %1224 = vmatpush.bf16.msra.mxu2 %v9644_v36  ;;  %v14381_v36 = vld [vmem:[#allocation8 + $0x304] sm:$0xf]  ;;  %v10156_v11 = vor.u32 %v14440_v4, %v10155_v3  ;;  %v14372_v13 = vld [vmem:[#allocation8 + $0x2b4] sm:$0xf0]  ;;  %v10139_v18 = vld [vmem:[#allocation8 + $0x4a8] sm:$0xf] }
  0x67   :  { %1237 = vmatpush.bf16.msra.mxu3 %v9772_v40  ;;  %v14413_v40 = vld [vmem:[#allocation8 + $0x404] sm:$0xf]  ;;  %v9928_v50 = vor.u32 %v14381_v36, %v9925_v37  ;;  %v14404_v17 = vld [vmem:[#allocation8 + $0x3b4] sm:$0xf0]  ;;  %v9867_v26 = vld [vmem:[#allocation8 + $0x288] sm:$0xf] }
  0x68   :  { %1199 = vmatpush.bf16.msra.mxu0 %v10008_v46  ;;  %v14320_v46 = vld [vmem:[#allocation8 + $0x114] sm:$0xf0]  ;;  %v10056_v54 = vor.u32 %v14413_v40, %v10053_v41  ;;  %v10123_v32 = vld [vmem:[#allocation8 + $0x488] sm:$0xf] }
  0x69   :  { %1212 = vmatpush.bf16.msra.mxu1 %v10136_v47  ;;  %v9915_v47 = vld [vmem:[#allocation8 + $0x2e8] sm:$0xf]  ;;  %v14436_v19 = vld [vmem:[#allocation8 + $0x4b4] sm:$0xf0] }
  0x6a   :  { %1225 = vmatpush.bf16.msra.mxu2 %v9628_v48  ;;  %v14380_v48 = vld [vmem:[#allocation8 + $0x2f4] sm:$0xf0]  ;;  %v10140_v24 = vor.u32 %v14436_v19, %v10139_v18  ;;  %v9979_v41 = vld [vmem:[#allocation8 + $0x368] sm:$0xf] }
  0x6b   :  { %1238 = vmatpush.bf16.msra.mxu3 %v9756_v52  ;;  %v10171_v52 = vld [vmem:[#allocation8 + $0x4e8] sm:$0xf]  ;;  %v14368_v27 = vld [vmem:[#allocation8 + $0x294] sm:$0xf0] }
  0x6c   :  { %1200 = vmatpush.bf16.msra.mxu0 %v9992_v58  ;;  %v9676_v58 = vor.u32 %v14320_v46, %v9675_v45  ;;  %v10172_v61 = vor.u32 %v14444_v53, %v10171_v52  ;;  %v14400_v30 = vld [vmem:[#allocation8 + $0x394] sm:$0xf0]  ;;  %v9868_v36 = vor.u32 %v14368_v27, %v9867_v26  ;;  %v10107_v44 = vld [vmem:[#allocation8 + $0x468] sm:$0xf]  ;;  %v14298_v46 = vld [vmem:[#allocation8 + $0x6c] sm:$0xf] }
  0x6d   :  { %1213 = vmatpush.bf16.msra.mxu1 %v10120_v59  ;;  %v9916_v59 = vor.u32 %v14380_v48, %v9915_v47  ;;  %v14432_v33 = vld [vmem:[#allocation8 + $0x494] sm:$0xf0]  ;;  %v9597_v47 = vld [vmem:[#allocation8 + $0x78] sm:$0xf0]  ;;  %v9963_v53 = vld [vmem:[#allocation8 + $0x348] sm:$0xf] }
  0x6e   :  { %1226 = vmatpush.bf16.msra.mxu2 %v9612_v60  ;;  %v10044_v60 = vor.u32 %v14412_v51, %v10043_v49  ;;  %v14364_v40 = vld [vmem:[#allocation8 + $0x274] sm:$0xf0]  ;;  %v9835_v51 = vld [vmem:[#allocation8 + $0x248] sm:$0xf]  ;;  %v14378_v26 = vld [vmem:[#allocation8 + $0x2ec] sm:$0xf] }
  0x6f   :  { %1239 = vmatpush.bf16.msra.mxu3 %v9740_v0  ;;  %v10027_v0 = vld [vmem:[#allocation8 + $0x3c8] sm:$0xf]  ;;  %v14428_v45 = vld [vmem:[#allocation8 + $0x474] sm:$0xf0] }
  0x70   :  { %1201 = vmatpush.bf16.msra.mxu0 %v9976_v6  ;;  %v9645_v6 = vld [vmem:[#allocation8 + $0xd8] sm:$0xf0]  ;;  %v14360_v52 = vld [vmem:[#allocation8 + $0x254] sm:$0xf0]  ;;  %v10091_v56 = vld [vmem:[#allocation8 + $0x448] sm:$0xf] }
  0x71   :  { %1214 = vmatpush.bf16.msra.mxu1 %v10104_v7  ;;  %v9900_v7 = vor.u32 %v14376_v63, %v9899_v62  ;;  %v9648_v16 = vor.u32 %v14310_v5, %v9645_v6  ;;  %v14424_v57 = vld [vmem:[#allocation8 + $0x454] sm:$0xf0]  ;;  %v9819_v63 = vld [vmem:[#allocation8 + $0x228] sm:$0xf]  ;;  %v14290_v6 = vld [vmem:[#allocation8 + $0x2c] sm:$0xf] }
  0x72   :  { %1227 = vmatpush.bf16.msra.mxu2 %v9596_v10  ;;  %v10028_v10 = vor.u32 %v14408_v2, %v10027_v0  ;;  %v10092_v62 = vor.u32 %v14424_v57, %v10091_v56  ;;  %v14356_v0 = vld [vmem:[#allocation8 + $0x234] sm:$0xf0]  ;;  %v10075_v4 = vld [vmem:[#allocation8 + $0x428] sm:$0xf]  ;;  %v9885_v56 = vld [vmem:[#allocation8 + $0x2b8] sm:$0xf0] }
  0x73   :  { %1240 = vmatpush.bf16.msra.mxu3 %v9724_v14  ;;  %v10011_v14 = vld [vmem:[#allocation8 + $0x3a8] sm:$0xf]  ;;  %v14388_v3 = vld [vmem:[#allocation8 + $0x334] sm:$0xf0]  ;;  %v14402_v57 = vld [vmem:[#allocation8 + $0x3ac] sm:$0xf] }
  0x74   :  { %1202 = vmatpush.bf16.msra.mxu0 %v9960_v21  ;;  %v9629_v21 = vld [vmem:[#allocation8 + $0xb8] sm:$0xf0]  ;;  %v14420_v5 = vld [vmem:[#allocation8 + $0x434] sm:$0xf0]  ;;  %v10059_v18 = vld [vmem:[#allocation8 + $0x408] sm:$0xf] }
  0x75   :  { %1215 = vmatpush.bf16.msra.mxu1 %v10088_v22  ;;  %v9884_v22 = vor.u32 %v14372_v13, %v9883_v12  ;;  %v9632_v29 = vor.u32 %v14306_v20, %v9629_v21  ;;  %v14352_v12 = vld [vmem:[#allocation8 + $0x214] sm:$0xf0]  ;;  %v14286_v21 = vld [vmem:[#allocation8 + $0xc] sm:$0xf] }
  0x76   :  { %1228 = vmatpush.bf16.msra.mxu2 %v9580_v23  ;;  %v10012_v23 = vor.u32 %v14404_v17, %v10011_v14  ;;  %v10076_v14 = vor.u32 %v14420_v5, %v10075_v4  ;;  %v14384_v17 = vld [vmem:[#allocation8 + $0x314] sm:$0xf0]  ;;  %v9869_v4 = vld [vmem:[#allocation8 + $0x298] sm:$0xf0]  ;;  %v14398_v5 = vld [vmem:[#allocation8 + $0x38c] sm:$0xf] }
  0x77   :  { %1241 = vmatpush.bf16.msra.mxu3 %v9708_v28  ;;  %v9995_v28 = vld [vmem:[#allocation8 + $0x388] sm:$0xf]  ;;  %v14416_v20 = vld [vmem:[#allocation8 + $0x414] sm:$0xf0] }
  0x78   :  { %1203 = vmatpush.bf16.msra.mxu0 %v9944_v35  ;;  %v9613_v35 = vld [vmem:[#allocation8 + $0x98] sm:$0xf0]  ;;  %v9996_v37 = vor.u32 %v14400_v30, %v9995_v28 }
  0x79   :  { %1216 = vmatpush.bf16.msra.mxu1 %v10072_v38  ;;  %v10124_v38 = vor.u32 %v14432_v33, %v10123_v32  ;;  %v9616_v42 = vor.u32 %v14302_v34, %v9613_v35  ;;  %v9917_v28 = vld [vmem:[#allocation8 + $0x2f8] sm:$0xf0]  ;;  %v10060_v33 = vor.u32 %v14416_v20, %v10059_v18  ;;  %v14442_v34 = vld [vmem:[#allocation8 + $0x4ec] sm:$0xf] }
  0x7a   :  { %1229 = vmatpush.bf16.msra.mxu2 %v9564_v39  ;;  %v9851_v39 = vld [vmem:[#allocation8 + $0x268] sm:$0xf]  ;;  %v10045_v30 = vld [vmem:[#allocation8 + $0x3f8] sm:$0xf0] }
  0x7b   :  { %1242 = vmatpush.bf16.msra.mxu3 %v9692_v43  ;;  %v14396_v43 = vld [vmem:[#allocation8 + $0x374] sm:$0xf0]  ;;  %v9852_v48 = vor.u32 %v14364_v40, %v9851_v39  ;;  %v10173_v35 = vld [vmem:[#allocation8 + $0x4f8] sm:$0xf0]  ;;  %v14342_v40 = vld [vmem:[#allocation8 + $0x1cc] sm:$0xf] }
  0x7c   :  { %1204 = vmatpush.bf16.msra.mxu0 %v9928_v50  ;;  %v9980_v49 = vor.u32 %v14396_v43, %v9979_v41  ;;  %v10108_v50 = vor.u32 %v14428_v45, %v10107_v44  ;;  %v9773_v41 = vld [vmem:[#allocation8 + $0x1d8] sm:$0xf0]  ;;  %v10176_v43 = vor.u32 %v14442_v34, %v10173_v35  ;;  %v14406_v45 = vld [vmem:[#allocation8 + $0x3cc] sm:$0xf] }
  0x7d   :  { %1217 = vmatpush.bf16.msra.mxu1 %v10056_v54  ;;  %v9600_v54 = vor.u32 %v14298_v46, %v9597_v47  ;;  %v9901_v44 = vld [vmem:[#allocation8 + $0x2d8] sm:$0xf0]  ;;  %v14438_v47 = vld [vmem:[#allocation8 + $0x4cc] sm:$0xf] }
  0x7e   :  { %1230 = vmatpush.bf16.msra.mxu2 %v9548_v55  ;;  %v14392_v55 = vld [vmem:[#allocation8 + $0x354] sm:$0xf0]  ;;  %v10029_v46 = vld [vmem:[#allocation8 + $0x3d8] sm:$0xf0]  ;;  %v14422_v35 = vld [vmem:[#allocation8 + $0x44c] sm:$0xf] }
  0x7f   :  { %1243 = vmatpush.bf16.msra.mxu3 %v9676_v58  ;;  %1205 = vmatmul.bf16.vlgmr.msra.gmra.mxu0 %v15831_v15  ;;  %v14294_v58 = vld [vmem:[#allocation8 + $0x4c] sm:$0xf]  ;;  %v9853_v18 = vld [vmem:[#allocation8 + $0x278] sm:$0xf0] }
  0x80   :  { %1249 = vmatpush.bf16.msrb.mxu0 %v9916_v59  ;;  %1218 = vmatmul.bf16.vlgmr.msra.gmra.mxu1 %v15839_v31  ;;  %v9581_v59 = vld [vmem:[#allocation8 + $0x58] sm:$0xf0] }
  0x81   :  { %1262 = vmatpush.bf16.msrb.mxu1 %v10044_v60  ;;  %1231 = vmatmul.bf16.vlgmr.msra.gmra.mxu2 %v15829_v9  ;;  %v9836_v60 = vor.u32 %v14360_v52, %v9835_v51  ;;  %v9584_v2 = vor.u32 %v14294_v58, %v9581_v59  ;;  %v10032_v51 = vor.u32 %v14406_v45, %v10029_v46  ;;  %v14338_v52 = vld [vmem:[#allocation8 + $0x1ac] sm:$0xf]  ;;  %v10013_v58 = vld [vmem:[#allocation8 + $0x3b8] sm:$0xf0] }
  0x82   :  { %1275 = vmatpush.bf16.msrb.mxu2 %v10172_v61  ;;  %1244 = vmatmul.bf16.vlgmr.msra.gmra.mxu3 %v15836_v25  ;;  %v9964_v61 = vor.u32 %v14392_v55, %v9963_v53  ;;  %v9757_v53 = vld [vmem:[#allocation8 + $0x1b8] sm:$0xf0]  ;;  %v14434_v59 = vld [vmem:[#allocation8 + $0x4ac] sm:$0xf] }
  0x83   :  { %1288 = vmatpush.bf16.msrb.mxu3 %v9664_v1  ;;  %v9947_v1 = vld [vmem:[#allocation8 + $0x328] sm:$0xf]  ;;  %v9981_v20 = vld [vmem:[#allocation8 + $0x378] sm:$0xf0]  ;;  %v14386_v45 = vld [vmem:[#allocation8 + $0x32c] sm:$0xf] }
  0x84   :  { %1250 = vmatpush.bf16.msrb.mxu0 %v9900_v7  ;;  %v9565_v7 = vld [vmem:[#allocation8 + $0x38] sm:$0xf0]  ;;  %v9948_v13 = vor.u32 %v14388_v3, %v9947_v1 }
  0x85   :  { %1263 = vmatpush.bf16.msrb.mxu1 %v10028_v10  ;;  %v9820_v10 = vor.u32 %v14356_v0, %v9819_v63  ;;  %v9568_v19 = vor.u32 %v14290_v6, %v9565_v7  ;;  %v10016_v63 = vor.u32 %v14402_v57, %v10013_v58  ;;  %v14334_v0 = vld [vmem:[#allocation8 + $0x18c] sm:$0xf]  ;;  %v9741_v1 = vld [vmem:[#allocation8 + $0x198] sm:$0xf0] }
  0x86   :  { %1276 = vmatpush.bf16.msrb.mxu2 %v10156_v11  ;;  %v9803_v11 = vld [vmem:[#allocation8 + $0x208] sm:$0xf]  ;;  %v9997_v6 = vld [vmem:[#allocation8 + $0x398] sm:$0xf0]  ;;  %v14430_v7 = vld [vmem:[#allocation8 + $0x48c] sm:$0xf] }
  0x87   :  { %1289 = vmatpush.bf16.msrb.mxu3 %v9648_v16  ;;  %v9931_v16 = vld [vmem:[#allocation8 + $0x308] sm:$0xf]  ;;  %v9804_v27 = vor.u32 %v14352_v12, %v9803_v11  ;;  %v10000_v12 = vor.u32 %v14398_v5, %v9997_v6  ;;  %v9965_v34 = vld [vmem:[#allocation8 + $0x358] sm:$0xf0]  ;;  %v14382_v57 = vld [vmem:[#allocation8 + $0x30c] sm:$0xf] }
  0x88   :  { %1251 = vmatpush.bf16.msrb.mxu0 %v9884_v22  ;;  %v9549_v22 = vld [vmem:[#allocation8 + $0x18] sm:$0xf0]  ;;  %v9932_v32 = vor.u32 %v14384_v17, %v9931_v16  ;;  %v14362_v16 = vld [vmem:[#allocation8 + $0x26c] sm:$0xf] }
  0x89   :  { %1264 = vmatpush.bf16.msrb.mxu1 %v10012_v23  ;;  %v14346_v23 = vld [vmem:[#allocation8 + $0x1ec] sm:$0xf]  ;;  %v9949_v46 = vld [vmem:[#allocation8 + $0x338] sm:$0xf0] }
  0x8a   :  { %1277 = vmatpush.bf16.msrb.mxu2 %v10140_v24  ;;  %v9789_v24 = vld [vmem:[#allocation8 + $0x1f8] sm:$0xf0] }
  0x8b   :  { %1290 = vmatpush.bf16.msrb.mxu3 %v9632_v29  ;;  %v14410_v29 = vld [vmem:[#allocation8 + $0x3ec] sm:$0xf]  ;;  %v9933_v58 = vld [vmem:[#allocation8 + $0x318] sm:$0xf0] }
  0x8c   :  { %1252 = vmatpush.bf16.msrb.mxu0 %v9868_v36  ;;  %v9552_v36 = vor.u32 %v14286_v21, %v9549_v22  ;;  %v10048_v39 = vor.u32 %v14410_v29, %v10045_v30  ;;  %v14426_v21 = vld [vmem:[#allocation8 + $0x46c] sm:$0xf]  ;;  %v10109_v22 = vld [vmem:[#allocation8 + $0x478] sm:$0xf0] }
  0x8d   :  { %1265 = vmatpush.bf16.msrb.mxu1 %v9996_v37  ;;  %v9792_v37 = vor.u32 %v14346_v23, %v9789_v24  ;;  %v9856_v24 = vor.u32 %v14362_v16, %v9853_v18  ;;  %v14358_v29 = vld [vmem:[#allocation8 + $0x24c] sm:$0xf]  ;;  %v10112_v30 = vor.u32 %v14426_v21, %v10109_v22  ;;  %v14533_v16 = vld [vmem:[#allocation11 + $0x2bc] sm:$0xf0] }
  0x8e   :  { %1278 = vmatpush.bf16.msrb.mxu2 %v10124_v38  ;;  %v9920_v38 = vor.u32 %v14378_v26, %v9917_v28  ;;  %v9709_v28 = vld [vmem:[#allocation8 + $0x158] sm:$0xf0]  ;;  %v14661_v18 = vld [vmem:[#allocation11 + $0x6bc] sm:$0xf0] }
  0x8f   :  { %1291 = vmatpush.bf16.msrb.mxu3 %v9616_v42  ;;  %v14374_v42 = vld [vmem:[#allocation8 + $0x2cc] sm:$0xf]  ;;  %v14517_v21 = vld [vmem:[#allocation11 + $0x23c] sm:$0xf0] }
  0x90   :  { %1253 = vmatpush.bf16.msrb.mxu0 %v9852_v48  ;;  %v10157_v48 = vld [vmem:[#allocation8 + $0x4d8] sm:$0xf0] }
  0x91   :  { %1266 = vmatpush.bf16.msrb.mxu1 %v9980_v49  ;;  %v9776_v49 = vor.u32 %v14342_v40, %v9773_v41  ;;  %v10160_v55 = vor.u32 %v14438_v47, %v10157_v48  ;;  %v14322_v40 = vld [vmem:[#allocation8 + $0x12c] sm:$0xf]  ;;  %v9693_v41 = vld [vmem:[#allocation8 + $0x138] sm:$0xf0] }
  0x92   :  { %1279 = vmatpush.bf16.msrb.mxu2 %v10108_v50  ;;  %v9904_v50 = vor.u32 %v14374_v42, %v9901_v44  ;;  %v14354_v42 = vld [vmem:[#allocation8 + $0x22c] sm:$0xf]  ;;  %v9821_v44 = vld [vmem:[#allocation8 + $0x238] sm:$0xf0] }
  0x93   :  { %1292 = vmatpush.bf16.msrb.mxu3 %v9600_v54  ;;  %v14370_v54 = vld [vmem:[#allocation8 + $0x2ac] sm:$0xf]  ;;  %v10077_v48 = vld [vmem:[#allocation8 + $0x438] sm:$0xf0] }
  0x94   :  { %1254 = vmatpush.bf16.msrb.mxu0 %v9836_v60  ;;  %v10141_v60 = vld [vmem:[#allocation8 + $0x4b8] sm:$0xf0]  ;;  %v14418_v47 = vld [vmem:[#allocation8 + $0x42c] sm:$0xf] }
  0x95   :  { %1267 = vmatpush.bf16.msrb.mxu1 %v9964_v61  ;;  %v9760_v61 = vor.u32 %v14338_v52, %v9757_v53  ;;  %v10144_v3 = vor.u32 %v14434_v59, %v10141_v60  ;;  %v9952_v52 = vor.u32 %v14386_v45, %v9949_v46  ;;  %v9677_v53 = vld [vmem:[#allocation8 + $0x118] sm:$0xf0]  ;;  %v14414_v59 = vld [vmem:[#allocation8 + $0x40c] sm:$0xf]  ;;  %v10819_v46 = vld [vmem:[#allocation11 + $0x500] sm:$0xf] }
  0x96   :  { %1280 = vmatpush.bf16.msrb.mxu2 %v10092_v62  ;;  %v9888_v62 = vor.u32 %v14370_v54, %v9885_v56  ;;  %v14350_v54 = vld [vmem:[#allocation8 + $0x20c] sm:$0xf]  ;;  %v10080_v56 = vor.u32 %v14418_v47, %v10077_v48  ;;  %v10061_v60 = vld [vmem:[#allocation8 + $0x418] sm:$0xf0]  ;;  %v11523_v47 = vld [vmem:[#allocation11 + $0xa80] sm:$0xf] }
  0x97   :  { %1293 = vmatpush.bf16.msrb.mxu3 %v9584_v2  ;;  %v14366_v2 = vld [vmem:[#allocation8 + $0x28c] sm:$0xf]  ;;  %v14789_v48 = vld [vmem:[#allocation11 + $0xabc] sm:$0xf0] }
  0x98   :  { %1255 = vmatpush.bf16.msrb.mxu0 %v9820_v10  ;;  %v10125_v10 = vld [vmem:[#allocation8 + $0x498] sm:$0xf0]  ;;  %v9872_v11 = vor.u32 %v14366_v2, %v9869_v4  ;;  %v10064_v4 = vor.u32 %v14414_v59, %v10061_v60  ;;  %v10755_v59 = vld [vmem:[#allocation11 + $0x480] sm:$0xf] }
  0x99   :  { %1268 = vmatpush.bf16.msrb.mxu1 %v9948_v13  ;;  %v14330_v13 = vld [vmem:[#allocation8 + $0x16c] sm:$0xf]  ;;  %v10128_v17 = vor.u32 %v14430_v7, %v10125_v10  ;;  %v10563_v7 = vld [vmem:[#allocation11 + $0x300] sm:$0xf] }
  0x9a   :  { %1281 = vmatpush.bf16.msrb.mxu2 %v10076_v14  ;;  %v9725_v14 = vld [vmem:[#allocation8 + $0x178] sm:$0xf0]  ;;  %v14549_v10 = vld [vmem:[#allocation11 + $0x33c] sm:$0xf0] }
  0x9b   :  { %1294 = vmatpush.bf16.msrb.mxu3 %v9568_v19  ;;  %v14394_v19 = vld [vmem:[#allocation8 + $0x36c] sm:$0xf]  ;;  %v9728_v23 = vor.u32 %v14330_v13, %v9725_v14  ;;  %v10499_v14 = vld [vmem:[#allocation11 + $0x280] sm:$0xf] }
  0x9c   :  { %1256 = vmatpush.bf16.msrb.mxu0 %v9804_v27  ;;  %v9984_v26 = vor.u32 %v14394_v19, %v9981_v20  ;;  %v14326_v27 = vld [vmem:[#allocation8 + $0x14c] sm:$0xf]  ;;  %v10500_v19 = vor.u32 %v14533_v16, %v10499_v14  ;;  %v10435_v20 = vld [vmem:[#allocation11 + $0x200] sm:$0xf] }
  0x9d   :  { %1269 = vmatpush.bf16.msrb.mxu1 %v9932_v32  ;;  %v9837_v32 = vld [vmem:[#allocation8 + $0x258] sm:$0xf0]  ;;  %v11459_v60 = vld [vmem:[#allocation11 + $0xa00] sm:$0xf] }
  0x9e   :  { %1282 = vmatpush.bf16.msrb.mxu2 %v10060_v33  ;;  %v14390_v33 = vld [vmem:[#allocation8 + $0x34c] sm:$0xf]  ;;  %v12675_v16 = vld [vmem:[#allocation11 + $0x1380] sm:$0xf] }
  0x9f   :  { %1295 = vmatpush.bf16.msrb.mxu3 %v9552_v36  ;;  %1257 = vmatmul.bf16.vlgmr.msrb.gmra.mxu0 %v15827_v8  ;;  %v10093_v36 = vld [vmem:[#allocation8 + $0x458] sm:$0xf0] }
  0xa0   :  { %1301 = vmatpush.bf16.msra.mxu0 %v9792_v37  ;;  %1270 = vmatmul.bf16.vlgmr.msrb.gmra.mxu1 %v15831_v15  ;;  %v9712_v37 = vor.u32 %v14326_v27, %v9709_v28  ;;  %v12163_v28 = vld [vmem:[#allocation11 + $0xf80] sm:$0xf] }
  0xa1   :  { %1314 = vmatpush.bf16.msra.mxu1 %v9920_v38  ;;  %1283 = vmatmul.bf16.vlgmr.msrb.gmra.mxu2 %v15839_v31  ;;  %v9840_v38 = vor.u32 %v14358_v29, %v9837_v32  ;;  %v14949_v29 = vld [vmem:[#allocation11 + $0xfbc] sm:$0xf0] }
  0xa2   :  { %1327 = vmatpush.bf16.msra.mxu2 %v10048_v39  ;;  %1296 = vmatmul.bf16.vlgmr.msrb.gmra.mxu3 %v15829_v9  ;;  %v9744_v9 = vor.u32 %v14334_v0, %v9741_v1  ;;  %v9968_v39 = vor.u32 %v14390_v33, %v9965_v34  ;;  %v11139_v0 = vld [vmem:[#allocation11 + $0x780] sm:$0xf] }
  0xa3   :  { %1340 = vmatpush.bf16.msra.mxu3 %v10176_v43  ;;  %v10096_v43 = vor.u32 %v14422_v35, %v10093_v36  ;;  %v14693_v1 = vld [vmem:[#allocation11 + $0x7bc] sm:$0xf0] }
  0xa4   :  { %1302 = vmatpush.bf16.msra.mxu0 %v9776_v49  ;;  %v9696_v49 = vor.u32 %v14322_v40, %v9693_v41  ;;  %v11140_v6 = vor.u32 %v14693_v1, %v11139_v0  ;;  %v14501_v32 = vld [vmem:[#allocation11 + $0x1bc] sm:$0xf0] }
  0xa5   :  { %1315 = vmatpush.bf16.msra.mxu1 %v9904_v50  ;;  %v14318_v50 = vld [vmem:[#allocation8 + $0x10c] sm:$0xf]  ;;  %v10883_v33 = vld [vmem:[#allocation11 + $0x580] sm:$0xf] }
  0xa6   :  { %1328 = vmatpush.bf16.msra.mxu2 %v10032_v51  ;;  %v9824_v51 = vor.u32 %v14354_v42, %v9821_v44  ;;  %v11587_v34 = vld [vmem:[#allocation11 + $0xb00] sm:$0xf] }
  0xa7   :  { %1341 = vmatpush.bf16.msra.mxu3 %v10160_v55  ;;  %v9805_v55 = vld [vmem:[#allocation8 + $0x218] sm:$0xf0]  ;;  %v14805_v35 = vld [vmem:[#allocation11 + $0xb3c] sm:$0xf0] }
  0xa8   :  { %1303 = vmatpush.bf16.msra.mxu0 %v9760_v61  ;;  %v10627_v61 = vld [vmem:[#allocation11 + $0x380] sm:$0xf]  ;;  %v9808_v2 = vor.u32 %v14350_v54, %v9805_v55 }
  0xa9   :  { %1316 = vmatpush.bf16.msra.mxu1 %v9888_v62  ;;  %v14565_v62 = vld [vmem:[#allocation11 + $0x3bc] sm:$0xf0] }
  0xaa   :  { %1329 = vmatpush.bf16.msra.mxu2 %v10016_v63  ;;  %v9680_v63 = vor.u32 %v14318_v50, %v9677_v53  ;;  %v10628_v5 = vor.u32 %v14565_v62, %v10627_v61  ;;  %v14629_v36 = vld [vmem:[#allocation11 + $0x5bc] sm:$0xf0]  ;;  %v11524_v50 = vor.u32 %v14789_v48, %v11523_v47 }
  0xab   :  { %1342 = vmatpush.bf16.msra.mxu3 %v10144_v3  ;;  %v9936_v3 = vor.u32 %v14382_v57, %v9933_v58  ;;  %v10307_v42 = vld [vmem:[#allocation11 + $0x100] sm:$0xf]  ;;  %v10884_v45 = vor.u32 %v14629_v36, %v10883_v33 }
  0xac   :  { %1304 = vmatpush.bf16.msra.mxu0 %v9744_v9  ;;  %v11075_v9 = vld [vmem:[#allocation11 + $0x700] sm:$0xf] }
  0xad   :  { %1317 = vmatpush.bf16.msra.mxu1 %v9872_v11  ;;  %v14677_v11 = vld [vmem:[#allocation11 + $0x73c] sm:$0xf0] }
  0xae   :  { %1330 = vmatpush.bf16.msra.mxu2 %v10000_v12  ;;  %v10564_v12 = vor.u32 %v14549_v10, %v10563_v7  ;;  %v11076_v13 = vor.u32 %v14677_v11, %v11075_v9  ;;  %v10243_v55 = vld [vmem:[#allocation11 + $0x80] sm:$0xf] }
  0xaf   :  { %1343 = vmatpush.bf16.msra.mxu3 %v10128_v17  ;;  %v11011_v17 = vld [vmem:[#allocation11 + $0x680] sm:$0xf] }
  0xb0   :  { %1305 = vmatpush.bf16.msra.mxu0 %v9728_v23  ;;  %v11012_v22 = vor.u32 %v14661_v18, %v11011_v17  ;;  %v10947_v23 = vld [vmem:[#allocation11 + $0x600] sm:$0xf] }
  0xb1   :  { %1318 = vmatpush.bf16.msra.mxu1 %v9856_v24  ;;  %v11651_v24 = vld [vmem:[#allocation11 + $0xb80] sm:$0xf] }
  0xb2   :  { %1331 = vmatpush.bf16.msra.mxu2 %v9984_v26  ;;  %v14645_v26 = vld [vmem:[#allocation11 + $0x63c] sm:$0xf0] }
  0xb3   :  { %1344 = vmatpush.bf16.msra.mxu3 %v10112_v30  ;;  %v10371_v30 = vld [vmem:[#allocation11 + $0x180] sm:$0xf] }
  0xb4   :  { %1306 = vmatpush.bf16.msra.mxu0 %v9712_v37  ;;  %v11588_v37 = vor.u32 %v14805_v35, %v11587_v34  ;;  %v10372_v41 = vor.u32 %v14501_v32, %v10371_v30  ;;  %v14773_v61 = vld [vmem:[#allocation11 + $0xa3c] sm:$0xf0] }
  0xb5   :  { %1319 = vmatpush.bf16.msra.mxu1 %v9840_v38  ;;  %v12099_v38 = vld [vmem:[#allocation11 + $0xf00] sm:$0xf]  ;;  %v11460_v0 = vor.u32 %v14773_v61, %v11459_v60 }
  0xb6   :  { %1332 = vmatpush.bf16.msra.mxu2 %v9968_v39  ;;  %v14933_v39 = vld [vmem:[#allocation11 + $0xf3c] sm:$0xf0] }
  0xb7   :  { %1345 = vmatpush.bf16.msra.mxu3 %v10096_v43  ;;  %v12100_v40 = vor.u32 %v14933_v39, %v12099_v38  ;;  %v14485_v43 = vld [vmem:[#allocation11 + $0x13c] sm:$0xf0] }
  0xb8   :  { %1307 = vmatpush.bf16.msra.mxu0 %v9696_v49  ;;  %v14613_v49 = vld [vmem:[#allocation11 + $0x53c] sm:$0xf0]  ;;  %v10308_v54 = vor.u32 %v14485_v43, %v10307_v42 }
  0xb9   :  { %1320 = vmatpush.bf16.msra.mxu1 %v9824_v51  ;;  %v12035_v51 = vld [vmem:[#allocation11 + $0xe80] sm:$0xf]  ;;  %v10820_v58 = vor.u32 %v14613_v49, %v10819_v46 }
  0xba   :  { %1333 = vmatpush.bf16.msra.mxu2 %v9952_v52  ;;  %v14917_v52 = vld [vmem:[#allocation11 + $0xebc] sm:$0xf0] }
  0xbb   :  { %1346 = vmatpush.bf16.msra.mxu3 %v10080_v56  ;;  %v12036_v53 = vor.u32 %v14917_v52, %v12035_v51  ;;  %v14469_v56 = vld [vmem:[#allocation11 + $0xbc] sm:$0xf0] }
  0xbc   :  { %1308 = vmatpush.bf16.msra.mxu0 %v9680_v63  ;;  %v15857_v44 = vpop.f32.mrf.mxu0  ;;  %v14597_v62 = vld [vmem:[#allocation11 + $0x4bc] sm:$0xf0]  ;;  %v10244_v7 = vor.u32 %v14469_v56, %v10243_v55 }
  0xbd   :  { %1321 = vmatpush.bf16.msra.mxu1 %v9808_v2  ;;  %v11971_v1 = vld [vmem:[#allocation11 + $0xe00] sm:$0xf]  ;;  %v10756_v14 = vor.u32 %v14597_v62, %v10755_v59 }
  0xbe   :  { %1334 = vmatpush.bf16.msra.mxu2 %v9936_v3  ;;  %v14901_v2 = vld [vmem:[#allocation11 + $0xe3c] sm:$0xf0] }
  0xbf   :  { %1347 = vmatpush.bf16.msra.mxu3 %v10064_v4  ;;  %1309 = vmatmul.bf16.vlgmr.msra.gmra.mxu0 %v15836_v25  ;;  %v14821_v25 = vld [vmem:[#allocation11 + $0xbbc] sm:$0xf0] }
  0xc0   :  { %7577 = vmatpush.bf16.msrb.mxu0 %v10628_v5  ;;  %1322 = vmatmul.bf16.vlgmr.msra.gmra.mxu1 %v15827_v8  ;;  %v11652_v27 = vor.u32 %v14821_v25, %v11651_v24  ;;  %v12164_v8 = vor.u32 %v14949_v29, %v12163_v28  ;;  %v10179_v3 = vld [vmem:[#allocation11] sm:$0xf] }
  0xc1   :  { %7590 = vmatpush.bf16.msrb.mxu1 %v11140_v6  ;;  %1335 = vmatmul.bf16.vlgmr.msra.gmra.mxu2 %v15831_v15  ;;  %v10436_v15 = vor.u32 %v14517_v21, %v10435_v20  ;;  %v14453_v4 = vld [vmem:[#allocation11 + $0x3c] sm:$0xf0]  ;;  %v11972_v6 = vor.u32 %v14901_v2, %v11971_v1  ;;  %v1355_v1 = vld [vmem:[#allocation3 + $0x10] sm:$0xff] }
  0xc2   :  { %1348 = vmatmul.bf16.vlgmr.msra.gmra.mxu3 %v15839_v31  ;;  %7603 = vmatpush.bf16.msrb.mxu2 %v11652_v27  ;;  %v10948_v31 = vor.u32 %v14645_v26, %v10947_v23  ;;  %v10691_v10 = vld [vmem:[#allocation11 + $0x400] sm:$0xf]  ;;  %v10180_v28 = vor.u32 %v14453_v4, %v10179_v3 }
  0xc3   :  { %7616 = vmatpush.bf16.msrb.mxu3 %v12164_v8  ;;  %v15859_v57 = vpop.f32.mrf.mxu1  ;;  %v14581_v9 = vld [vmem:[#allocation11 + $0x43c] sm:$0xf0] }
  0xc4   :  { %7578 = vmatpush.bf16.msrb.mxu0 %v10564_v12  ;;  %v15861_v63 = vpop.f32.mrf.mxu2  ;;  %v1104_v11 = vpop.f32.mrf.mxu0  ;;  %v1353_v12 = vld [vmem:[#allocation3] sm:$0xff]  ;;  %v11395_v17 = vld [vmem:[#allocation11 + $0x980] sm:$0xf] }
  0xc5   :  { %7591 = vmatpush.bf16.msrb.mxu1 %v11076_v13  ;;  %v1354_v13 = vld [vmem:[#allocation3 + $0x8] sm:$0xff] }
  0xc6   :  { %7604 = vmatpush.bf16.msrb.mxu2 %v11588_v37  ;;  %v14757_v18 = vld [vmem:[#allocation11 + $0x9bc] sm:$0xf0] }
  0xc7   :  { %7617 = vmatpush.bf16.msrb.mxu3 %v12100_v40  ;;  %v15863_v5 = vpop.f32.mrf.mxu3  ;;  %v15077_v20 = vld [vmem:[#allocation11 + $0x13bc] sm:$0xf0]  ;;  %v11396_v21 = vor.u32 %v14757_v18, %v11395_v17 }
  0xc8   :  { %7579 = vmatpush.bf16.msrb.mxu0 %v10500_v19  ;;  %v1357_v19 = vpack.c.bf16 %v1354_v13, %v1353_v12  ;;  %v14885_v23 = vld [vmem:[#allocation11 + $0xdbc] sm:$0xf0]  ;;  %v12676_v30 = vor.u32 %v15077_v20, %v12675_v16 }
  0xc9   :  { %7592 = vmatpush.bf16.msrb.mxu1 %v11012_v22  ;;  %v11907_v22 = vld [vmem:[#allocation11 + $0xd80] sm:$0xf] }
  0xca   :  { %7605 = vmatpush.bf16.msrb.mxu2 %v11524_v50  ;;  %v13187_v24 = vld [vmem:[#allocation11 + $0x1780] sm:$0xf]  ;;  %v11908_v26 = vor.u32 %v14885_v23, %v11907_v22  ;;  %v2433_v27 = vunpack.c.l.b16 %v1357_v19  ;;  %v2434_v8 = vunpack.c.h.b16 %v1357_v19 }
  0xcb   :  { %7618 = vmatpush.bf16.msrb.mxu3 %v12036_v53  ;;  %v15205_v25 = vld [vmem:[#allocation11 + $0x17bc] sm:$0xf0]  ;;  %v1117_v29 = vpop.f32.mrf.mxu1 }
  0xcc   :  { %7580 = vmatpush.bf16.msrb.mxu0 %v10436_v15  ;;  %v10692_v15 = vor.u32 %v14581_v9, %v10691_v10  ;;  %v12611_v32 = vld [vmem:[#allocation11 + $0x1300] sm:$0xf]  ;;  %v13188_v33 = vor.u32 %v15205_v25, %v13187_v24  ;;  %v1130_v36 = vpop.f32.mrf.mxu2  ;;  %v15865_v40 = vpack.c.b16 %v2433_v27, %v2433_v27 }
  0xcd   :  { %7593 = vmatpush.bf16.msrb.mxu1 %v10948_v31  ;;  %v11331_v31 = vld [vmem:[#allocation11 + $0x900] sm:$0xf] }
  0xce   :  { %7606 = vmatpush.bf16.msrb.mxu2 %v11460_v0  ;;  %v15061_v34 = vld [vmem:[#allocation11 + $0x133c] sm:$0xf0] }
  0xcf   :  { %7619 = vmatpush.bf16.msrb.mxu3 %v11972_v6  ;;  %v13123_v35 = vld [vmem:[#allocation11 + $0x1700] sm:$0xf]  ;;  %v1143_v39 = vpop.f32.mrf.mxu3  ;;  %v12612_v47 = vor.u32 %v15061_v34, %v12611_v32 }
  0xd0   :  { %7581 = vmatpush.bf16.msrb.mxu0 %v10372_v41  ;;  %v14741_v37 = vld [vmem:[#allocation11 + $0x93c] sm:$0xf0] }
  0xd1   :  { %7594 = vmatpush.bf16.msrb.mxu1 %v10884_v45  ;;  %v15189_v38 = vld [vmem:[#allocation11 + $0x173c] sm:$0xf0]  ;;  %v11332_v41 = vor.u32 %v14741_v37, %v11331_v31  ;;  %v15867_v45 = vpack.c.b16 %v2434_v8, %v2434_v8  ;;  %v15883_v31 = vld [vmem:[#allocation9] sm:$0xf] }
  0xd2   :  { %7607 = vmatpush.bf16.msrb.mxu2 %v11396_v21  ;;  %v11843_v42 = vld [vmem:[#allocation11 + $0xd00] sm:$0xf]  ;;  %v13124_v50 = vor.u32 %v15189_v38, %v13123_v35 }
  0xd3   :  { %7620 = vmatpush.bf16.msrb.mxu3 %v11908_v26  ;;  %v14869_v43 = vld [vmem:[#allocation11 + $0xd3c] sm:$0xf0] }
  0xd4   :  { %7582 = vmatpush.bf16.msrb.mxu0 %v10308_v54  ;;  %v11844_v46 = vor.u32 %v14869_v43, %v11843_v42  ;;  %v11267_v48 = vld [vmem:[#allocation11 + $0x880] sm:$0xf]  ;;  %v285_v43 = vperm.slane %v15883_v31, 0 }
  0xd5   :  { %7595 = vmatpush.bf16.msrb.mxu1 %v10820_v58  ;;  %v14725_v49 = vld [vmem:[#allocation11 + $0x8bc] sm:$0xf0] }
  0xd6   :  { %v12547_v51 = vld [vmem:[#allocation11 + $0x1280] sm:$0xf]  ;;  %7608 = vmatpush.bf16.msrb.mxu2 %v11332_v41  ;;  %v11268_v54 = vor.u32 %v14725_v49, %v11267_v48 }
  0xd7   :  { %v15045_v52 = vld [vmem:[#allocation11 + $0x12bc] sm:$0xf0]  ;;  %7621 = vmatpush.bf16.msrb.mxu3 %v11844_v46  ;;  %v286_v46 = vperm.slane %v15883_v31, 1 }
  0xd8   :  { %7583 = vmatpush.bf16.msrb.mxu0 %v10244_v7  ;;  %v13059_v53 = vld [vmem:[#allocation11 + $0x1680] sm:$0xf]  ;;  %v12548_v61 = vor.u32 %v15045_v52, %v12547_v51  ;;  %v1356_v7 = vld [vmem:[#allocation3 + $0x18] sm:$0xff] }
  0xd9   :  { %7596 = vmatpush.bf16.msrb.mxu1 %v10756_v14  ;;  %v15173_v55 = vld [vmem:[#allocation11 + $0x16bc] sm:$0xf0]  ;;  %v1358_v12 = vpack.c.bf16 %v1356_v7, %v1355_v1 }
  0xda   :  { %v11779_v56 = vld [vmem:[#allocation11 + $0xc80] sm:$0xf]  ;;  %v13060_v2 = vor.u32 %v15173_v55, %v13059_v53  ;;  %7609 = vmatpush.bf16.msrb.mxu2 %v11268_v54  ;;  %v14557_v53 = vld [vmem:[#allocation11 + $0x384] sm:$0xf] }
  0xdb   :  { %v14853_v58 = vld [vmem:[#allocation11 + $0xcbc] sm:$0xf0]  ;;  %v2435_v17 = vunpack.c.l.b16 %v1358_v12  ;;  %v2436_v18 = vunpack.c.h.b16 %v1358_v12  ;;  %v10629_v54 = vld [vmem:[#allocation11 + $0x3c0] sm:$0xf0] }
  0xdc   :  { %7584 = vmatpush.bf16.msrb.mxu0 %v10180_v28  ;;  %v12483_v59 = vld [vmem:[#allocation11 + $0x1200] sm:$0xf]  ;;  %v11780_v60 = vor.u32 %v14853_v58, %v11779_v56  ;;  %v15871_v16 = vpop.f32.mrf.mxu0  ;;  %v10632_v7 = vor.u32 %v14557_v53, %v10629_v54  ;;  %v14669_v12 = vld [vmem:[#allocation11 + $0x704] sm:$0xf] }
  0xdd   :  { %7597 = vmatpush.bf16.msrb.mxu1 %v10692_v15  ;;  %v11203_v62 = vld [vmem:[#allocation11 + $0x800] sm:$0xf]  ;;  %v15873_v22 = vpop.f32.mrf.mxu1  ;;  %v15875_v25 = vpack.c.b16 %v2435_v17, %v2435_v17  ;;  %v15877_v26 = vpack.c.b16 %v2436_v18, %v2436_v18  ;;  %v14493_v54 = vld [vmem:[#allocation11 + $0x184] sm:$0xf] }
  0xde   :  { %v14709_v0 = vld [vmem:[#allocation11 + $0x83c] sm:$0xf0]  ;;  %7622 = vmatpush.bf16.msrb.mxu3 %v11780_v60  ;;  %v11141_v60 = vld [vmem:[#allocation11 + $0x7c0] sm:$0xf0] }
  0xdf   :  { %7585 = vmatmul.bf16.vlgmr.msrb.gmra.mxu0 %v15865_v40  ;;  %v15029_v3 = vld [vmem:[#allocation11 + $0x123c] sm:$0xf0]  ;;  %v11204_v6 = vor.u32 %v14709_v0, %v11203_v62 }
  0xe0   :  { %7629 = vmatpush.bf16.msra.mxu0 %v12676_v30  ;;  %7598 = vmatmul.bf16.vlgmr.msrb.gmra.mxu1 %v15867_v45  ;;  %v12995_v4 = vld [vmem:[#allocation11 + $0x1600] sm:$0xf]  ;;  %v12484_v14 = vor.u32 %v15029_v3, %v12483_v59  ;;  %v14685_v59 = vld [vmem:[#allocation11 + $0x784] sm:$0xf] }
  0xe1   :  { %7642 = vmatpush.bf16.msra.mxu1 %v13188_v33  ;;  %v15157_v10 = vld [vmem:[#allocation11 + $0x163c] sm:$0xf0]  ;;  %7610 = vmatpush.bf16.msrb.mxu2 %v11204_v6 }
  0xe2   :  { %v11715_v9 = vld [vmem:[#allocation11 + $0xc00] sm:$0xf]  ;;  %v12996_v19 = vor.u32 %v15157_v10, %v12995_v4  ;;  %v1103_v4 = vadd.f32 %v15857_v44, %v285_v43  ;;  %v14541_v10 = vld [vmem:[#allocation11 + $0x304] sm:$0xf] }
  0xe3   :  { %v14837_v11 = vld [vmem:[#allocation11 + $0xc3c] sm:$0xf0]  ;;  %v10437_v43 = vld [vmem:[#allocation11 + $0x240] sm:$0xf0] }
  0xe4   :  { %7630 = vmatpush.bf16.msra.mxu0 %v12612_v47  ;;  %v11716_v13 = vor.u32 %v14837_v11, %v11715_v9  ;;  %v12419_v20 = vld [vmem:[#allocation11 + $0x1180] sm:$0xf]  ;;  %7611 = vmatmul.bf16.vlgmr.msrb.gmra.mxu2 %v15875_v25  ;;  %v15881_v32 = vpop.f32.mrf.mxu2  ;;  %v1156_v34 = vpop.f32.mrf.mxu0  ;;  %v11144_v9 = vor.u32 %v14685_v59, %v11141_v60  ;;  %v10565_v11 = vld [vmem:[#allocation11 + $0x340] sm:$0xf0]  ;;  %v1116_v44 = vadd.f32 %v15859_v57, %v1103_v4 }
  0xe5   :  { %7643 = vmatpush.bf16.msra.mxu1 %v13124_v50  ;;  %v15013_v21 = vld [vmem:[#allocation11 + $0x11bc] sm:$0xf0]  ;;  %v15885_v35 = vpop.f32.mrf.mxu3  ;;  %v1169_v39 = vpop.f32.mrf.mxu1  ;;  %v10373_v59 = vld [vmem:[#allocation11 + $0x1c0] sm:$0xf0] }
  0xe6   :  { %v12931_v23 = vld [vmem:[#allocation11 + $0x1580] sm:$0xf]  ;;  %7623 = vmatpush.bf16.msrb.mxu3 %v11716_v13  ;;  %v12420_v27 = vor.u32 %v15013_v21, %v12419_v20  ;;  %v11077_v13 = vld [vmem:[#allocation11 + $0x740] sm:$0xf0]  ;;  %v1129_v57 = vadd.f32 %v15861_v63, %v1116_v44 }
  0xe7   :  { %v15141_v24 = vld [vmem:[#allocation11 + $0x15bc] sm:$0xf0]  ;;  %v14509_v39 = vld [vmem:[#allocation11 + $0x204] sm:$0xf] }
  0xe8   :  { %7631 = vmatpush.bf16.msra.mxu0 %v12548_v61  ;;  %v12932_v28 = vor.u32 %v15141_v24, %v12931_v23  ;;  %v12355_v29 = vld [vmem:[#allocation11 + $0x1100] sm:$0xf]  ;;  %v10568_v23 = vor.u32 %v14541_v10, %v10565_v11  ;;  %v1142_v63 = vadd.f32 %v15863_v5, %v1129_v57  ;;  %v10440_v53 = vor.u32 %v14509_v39, %v10437_v43  ;;  %v14621_v60 = vld [vmem:[#allocation11 + $0x584] sm:$0xf] }
  0xe9   :  { %7644 = vmatpush.bf16.msra.mxu1 %v13060_v2  ;;  %v14997_v8 = vld [vmem:[#allocation11 + $0x113c] sm:$0xf0]  ;;  %7624 = vmatmul.bf16.vlgmr.msrb.gmra.mxu3 %v15877_v26  ;;  %v14477_v10 = vld [vmem:[#allocation11 + $0x104] sm:$0xf] }
  0xea   :  { %v12867_v15 = vld [vmem:[#allocation11 + $0x1500] sm:$0xf]  ;;  %v12356_v33 = vor.u32 %v14997_v8, %v12355_v29  ;;  %v10501_v29 = vld [vmem:[#allocation11 + $0x2c0] sm:$0xf0]  ;;  %v15897_v5 = vadd.f32 %v15871_v16, %v1142_v63 }
  0xeb   :  { %v15125_v30 = vld [vmem:[#allocation11 + $0x153c] sm:$0xf0]  ;;  %v14653_v8 = vld [vmem:[#allocation11 + $0x684] sm:$0xf] }
  0xec   :  { %7632 = vmatpush.bf16.msra.mxu0 %v12484_v14  ;;  %v12868_v36 = vor.u32 %v15125_v30, %v12867_v15  ;;  %v12291_v37 = vld [vmem:[#allocation11 + $0x1080] sm:$0xf]  ;;  %v1182_v61 = vpop.f32.mrf.mxu2  ;;  %v1168_v14 = vadd.f32 %v15873_v22, %v286_v46  ;;  %v11013_v15 = vld [vmem:[#allocation11 + $0x6c0] sm:$0xf0] }
  0xed   :  { %7645 = vmatpush.bf16.msra.mxu1 %v12996_v19  ;;  %v14981_v38 = vld [vmem:[#allocation11 + $0x10bc] sm:$0xf0]  ;;  %v1195_v2 = vpop.f32.mrf.mxu3  ;;  %v14637_v46 = vld [vmem:[#allocation11 + $0x604] sm:$0xf] }
  0xee   :  { %v12803_v41 = vld [vmem:[#allocation11 + $0x1480] sm:$0xf]  ;;  %v12292_v47 = vor.u32 %v14981_v38, %v12291_v37  ;;  %v1181_v22 = vadd.f32 %v15881_v32, %v1168_v14  ;;  %v10885_v61 = vld [vmem:[#allocation11 + $0x5c0] sm:$0xf0] }
  0xef   :  { %v15109_v42 = vld [vmem:[#allocation11 + $0x14bc] sm:$0xf0]  ;;  %v10888_v11 = vor.u32 %v14621_v60, %v10885_v61  ;;  %v10821_v14 = vld [vmem:[#allocation11 + $0x540] sm:$0xf0] }
  0xf0   :  { %7633 = vmatpush.bf16.msra.mxu0 %v12420_v27  ;;  %v12227_v48 = vld [vmem:[#allocation11 + $0x1000] sm:$0xf]  ;;  %v12804_v51 = vor.u32 %v15109_v42, %v12803_v41  ;;  %v11080_v27 = vor.u32 %v14669_v12, %v11077_v13  ;;  %v11016_v42 = vor.u32 %v14653_v8, %v11013_v15  ;;  %v1194_v32 = vadd.f32 %v15885_v35, %v1181_v22  ;;  %v10309_v12 = vld [vmem:[#allocation11 + $0x140] sm:$0xf0] }
  0xf1   :  { %7646 = vmatpush.bf16.msra.mxu1 %v12932_v28  ;;  %v14965_v49 = vld [vmem:[#allocation11 + $0x103c] sm:$0xf0]  ;;  %v14525_v28 = vld [vmem:[#allocation11 + $0x284] sm:$0xf] }
  0xf2   :  { %v12739_v50 = vld [vmem:[#allocation11 + $0x1400] sm:$0xf]  ;;  %v12228_v1 = vor.u32 %v14965_v49, %v12227_v48  ;;  %v10504_v38 = vor.u32 %v14525_v28, %v10501_v29  ;;  %v14605_v13 = vld [vmem:[#allocation11 + $0x504] sm:$0xf] }
  0xf3   :  { %v15093_v52 = vld [vmem:[#allocation11 + $0x143c] sm:$0xf0]  ;;  %v10824_v8 = vor.u32 %v14605_v13, %v10821_v14  ;;  %v10245_v22 = vld [vmem:[#allocation11 + $0xc0] sm:$0xf0] }
  0xf4   :  { %7634 = vmatpush.bf16.msra.mxu0 %v12356_v33  ;;  %v13699_v55 = vld [vmem:[#allocation11 + $0x1b80] sm:$0xf]  ;;  %v12740_v6 = vor.u32 %v15093_v52, %v12739_v50  ;;  %v14589_v15 = vld [vmem:[#allocation11 + $0x484] sm:$0xf] }
  0xf5   :  { %7647 = vmatpush.bf16.msra.mxu1 %v12868_v36  ;;  %v15333_v56 = vld [vmem:[#allocation11 + $0x1bbc] sm:$0xf0]  ;;  %v10181_v43 = vld [vmem:[#allocation11 + $0x40] sm:$0xf0] }
  0xf6   :  { %v14211_v58 = vld [vmem:[#allocation11 + $0x1f80] sm:$0xf]  ;;  %v13700_v62 = vor.u32 %v15333_v56, %v13699_v55  ;;  %v12677_v63 = vld [vmem:[#allocation11 + $0x13c0] sm:$0xf0] }
  0xf7   :  { %v15461_v0 = vld [vmem:[#allocation11 + $0x1fbc] sm:$0xf0]  ;;  %v14813_v61 = vld [vmem:[#allocation11 + $0xb84] sm:$0xf] }
  0xf8   :  { %7635 = vmatpush.bf16.msra.mxu0 %v12292_v47  ;;  %v14212_v3 = vor.u32 %v15461_v0, %v14211_v58  ;;  %7655 = vmatpush.bf16.msra.mxu2 %v13700_v62  ;;  %v13635_v17 = vld [vmem:[#allocation11 + $0x1b00] sm:$0xf]  ;;  %v10949_v47 = vld [vmem:[#allocation11 + $0x640] sm:$0xf0] }
  0xf9   :  { %7648 = vmatpush.bf16.msra.mxu1 %v12804_v51  ;;  %v15317_v18 = vld [vmem:[#allocation11 + $0x1b3c] sm:$0xf0]  ;;  %v10952_v58 = vor.u32 %v14637_v46, %v10949_v47  ;;  %v15053_v13 = vld [vmem:[#allocation11 + $0x1304] sm:$0xf] }
  0xfa   :  { %7668 = vmatpush.bf16.msra.mxu3 %v14212_v3  ;;  %v14147_v19 = vld [vmem:[#allocation11 + $0x1f00] sm:$0xf]  ;;  %v13636_v20 = vor.u32 %v15317_v18, %v13635_v17  ;;  %v12613_v14 = vld [vmem:[#allocation11 + $0x1340] sm:$0xf0] }
  0xfb   :  { %v15445_v21 = vld [vmem:[#allocation11 + $0x1f3c] sm:$0xf0] }
  0xfc   :  { %7636 = vmatpush.bf16.msra.mxu0 %v12228_v1  ;;  %v14148_v24 = vor.u32 %v15445_v21, %v14147_v19  ;;  %7656 = vmatpush.bf16.msra.mxu2 %v13636_v20  ;;  %v13571_v30 = vld [vmem:[#allocation11 + $0x1a80] sm:$0xf]  ;;  %v1206_v56 = vpop.f32.mrf.mxu0 }
  0xfd   :  { %7649 = vmatpush.bf16.msra.mxu1 %v12740_v6  ;;  %v15301_v33 = vld [vmem:[#allocation11 + $0x1abc] sm:$0xf0]  ;;  %v1207_v35 = vadd.f32 %v1206_v56, %v1194_v32  ;;  %v1219_v62 = vpop.f32.mrf.mxu1 }
  0xfe   :  { %7669 = vmatpush.bf16.msra.mxu3 %v14148_v24  ;;  %v13572_v34 = vor.u32 %v15301_v33, %v13571_v30  ;;  %v14083_v36 = vld [vmem:[#allocation11 + $0x1e80] sm:$0xf]  ;;  %v10312_v24 = vor.u32 %v14477_v10, %v10309_v12  ;;  %v10757_v30 = vld [vmem:[#allocation11 + $0x4c0] sm:$0xf0] }
  0xff   :  { %v15429_v37 = vld [vmem:[#allocation11 + $0x1ebc] sm:$0xf0]  ;;  %v15899_v6 = vadd.f32 %v1219_v62, %v1207_v35  ;;  %v11653_v35 = vld [vmem:[#allocation11 + $0xbc0] sm:$0xf0] }
 0x100   :  { %7681 = vmatpush.bf16.msrb.mxu0 %v10632_v7  ;;  %v14084_v41 = vor.u32 %v15429_v37, %v14083_v36  ;;  %7657 = vmatpush.bf16.msra.mxu2 %v13572_v34  ;;  %v13507_v48 = vld [vmem:[#allocation11 + $0x1a00] sm:$0xf]  ;;  %v10376_v7 = vor.u32 %v14493_v54, %v10373_v59  ;;  %v13189_v54 = vld [vmem:[#allocation11 + $0x17c0] sm:$0xf0] }
 0x101   :  { %7694 = vmatpush.bf16.msrb.mxu1 %v11144_v9  ;;  %v15285_v49 = vld [vmem:[#allocation11 + $0x1a3c] sm:$0xf0]  ;;  %v1361_v17 = vpack.c.bf16 %v15899_v6, %v15897_v5 }
 0x102   :  { %7670 = vmatpush.bf16.msra.mxu3 %v14084_v41  ;;  %v14019_v50 = vld [vmem:[#allocation11 + $0x1e00] sm:$0xf]  ;;  %v13508_v51 = vor.u32 %v15285_v49, %v13507_v48  ;;  %v14573_v48 = vld [vmem:[#allocation11 + $0x404] sm:$0xf] }
 0x103   :  { %v15413_v52 = vld [vmem:[#allocation11 + $0x1e3c] sm:$0xf0]  ;;  %v2437_v44 = vunpack.c.l.b16 %v1361_v17  ;;  %v10693_v49 = vld [vmem:[#allocation11 + $0x440] sm:$0xf0] }
 0x104   :  { %7682 = vmatpush.bf16.msrb.mxu0 %v10568_v23  ;;  %v14020_v55 = vor.u32 %v15413_v52, %v14019_v50  ;;  %7658 = vmatpush.bf16.msra.mxu2 %v13508_v51  ;;  %v13443_v0 = vld [vmem:[#allocation11 + $0x1980] sm:$0xf]  ;;  %v2438_v23 = vunpack.c.h.b16 %v1361_v17  ;;  %v15903_v28 = vpop.f32.mrf.mxu2  ;;  %v1208_v34 = vpop.f32.mrf.mxu0  ;;  %v15069_v50 = vld [vmem:[#allocation11 + $0x1384] sm:$0xf]  ;;  %v10760_v52 = vor.u32 %v14589_v15, %v10757_v30 }
 0x105   :  { %7695 = vmatpush.bf16.msrb.mxu1 %v11080_v27  ;;  %v15269_v1 = vld [vmem:[#allocation11 + $0x19bc] sm:$0xf0]  ;;  %v14461_v27 = vld [vmem:[#allocation11 + $0x84] sm:$0xf]  ;;  %v15905_v33 = vpop.f32.mrf.mxu3  ;;  %v15907_v36 = vpack.c.b16 %v2437_v44, %v2437_v44  ;;  %v1221_v57 = vpop.f32.mrf.mxu1  ;;  %v12680_v10 = vor.u32 %v15069_v50, %v12677_v63 }
 0x106   :  { %7671 = vmatpush.bf16.msra.mxu3 %v14020_v55  ;;  %v13955_v2 = vld [vmem:[#allocation11 + $0x1d80] sm:$0xf]  ;;  %v13444_v3 = vor.u32 %v15269_v1, %v13443_v0  ;;  %v15909_v37 = vpack.c.b16 %v2438_v23, %v2438_v23  ;;  %v10248_v32 = vor.u32 %v14461_v27, %v10245_v22  ;;  %v15181_v17 = vld [vmem:[#allocation11 + $0x1704] sm:$0xf]  ;;  %v12616_v23 = vor.u32 %v15053_v13, %v12613_v14 }
 0x107   :  { %v15397_v4 = vld [vmem:[#allocation11 + $0x1dbc] sm:$0xf0]  ;;  %7637 = vmatmul.bf16.vlgmr.msra.gmra.mxu0 %v15907_v36  ;;  %v12101_v44 = vld [vmem:[#allocation11 + $0xf40] sm:$0xf0] }
 0x108   :  { %7683 = vmatpush.bf16.msrb.mxu0 %v10504_v38  ;;  %v13956_v9 = vor.u32 %v15397_v4, %v13955_v2  ;;  %7659 = vmatpush.bf16.msra.mxu2 %v13444_v3  ;;  %v13379_v18 = vld [vmem:[#allocation11 + $0x1900] sm:$0xf]  ;;  %v11656_v2 = vor.u32 %v14813_v61, %v11653_v35  ;;  %v14941_v3 = vld [vmem:[#allocation11 + $0xf84] sm:$0xf] }
 0x109   :  { %7696 = vmatpush.bf16.msrb.mxu1 %v11016_v42  ;;  %v15253_v19 = vld [vmem:[#allocation11 + $0x193c] sm:$0xf0]  ;;  %v14445_v42 = vld [vmem:[#allocation11 + $0x4] sm:$0xf] }
 0x10a   :  { %7672 = vmatpush.bf16.msra.mxu3 %v13956_v9  ;;  %v13891_v16 = vld [vmem:[#allocation11 + $0x1d00] sm:$0xf]  ;;  %v13380_v20 = vor.u32 %v15253_v19, %v13379_v18  ;;  %7650 = vmatmul.bf16.vlgmr.msra.gmra.mxu1 %v15909_v37  ;;  %v10184_v62 = vor.u32 %v14445_v42, %v10181_v43  ;;  %v12165_v4 = vld [vmem:[#allocation11 + $0xfc0] sm:$0xf0] }
 0x10b   :  { %v15381_v21 = vld [vmem:[#allocation11 + $0x1d3c] sm:$0xf0]  ;;  %v13125_v18 = vld [vmem:[#allocation11 + $0x1740] sm:$0xf0] }
 0x10c   :  { %7684 = vmatpush.bf16.msrb.mxu0 %v10440_v53  ;;  %v13892_v29 = vor.u32 %v15381_v21, %v13891_v16  ;;  %7660 = vmatpush.bf16.msra.mxu2 %v13380_v20  ;;  %v13315_v38 = vld [vmem:[#allocation11 + $0x1880] sm:$0xf]  ;;  %v15197_v53 = vld [vmem:[#allocation11 + $0x1784] sm:$0xf]  ;;  %v1234_v0 = vpop.f32.mrf.mxu2 }
 0x10d   :  { %7697 = vmatpush.bf16.msrb.mxu1 %v10952_v58  ;;  %v15237_v39 = vld [vmem:[#allocation11 + $0x18bc] sm:$0xf0]  ;;  %v1247_v9 = vpop.f32.mrf.mxu3  ;;  %v13192_v12 = vor.u32 %v15197_v53, %v13189_v54  ;;  %v14797_v19 = vld [vmem:[#allocation11 + $0xb04] sm:$0xf] }
 0x10e   :  { %7673 = vmatpush.bf16.msra.mxu3 %v13892_v29  ;;  %v13827_v41 = vld [vmem:[#allocation11 + $0x1c80] sm:$0xf]  ;;  %v13316_v46 = vor.u32 %v15237_v39, %v13315_v38  ;;  %v11589_v16 = vld [vmem:[#allocation11 + $0xb40] sm:$0xf0]  ;;  %v13128_v29 = vor.u32 %v15181_v17, %v13125_v18 }
 0x10f   :  { %v15365_v47 = vld [vmem:[#allocation11 + $0x1cbc] sm:$0xf0]  ;;  %v11592_v20 = vor.u32 %v14797_v19, %v11589_v16  ;;  %v14925_v21 = vld [vmem:[#allocation11 + $0xf04] sm:$0xf] }
 0x110   :  { %7685 = vmatpush.bf16.msrb.mxu0 %v10376_v7  ;;  %v13828_v51 = vor.u32 %v15365_v47, %v13827_v41  ;;  %7661 = vmatpush.bf16.msra.mxu2 %v13316_v46  ;;  %v13251_v55 = vld [vmem:[#allocation11 + $0x1800] sm:$0xf]  ;;  %v10696_v7 = vor.u32 %v14573_v48, %v10693_v49  ;;  %v12104_v27 = vor.u32 %v14925_v21, %v12101_v44  ;;  %v15165_v22 = vld [vmem:[#allocation11 + $0x1684] sm:$0xf] }
 0x111   :  { %7698 = vmatpush.bf16.msrb.mxu1 %v10888_v11  ;;  %v15221_v56 = vld [vmem:[#allocation11 + $0x183c] sm:$0xf0]  ;;  %v12168_v11 = vor.u32 %v14941_v3, %v12165_v4  ;;  %v13061_v15 = vld [vmem:[#allocation11 + $0x16c0] sm:$0xf0] }
 0x112   :  { %7674 = vmatpush.bf16.msra.mxu3 %v13828_v51  ;;  %v13763_v58 = vld [vmem:[#allocation11 + $0x1c00] sm:$0xf]  ;;  %v13252_v59 = vor.u32 %v15221_v56, %v13251_v55  ;;  %v14781_v30 = vld [vmem:[#allocation11 + $0xa84] sm:$0xf]  ;;  %v13064_v46 = vor.u32 %v15165_v22, %v13061_v15 }
 0x113   :  { %v15349_v60 = vld [vmem:[#allocation11 + $0x1c3c] sm:$0xf0]  ;;  %v11525_v34 = vld [vmem:[#allocation11 + $0xac0] sm:$0xf0] }
 0x114   :  { %7686 = vmatpush.bf16.msrb.mxu0 %v10312_v24  ;;  %v13764_v1 = vor.u32 %v15349_v60, %v13763_v58  ;;  %7662 = vmatpush.bf16.msra.mxu2 %v13252_v59  ;;  %v15037_v24 = vld [vmem:[#allocation11 + $0x1284] sm:$0xf]  ;;  %v11528_v38 = vor.u32 %v14781_v30, %v11525_v34 }
 0x115   :  { %7699 = vmatpush.bf16.msrb.mxu1 %v10824_v8  ;;  %v12549_v8 = vld [vmem:[#allocation11 + $0x12c0] sm:$0xf0] }
 0x116   :  { %7675 = vmatpush.bf16.msra.mxu3 %v13764_v1  ;;  %v14909_v57 = vld [vmem:[#allocation11 + $0xe84] sm:$0xf]  ;;  %v12552_v41 = vor.u32 %v15037_v24, %v12549_v8 }
 0x117   :  { %v12037_v39 = vld [vmem:[#allocation11 + $0xec0] sm:$0xf0] }
 0x118   :  { %7687 = vmatpush.bf16.msrb.mxu0 %v10248_v32  ;;  %7707 = vmatpush.bf16.msrb.mxu2 %v11656_v2  ;;  %v15021_v42 = vld [vmem:[#allocation11 + $0x1204] sm:$0xf]  ;;  %v12040_v43 = vor.u32 %v14909_v57, %v12037_v39 }
 0x119   :  { %7700 = vmatpush.bf16.msrb.mxu1 %v10760_v52  ;;  %v12485_v47 = vld [vmem:[#allocation11 + $0x1240] sm:$0xf0] }
 0x11a   :  { %7720 = vmatpush.bf16.msrb.mxu3 %v12168_v11  ;;  %v15149_v32 = vld [vmem:[#allocation11 + $0x1604] sm:$0xf]  ;;  %v12488_v53 = vor.u32 %v15021_v42, %v12485_v47 }
 0x11b   :  { %v12997_v48 = vld [vmem:[#allocation11 + $0x1640] sm:$0xf0] }
 0x11c   :  { %7688 = vmatpush.bf16.msrb.mxu0 %v10184_v62  ;;  %7708 = vmatpush.bf16.msrb.mxu2 %v11592_v20  ;;  %v14765_v49 = vld [vmem:[#allocation11 + $0xa04] sm:$0xf]  ;;  %v13000_v56 = vor.u32 %v15149_v32, %v12997_v48  ;;  %v15915_v0 = vpop.f32.mrf.mxu0 }
 0x11d   :  { %7701 = vmatpush.bf16.msrb.mxu1 %v10696_v7  ;;  %v11461_v50 = vld [vmem:[#allocation11 + $0xa40] sm:$0xf0]  ;;  %v15917_v4 = vpop.f32.mrf.mxu1 }
 0x11e   :  { %7721 = vmatpush.bf16.msrb.mxu3 %v12104_v27  ;;  %v14893_v51 = vld [vmem:[#allocation11 + $0xe04] sm:$0xf]  ;;  %v11464_v52 = vor.u32 %v14765_v49, %v11461_v50  ;;  %v10635_v50 = vld [vmem:[#allocation11 + $0x388] sm:$0xf] }
 0x11f   :  { %v11973_v63 = vld [vmem:[#allocation11 + $0xe40] sm:$0xf0]  ;;  %7689 = vmatmul.bf16.vlgmr.msrb.gmra.mxu0 %v15865_v40 }
 0x120   :  { %7733 = vmatpush.bf16.msra.mxu0 %v12680_v10  ;;  %7709 = vmatpush.bf16.msrb.mxu2 %v11528_v38  ;;  %v15005_v54 = vld [vmem:[#allocation11 + $0x1184] sm:$0xf]  ;;  %v11976_v55 = vor.u32 %v14893_v51, %v11973_v63  ;;  %v14566_v51 = vld [vmem:[#allocation11 + $0x3c4] sm:$0xf0] }
 0x121   :  { %7746 = vmatpush.bf16.msra.mxu1 %v13192_v12  ;;  %v12421_v58 = vld [vmem:[#allocation11 + $0x11c0] sm:$0xf0] }
 0x122   :  { %7722 = vmatpush.bf16.msrb.mxu3 %v12040_v43  ;;  %7702 = vmatmul.bf16.vlgmr.msrb.gmra.mxu1 %v15867_v45  ;;  %v15133_v59 = vld [vmem:[#allocation11 + $0x1584] sm:$0xf]  ;;  %v12424_v3 = vor.u32 %v15005_v54, %v12421_v58  ;;  %v11147_v54 = vld [vmem:[#allocation11 + $0x788] sm:$0xf] }
 0x123   :  { %v12933_v60 = vld [vmem:[#allocation11 + $0x15c0] sm:$0xf0] }
 0x124   :  { %7734 = vmatpush.bf16.msra.mxu0 %v12616_v23  ;;  %7710 = vmatpush.bf16.msrb.mxu2 %v11464_v52  ;;  %v14749_v61 = vld [vmem:[#allocation11 + $0x984] sm:$0xf]  ;;  %v12936_v9 = vor.u32 %v15133_v59, %v12933_v60  ;;  %v15919_v21 = vpop.f32.mrf.mxu2  ;;  %v1260_v57 = vpop.f32.mrf.mxu0 }
 0x125   :  { %7747 = vmatpush.bf16.msra.mxu1 %v13128_v29  ;;  %v11397_v35 = vld [vmem:[#allocation11 + $0x9c0] sm:$0xf0]  ;;  %v15921_v27 = vpop.f32.mrf.mxu3  ;;  %v1273_v42 = vpop.f32.mrf.mxu1  ;;  %v10379_v57 = vld [vmem:[#allocation11 + $0x188] sm:$0xf] }
 0x126   :  { %7723 = vmatpush.bf16.msrb.mxu3 %v11976_v55  ;;  %v14877_v62 = vld [vmem:[#allocation11 + $0xd84] sm:$0xf]  ;;  %v11400_v1 = vor.u32 %v14749_v61, %v11397_v35  ;;  %v14694_v55 = vld [vmem:[#allocation11 + $0x7c4] sm:$0xf0] }
 0x127   :  { %v11909_v2 = vld [vmem:[#allocation11 + $0xdc0] sm:$0xf0]  ;;  %v14630_v42 = vld [vmem:[#allocation11 + $0x5c4] sm:$0xf0] }
 0x128   :  { %7735 = vmatpush.bf16.msra.mxu0 %v12552_v41  ;;  %v14989_v7 = vld [vmem:[#allocation11 + $0x1104] sm:$0xf]  ;;  %v11912_v10 = vor.u32 %v14877_v62, %v11909_v2  ;;  %7711 = vmatpush.bf16.msrb.mxu2 %v11400_v1  ;;  %v10636_v62 = vor.u32 %v14566_v51, %v10635_v50  ;;  %v11148_v2 = vor.u32 %v14694_v55, %v11147_v54  ;;  %v14614_v50 = vld [vmem:[#allocation11 + $0x544] sm:$0xf0] }
 0x129   :  { %7748 = vmatpush.bf16.msra.mxu1 %v13064_v46  ;;  %v12357_v11 = vld [vmem:[#allocation11 + $0x1140] sm:$0xf0]  ;;  %v10251_v54 = vld [vmem:[#allocation11 + $0x88] sm:$0xf] }
 0x12a   :  { %v15117_v12 = vld [vmem:[#allocation11 + $0x1504] sm:$0xf]  ;;  %7724 = vmatpush.bf16.msrb.mxu3 %v11912_v10  ;;  %v12360_v20 = vor.u32 %v14989_v7, %v12357_v11  ;;  %v14550_v7 = vld [vmem:[#allocation11 + $0x344] sm:$0xf0]  ;;  %v287_v11 = vperm.slane %v15883_v31, 2 }
 0x12b   :  { %v12869_v13 = vld [vmem:[#allocation11 + $0x1540] sm:$0xf0]  ;;  %v11083_v10 = vld [vmem:[#allocation11 + $0x708] sm:$0xf] }
 0x12c   :  { %7736 = vmatpush.bf16.msra.mxu0 %v12488_v53  ;;  %v14733_v14 = vld [vmem:[#allocation11 + $0x904] sm:$0xf]  ;;  %v12872_v24 = vor.u32 %v15117_v12, %v12869_v13  ;;  %v1286_v60 = vpop.f32.mrf.mxu2  ;;  %v14470_v55 = vld [vmem:[#allocation11 + $0xc4] sm:$0xf0] }
 0x12d   :  { %7749 = vmatpush.bf16.msra.mxu1 %v13000_v56  ;;  %v11333_v17 = vld [vmem:[#allocation11 + $0x940] sm:$0xf0]  ;;  %v1299_v1 = vpop.f32.mrf.mxu3  ;;  %v14598_v60 = vld [vmem:[#allocation11 + $0x4c4] sm:$0xf0] }
 0x12e   :  { %v14861_v18 = vld [vmem:[#allocation11 + $0xd04] sm:$0xf]  ;;  %v11336_v19 = vor.u32 %v14733_v14, %v11333_v17  ;;  %v10507_v14 = vld [vmem:[#allocation11 + $0x288] sm:$0xf] }
 0x12f   :  { %v11845_v16 = vld [vmem:[#allocation11 + $0xd40] sm:$0xf0]  ;;  %v14534_v17 = vld [vmem:[#allocation11 + $0x2c4] sm:$0xf0] }
 0x130   :  { %7737 = vmatpush.bf16.msra.mxu0 %v12424_v3  ;;  %v14973_v44 = vld [vmem:[#allocation11 + $0x1084] sm:$0xf]  ;;  %v11848_v23 = vor.u32 %v14861_v18, %v11845_v16  ;;  %7712 = vmatpush.bf16.msrb.mxu2 %v11336_v19  ;;  %v10571_v3 = vld [vmem:[#allocation11 + $0x308] sm:$0xf]  ;;  %v1233_v16 = vadd.f32 %v15903_v28, %v287_v11 }
 0x131   :  { %7750 = vmatpush.bf16.msra.mxu1 %v12936_v9  ;;  %v12293_v29 = vld [vmem:[#allocation11 + $0x10c0] sm:$0xf0]  ;;  %v14678_v9 = vld [vmem:[#allocation11 + $0x744] sm:$0xf0]  ;;  %v10572_v12 = vor.u32 %v14550_v7, %v10571_v3 }
 0x132   :  { %v15101_v8 = vld [vmem:[#allocation11 + $0x1484] sm:$0xf]  ;;  %7725 = vmatpush.bf16.msrb.mxu3 %v11848_v23  ;;  %v12296_v41 = vor.u32 %v14973_v44, %v12293_v29  ;;  %v11084_v13 = vor.u32 %v14678_v9, %v11083_v10  ;;  %v11019_v18 = vld [vmem:[#allocation11 + $0x688] sm:$0xf]  ;;  %v288_v29 = vperm.slane %v15883_v31, 3 }
 0x133   :  { %v12805_v22 = vld [vmem:[#allocation11 + $0x14c0] sm:$0xf0]  ;;  %v14662_v19 = vld [vmem:[#allocation11 + $0x6c4] sm:$0xf0] }
 0x134   :  { %v14717_v15 = vld [vmem:[#allocation11 + $0x884] sm:$0xf]  ;;  %7738 = vmatpush.bf16.msra.mxu0 %v12360_v20  ;;  %v12808_v48 = vor.u32 %v15101_v8, %v12805_v22  ;;  %v10508_v20 = vor.u32 %v14534_v17, %v10507_v14  ;;  %v11020_v44 = vor.u32 %v14662_v19, %v11019_v18  ;;  %v10443_v23 = vld [vmem:[#allocation11 + $0x208] sm:$0xf]  ;;  %v1298_v28 = vadd.f32 %v15921_v27, %v288_v29 }
 0x135   :  { %v11269_v30 = vld [vmem:[#allocation11 + $0x8c0] sm:$0xf0]  ;;  %7751 = vmatpush.bf16.msra.mxu1 %v12872_v24  ;;  %v14518_v24 = vld [vmem:[#allocation11 + $0x244] sm:$0xf0] }
 0x136   :  { %v14845_v34 = vld [vmem:[#allocation11 + $0xc84] sm:$0xf]  ;;  %v11272_v38 = vor.u32 %v14717_v15, %v11269_v30  ;;  %v10955_v8 = vld [vmem:[#allocation11 + $0x608] sm:$0xf]  ;;  %v1246_v15 = vadd.f32 %v15905_v33, %v1233_v16  ;;  %v10444_v30 = vor.u32 %v14518_v24, %v10443_v23 }
 0x137   :  { %v11781_v39 = vld [vmem:[#allocation11 + $0xcc0] sm:$0xf0]  ;;  %v14646_v22 = vld [vmem:[#allocation11 + $0x644] sm:$0xf0] }
 0x138   :  { %v14957_v43 = vld [vmem:[#allocation11 + $0x1004] sm:$0xf]  ;;  %v11784_v32 = vor.u32 %v14845_v34, %v11781_v39  ;;  %7713 = vmatpush.bf16.msrb.mxu2 %v11272_v38  ;;  %7739 = vmatpush.bf16.msra.mxu0 %v12296_v41  ;;  %v10956_v34 = vor.u32 %v14646_v22, %v10955_v8  ;;  %v14502_v38 = vld [vmem:[#allocation11 + $0x1c4] sm:$0xf0] }
 0x139   :  { %v12229_v46 = vld [vmem:[#allocation11 + $0x1040] sm:$0xf0]  ;;  %7752 = vmatpush.bf16.msra.mxu1 %v12808_v48  ;;  %v10891_v41 = vld [vmem:[#allocation11 + $0x588] sm:$0xf]  ;;  %v10380_v31 = vor.u32 %v14502_v38, %v10379_v57 }
 0x13a   :  { %v15085_v47 = vld [vmem:[#allocation11 + $0x1404] sm:$0xf]  ;;  %7726 = vmatpush.bf16.msrb.mxu3 %v11784_v32  ;;  %v12232_v59 = vor.u32 %v14957_v43, %v12229_v46  ;;  %v1259_v46 = vadd.f32 %v15915_v0, %v1246_v15  ;;  %v10892_v32 = vor.u32 %v14630_v42, %v10891_v41  ;;  %v10315_v33 = vld [vmem:[#allocation11 + $0x108] sm:$0xf] }
 0x13b   :  { %v12741_v49 = vld [vmem:[#allocation11 + $0x1440] sm:$0xf0]  ;;  %v14486_v48 = vld [vmem:[#allocation11 + $0x144] sm:$0xf0] }
 0x13c   :  { %v14701_v52 = vld [vmem:[#allocation11 + $0x804] sm:$0xf]  ;;  %v12744_v35 = vor.u32 %v15085_v47, %v12741_v49  ;;  %7740 = vmatpush.bf16.msra.mxu0 %v12232_v59  ;;  %v1310_v39 = vpop.f32.mrf.mxu0  ;;  %v10827_v49 = vld [vmem:[#allocation11 + $0x508] sm:$0xf]  ;;  %v1272_v51 = vadd.f32 %v15917_v4, %v1259_v46  ;;  %v10316_v27 = vor.u32 %v14486_v48, %v10315_v33  ;;  %v10252_v4 = vor.u32 %v14470_v55, %v10251_v54 }
 0x13d   :  { %v11205_v63 = vld [vmem:[#allocation11 + $0x840] sm:$0xf0]  ;;  %v1323_v43 = vpop.f32.mrf.mxu1  ;;  %v1311_v47 = vadd.f32 %v1310_v39, %v1298_v28  ;;  %v10763_v59 = vld [vmem:[#allocation11 + $0x488] sm:$0xf] }
 0x13e   :  { %v14829_v53 = vld [vmem:[#allocation11 + $0xc04] sm:$0xf]  ;;  %v11208_v56 = vor.u32 %v14701_v52, %v11205_v63  ;;  %7753 = vmatpush.bf16.msra.mxu1 %v12744_v35  ;;  %v15933_v35 = vadd.f32 %v15919_v21, %v1272_v51  ;;  %v10764_v1 = vor.u32 %v14598_v60, %v10763_v59  ;;  %v10187_v11 = vld [vmem:[#allocation11 + $0x8] sm:$0xf] }
 0x13f   :  { %v11717_v58 = vld [vmem:[#allocation11 + $0xc40] sm:$0xf0]  ;;  %7741 = vmatmul.bf16.vlgmr.msra.gmra.mxu0 %v15907_v36  ;;  %v1324_v52 = vadd.f32 %v1323_v43, %v1311_v47  ;;  %v14582_v14 = vld [vmem:[#allocation11 + $0x444] sm:$0xf0] }
 0x140   :  { %v11720_v61 = vor.u32 %v14829_v53, %v11717_v58  ;;  %7714 = vmatpush.bf16.msrb.mxu2 %v11208_v56  ;;  %7785 = vmatpush.bf16.msrb.mxu0 %v10636_v62  ;;  %v10828_v53 = vor.u32 %v14614_v50, %v10827_v49  ;;  %v13701_v3 = vld [vmem:[#allocation11 + $0x1bc0] sm:$0xf0]  ;;  %v12683_v17 = vld [vmem:[#allocation11 + $0x1388] sm:$0xf] }
 0x141   :  { %7754 = vmatmul.bf16.vlgmr.msra.gmra.mxu1 %v15909_v37  ;;  %v15453_v7 = vld [vmem:[#allocation11 + $0x1f84] sm:$0xf]  ;;  %v15078_v19 = vld [vmem:[#allocation11 + $0x13c4] sm:$0xf0] }
 0x142   :  { %7727 = vmatpush.bf16.msrb.mxu3 %v11720_v61  ;;  %7798 = vmatpush.bf16.msrb.mxu1 %v11148_v2  ;;  %v15325_v2 = vld [vmem:[#allocation11 + $0x1b84] sm:$0xf]  ;;  %v13195_v16 = vld [vmem:[#allocation11 + $0x1788] sm:$0xf]  ;;  %v12684_v39 = vor.u32 %v15078_v19, %v12683_v17 }
 0x143   :  { %v14213_v9 = vld [vmem:[#allocation11 + $0x1fc0] sm:$0xf0]  ;;  %v13704_v23 = vor.u32 %v15325_v2, %v13701_v3  ;;  %v12619_v42 = vld [vmem:[#allocation11 + $0x1308] sm:$0xf] }
 0x144   :  { %7786 = vmatpush.bf16.msrb.mxu0 %v10572_v12  ;;  %v1336_v63 = vpop.f32.mrf.mxu2  ;;  %v1312_v58 = vpop.f32.mrf.mxu0  ;;  %v14454_v12 = vld [vmem:[#allocation11 + $0x44] sm:$0xf0]  ;;  %v14216_v24 = vor.u32 %v15453_v7, %v14213_v9  ;;  %v15309_v29 = vld [vmem:[#allocation11 + $0x1b04] sm:$0xf] }
 0x145   :  { %v1337_v0 = vadd.f32 %v1336_v63, %v1324_v52  ;;  %v1349_v56 = vpop.f32.mrf.mxu3  ;;  %v1325_v61 = vpop.f32.mrf.mxu1  ;;  %v13637_v57 = vld [vmem:[#allocation11 + $0x1b40] sm:$0xf0]  ;;  %v15062_v43 = vld [vmem:[#allocation11 + $0x1344] sm:$0xf0] }
 0x146   :  { %7799 = vmatpush.bf16.msrb.mxu1 %v11084_v13  ;;  %v10699_v13 = vld [vmem:[#allocation11 + $0x408] sm:$0xf]  ;;  %v15437_v38 = vld [vmem:[#allocation11 + $0x1f04] sm:$0xf]  ;;  %v12620_v51 = vor.u32 %v15062_v43, %v12619_v42 }
 0x147   :  { %v15935_v62 = vadd.f32 %v1349_v56, %v1337_v0  ;;  %v14149_v28 = vld [vmem:[#allocation11 + $0x1f40] sm:$0xf0]  ;;  %v13131_v46 = vld [vmem:[#allocation11 + $0x1708] sm:$0xf] }
 0x148   :  { %7787 = vmatpush.bf16.msrb.mxu0 %v10508_v20  ;;  %v15206_v20 = vld [vmem:[#allocation11 + $0x17c4] sm:$0xf0]  ;;  %v15293_v33 = vld [vmem:[#allocation11 + $0x1a84] sm:$0xf] }
 0x149   :  { %v1362_v10 = vpack.c.bf16 %v15935_v62, %v15933_v35  ;;  %v13196_v41 = vor.u32 %v15206_v20, %v13195_v16  ;;  %v15190_v47 = vld [vmem:[#allocation11 + $0x1744] sm:$0xf0]  ;;  %v13573_v48 = vld [vmem:[#allocation11 + $0x1ac0] sm:$0xf0] }
 0x14a   :  { %7800 = vmatpush.bf16.msrb.mxu1 %v11020_v44  ;;  %v15421_v49 = vld [vmem:[#allocation11 + $0x1e84] sm:$0xf]  ;;  %v13132_v52 = vor.u32 %v15190_v47, %v13131_v46  ;;  %v15046_v63 = vld [vmem:[#allocation11 + $0x12c4] sm:$0xf0]  ;;  %v13576_v55 = vor.u32 %v15293_v33, %v13573_v48 }
 0x14b   :  { %v2439_v21 = vunpack.c.l.b16 %v1362_v10  ;;  %v2440_v18 = vunpack.c.h.b16 %v1362_v10  ;;  %v14085_v50 = vld [vmem:[#allocation11 + $0x1ec0] sm:$0xf0]  ;;  %v15174_v54 = vld [vmem:[#allocation11 + $0x16c4] sm:$0xf0] }
 0x14c   :  { %7788 = vmatpush.bf16.msrb.mxu0 %v10444_v30  ;;  %v1338_v44 = vpop.f32.mrf.mxu2  ;;  %v10188_v30 = vor.u32 %v14454_v12, %v10187_v11  ;;  %v14088_v0 = vor.u32 %v15421_v49, %v14085_v50  ;;  %v15277_v56 = vld [vmem:[#allocation11 + $0x1a04] sm:$0xf]  ;;  %v15030_v2 = vld [vmem:[#allocation11 + $0x1244] sm:$0xf0] }
 0x14d   :  { %v15939_v8 = vpack.c.b16 %v2439_v21, %v2439_v21  ;;  %v15941_v22 = vpack.c.b16 %v2440_v18, %v2440_v18  ;;  %v1351_v15 = vpop.f32.mrf.mxu3  ;;  %v13509_v58 = vld [vmem:[#allocation11 + $0x1a40] sm:$0xf0]  ;;  %v13003_v3 = vld [vmem:[#allocation11 + $0x1608] sm:$0xf] }
 0x14e   :  { %7801 = vmatpush.bf16.msrb.mxu1 %v10956_v34  ;;  %v10700_v34 = vor.u32 %v14582_v14, %v10699_v13  ;;  %v15405_v59 = vld [vmem:[#allocation11 + $0x1e04] sm:$0xf]  ;;  %v15158_v7 = vld [vmem:[#allocation11 + $0x1644] sm:$0xf0]  ;;  %v13512_v10 = vor.u32 %v15277_v56, %v13509_v58 }
 0x14f   :  { %7663 = vmatmul.bf16.vlgmr.msra.gmra.mxu2 %v15939_v8  ;;  %7676 = vmatmul.bf16.vlgmr.msra.gmra.mxu3 %v15941_v22  ;;  %v14021_v60 = vld [vmem:[#allocation11 + $0x1e40] sm:$0xf0]  ;;  %v13004_v21 = vor.u32 %v15158_v7, %v13003_v3  ;;  %v12427_v18 = vld [vmem:[#allocation11 + $0x1188] sm:$0xf] }
 0x150   :  { %7789 = vmatpush.bf16.msrb.mxu0 %v10380_v31  ;;  %7759 = vmatpush.bf16.msra.mxu2 %v13704_v23  ;;  %v13640_v31 = vor.u32 %v15309_v29, %v13637_v57  ;;  %v14024_v9 = vor.u32 %v15405_v59, %v14021_v60  ;;  %v15261_v11 = vld [vmem:[#allocation11 + $0x1984] sm:$0xf]  ;;  %v15014_v19 = vld [vmem:[#allocation11 + $0x11c4] sm:$0xf0] }
 0x151   :  { %7772 = vmatpush.bf16.msra.mxu3 %v14216_v24  ;;  %v13445_v12 = vld [vmem:[#allocation11 + $0x19c0] sm:$0xf0]  ;;  %v12939_v16 = vld [vmem:[#allocation11 + $0x1588] sm:$0xf] }
 0x152   :  { %7802 = vmatpush.bf16.msrb.mxu1 %v10892_v32  ;;  %v14152_v32 = vor.u32 %v15437_v38, %v14149_v28  ;;  %v15389_v13 = vld [vmem:[#allocation11 + $0x1d84] sm:$0xf]  ;;  %v15142_v20 = vld [vmem:[#allocation11 + $0x15c4] sm:$0xf0]  ;;  %v13448_v24 = vor.u32 %v15261_v11, %v13445_v12 }
 0x153   :  { %v13957_v14 = vld [vmem:[#allocation11 + $0x1dc0] sm:$0xf0]  ;;  %v12363_v42 = vld [vmem:[#allocation11 + $0x1108] sm:$0xf] }
 0x154   :  { %7790 = vmatpush.bf16.msrb.mxu0 %v10316_v27  ;;  %v12555_v27 = vld [vmem:[#allocation11 + $0x1288] sm:$0xf]  ;;  %7760 = vmatpush.bf16.msra.mxu2 %v13640_v31  ;;  %v15947_v44 = vld [vmem:[#allocation12] sm:$0xff]  ;;  %v13960_v29 = vor.u32 %v15389_v13, %v13957_v14 }
 0x155   :  { %7773 = vmatpush.bf16.msra.mxu3 %v14152_v32  ;;  %v12556_v61 = vor.u32 %v15046_v63, %v12555_v27  ;;  %v15245_v15 = vld [vmem:[#allocation11 + $0x1904] sm:$0xf]  ;;  %v14998_v46 = vld [vmem:[#allocation11 + $0x1144] sm:$0xf0] }
 0x156   :  { %7803 = vmatpush.bf16.msrb.mxu1 %v10828_v53  ;;  %v13067_v53 = vld [vmem:[#allocation11 + $0x1688] sm:$0xf]  ;;  %v13381_v57 = vld [vmem:[#allocation11 + $0x1940] sm:$0xf0]  ;;  %v12364_v27 = vor.u32 %v14998_v46, %v12363_v42 }
 0x157   :  { %v15373_v38 = vld [vmem:[#allocation11 + $0x1d04] sm:$0xf]  ;;  %v12875_v47 = vld [vmem:[#allocation11 + $0x1508] sm:$0xf]  ;;  %v13384_v32 = vor.u32 %v15245_v15, %v13381_v57 }
 0x158   :  { %7791 = vmatpush.bf16.msrb.mxu0 %v10252_v4  ;;  %v13068_v4 = vor.u32 %v15174_v54, %v13067_v53  ;;  %7761 = vmatpush.bf16.msra.mxu2 %v13576_v55  ;;  %v13893_v28 = vld [vmem:[#allocation11 + $0x1d40] sm:$0xf0]  ;;  %v15126_v31 = vld [vmem:[#allocation11 + $0x1544] sm:$0xf0] }
 0x159   :  { %7774 = vmatpush.bf16.msra.mxu3 %v14088_v0  ;;  %v13896_v33 = vor.u32 %v15373_v38, %v13893_v28  ;;  %v15229_v48 = vld [vmem:[#allocation11 + $0x1884] sm:$0xf]  ;;  %v12876_v63 = vor.u32 %v15126_v31, %v12875_v47  ;;  %v12299_v53 = vld [vmem:[#allocation11 + $0x1088] sm:$0xf]  ;;  %v10573_v47 = vld [vmem:[#allocation11 + $0x348] sm:$0xf0] }
 0x15a   :  { %7804 = vmatpush.bf16.msrb.mxu1 %v10764_v1  ;;  %v12491_v1 = vld [vmem:[#allocation11 + $0x1208] sm:$0xf]  ;;  %v13317_v50 = vld [vmem:[#allocation11 + $0x18c0] sm:$0xf0]  ;;  %v14670_v31 = vld [vmem:[#allocation11 + $0x70c] sm:$0xf] }
 0x15b   :  { %v12492_v17 = vor.u32 %v15030_v2, %v12491_v1  ;;  %v14982_v54 = vld [vmem:[#allocation11 + $0x10c4] sm:$0xf0]  ;;  %v15213_v56 = vld [vmem:[#allocation11 + $0x1804] sm:$0xf]  ;;  %v13320_v59 = vor.u32 %v15229_v48, %v13317_v50 }
 0x15c   :  { %7792 = vmatpush.bf16.msrb.mxu0 %v10188_v30  ;;  %v7586_v23 = vpop.f32.mrf.mxu0  ;;  %7762 = vmatpush.bf16.msra.mxu2 %v13512_v10  ;;  %v2397_v30 = vperm.slane %v15947_v44, 0  ;;  %v12811_v55 = vld [vmem:[#allocation11 + $0x1488] sm:$0xf]  ;;  %v13765_v1 = vld [vmem:[#allocation11 + $0x1c40] sm:$0xf0] }
 0x15d   :  { %7775 = vmatpush.bf16.msra.mxu3 %v14024_v9  ;;  %v15110_v0 = vld [vmem:[#allocation11 + $0x14c4] sm:$0xf0]  ;;  %v12300_v9 = vor.u32 %v14982_v54, %v12299_v53 }
 0x15e   :  { %7805 = vmatpush.bf16.msrb.mxu1 %v10700_v34  ;;  %v7599_v34 = vpop.f32.mrf.mxu1  ;;  %v7587_v43 = vadd.f32 %v7586_v23, %v2397_v30  ;;  %v11659_v3 = vld [vmem:[#allocation11 + $0xb88] sm:$0xf]  ;;  %v12812_v11 = vor.u32 %v15110_v0, %v12811_v55  ;;  %v14686_v23 = vld [vmem:[#allocation11 + $0x78c] sm:$0xf] }
 0x15f   :  { %7793 = vmatmul.bf16.vlgmr.msrb.gmra.mxu0 %v15865_v40  ;;  %7715 = vmatmul.bf16.vlgmr.msrb.gmra.mxu2 %v15875_v25  ;;  %v14822_v7 = vld [vmem:[#allocation11 + $0xbc4] sm:$0xf0] }
 0x160   :  { %7837 = vmatpush.bf16.msra.mxu0 %v12684_v39  ;;  %v12428_v39 = vor.u32 %v15014_v19, %v12427_v18  ;;  %7728 = vmatmul.bf16.vlgmr.msrb.gmra.mxu3 %v15877_v26  ;;  %v7600_v49 = vadd.f32 %v7599_v34, %v7587_v43  ;;  %v12171_v10 = vld [vmem:[#allocation11 + $0xf88] sm:$0xf]  ;;  %v14558_v18 = vld [vmem:[#allocation11 + $0x38c] sm:$0xf] }
 0x161   :  { %7806 = vmatmul.bf16.vlgmr.msrb.gmra.mxu1 %v15867_v45  ;;  %7763 = vmatpush.bf16.msra.mxu2 %v13448_v24  ;;  %v14950_v12 = vld [vmem:[#allocation11 + $0xfc4] sm:$0xf0]  ;;  %v11149_v24 = vld [vmem:[#allocation11 + $0x7c8] sm:$0xf0] }
 0x162   :  { %7850 = vmatpush.bf16.msra.mxu1 %v13196_v41  ;;  %v12940_v41 = vor.u32 %v15142_v20, %v12939_v16  ;;  %7776 = vmatpush.bf16.msra.mxu3 %v13960_v29  ;;  %v12235_v13 = vld [vmem:[#allocation11 + $0x1008] sm:$0xf]  ;;  %v10637_v20 = vld [vmem:[#allocation11 + $0x3c8] sm:$0xf0]  ;;  %v11660_v29 = vor.u32 %v14822_v7, %v11659_v3  ;;  %v12172_v15 = vor.u32 %v14950_v12, %v12171_v10 }
 0x163   :  { %v14966_v14 = vld [vmem:[#allocation11 + $0x1044] sm:$0xf0]  ;;  %v10640_v28 = vor.u32 %v14558_v18, %v10637_v20  ;;  %v14542_v43 = vld [vmem:[#allocation11 + $0x30c] sm:$0xf] }
 0x164   :  { %7838 = vmatpush.bf16.msra.mxu0 %v12620_v51  ;;  %v15357_v51 = vld [vmem:[#allocation11 + $0x1c84] sm:$0xf]  ;;  %v7588_v58 = vpop.f32.mrf.mxu0  ;;  %v12236_v30 = vor.u32 %v14966_v14, %v12235_v13  ;;  %v11595_v57 = vld [vmem:[#allocation11 + $0xb08] sm:$0xf]  ;;  %v10576_v53 = vor.u32 %v14542_v43, %v10573_v47  ;;  %v10445_v12 = vld [vmem:[#allocation11 + $0x248] sm:$0xf0] }
 0x165   :  { %7764 = vmatpush.bf16.msra.mxu2 %v13384_v32  ;;  %v14806_v38 = vld [vmem:[#allocation11 + $0xb44] sm:$0xf0]  ;;  %v11085_v32 = vld [vmem:[#allocation11 + $0x748] sm:$0xf0] }
 0x166   :  { %7851 = vmatpush.bf16.msra.mxu1 %v13132_v52  ;;  %v13829_v52 = vld [vmem:[#allocation11 + $0x1cc0] sm:$0xf0]  ;;  %7777 = vmatpush.bf16.msra.mxu3 %v13896_v33  ;;  %v7601_v2 = vpop.f32.mrf.mxu1  ;;  %v14934_v42 = vld [vmem:[#allocation11 + $0xf44] sm:$0xf0]  ;;  %v11596_v50 = vor.u32 %v14806_v38, %v11595_v57  ;;  %v11088_v54 = vor.u32 %v14670_v31, %v11085_v32  ;;  %v14654_v58 = vld [vmem:[#allocation11 + $0x68c] sm:$0xf] }
 0x167   :  { %v13832_v60 = vor.u32 %v15357_v51, %v13829_v52  ;;  %v7612_v46 = vpop.f32.mrf.mxu2  ;;  %v11531_v52 = vld [vmem:[#allocation11 + $0xa88] sm:$0xf]  ;;  %v14638_v13 = vld [vmem:[#allocation11 + $0x60c] sm:$0xf] }
 0x168   :  { %7839 = vmatpush.bf16.msra.mxu0 %v12556_v61  ;;  %v13253_v61 = vld [vmem:[#allocation11 + $0x1840] sm:$0xf0]  ;;  %v7613_v33 = vadd.f32 %v7612_v46, %v7600_v49  ;;  %v12043_v55 = vld [vmem:[#allocation11 + $0xe88] sm:$0xf]  ;;  %v10509_v49 = vld [vmem:[#allocation11 + $0x2c8] sm:$0xf0] }
 0x169   :  { %7765 = vmatpush.bf16.msra.mxu2 %v13320_v59  ;;  %v13256_v19 = vor.u32 %v15213_v56, %v13253_v61  ;;  %v14918_v0 = vld [vmem:[#allocation11 + $0xec4] sm:$0xf0]  ;;  %v14526_v56 = vld [vmem:[#allocation11 + $0x28c] sm:$0xf] }
 0x16a   :  { %7852 = vmatpush.bf16.msra.mxu1 %v13068_v4  ;;  %v15341_v4 = vld [vmem:[#allocation11 + $0x1c04] sm:$0xf]  ;;  %7778 = vmatpush.bf16.msra.mxu3 %v13832_v60  ;;  %v11021_v59 = vld [vmem:[#allocation11 + $0x6c8] sm:$0xf0]  ;;  %v12044_v61 = vor.u32 %v14918_v0, %v12043_v55  ;;  %v10512_v2 = vor.u32 %v14526_v56, %v10509_v49  ;;  %v11979_v7 = vld [vmem:[#allocation11 + $0xe08] sm:$0xf] }
 0x16b   :  { %v13768_v16 = vor.u32 %v15341_v4, %v13765_v1  ;;  %v11467_v4 = vld [vmem:[#allocation11 + $0xa08] sm:$0xf]  ;;  %v11024_v3 = vor.u32 %v14654_v58, %v11021_v59  ;;  %v10957_v14 = vld [vmem:[#allocation11 + $0x648] sm:$0xf0] }
 0x16c   :  { %7840 = vmatpush.bf16.msra.mxu0 %v12492_v17  ;;  %v12747_v17 = vld [vmem:[#allocation11 + $0x1408] sm:$0xf]  ;;  %v7625_v48 = vpop.f32.mrf.mxu3  ;;  %v10893_v57 = vld [vmem:[#allocation11 + $0x5c8] sm:$0xf0] }
 0x16d   :  { %7766 = vmatpush.bf16.msra.mxu2 %v13256_v19  ;;  %v14774_v1 = vld [vmem:[#allocation11 + $0xa44] sm:$0xf0]  ;;  %v14478_v31 = vld [vmem:[#allocation11 + $0x10c] sm:$0xf] }
 0x16e   :  { %7853 = vmatpush.bf16.msra.mxu1 %v13004_v21  ;;  %v15094_v21 = vld [vmem:[#allocation11 + $0x1444] sm:$0xf0]  ;;  %7779 = vmatpush.bf16.msra.mxu3 %v13768_v16  ;;  %v10317_v32 = vld [vmem:[#allocation11 + $0x148] sm:$0xf0] }
 0x16f   :  { %v12748_v34 = vor.u32 %v15094_v21, %v12747_v17  ;;  %v14902_v10 = vld [vmem:[#allocation11 + $0xe44] sm:$0xf0]  ;;  %v11468_v21 = vor.u32 %v14774_v1, %v11467_v4  ;;  %v14462_v56 = vld [vmem:[#allocation11 + $0x8c] sm:$0xf] }
 0x170   :  { %7841 = vmatpush.bf16.msra.mxu0 %v12428_v39  ;;  %v11152_v39 = vor.u32 %v14686_v23, %v11149_v24  ;;  %7767 = vmatmul.bf16.vlgmr.msra.gmra.mxu2 %v15939_v8  ;;  %v11980_v18 = vor.u32 %v14902_v10, %v11979_v7  ;;  %v11403_v19 = vld [vmem:[#allocation11 + $0x988] sm:$0xf]  ;;  %v10960_v23 = vor.u32 %v14638_v13, %v10957_v14  ;;  %v10253_v49 = vld [vmem:[#allocation11 + $0xc8] sm:$0xf0] }
 0x171   :  { %7811 = vmatpush.bf16.msrb.mxu2 %v11660_v29  ;;  %7780 = vmatmul.bf16.vlgmr.msra.gmra.mxu3 %v15941_v22  ;;  %v14758_v16 = vld [vmem:[#allocation11 + $0x9c4] sm:$0xf0]  ;;  %v14590_v58 = vld [vmem:[#allocation11 + $0x48c] sm:$0xf]  ;;  %v10256_v7 = vor.u32 %v14462_v56, %v10253_v49 }
 0x172   :  { %7854 = vmatpush.bf16.msra.mxu1 %v12940_v41  ;;  %v12107_v41 = vld [vmem:[#allocation11 + $0xf08] sm:$0xf]  ;;  %7824 = vmatpush.bf16.msrb.mxu3 %v12172_v15  ;;  %v14494_v15 = vld [vmem:[#allocation11 + $0x18c] sm:$0xf]  ;;  %v11404_v38 = vor.u32 %v14758_v16, %v11403_v19 }
 0x173   :  { %v12108_v51 = vor.u32 %v14934_v42, %v12107_v41  ;;  %v11915_v24 = vld [vmem:[#allocation11 + $0xd88] sm:$0xf]  ;;  %v10765_v59 = vld [vmem:[#allocation11 + $0x4c8] sm:$0xf0] }
 0x174   :  { %7842 = vmatpush.bf16.msra.mxu0 %v12364_v27  ;;  %v14790_v27 = vld [vmem:[#allocation11 + $0xac4] sm:$0xf0]  ;;  %v7627_v17 = vpop.f32.mrf.mxu3  ;;  %v10768_v10 = vor.u32 %v14590_v58, %v10765_v59  ;;  %v14446_v14 = vld [vmem:[#allocation11 + $0xc] sm:$0xf] }
 0x175   :  { %7812 = vmatpush.bf16.msrb.mxu2 %v11596_v50  ;;  %v11532_v60 = vor.u32 %v14790_v27, %v11531_v52  ;;  %v14886_v29 = vld [vmem:[#allocation11 + $0xdc4] sm:$0xf0]  ;;  %v10189_v17 = vld [vmem:[#allocation11 + $0x48] sm:$0xf0] }
 0x176   :  { %7855 = vmatpush.bf16.msra.mxu1 %v12876_v63  ;;  %v15952_v63 = vadd.f32 %v7625_v48, %v7613_v33  ;;  %7825 = vmatpush.bf16.msrb.mxu3 %v12108_v51  ;;  %v14742_v41 = vld [vmem:[#allocation11 + $0x944] sm:$0xf0]  ;;  %v14606_v33 = vld [vmem:[#allocation11 + $0x50c] sm:$0xf] }
 0x177   :  { %v11851_v46 = vld [vmem:[#allocation11 + $0xd08] sm:$0xf]  ;;  %v10829_v48 = vld [vmem:[#allocation11 + $0x548] sm:$0xf0] }
 0x178   :  { %7843 = vmatpush.bf16.msra.mxu0 %v12300_v9  ;;  %v14510_v9 = vld [vmem:[#allocation11 + $0x20c] sm:$0xf]  ;;  %v14870_v47 = vld [vmem:[#allocation11 + $0xd44] sm:$0xf0] }
 0x179   :  { %7813 = vmatpush.bf16.msrb.mxu2 %v11532_v60  ;;  %v10448_v20 = vor.u32 %v14510_v9, %v10445_v12  ;;  %v11852_v51 = vor.u32 %v14870_v47, %v11851_v46  ;;  %v11275_v52 = vld [vmem:[#allocation11 + $0x888] sm:$0xf]  ;;  %v15070_v19 = vld [vmem:[#allocation11 + $0x138c] sm:$0xf] }
 0x17a   :  { %7856 = vmatpush.bf16.msra.mxu1 %v12812_v11  ;;  %v7614_v11 = vpop.f32.mrf.mxu2  ;;  %7826 = vmatpush.bf16.msrb.mxu3 %v12044_v61  ;;  %v14726_v27 = vld [vmem:[#allocation11 + $0x8c4] sm:$0xf0]  ;;  %v15054_v46 = vld [vmem:[#allocation11 + $0x130c] sm:$0xf] }
 0x17b   :  { %v11787_v55 = vld [vmem:[#allocation11 + $0xc88] sm:$0xf]  ;;  %v11276_v61 = vor.u32 %v14726_v27, %v11275_v52  ;;  %v15038_v49 = vld [vmem:[#allocation11 + $0x128c] sm:$0xf] }
 0x17c   :  { %7844 = vmatpush.bf16.msra.mxu0 %v12236_v30  ;;  %v10381_v30 = vld [vmem:[#allocation11 + $0x1c8] sm:$0xf0]  ;;  %v14854_v0 = vld [vmem:[#allocation11 + $0xcc4] sm:$0xf0] }
 0x17d   :  { %7814 = vmatpush.bf16.msrb.mxu2 %v11468_v21  ;;  %v10384_v42 = vor.u32 %v14494_v15, %v10381_v30  ;;  %v11211_v60 = vld [vmem:[#allocation11 + $0x808] sm:$0xf]  ;;  %v11788_v4 = vor.u32 %v14854_v0, %v11787_v55  ;;  %v14574_v21 = vld [vmem:[#allocation11 + $0x40c] sm:$0xf] }
 0x17e   :  { %7857 = vmatpush.bf16.msra.mxu1 %v12748_v34  ;;  %v14622_v34 = vld [vmem:[#allocation11 + $0x58c] sm:$0xf]  ;;  %7827 = vmatpush.bf16.msrb.mxu3 %v11980_v18  ;;  %v14710_v1 = vld [vmem:[#allocation11 + $0x844] sm:$0xf0] }
 0x17f   :  { %7845 = vmatmul.bf16.vlgmr.msra.gmra.mxu0 %v15907_v36  ;;  %v10896_v43 = vor.u32 %v14622_v34, %v10893_v57  ;;  %v13707_v9 = vld [vmem:[#allocation11 + $0x1b88] sm:$0xf]  ;;  %v10701_v18 = vld [vmem:[#allocation11 + $0x448] sm:$0xf0]  ;;  %v11212_v16 = vor.u32 %v14710_v1, %v11211_v60  ;;  %v10192_v57 = vor.u32 %v14446_v14, %v10189_v17 }
 0x180   :  { %7889 = vmatpush.bf16.msrb.mxu0 %v10640_v28  ;;  %v11916_v28 = vor.u32 %v14886_v29, %v11915_v24  ;;  %v15334_v11 = vld [vmem:[#allocation11 + $0x1bc4] sm:$0xf0]  ;;  %v15198_v24 = vld [vmem:[#allocation11 + $0x178c] sm:$0xf] }
 0x181   :  { %7858 = vmatmul.bf16.vlgmr.msra.gmra.mxu1 %v15909_v37  ;;  %7815 = vmatpush.bf16.msrb.mxu2 %v11404_v38  ;;  %v14219_v12 = vld [vmem:[#allocation11 + $0x1f88] sm:$0xf]  ;;  %v13197_v29 = vld [vmem:[#allocation11 + $0x17c8] sm:$0xf0]  ;;  %v13708_v15 = vor.u32 %v15334_v11, %v13707_v9  ;;  %v10704_v38 = vor.u32 %v14574_v21, %v10701_v18 }
 0x182   :  { %7902 = vmatpush.bf16.msrb.mxu1 %v11152_v39  ;;  %v11339_v39 = vld [vmem:[#allocation11 + $0x908] sm:$0xf]  ;;  %7828 = vmatpush.bf16.msrb.mxu3 %v11916_v28  ;;  %v12557_v59 = vld [vmem:[#allocation11 + $0x12c8] sm:$0xf0] }
 0x183   :  { %v11340_v50 = vor.u32 %v14742_v41, %v11339_v39  ;;  %v15462_v13 = vld [vmem:[#allocation11 + $0x1fc4] sm:$0xf0]  ;;  %v15166_v60 = vld [vmem:[#allocation11 + $0x168c] sm:$0xf] }
 0x184   :  { %7890 = vmatpush.bf16.msrb.mxu0 %v10576_v53  ;;  %v10320_v53 = vor.u32 %v14478_v31, %v10317_v32  ;;  %v14220_v30 = vor.u32 %v15462_v13, %v14219_v12  ;;  %v13643_v34 = vld [vmem:[#allocation11 + $0x1b08] sm:$0xf]  ;;  %v12621_v31 = vld [vmem:[#allocation11 + $0x1348] sm:$0xf0] }
 0x185   :  { %7816 = vmatpush.bf16.msrb.mxu2 %v11340_v50  ;;  %v15318_v28 = vld [vmem:[#allocation11 + $0x1b44] sm:$0xf0]  ;;  %v15182_v32 = vld [vmem:[#allocation11 + $0x170c] sm:$0xf]  ;;  %v12624_v0 = vor.u32 %v15054_v46, %v12621_v31 }
 0x186   :  { %7903 = vmatpush.bf16.msrb.mxu1 %v11088_v54  ;;  %v10832_v54 = vor.u32 %v14606_v33, %v10829_v48  ;;  %7829 = vmatpush.bf16.msrb.mxu3 %v11852_v51  ;;  %v14155_v39 = vld [vmem:[#allocation11 + $0x1f08] sm:$0xf]  ;;  %v13133_v33 = vld [vmem:[#allocation11 + $0x1748] sm:$0xf0]  ;;  %v7638_v48 = vpop.f32.mrf.mxu0  ;;  %v13644_v50 = vor.u32 %v15318_v28, %v13643_v34 }
 0x187   :  { %v15446_v41 = vld [vmem:[#allocation11 + $0x1f44] sm:$0xf0]  ;;  %v7651_v47 = vpop.f32.mrf.mxu1  ;;  %v7639_v27 = vadd.f32 %v7638_v48, %v15952_v63  ;;  %v13136_v56 = vor.u32 %v15182_v32, %v13133_v33  ;;  %v15022_v11 = vld [vmem:[#allocation11 + $0x120c] sm:$0xf]  ;;  %v2398_v33 = vperm.slane %v15947_v44, 1 }
 0x188   :  { %7891 = vmatpush.bf16.msrb.mxu0 %v10512_v2  ;;  %v11723_v2 = vld [vmem:[#allocation11 + $0xc08] sm:$0xf]  ;;  %v14156_v51 = vor.u32 %v15446_v41, %v14155_v39  ;;  %v12493_v13 = vld [vmem:[#allocation11 + $0x1248] sm:$0xf0] }
 0x189   :  { %7817 = vmatpush.bf16.msrb.mxu2 %v11276_v61  ;;  %v13579_v52 = vld [vmem:[#allocation11 + $0x1a88] sm:$0xf]  ;;  %v15960_v58 = vadd.f32 %v7651_v47, %v7639_v27  ;;  %v13069_v61 = vld [vmem:[#allocation11 + $0x16c8] sm:$0xf0] }
 0x18a   :  { %7904 = vmatpush.bf16.msrb.mxu1 %v11024_v3  ;;  %v14838_v3 = vld [vmem:[#allocation11 + $0xc44] sm:$0xf0]  ;;  %7830 = vmatpush.bf16.msrb.mxu3 %v11788_v4  ;;  %v13072_v9 = vor.u32 %v15166_v60, %v13069_v61  ;;  %v15150_v14 = vld [vmem:[#allocation11 + $0x160c] sm:$0xf] }
 0x18b   :  { %v15430_v55 = vld [vmem:[#allocation11 + $0x1ec4] sm:$0xf0]  ;;  %v13005_v17 = vld [vmem:[#allocation11 + $0x1648] sm:$0xf0] }
 0x18c   :  { %7892 = vmatpush.bf16.msrb.mxu0 %v10448_v20  ;;  %v11724_v20 = vor.u32 %v14838_v3, %v11723_v2  ;;  %v13515_v1 = vld [vmem:[#allocation11 + $0x1a08] sm:$0xf]  ;;  %v12429_v34 = vld [vmem:[#allocation11 + $0x11c8] sm:$0xf0] }
 0x18d   :  { %7818 = vmatpush.bf16.msrb.mxu2 %v11212_v16  ;;  %v15286_v2 = vld [vmem:[#allocation11 + $0x1a44] sm:$0xf0]  ;;  %v14990_v32 = vld [vmem:[#allocation11 + $0x110c] sm:$0xf] }
 0x18e   :  { %7905 = vmatpush.bf16.msrb.mxu1 %v10960_v23  ;;  %v12685_v23 = vld [vmem:[#allocation11 + $0x13c8] sm:$0xf0]  ;;  %7831 = vmatpush.bf16.msrb.mxu3 %v11724_v20  ;;  %v14027_v3 = vld [vmem:[#allocation11 + $0x1e08] sm:$0xf]  ;;  %v7640_v21 = vpop.f32.mrf.mxu0  ;;  %v13516_v18 = vor.u32 %v15286_v2, %v13515_v1 }
 0x18f   :  { %v7653_v12 = vpop.f32.mrf.mxu1  ;;  %v13451_v16 = vld [vmem:[#allocation11 + $0x1988] sm:$0xf]  ;;  %v12365_v48 = vld [vmem:[#allocation11 + $0x1148] sm:$0xf0] }
 0x190   :  { %7893 = vmatpush.bf16.msrb.mxu0 %v10384_v42  ;;  %v12688_v42 = vor.u32 %v15070_v19, %v12685_v23  ;;  %7819 = vmatmul.bf16.vlgmr.msrb.gmra.mxu2 %v15875_v25  ;;  %v15270_v20 = vld [vmem:[#allocation11 + $0x19c4] sm:$0xf0]  ;;  %v12301_v44 = vld [vmem:[#allocation11 + $0x10c8] sm:$0xf0] }
 0x191   :  { %7863 = vmatpush.bf16.msra.mxu2 %v13708_v15  ;;  %7832 = vmatmul.bf16.vlgmr.msrb.gmra.mxu3 %v15877_v26  ;;  %v13963_v23 = vld [vmem:[#allocation11 + $0x1d88] sm:$0xf]  ;;  %v13008_v15 = vor.u32 %v15150_v14, %v13005_v17  ;;  %v13452_v28 = vor.u32 %v15270_v20, %v13451_v16  ;;  %v12813_v1 = vld [vmem:[#allocation11 + $0x14c8] sm:$0xf0] }
 0x192   :  { %7906 = vmatpush.bf16.msrb.mxu1 %v10896_v43  ;;  %v13200_v43 = vor.u32 %v15198_v24, %v13197_v29  ;;  %7876 = vmatpush.bf16.msra.mxu3 %v14220_v30  ;;  %v15398_v24 = vld [vmem:[#allocation11 + $0x1dc4] sm:$0xf0]  ;;  %v12496_v29 = vor.u32 %v15022_v11, %v12493_v13  ;;  %v15006_v30 = vld [vmem:[#allocation11 + $0x118c] sm:$0xf] }
 0x193   :  { %v13964_v39 = vor.u32 %v15398_v24, %v13963_v23  ;;  %v13387_v41 = vld [vmem:[#allocation11 + $0x1908] sm:$0xf]  ;;  %v12432_v47 = vor.u32 %v15006_v30, %v12429_v34  ;;  %v14814_v13 = vld [vmem:[#allocation11 + $0xb8c] sm:$0xf] }
 0x194   :  { %7894 = vmatpush.bf16.msrb.mxu0 %v10320_v53  ;;  %v15302_v53 = vld [vmem:[#allocation11 + $0x1ac4] sm:$0xf0]  ;;  %v11661_v14 = vld [vmem:[#allocation11 + $0xbc8] sm:$0xf0] }
 0x195   :  { %7864 = vmatpush.bf16.msra.mxu2 %v13644_v50  ;;  %v13580_v63 = vor.u32 %v15302_v53, %v13579_v52  ;;  %v15382_v46 = vld [vmem:[#allocation11 + $0x1d44] sm:$0xf0]  ;;  %v15118_v50 = vld [vmem:[#allocation11 + $0x150c] sm:$0xf] }
 0x196   :  { %7907 = vmatpush.bf16.msrb.mxu1 %v10832_v54  ;;  %v14091_v54 = vld [vmem:[#allocation11 + $0x1e88] sm:$0xf]  ;;  %7877 = vmatpush.bf16.msra.mxu3 %v14156_v51  ;;  %v12877_v51 = vld [vmem:[#allocation11 + $0x1548] sm:$0xf0] }
 0x197   :  { %v14092_v4 = vor.u32 %v15430_v55, %v14091_v54  ;;  %v13323_v54 = vld [vmem:[#allocation11 + $0x1888] sm:$0xf]  ;;  %v12880_v60 = vor.u32 %v15118_v50, %v12877_v51  ;;  %v14942_v17 = vld [vmem:[#allocation11 + $0xf8c] sm:$0xf]  ;;  %v10579_v51 = vld [vmem:[#allocation11 + $0x310] sm:$0xf] }
 0x198   :  { %7895 = vmatpush.bf16.msrb.mxu0 %v10256_v7  ;;  %v15414_v7 = vld [vmem:[#allocation11 + $0x1e44] sm:$0xf0]  ;;  %v14958_v16 = vld [vmem:[#allocation11 + $0x100c] sm:$0xf] }
 0x199   :  { %7865 = vmatpush.bf16.msra.mxu2 %v13580_v63  ;;  %v14028_v19 = vor.u32 %v15414_v7, %v14027_v3  ;;  %v15238_v55 = vld [vmem:[#allocation11 + $0x18c4] sm:$0xf0]  ;;  %v14974_v63 = vld [vmem:[#allocation11 + $0x108c] sm:$0xf] }
 0x19a   :  { %7908 = vmatpush.bf16.msrb.mxu1 %v10768_v10  ;;  %v12560_v10 = vor.u32 %v15038_v49, %v12557_v59  ;;  %7878 = vmatpush.bf16.msra.mxu3 %v14092_v4  ;;  %v12368_v59 = vor.u32 %v14990_v32, %v12365_v48  ;;  %v15102_v4 = vld [vmem:[#allocation11 + $0x148c] sm:$0xf]  ;;  %v13259_v2 = vld [vmem:[#allocation11 + $0x1808] sm:$0xf]  ;;  %v13324_v3 = vor.u32 %v15238_v55, %v13323_v54 }
 0x19b   :  { %v13771_v11 = vld [vmem:[#allocation11 + $0x1c08] sm:$0xf]  ;;  %v12304_v21 = vor.u32 %v14974_v63, %v12301_v44  ;;  %v12237_v20 = vld [vmem:[#allocation11 + $0x1048] sm:$0xf0]  ;;  %v10515_v63 = vld [vmem:[#allocation11 + $0x290] sm:$0xf] }
 0x19c   :  { %7896 = vmatpush.bf16.msrb.mxu0 %v10192_v57  ;;  %v15134_v57 = vld [vmem:[#allocation11 + $0x158c] sm:$0xf]  ;;  %v7690_v49 = vpop.f32.mrf.mxu0  ;;  %v15350_v12 = vld [vmem:[#allocation11 + $0x1c44] sm:$0xf0]  ;;  %v14535_v44 = vld [vmem:[#allocation11 + $0x2cc] sm:$0xf0] }
 0x19d   :  { %7866 = vmatpush.bf16.msra.mxu2 %v13516_v18  ;;  %v7691_v61 = vadd.f32 %v7690_v49, %v2398_v33  ;;  %v12816_v18 = vor.u32 %v15102_v4, %v12813_v1  ;;  %v15086_v23 = vld [vmem:[#allocation11 + $0x140c] sm:$0xf]  ;;  %v13772_v34 = vor.u32 %v15350_v12, %v13771_v11  ;;  %v11027_v4 = vld [vmem:[#allocation11 + $0x690] sm:$0xf]  ;;  %v10516_v11 = vor.u32 %v14535_v44, %v10515_v63 }
 0x19e   :  { %7909 = vmatpush.bf16.msrb.mxu1 %v10704_v38  ;;  %v12941_v38 = vld [vmem:[#allocation11 + $0x15c8] sm:$0xf0]  ;;  %7879 = vmatpush.bf16.msra.mxu3 %v14028_v19  ;;  %v14663_v1 = vld [vmem:[#allocation11 + $0x6cc] sm:$0xf0] }
 0x19f   :  { %7897 = vmatmul.bf16.vlgmr.msrb.gmra.mxu0 %v15865_v40  ;;  %v12944_v31 = vor.u32 %v15134_v57, %v12941_v38  ;;  %v7703_v52 = vpop.f32.mrf.mxu1  ;;  %v12173_v19 = vld [vmem:[#allocation11 + $0xfc8] sm:$0xf0]  ;;  %v14567_v57 = vld [vmem:[#allocation11 + $0x3cc] sm:$0xf0]  ;;  %v11028_v12 = vor.u32 %v14663_v1, %v11027_v4 }
 0x1a0   :  { %7941 = vmatpush.bf16.msra.mxu0 %v12688_v42  ;;  %v15254_v42 = vld [vmem:[#allocation11 + $0x1944] sm:$0xf0]  ;;  %v12749_v24 = vld [vmem:[#allocation11 + $0x1448] sm:$0xf0]  ;;  %v11155_v38 = vld [vmem:[#allocation11 + $0x790] sm:$0xf] }
 0x1a1   :  { %7910 = vmatmul.bf16.vlgmr.msrb.gmra.mxu1 %v15867_v45  ;;  %7867 = vmatpush.bf16.msra.mxu2 %v13452_v28  ;;  %v13388_v27 = vor.u32 %v15254_v42, %v13387_v41  ;;  %v14695_v28 = vld [vmem:[#allocation11 + $0x7cc] sm:$0xf0]  ;;  %v12176_v41 = vor.u32 %v14942_v17, %v12173_v19  ;;  %v14926_v48 = vld [vmem:[#allocation11 + $0xf0c] sm:$0xf] }
 0x1a2   :  { %7954 = vmatpush.bf16.msra.mxu1 %v13200_v43  ;;  %v13899_v43 = vld [vmem:[#allocation11 + $0x1d08] sm:$0xf]  ;;  %7880 = vmatpush.bf16.msra.mxu3 %v13964_v39  ;;  %v11664_v39 = vor.u32 %v14814_v13, %v11661_v14  ;;  %v11156_v33 = vor.u32 %v14695_v28, %v11155_v38  ;;  %v12109_v50 = vld [vmem:[#allocation11 + $0xf48] sm:$0xf0]  ;;  %v10451_v17 = vld [vmem:[#allocation11 + $0x210] sm:$0xf] }
 0x1a3   :  { %v13900_v53 = vor.u32 %v15382_v46, %v13899_v43  ;;  %v12240_v43 = vor.u32 %v14958_v16, %v12237_v20  ;;  %v12752_v46 = vor.u32 %v15086_v23, %v12749_v24  ;;  %v12112_v55 = vor.u32 %v14926_v48, %v12109_v50  ;;  %v14894_v13 = vld [vmem:[#allocation11 + $0xe0c] sm:$0xf]  ;;  %v14647_v19 = vld [vmem:[#allocation11 + $0x64c] sm:$0xf0] }
 0x1a4   :  { %7942 = vmatpush.bf16.msra.mxu0 %v12624_v0  ;;  %v13835_v0 = vld [vmem:[#allocation11 + $0x1c88] sm:$0xf]  ;;  %v7692_v42 = vpop.f32.mrf.mxu0  ;;  %v11981_v14 = vld [vmem:[#allocation11 + $0xe48] sm:$0xf0]  ;;  %v10387_v38 = vld [vmem:[#allocation11 + $0x190] sm:$0xf] }
 0x1a5   :  { %7868 = vmatpush.bf16.msra.mxu2 %v13388_v27  ;;  %v11091_v27 = vld [vmem:[#allocation11 + $0x710] sm:$0xf]  ;;  %v11984_v20 = vor.u32 %v14894_v13, %v11981_v14  ;;  %v14750_v23 = vld [vmem:[#allocation11 + $0x98c] sm:$0xf] }
 0x1a6   :  { %7955 = vmatpush.bf16.msra.mxu1 %v13136_v56  ;;  %v15366_v56 = vld [vmem:[#allocation11 + $0x1cc4] sm:$0xf0]  ;;  %7881 = vmatpush.bf16.msra.mxu3 %v13900_v53  ;;  %v14679_v53 = vld [vmem:[#allocation11 + $0x74c] sm:$0xf0]  ;;  %v11405_v24 = vld [vmem:[#allocation11 + $0x9c8] sm:$0xf0] }
 0x1a7   :  { %v13836_v7 = vor.u32 %v15366_v56, %v13835_v0  ;;  %v14782_v0 = vld [vmem:[#allocation11 + $0xa8c] sm:$0xf]  ;;  %v14631_v42 = vld [vmem:[#allocation11 + $0x5cc] sm:$0xf0] }
 0x1a8   :  { %7943 = vmatpush.bf16.msra.mxu0 %v12560_v10  ;;  %v15966_v10 = vadd.f32 %v7703_v52, %v7691_v61  ;;  %v14551_v52 = vld [vmem:[#allocation11 + $0x34c] sm:$0xf0]  ;;  %v11533_v56 = vld [vmem:[#allocation11 + $0xac8] sm:$0xf0] }
 0x1a9   :  { %7869 = vmatpush.bf16.msra.mxu2 %v13324_v3  ;;  %v10580_v49 = vor.u32 %v14551_v52, %v10579_v51  ;;  %v12045_v61 = vld [vmem:[#allocation11 + $0xec8] sm:$0xf0]  ;;  %v10323_v51 = vld [vmem:[#allocation11 + $0x110] sm:$0xf] }
 0x1aa   :  { %7956 = vmatpush.bf16.msra.mxu1 %v13072_v9  ;;  %v15222_v9 = vld [vmem:[#allocation11 + $0x1844] sm:$0xf0]  ;;  %7882 = vmatpush.bf16.msra.mxu3 %v13836_v7  ;;  %v14766_v7 = vld [vmem:[#allocation11 + $0xa0c] sm:$0xf]  ;;  %v14487_v52 = vld [vmem:[#allocation11 + $0x14c] sm:$0xf0] }
 0x1ab   :  { %v13260_v30 = vor.u32 %v15222_v9, %v13259_v2  ;;  %v11536_v2 = vor.u32 %v14782_v0, %v11533_v56  ;;  %v11469_v9 = vld [vmem:[#allocation11 + $0xa48] sm:$0xf0]  ;;  %v10259_v44 = vld [vmem:[#allocation11 + $0x90] sm:$0xf] }
 0x1ac   :  { %7944 = vmatpush.bf16.msra.mxu0 %v12496_v29  ;;  %v10643_v29 = vld [vmem:[#allocation11 + $0x390] sm:$0xf]  ;;  %v11472_v16 = vor.u32 %v14766_v7, %v11469_v9  ;;  %v14862_v48 = vld [vmem:[#allocation11 + $0xd0c] sm:$0xf] }
 0x1ad   :  { %v10644_v32 = vor.u32 %v14567_v57, %v10643_v29  ;;  %7870 = vmatpush.bf16.msra.mxu2 %v13260_v30  ;;  %v11917_v57 = vld [vmem:[#allocation11 + $0xdc8] sm:$0xf0]  ;;  %v14471_v1 = vld [vmem:[#allocation11 + $0xcc] sm:$0xf0] }
 0x1ae   :  { %7957 = vmatpush.bf16.msra.mxu1 %v13008_v15  ;;  %v7705_v15 = vpop.f32.mrf.mxu1  ;;  %7883 = vmatpush.bf16.msra.mxu3 %v13772_v34  ;;  %v14878_v34 = vld [vmem:[#allocation11 + $0xd8c] sm:$0xf] }
 0x1af   :  { %v11853_v50 = vld [vmem:[#allocation11 + $0xd48] sm:$0xf0] }
 0x1b0   :  { %7945 = vmatpush.bf16.msra.mxu0 %v12432_v47  ;;  %v14798_v47 = vld [vmem:[#allocation11 + $0xb0c] sm:$0xf]  ;;  %7871 = vmatmul.bf16.vlgmr.msra.gmra.mxu2 %v15939_v8 }
 0x1b1   :  { %7915 = vmatpush.bf16.msrb.mxu2 %v11664_v39  ;;  %7884 = vmatmul.bf16.vlgmr.msra.gmra.mxu3 %v15941_v22  ;;  %v14503_v39 = vld [vmem:[#allocation11 + $0x1cc] sm:$0xf0]  ;;  %v14718_v0 = vld [vmem:[#allocation11 + $0x88c] sm:$0xf] }
 0x1b2   :  { %7958 = vmatpush.bf16.msra.mxu1 %v12944_v31  ;;  %v11597_v31 = vld [vmem:[#allocation11 + $0xb48] sm:$0xf0]  ;;  %7928 = vmatpush.bf16.msrb.mxu3 %v12176_v41  ;;  %v10899_v41 = vld [vmem:[#allocation11 + $0x590] sm:$0xf] }
 0x1b3   :  { %v11600_v54 = vor.u32 %v14798_v47, %v11597_v31  ;;  %v14734_v47 = vld [vmem:[#allocation11 + $0x90c] sm:$0xf] }
 0x1b4   :  { %7946 = vmatpush.bf16.msra.mxu0 %v12368_v59  ;;  %v11092_v59 = vor.u32 %v14679_v53, %v11091_v27  ;;  %v11341_v31 = vld [vmem:[#allocation11 + $0x948] sm:$0xf0]  ;;  %v10835_v27 = vld [vmem:[#allocation11 + $0x510] sm:$0xf] }
 0x1b5   :  { %7916 = vmatpush.bf16.msrb.mxu2 %v11600_v54  ;;  %v14615_v53 = vld [vmem:[#allocation11 + $0x54c] sm:$0xf0]  ;;  %v11344_v54 = vor.u32 %v14734_v47, %v11341_v31  ;;  %v11277_v56 = vld [vmem:[#allocation11 + $0x8c8] sm:$0xf0] }
 0x1b6   :  { %7959 = vmatpush.bf16.msra.mxu1 %v12880_v60  ;;  %v14910_v60 = vld [vmem:[#allocation11 + $0xe8c] sm:$0xf]  ;;  %7929 = vmatpush.bf16.msrb.mxu3 %v12112_v55  ;;  %v11856_v55 = vor.u32 %v14862_v48, %v11853_v50  ;;  %v11280_v9 = vor.u32 %v14718_v0, %v11277_v56 }
 0x1b7   :  { %v12048_v3 = vor.u32 %v14910_v60, %v12045_v61  ;;  %v10836_v60 = vor.u32 %v14615_v53, %v10835_v27  ;;  %v14846_v61 = vld [vmem:[#allocation11 + $0xc8c] sm:$0xf]  ;;  %v12627_v27 = vld [vmem:[#allocation11 + $0x1310] sm:$0xf] }
 0x1b8   :  { %7947 = vmatpush.bf16.msra.mxu0 %v12304_v21  ;;  %v14519_v21 = vld [vmem:[#allocation11 + $0x24c] sm:$0xf0]  ;;  %v11789_v63 = vld [vmem:[#allocation11 + $0xcc8] sm:$0xf0] }
 0x1b9   :  { %7917 = vmatpush.bf16.msrb.mxu2 %v11536_v2  ;;  %v10452_v15 = vor.u32 %v14519_v21, %v10451_v17  ;;  %v10771_v2 = vld [vmem:[#allocation11 + $0x490] sm:$0xf]  ;;  %v14702_v7 = vld [vmem:[#allocation11 + $0x80c] sm:$0xf]  ;;  %v10260_v17 = vor.u32 %v14471_v1, %v10259_v44 }
 0x1ba   :  { %7960 = vmatpush.bf16.msra.mxu1 %v12816_v18  ;;  %v10963_v18 = vld [vmem:[#allocation11 + $0x610] sm:$0xf]  ;;  %7930 = vmatpush.bf16.msrb.mxu3 %v12048_v3  ;;  %v14830_v13 = vld [vmem:[#allocation11 + $0xc0c] sm:$0xf] }
 0x1bb   :  { %v10964_v30 = vor.u32 %v14647_v19, %v10963_v18  ;;  %v14599_v3 = vld [vmem:[#allocation11 + $0x4cc] sm:$0xf0]  ;;  %v11725_v14 = vld [vmem:[#allocation11 + $0xc48] sm:$0xf0] }
 0x1bc   :  { %7948 = vmatpush.bf16.msra.mxu0 %v12240_v43  ;;  %v15972_v29 = vpop.f32.mrf.mxu0  ;;  %v11408_v43 = vor.u32 %v14750_v23, %v11405_v24  ;;  %v10772_v21 = vor.u32 %v14599_v3, %v10771_v2  ;;  %v15326_v18 = vld [vmem:[#allocation11 + $0x1b8c] sm:$0xf]  ;;  %v10195_v23 = vld [vmem:[#allocation11 + $0x10] sm:$0xf] }
 0x1bd   :  { %7918 = vmatpush.bf16.msrb.mxu2 %v11472_v16  ;;  %v13709_v19 = vld [vmem:[#allocation11 + $0x1bc8] sm:$0xf0]  ;;  %v14455_v24 = vld [vmem:[#allocation11 + $0x4c] sm:$0xf0] }
 0x1be   :  { %7961 = vmatpush.bf16.msra.mxu1 %v12752_v46  ;;  %v15974_v28 = vpop.f32.mrf.mxu1  ;;  %7931 = vmatpush.bf16.msrb.mxu3 %v11984_v20  ;;  %v11920_v46 = vor.u32 %v14878_v34, %v11917_v57  ;;  %v15454_v16 = vld [vmem:[#allocation11 + $0x1f8c] sm:$0xf]  ;;  %v12691_v34 = vld [vmem:[#allocation11 + $0x1390] sm:$0xf]  ;;  %v10196_v31 = vor.u32 %v14455_v24, %v10195_v23 }
 0x1bf   :  { %7949 = vmatmul.bf16.vlgmr.msra.gmra.mxu0 %v15907_v36  ;;  %v14221_v20 = vld [vmem:[#allocation11 + $0x1fc8] sm:$0xf0]  ;;  %v15063_v53 = vld [vmem:[#allocation11 + $0x134c] sm:$0xf0] }
 0x1c0   :  { %7993 = vmatpush.bf16.msrb.mxu0 %v10644_v32  ;;  %v10388_v32 = vor.u32 %v14503_v39, %v10387_v38  ;;  %v11728_v38 = vor.u32 %v14830_v13, %v11725_v14  ;;  %v15079_v39 = vld [vmem:[#allocation11 + $0x13cc] sm:$0xf0]  ;;  %v15310_v47 = vld [vmem:[#allocation11 + $0x1b0c] sm:$0xf] }
 0x1c1   :  { %7962 = vmatmul.bf16.vlgmr.msra.gmra.mxu1 %v15909_v37  ;;  %7919 = vmatpush.bf16.msrb.mxu2 %v11408_v43  ;;  %v13712_v43 = vor.u32 %v15326_v18, %v13709_v19  ;;  %v15438_v48 = vld [vmem:[#allocation11 + $0x1f0c] sm:$0xf]  ;;  %v15047_v1 = vld [vmem:[#allocation11 + $0x12cc] sm:$0xf0] }
 0x1c2   :  { %8006 = vmatpush.bf16.msrb.mxu1 %v11156_v33  ;;  %v10900_v33 = vor.u32 %v14631_v42, %v10899_v41  ;;  %7932 = vmatpush.bf16.msrb.mxu3 %v11920_v46  ;;  %v13203_v41 = vld [vmem:[#allocation11 + $0x1790] sm:$0xf]  ;;  %v14224_v46 = vor.u32 %v15454_v16, %v14221_v20  ;;  %v14157_v50 = vld [vmem:[#allocation11 + $0x1f48] sm:$0xf0] }
 0x1c3   :  { %v15207_v42 = vld [vmem:[#allocation11 + $0x17cc] sm:$0xf0]  ;;  %v14160_v56 = vor.u32 %v15438_v48, %v14157_v50  ;;  %v15406_v13 = vld [vmem:[#allocation11 + $0x1e0c] sm:$0xf] }
 0x1c4   :  { %7994 = vmatpush.bf16.msrb.mxu0 %v10580_v49  ;;  %v7744_v49 = vpop.f32.mrf.mxu0  ;;  %v13075_v2 = vld [vmem:[#allocation11 + $0x1690] sm:$0xf]  ;;  %v14029_v14 = vld [vmem:[#allocation11 + $0x1e48] sm:$0xf0] }
 0x1c5   :  { %7920 = vmatpush.bf16.msrb.mxu2 %v11344_v54  ;;  %v13139_v54 = vld [vmem:[#allocation11 + $0x1710] sm:$0xf]  ;;  %v15294_v49 = vld [vmem:[#allocation11 + $0x1a8c] sm:$0xf]  ;;  %v14032_v24 = vor.u32 %v15406_v13, %v14029_v14 }
 0x1c6   :  { %8007 = vmatpush.bf16.msrb.mxu1 %v11092_v59  ;;  %v10324_v59 = vor.u32 %v14487_v52, %v10323_v51  ;;  %v7757_v4 = vpop.f32.mrf.mxu1  ;;  %7933 = vmatpush.bf16.msrb.mxu3 %v11856_v55  ;;  %v12692_v51 = vor.u32 %v15079_v39, %v12691_v34  ;;  %v13204_v52 = vor.u32 %v15207_v42, %v13203_v41  ;;  %v15191_v55 = vld [vmem:[#allocation11 + $0x174c] sm:$0xf0]  ;;  %v15390_v34 = vld [vmem:[#allocation11 + $0x1d8c] sm:$0xf]  ;;  %v15980_v42 = vld [vmem:[#allocation12] sm:$0xff] }
 0x1c7   :  { %v13140_v44 = vor.u32 %v15191_v55, %v13139_v54  ;;  %v12563_v4 = vld [vmem:[#allocation11 + $0x1290] sm:$0xf]  ;;  %v13901_v54 = vld [vmem:[#allocation11 + $0x1d48] sm:$0xf0] }
 0x1c8   :  { %7995 = vmatpush.bf16.msrb.mxu0 %v10516_v11  ;;  %v11792_v11 = vor.u32 %v14846_v61, %v11789_v63  ;;  %v14093_v61 = vld [vmem:[#allocation11 + $0x1ec8] sm:$0xf0]  ;;  %v12628_v63 = vor.u32 %v15063_v53, %v12627_v27  ;;  %v15175_v3 = vld [vmem:[#allocation11 + $0x16cc] sm:$0xf0] }
 0x1c9   :  { %7921 = vmatpush.bf16.msrb.mxu2 %v11280_v9  ;;  %v12499_v18 = vld [vmem:[#allocation11 + $0x1210] sm:$0xf]  ;;  %v13389_v27 = vld [vmem:[#allocation11 + $0x1948] sm:$0xf0] }
 0x1ca   :  { %8008 = vmatpush.bf16.msrb.mxu1 %v11028_v12  ;;  %v11213_v12 = vld [vmem:[#allocation11 + $0x848] sm:$0xf0]  ;;  %7934 = vmatpush.bf16.msrb.mxu3 %v11792_v11  ;;  %v15031_v19 = vld [vmem:[#allocation11 + $0x124c] sm:$0xf0] }
 0x1cb   :  { %v11216_v57 = vor.u32 %v14702_v7, %v11213_v12  ;;  %v15278_v11 = vld [vmem:[#allocation11 + $0x1a0c] sm:$0xf]  ;;  %v13011_v16 = vld [vmem:[#allocation11 + $0x1610] sm:$0xf] }
 0x1cc   :  { %7996 = vmatpush.bf16.msrb.mxu0 %v10452_v15  ;;  %v10707_v15 = vld [vmem:[#allocation11 + $0x410] sm:$0xf]  ;;  %v13517_v12 = vld [vmem:[#allocation11 + $0x1a48] sm:$0xf0] }
 0x1cd   :  { %7922 = vmatpush.bf16.msrb.mxu2 %v11216_v57  ;;  %v15159_v20 = vld [vmem:[#allocation11 + $0x164c] sm:$0xf0]  ;;  %v13520_v23 = vor.u32 %v15278_v11, %v13517_v12  ;;  %v13965_v57 = vld [vmem:[#allocation11 + $0x1dc8] sm:$0xf0] }
 0x1ce   :  { %8009 = vmatpush.bf16.msrb.mxu1 %v10964_v30  ;;  %v14583_v30 = vld [vmem:[#allocation11 + $0x44c] sm:$0xf0]  ;;  %7935 = vmatpush.bf16.msrb.mxu3 %v11728_v38  ;;  %v12500_v38 = vor.u32 %v15031_v19, %v12499_v18  ;;  %v13012_v39 = vor.u32 %v15159_v20, %v13011_v16  ;;  %v13968_v50 = vor.u32 %v15390_v34, %v13965_v57  ;;  %v15374_v53 = vld [vmem:[#allocation11 + $0x1d0c] sm:$0xf] }
 0x1cf   :  { %v12435_v41 = vld [vmem:[#allocation11 + $0x1190] sm:$0xf]  ;;  %v13837_v11 = vld [vmem:[#allocation11 + $0x1cc8] sm:$0xf0] }
 0x1d0   :  { %7997 = vmatpush.bf16.msrb.mxu0 %v10388_v32  ;;  %v10708_v32 = vor.u32 %v14583_v30, %v10707_v15  ;;  %7923 = vmatmul.bf16.vlgmr.msrb.gmra.mxu2 %v15875_v25  ;;  %v15262_v15 = vld [vmem:[#allocation11 + $0x198c] sm:$0xf]  ;;  %v12307_v14 = vld [vmem:[#allocation11 + $0x1090] sm:$0xf] }
 0x1d1   :  { %7967 = vmatpush.bf16.msra.mxu2 %v13712_v43  ;;  %7936 = vmatmul.bf16.vlgmr.msrb.gmra.mxu3 %v15877_v26  ;;  %v13453_v30 = vld [vmem:[#allocation11 + $0x19c8] sm:$0xf0]  ;;  %v2399_v43 = vperm.slane %v15980_v42, 2  ;;  %v15111_v18 = vld [vmem:[#allocation11 + $0x14cc] sm:$0xf0] }
 0x1d2   :  { %8010 = vmatpush.bf16.msrb.mxu1 %v10900_v33  ;;  %v13645_v33 = vld [vmem:[#allocation11 + $0x1b48] sm:$0xf0]  ;;  %7980 = vmatpush.bf16.msra.mxu3 %v14224_v46  ;;  %v15015_v46 = vld [vmem:[#allocation11 + $0x11cc] sm:$0xf0]  ;;  %v13456_v48 = vor.u32 %v15262_v15, %v13453_v30 }
 0x1d3   :  { %v13648_v0 = vor.u32 %v15310_v47, %v13645_v33  ;;  %v12947_v47 = vld [vmem:[#allocation11 + $0x1590] sm:$0xf]  ;;  %v7677_v33 = vpop.f32.mrf.mxu3  ;;  %v15214_v19 = vld [vmem:[#allocation11 + $0x180c] sm:$0xf] }
 0x1d4   :  { %7998 = vmatpush.bf16.msrb.mxu0 %v10324_v59  ;;  %v13581_v59 = vld [vmem:[#allocation11 + $0x1ac8] sm:$0xf0]  ;;  %v11667_v57 = vld [vmem:[#allocation11 + $0xb90] sm:$0xf] }
 0x1d5   :  { %7968 = vmatpush.bf16.msra.mxu2 %v13648_v0  ;;  %v13584_v7 = vor.u32 %v15294_v49, %v13581_v59  ;;  %v12371_v59 = vld [vmem:[#allocation11 + $0x1110] sm:$0xf]  ;;  %v13261_v15 = vld [vmem:[#allocation11 + $0x1848] sm:$0xf0] }
 0x1d6   :  { %8011 = vmatpush.bf16.msrb.mxu1 %v10836_v60  ;;  %v15422_v60 = vld [vmem:[#allocation11 + $0x1e8c] sm:$0xf]  ;;  %7981 = vmatpush.bf16.msra.mxu3 %v14160_v56  ;;  %v12436_v56 = vor.u32 %v15015_v46, %v12435_v41 }
 0x1d7   :  { %v14096_v9 = vor.u32 %v15422_v60, %v14093_v61  ;;  %v15342_v30 = vld [vmem:[#allocation11 + $0x1c0c] sm:$0xf] }
 0x1d8   :  { %7999 = vmatpush.bf16.msrb.mxu0 %v10260_v17  ;;  %v12564_v17 = vor.u32 %v15047_v1, %v12563_v4  ;;  %v15127_v4 = vld [vmem:[#allocation11 + $0x154c] sm:$0xf0]  ;;  %v13773_v34 = vld [vmem:[#allocation11 + $0x1c48] sm:$0xf0] }
 0x1d9   :  { %7969 = vmatpush.bf16.msra.mxu2 %v13584_v7  ;;  %v13325_v7 = vld [vmem:[#allocation11 + $0x18c8] sm:$0xf0] }
 0x1da   :  { %8012 = vmatpush.bf16.msrb.mxu1 %v10772_v21  ;;  %v13076_v21 = vor.u32 %v15175_v3, %v13075_v2  ;;  %7982 = vmatpush.bf16.msra.mxu3 %v14096_v9  ;;  %v15230_v2 = vld [vmem:[#allocation11 + $0x188c] sm:$0xf] }
 0x1db   :  { %v15358_v9 = vld [vmem:[#allocation11 + $0x1c8c] sm:$0xf]  ;;  %v7679_v20 = vpop.f32.mrf.mxu3 }
 0x1dc   :  { %8000 = vmatpush.bf16.msrb.mxu0 %v10196_v31  ;;  %v15143_v31 = vld [vmem:[#allocation11 + $0x15cc] sm:$0xf0]  ;;  %v7794_v55 = vpop.f32.mrf.mxu0 }
 0x1dd   :  { %7970 = vmatpush.bf16.msra.mxu2 %v13520_v23  ;;  %v12948_v49 = vor.u32 %v15143_v31, %v12947_v47  ;;  %v7795_v60 = vadd.f32 %v7794_v55, %v2399_v43  ;;  %v13328_v23 = vor.u32 %v15230_v2, %v13325_v7  ;;  %v14951_v31 = vld [vmem:[#allocation11 + $0xfcc] sm:$0xf0]  ;;  %v11157_v55 = vld [vmem:[#allocation11 + $0x7d0] sm:$0xf0] }
 0x1de   :  { %8013 = vmatpush.bf16.msrb.mxu1 %v10708_v32  ;;  %7983 = vmatpush.bf16.msra.mxu3 %v14032_v24  ;;  %v7664_v32 = vpop.f32.mrf.mxu2  ;;  %v7807_v0 = vpop.f32.mrf.mxu1  ;;  %v13840_v24 = vor.u32 %v15358_v9, %v13837_v11  ;;  %v14543_v2 = vld [vmem:[#allocation11 + $0x314] sm:$0xf] }
 0x1df   :  { %8001 = vmatmul.bf16.vlgmr.msrb.gmra.mxu0 %v15865_v40  ;;  %v15986_v3 = vadd.f32 %v7807_v0, %v7795_v60  ;;  %v11603_v60 = vld [vmem:[#allocation11 + $0xb10] sm:$0xf]  ;;  %v10581_v11 = vld [vmem:[#allocation11 + $0x350] sm:$0xf0] }
 0x1e0   :  { %8045 = vmatpush.bf16.msra.mxu0 %v12692_v51  ;;  %v15246_v51 = vld [vmem:[#allocation11 + $0x190c] sm:$0xf]  ;;  %v10584_v20 = vor.u32 %v14543_v2, %v10581_v11  ;;  %v10901_v2 = vld [vmem:[#allocation11 + $0x5d0] sm:$0xf0]  ;;  %v11347_v11 = vld [vmem:[#allocation11 + $0x910] sm:$0xf] }
 0x1e1   :  { %8014 = vmatmul.bf16.vlgmr.msrb.gmra.mxu1 %v15867_v45  ;;  %7971 = vmatpush.bf16.msra.mxu2 %v13456_v48  ;;  %v13392_v1 = vor.u32 %v15246_v51, %v13389_v27  ;;  %v12755_v48 = vld [vmem:[#allocation11 + $0x1410] sm:$0xf]  ;;  %v14559_v51 = vld [vmem:[#allocation11 + $0x394] sm:$0xf]  ;;  %v13776_v27 = vor.u32 %v15342_v30, %v13773_v34 }
 0x1e2   :  { %8058 = vmatpush.bf16.msra.mxu1 %v13204_v52  ;;  %v7665_v52 = vadd.f32 %v7664_v32, %v15960_v58  ;;  %7984 = vmatpush.bf16.msra.mxu3 %v13968_v50  ;;  %v13904_v58 = vor.u32 %v15374_v53, %v13901_v54  ;;  %v12243_v32 = vld [vmem:[#allocation11 + $0x1010] sm:$0xf]  ;;  %v10645_v53 = vld [vmem:[#allocation11 + $0x3d0] sm:$0xf0] }
 0x1e3   :  { %v15095_v50 = vld [vmem:[#allocation11 + $0x144c] sm:$0xf0]  ;;  %v14687_v54 = vld [vmem:[#allocation11 + $0x794] sm:$0xf]  ;;  %v7729_v9 = vpop.f32.mrf.mxu3 }
 0x1e4   :  { %8046 = vmatpush.bf16.msra.mxu0 %v12628_v63  ;;  %v15984_v61 = vadd.f32 %v7677_v33, %v7665_v52  ;;  %v14999_v63 = vld [vmem:[#allocation11 + $0x114c] sm:$0xf0]  ;;  %v7796_v41 = vpop.f32.mrf.mxu0  ;;  %v13264_v52 = vor.u32 %v15214_v19, %v13261_v15  ;;  %v14527_v30 = vld [vmem:[#allocation11 + $0x294] sm:$0xf] }
 0x1e5   :  { %v12372_v12 = vor.u32 %v14999_v63, %v12371_v59  ;;  %7972 = vmatpush.bf16.msra.mxu2 %v13392_v1  ;;  %v14967_v33 = vld [vmem:[#allocation11 + $0x104c] sm:$0xf0]  ;;  %v12756_v59 = vor.u32 %v15095_v50, %v12755_v48  ;;  %v10517_v34 = vld [vmem:[#allocation11 + $0x2d0] sm:$0xf0] }
 0x1e6   :  { %8059 = vmatpush.bf16.msra.mxu1 %v13140_v44  ;;  %v12883_v44 = vld [vmem:[#allocation11 + $0x1510] sm:$0xf]  ;;  %7985 = vmatpush.bf16.msra.mxu3 %v13904_v58  ;;  %v7666_v16 = vpop.f32.mrf.mxu2  ;;  %v7809_v43 = vpop.f32.mrf.mxu1  ;;  %v14511_v48 = vld [vmem:[#allocation11 + $0x214] sm:$0xf] }
 0x1e7   :  { %v12884_v13 = vor.u32 %v15127_v4, %v12883_v44  ;;  %v14807_v63 = vld [vmem:[#allocation11 + $0xb4c] sm:$0xf0]  ;;  %v10648_v44 = vor.u32 %v14559_v51, %v10645_v53  ;;  %v11160_v4 = vor.u32 %v14687_v54, %v11157_v55  ;;  %v10965_v53 = vld [vmem:[#allocation11 + $0x650] sm:$0xf0] }
 0x1e8   :  { %8047 = vmatpush.bf16.msra.mxu0 %v12564_v17  ;;  %v14983_v17 = vld [vmem:[#allocation11 + $0x10cc] sm:$0xf0] }
 0x1e9   :  { %v12308_v46 = vor.u32 %v14983_v17, %v12307_v14  ;;  %7973 = vmatpush.bf16.msra.mxu2 %v13328_v23  ;;  %v12115_v1 = vld [vmem:[#allocation11 + $0xf10] sm:$0xf]  ;;  %v11604_v17 = vor.u32 %v14807_v63, %v11603_v60 }
 0x1ea   :  { %8060 = vmatpush.bf16.msra.mxu1 %v13076_v21  ;;  %v12819_v21 = vld [vmem:[#allocation11 + $0x1490] sm:$0xf]  ;;  %7986 = vmatpush.bf16.msra.mxu3 %v13840_v24 }
 0x1eb   :  { %v12820_v47 = vor.u32 %v15111_v18, %v12819_v21  ;;  %v14935_v58 = vld [vmem:[#allocation11 + $0xf4c] sm:$0xf0]  ;;  %v7731_v51 = vpop.f32.mrf.mxu3 }
 0x1ec   :  { %8048 = vmatpush.bf16.msra.mxu0 %v12500_v38  ;;  %v14823_v38 = vld [vmem:[#allocation11 + $0xbcc] sm:$0xf0]  ;;  %v12116_v21 = vor.u32 %v14935_v58, %v12115_v1  ;;  %v10389_v1 = vld [vmem:[#allocation11 + $0x1d0] sm:$0xf0] }
 0x1ed   :  { %v11668_v0 = vor.u32 %v14823_v38, %v11667_v57  ;;  %7974 = vmatpush.bf16.msra.mxu2 %v13264_v52  ;;  %v11539_v18 = vld [vmem:[#allocation11 + $0xa90] sm:$0xf]  ;;  %v11029_v57 = vld [vmem:[#allocation11 + $0x6d0] sm:$0xf0] }
 0x1ee   :  { %8061 = vmatpush.bf16.msra.mxu1 %v13012_v39  ;;  %v12179_v39 = vld [vmem:[#allocation11 + $0xf90] sm:$0xf]  ;;  %7987 = vmatpush.bf16.msra.mxu3 %v13776_v27  ;;  %v7716_v7 = vpop.f32.mrf.mxu2  ;;  %v10453_v52 = vld [vmem:[#allocation11 + $0x250] sm:$0xf0] }
 0x1ef   :  { %v7717_v14 = vadd.f32 %v7716_v7, %v15966_v10  ;;  %v14791_v19 = vld [vmem:[#allocation11 + $0xacc] sm:$0xf0]  ;;  %v14655_v10 = vld [vmem:[#allocation11 + $0x694] sm:$0xf] }
 0x1f0   :  { %8049 = vmatpush.bf16.msra.mxu0 %v12436_v56  ;;  %v12180_v56 = vor.u32 %v14951_v31, %v12179_v39  ;;  %v12051_v24 = vld [vmem:[#allocation11 + $0xe90] sm:$0xf]  ;;  %7975 = vmatmul.bf16.vlgmr.msra.gmra.mxu2 %v15939_v8  ;;  %v11540_v39 = vor.u32 %v14791_v19, %v11539_v18  ;;  %v11032_v31 = vor.u32 %v14655_v10, %v11029_v57  ;;  %v14639_v27 = vld [vmem:[#allocation11 + $0x614] sm:$0xf] }
 0x1f1   :  { %8019 = vmatpush.bf16.msrb.mxu2 %v11668_v0  ;;  %v7730_v16 = vadd.f32 %v7729_v9, %v7717_v14  ;;  %v14919_v15 = vld [vmem:[#allocation11 + $0xecc] sm:$0xf0]  ;;  %7988 = vmatmul.bf16.vlgmr.msra.gmra.mxu3 %v15941_v22  ;;  %v14623_v58 = vld [vmem:[#allocation11 + $0x594] sm:$0xf] }
 0x1f2   :  { %8062 = vmatpush.bf16.msra.mxu1 %v12948_v49  ;;  %v12244_v49 = vor.u32 %v14967_v33, %v12243_v32  ;;  %8032 = vmatpush.bf16.msrb.mxu3 %v12180_v56  ;;  %v12052_v41 = vor.u32 %v14919_v15, %v12051_v24  ;;  %v11475_v43 = vld [vmem:[#allocation11 + $0xa10] sm:$0xf]  ;;  %v10904_v14 = vor.u32 %v14623_v58, %v10901_v2  ;;  %v14479_v18 = vld [vmem:[#allocation11 + $0x114] sm:$0xf] }
 0x1f3   :  { %v7743_v38 = vadd.f32 %v15972_v29, %v7730_v16  ;;  %v11987_v32 = vld [vmem:[#allocation11 + $0xe10] sm:$0xf]  ;;  %v10325_v19 = vld [vmem:[#allocation11 + $0x150] sm:$0xf0] }
 0x1f4   :  { %8050 = vmatpush.bf16.msra.mxu0 %v12372_v12  ;;  %v14671_v12 = vld [vmem:[#allocation11 + $0x714] sm:$0xf]  ;;  %v14903_v33 = vld [vmem:[#allocation11 + $0xe4c] sm:$0xf0]  ;;  %v7781_v24 = vpop.f32.mrf.mxu3 }
 0x1f5   :  { %8020 = vmatpush.bf16.msrb.mxu2 %v11604_v17  ;;  %v7756_v50 = vadd.f32 %v15974_v28, %v7743_v38  ;;  %v11988_v55 = vor.u32 %v14903_v33, %v11987_v32  ;;  %v11411_v0 = vld [vmem:[#allocation11 + $0x990] sm:$0xf]  ;;  %v14607_v16 = vld [vmem:[#allocation11 + $0x514] sm:$0xf]  ;;  %v10328_v38 = vor.u32 %v14479_v18, %v10325_v19 }
 0x1f6   :  { %8063 = vmatpush.bf16.msra.mxu1 %v12884_v13  ;;  %v11093_v13 = vld [vmem:[#allocation11 + $0x750] sm:$0xf0]  ;;  %8033 = vmatpush.bf16.msrb.mxu3 %v12116_v21  ;;  %v7718_v29 = vpop.f32.mrf.mxu2  ;;  %v14759_v56 = vld [vmem:[#allocation11 + $0x9cc] sm:$0xf0] }
 0x1f7   :  { %v11096_v23 = vor.u32 %v14671_v12, %v11093_v13  ;;  %v11923_v60 = vld [vmem:[#allocation11 + $0xd90] sm:$0xf]  ;;  %v11412_v7 = vor.u32 %v14759_v56, %v11411_v0  ;;  %v10261_v33 = vld [vmem:[#allocation11 + $0xd0] sm:$0xf0] }
 0x1f8   :  { %8051 = vmatpush.bf16.msra.mxu0 %v12308_v46  ;;  %v14775_v46 = vld [vmem:[#allocation11 + $0xa4c] sm:$0xf0]  ;;  %v10773_v29 = vld [vmem:[#allocation11 + $0x4d0] sm:$0xf0] }
 0x1f9   :  { %8021 = vmatpush.bf16.msrb.mxu2 %v11540_v39  ;;  %v11476_v54 = vor.u32 %v14775_v46, %v11475_v43  ;;  %v14887_v63 = vld [vmem:[#allocation11 + $0xdcc] sm:$0xf0]  ;;  %v14463_v46 = vld [vmem:[#allocation11 + $0x94] sm:$0xf] }
 0x1fa   :  { %8064 = vmatpush.bf16.msra.mxu1 %v12820_v47  ;;  %v10520_v47 = vor.u32 %v14527_v30, %v10517_v34  ;;  %8034 = vmatpush.bf16.msrb.mxu3 %v12052_v41  ;;  %v11924_v9 = vor.u32 %v14887_v63, %v11923_v60  ;;  %v14743_v12 = vld [vmem:[#allocation11 + $0x94c] sm:$0xf0]  ;;  %v14447_v63 = vld [vmem:[#allocation11 + $0x14] sm:$0xf] }
 0x1fb   :  { %v11859_v17 = vld [vmem:[#allocation11 + $0xd10] sm:$0xf]  ;;  %v11348_v30 = vor.u32 %v14743_v12, %v11347_v11  ;;  %v14575_v2 = vld [vmem:[#allocation11 + $0x414] sm:$0xf] }
 0x1fc   :  { %8052 = vmatpush.bf16.msra.mxu0 %v12244_v49  ;;  %v10456_v49 = vor.u32 %v14511_v48, %v10453_v52  ;;  %v14871_v21 = vld [vmem:[#allocation11 + $0xd4c] sm:$0xf0]  ;;  %v14591_v48 = vld [vmem:[#allocation11 + $0x494] sm:$0xf]  ;;  %v7783_v58 = vpop.f32.mrf.mxu3 }
 0x1fd   :  { %8022 = vmatpush.bf16.msrb.mxu2 %v11476_v54  ;;  %v11860_v34 = vor.u32 %v14871_v21, %v11859_v17  ;;  %v11283_v10 = vld [vmem:[#allocation11 + $0x890] sm:$0xf]  ;;  %v10776_v0 = vor.u32 %v14591_v48, %v10773_v29  ;;  %v13205_v17 = vld [vmem:[#allocation11 + $0x17d0] sm:$0xf0] }
 0x1fe   :  { %8065 = vmatpush.bf16.msra.mxu1 %v12756_v59  ;;  %v10968_v59 = vor.u32 %v14639_v27, %v10965_v53  ;;  %v15997_v28 = vpop.f32.mrf.mxu1  ;;  %8035 = vmatpush.bf16.msrb.mxu3 %v11988_v55  ;;  %v14727_v57 = vld [vmem:[#allocation11 + $0x8cc] sm:$0xf0]  ;;  %v10264_v55 = vor.u32 %v14463_v46, %v10261_v33  ;;  %v13013_v58 = vld [vmem:[#allocation11 + $0x1650] sm:$0xf0] }
 0x1ff   :  { %8053 = vmatmul.bf16.vlgmr.msra.gmra.mxu0 %v15907_v36  ;;  %v11795_v41 = vld [vmem:[#allocation11 + $0xc90] sm:$0xf] }
 0x200   :  { %8097 = vmatpush.bf16.msrb.mxu0 %v10648_v44  ;;  %v14495_v44 = vld [vmem:[#allocation11 + $0x194] sm:$0xf]  ;;  %v14855_v43 = vld [vmem:[#allocation11 + $0xccc] sm:$0xf0] }
 0x201   :  { %8066 = vmatmul.bf16.vlgmr.msra.gmra.mxu1 %v15909_v37  ;;  %v10392_v13 = vor.u32 %v14495_v44, %v10389_v1  ;;  %8023 = vmatpush.bf16.msrb.mxu2 %v11412_v7  ;;  %v11219_v51 = vld [vmem:[#allocation11 + $0x810] sm:$0xf]  ;;  %v11796_v52 = vor.u32 %v14855_v43, %v11795_v41  ;;  %v10197_v44 = vld [vmem:[#allocation11 + $0x50] sm:$0xf0] }
 0x202   :  { %8110 = vmatpush.bf16.msrb.mxu1 %v11160_v4  ;;  %v15995_v4 = vpop.f32.mrf.mxu0  ;;  %8036 = vmatpush.bf16.msrb.mxu3 %v11924_v9  ;;  %v14711_v27 = vld [vmem:[#allocation11 + $0x84c] sm:$0xf0]  ;;  %v10709_v7 = vld [vmem:[#allocation11 + $0x450] sm:$0xf0] }
 0x203   :  { %v11731_v53 = vld [vmem:[#allocation11 + $0xc10] sm:$0xf]  ;;  %v15071_v9 = vld [vmem:[#allocation11 + $0x1394] sm:$0xf]  ;;  %v11220_v11 = vor.u32 %v14711_v27, %v11219_v51 }
 0x204   :  { %8098 = vmatpush.bf16.msrb.mxu0 %v10584_v20  ;;  %v10837_v20 = vld [vmem:[#allocation11 + $0x550] sm:$0xf0]  ;;  %v14839_v54 = vld [vmem:[#allocation11 + $0xc4c] sm:$0xf0] }
 0x205   :  { %v10840_v39 = vor.u32 %v14607_v16, %v10837_v20  ;;  %8024 = vmatpush.bf16.msrb.mxu2 %v11348_v30  ;;  %v13715_v56 = vld [vmem:[#allocation11 + $0x1b90] sm:$0xf]  ;;  %v11732_v12 = vor.u32 %v14839_v54, %v11731_v53  ;;  %v10200_v16 = vor.u32 %v14447_v63, %v10197_v44  ;;  %v10712_v20 = vor.u32 %v14575_v2, %v10709_v7  ;;  %v15039_v51 = vld [vmem:[#allocation11 + $0x1294] sm:$0xf] }
 0x206   :  { %8111 = vmatpush.bf16.msrb.mxu1 %v11096_v23  ;;  %v7768_v23 = vpop.f32.mrf.mxu2  ;;  %v7861_v32 = vpop.f32.mrf.mxu1  ;;  %8037 = vmatpush.bf16.msrb.mxu3 %v11860_v34  ;;  %v15463_v60 = vld [vmem:[#allocation11 + $0x1fcc] sm:$0xf0]  ;;  %v13077_v27 = vld [vmem:[#allocation11 + $0x16d0] sm:$0xf0] }
 0x207   :  { %v7769_v15 = vadd.f32 %v7768_v23, %v7756_v50  ;;  %v11284_v50 = vor.u32 %v14727_v57, %v11283_v10  ;;  %v13651_v19 = vld [vmem:[#allocation11 + $0x1b10] sm:$0xf]  ;;  %v15055_v10 = vld [vmem:[#allocation11 + $0x1314] sm:$0xf] }
 0x208   :  { %8099 = vmatpush.bf16.msrb.mxu0 %v10520_v47  ;;  %v15319_v23 = vld [vmem:[#allocation11 + $0x1b4c] sm:$0xf0]  ;;  %v12629_v57 = vld [vmem:[#allocation11 + $0x1350] sm:$0xf0] }
 0x209   :  { %v15999_v47 = vadd.f32 %v7781_v24, %v7769_v15  ;;  %8025 = vmatpush.bf16.msrb.mxu2 %v11284_v50  ;;  %v14163_v24 = vld [vmem:[#allocation11 + $0x1f10] sm:$0xf]  ;;  %v13652_v41 = vor.u32 %v15319_v23, %v13651_v19  ;;  %v12632_v48 = vor.u32 %v15055_v10, %v12629_v57  ;;  %v12565_v50 = vld [vmem:[#allocation11 + $0x12d0] sm:$0xf0] }
 0x20a   :  { %8112 = vmatpush.bf16.msrb.mxu1 %v11032_v31  ;;  %v7848_v31 = vpop.f32.mrf.mxu0  ;;  %8038 = vmatpush.bf16.msrb.mxu3 %v11796_v52  ;;  %v15447_v15 = vld [vmem:[#allocation11 + $0x1f4c] sm:$0xf0]  ;;  %v15167_v52 = vld [vmem:[#allocation11 + $0x1694] sm:$0xf] }
 0x20b   :  { %v14164_v43 = vor.u32 %v15447_v15, %v14163_v24  ;;  %v13587_v46 = vld [vmem:[#allocation11 + $0x1a90] sm:$0xf]  ;;  %v15023_v63 = vld [vmem:[#allocation11 + $0x1214] sm:$0xf] }
 0x20c   :  { %8100 = vmatpush.bf16.msrb.mxu0 %v10456_v49  ;;  %v15335_v49 = vld [vmem:[#allocation11 + $0x1bcc] sm:$0xf0]  ;;  %v12501_v44 = vld [vmem:[#allocation11 + $0x1250] sm:$0xf0] }
 0x20d   :  { %v13716_v21 = vor.u32 %v15335_v49, %v13715_v56  ;;  %8026 = vmatpush.bf16.msrb.mxu2 %v11220_v11  ;;  %v15303_v31 = vld [vmem:[#allocation11 + $0x1acc] sm:$0xf0]  ;;  %v12437_v19 = vld [vmem:[#allocation11 + $0x11d0] sm:$0xf0] }
 0x20e   :  { %8113 = vmatpush.bf16.msrb.mxu1 %v10968_v59  ;;  %v14227_v59 = vld [vmem:[#allocation11 + $0x1f90] sm:$0xf]  ;;  %v7770_v1 = vpop.f32.mrf.mxu2  ;;  %8039 = vmatpush.bf16.msrb.mxu3 %v11732_v12  ;;  %v13588_v53 = vor.u32 %v15303_v31, %v13587_v46  ;;  %v12373_v46 = vld [vmem:[#allocation11 + $0x1150] sm:$0xf0] }
 0x20f   :  { %v14228_v18 = vor.u32 %v15463_v60, %v14227_v59  ;;  %v14099_v32 = vld [vmem:[#allocation11 + $0x1e90] sm:$0xf]  ;;  %v12568_v59 = vor.u32 %v15039_v51, %v12565_v50  ;;  %v13080_v60 = vor.u32 %v15167_v52, %v13077_v27  ;;  %v15151_v1 = vld [vmem:[#allocation11 + $0x1614] sm:$0xf] }
 0x210   :  { %8101 = vmatpush.bf16.msrb.mxu0 %v10392_v13  ;;  %v12693_v13 = vld [vmem:[#allocation11 + $0x13d0] sm:$0xf0]  ;;  %v15431_v33 = vld [vmem:[#allocation11 + $0x1ecc] sm:$0xf0]  ;;  %8027 = vmatmul.bf16.vlgmr.msrb.gmra.mxu2 %v15875_v25 }
 0x211   :  { %v12696_v30 = vor.u32 %v15071_v9, %v12693_v13  ;;  %8071 = vmatpush.bf16.msra.mxu2 %v13716_v21  ;;  %8040 = vmatmul.bf16.vlgmr.msrb.gmra.mxu3 %v15877_v26  ;;  %v14100_v54 = vor.u32 %v15431_v33, %v14099_v32  ;;  %v14035_v56 = vld [vmem:[#allocation11 + $0x1e10] sm:$0xf]  ;;  %v13016_v21 = vor.u32 %v15151_v1, %v13013_v58  ;;  %v15119_v31 = vld [vmem:[#allocation11 + $0x1514] sm:$0xf] }
 0x212   :  { %8114 = vmatpush.bf16.msrb.mxu1 %v10904_v14  ;;  %v15199_v14 = vld [vmem:[#allocation11 + $0x1794] sm:$0xf]  ;;  %8084 = vmatpush.bf16.msra.mxu3 %v14228_v18  ;;  %v15415_v49 = vld [vmem:[#allocation11 + $0x1e4c] sm:$0xf0] }
 0x213   :  { %v13208_v34 = vor.u32 %v15199_v14, %v13205_v17  ;;  %v14036_v7 = vor.u32 %v15415_v49, %v14035_v56  ;;  %v13459_v9 = vld [vmem:[#allocation11 + $0x1990] sm:$0xf]  ;;  %v2400_v14 = vperm.slane %v15980_v42, 3  ;;  %v12504_v17 = vor.u32 %v15023_v63, %v12501_v44  ;;  %v15007_v18 = vld [vmem:[#allocation11 + $0x1194] sm:$0xf] }
 0x214   :  { %8102 = vmatpush.bf16.msrb.mxu0 %v10328_v38  ;;  %v15183_v38 = vld [vmem:[#allocation11 + $0x1714] sm:$0xf]  ;;  %v15271_v11 = vld [vmem:[#allocation11 + $0x19cc] sm:$0xf0]  ;;  %v12440_v42 = vor.u32 %v15007_v18, %v12437_v19 }
 0x215   :  { %8072 = vmatpush.bf16.msra.mxu2 %v13652_v41  ;;  %v13971_v12 = vld [vmem:[#allocation11 + $0x1d90] sm:$0xf]  ;;  %v13460_v23 = vor.u32 %v15271_v11, %v13459_v9  ;;  %v12885_v32 = vld [vmem:[#allocation11 + $0x1550] sm:$0xf0] }
 0x216   :  { %8115 = vmatpush.bf16.msrb.mxu1 %v10840_v39  ;;  %v13141_v39 = vld [vmem:[#allocation11 + $0x1750] sm:$0xf0]  ;;  %8085 = vmatpush.bf16.msra.mxu3 %v14164_v43  ;;  %v15399_v13 = vld [vmem:[#allocation11 + $0x1dcc] sm:$0xf0]  ;;  %v12888_v56 = vor.u32 %v15119_v31, %v12885_v32 }
 0x217   :  { %v13144_v29 = vor.u32 %v15183_v38, %v13141_v39  ;;  %v13972_v24 = vor.u32 %v15399_v13, %v13971_v12  ;;  %v13395_v15 = vld [vmem:[#allocation11 + $0x1910] sm:$0xf]  ;;  %v14991_v43 = vld [vmem:[#allocation11 + $0x1114] sm:$0xf] }
 0x218   :  { %8103 = vmatpush.bf16.msrb.mxu0 %v10264_v55  ;;  %v13523_v55 = vld [vmem:[#allocation11 + $0x1a10] sm:$0xf]  ;;  %v14975_v49 = vld [vmem:[#allocation11 + $0x1094] sm:$0xf] }
 0x219   :  { %8073 = vmatpush.bf16.msra.mxu2 %v13588_v53  ;;  %v15255_v10 = vld [vmem:[#allocation11 + $0x194c] sm:$0xf0]  ;;  %v15103_v63 = vld [vmem:[#allocation11 + $0x1494] sm:$0xf] }
 0x21a   :  { %8116 = vmatpush.bf16.msrb.mxu1 %v10776_v0  ;;  %v15287_v0 = vld [vmem:[#allocation11 + $0x1a4c] sm:$0xf0]  ;;  %8086 = vmatpush.bf16.msra.mxu3 %v14100_v54  ;;  %v13396_v51 = vor.u32 %v15255_v10, %v13395_v15  ;;  %v12821_v44 = vld [vmem:[#allocation11 + $0x14d0] sm:$0xf0] }
 0x21b   :  { %v13524_v2 = vor.u32 %v15287_v0, %v13523_v55  ;;  %v13907_v57 = vld [vmem:[#allocation11 + $0x1d10] sm:$0xf]  ;;  %v12376_v0 = vor.u32 %v14991_v43, %v12373_v46  ;;  %v12824_v19 = vor.u32 %v15103_v63, %v12821_v44  ;;  %v12757_v15 = vld [vmem:[#allocation11 + $0x1450] sm:$0xf0] }
 0x21c   :  { %8104 = vmatpush.bf16.msrb.mxu0 %v10200_v16  ;;  %v15135_v16 = vld [vmem:[#allocation11 + $0x1594] sm:$0xf]  ;;  %v15383_v38 = vld [vmem:[#allocation11 + $0x1d4c] sm:$0xf0] }
 0x21d   :  { %8074 = vmatpush.bf16.msra.mxu2 %v13524_v2  ;;  %v13908_v50 = vor.u32 %v15383_v38, %v13907_v57  ;;  %v13331_v52 = vld [vmem:[#allocation11 + $0x1890] sm:$0xf]  ;;  %v14568_v57 = vld [vmem:[#allocation11 + $0x3d4] sm:$0xf0]  ;;  %v14911_v44 = vld [vmem:[#allocation11 + $0xe94] sm:$0xf] }
 0x21e   :  { %8117 = vmatpush.bf16.msrb.mxu1 %v10712_v20  ;;  %v12949_v20 = vld [vmem:[#allocation11 + $0x15d0] sm:$0xf0]  ;;  %8087 = vmatpush.bf16.msra.mxu3 %v14036_v7  ;;  %v15239_v53 = vld [vmem:[#allocation11 + $0x18cc] sm:$0xf0]  ;;  %v11163_v38 = vld [vmem:[#allocation11 + $0x798] sm:$0xf] }
 0x21f   :  { %8105 = vmatmul.bf16.vlgmr.msrb.gmra.mxu0 %v15865_v40  ;;  %v12952_v41 = vor.u32 %v15135_v16, %v12949_v20  ;;  %v13843_v54 = vld [vmem:[#allocation11 + $0x1c90] sm:$0xf]  ;;  %v13332_v58 = vor.u32 %v15239_v53, %v13331_v52  ;;  %v12181_v16 = vld [vmem:[#allocation11 + $0xfd0] sm:$0xf0]  ;;  %v14552_v53 = vld [vmem:[#allocation11 + $0x354] sm:$0xf0] }
 0x220   :  { %8149 = vmatpush.bf16.msra.mxu0 %v12696_v30  ;;  %v7898_v30 = vpop.f32.mrf.mxu0  ;;  %v15367_v55 = vld [vmem:[#allocation11 + $0x1ccc] sm:$0xf0]  ;;  %v14959_v20 = vld [vmem:[#allocation11 + $0x1014] sm:$0xf] }
 0x221   :  { %8118 = vmatmul.bf16.vlgmr.msrb.gmra.mxu1 %v15867_v45  ;;  %v7899_v39 = vadd.f32 %v7898_v30, %v2400_v14  ;;  %8075 = vmatpush.bf16.msra.mxu2 %v13460_v23  ;;  %v13267_v1 = vld [vmem:[#allocation11 + $0x1810] sm:$0xf]  ;;  %v13844_v2 = vor.u32 %v15367_v55, %v13843_v54  ;;  %v14815_v14 = vld [vmem:[#allocation11 + $0xb94] sm:$0xf]  ;;  %v10651_v30 = vld [vmem:[#allocation11 + $0x398] sm:$0xf] }
 0x222   :  { %8162 = vmatpush.bf16.msra.mxu1 %v13208_v34  ;;  %v7911_v34 = vpop.f32.mrf.mxu1  ;;  %8088 = vmatpush.bf16.msra.mxu3 %v13972_v24  ;;  %v15223_v7 = vld [vmem:[#allocation11 + $0x184c] sm:$0xf0]  ;;  %v12245_v23 = vld [vmem:[#allocation11 + $0x1050] sm:$0xf0]  ;;  %v11099_v54 = vld [vmem:[#allocation11 + $0x718] sm:$0xf] }
 0x223   :  { %v16006_v33 = vadd.f32 %v7911_v34, %v7899_v39  ;;  %v13779_v9 = vld [vmem:[#allocation11 + $0x1c10] sm:$0xf]  ;;  %v15087_v24 = vld [vmem:[#allocation11 + $0x1414] sm:$0xf]  ;;  %v13268_v10 = vor.u32 %v15223_v7, %v13267_v1  ;;  %v14696_v39 = vld [vmem:[#allocation11 + $0x7d4] sm:$0xf0]  ;;  %v12248_v31 = vor.u32 %v14959_v20, %v12245_v23 }
 0x224   :  { %8150 = vmatpush.bf16.msra.mxu0 %v12632_v48  ;;  %v7820_v48 = vpop.f32.mrf.mxu2  ;;  %v12760_v32 = vor.u32 %v15087_v24, %v12757_v15  ;;  %v12117_v52 = vld [vmem:[#allocation11 + $0xf50] sm:$0xf0]  ;;  %v14680_v55 = vld [vmem:[#allocation11 + $0x754] sm:$0xf0] }
 0x225   :  { %v7821_v27 = vadd.f32 %v7820_v48, %v15986_v3  ;;  %8076 = vmatpush.bf16.msra.mxu2 %v13396_v51  ;;  %v15351_v3 = vld [vmem:[#allocation11 + $0x1c4c] sm:$0xf0]  ;;  %v14799_v48 = vld [vmem:[#allocation11 + $0xb14] sm:$0xf]  ;;  %v10652_v51 = vor.u32 %v14568_v57, %v10651_v30  ;;  %v11100_v63 = vor.u32 %v14680_v55, %v11099_v54  ;;  %v11035_v7 = vld [vmem:[#allocation11 + $0x698] sm:$0xf] }
 0x226   :  { %8163 = vmatpush.bf16.msra.mxu1 %v13144_v29  ;;  %v7833_v29 = vpop.f32.mrf.mxu3  ;;  %8089 = vmatpush.bf16.msra.mxu3 %v13908_v50  ;;  %v14927_v50 = vld [vmem:[#allocation11 + $0xf14] sm:$0xf]  ;;  %v10971_v20 = vld [vmem:[#allocation11 + $0x618] sm:$0xf] }
 0x227   :  { %v12053_v1 = vld [vmem:[#allocation11 + $0xed0] sm:$0xf0]  ;;  %v14648_v23 = vld [vmem:[#allocation11 + $0x654] sm:$0xf0] }
 0x228   :  { %8151 = vmatpush.bf16.msra.mxu0 %v12568_v59  ;;  %v12309_v59 = vld [vmem:[#allocation11 + $0x10d0] sm:$0xf0]  ;;  %v7900_v11 = vpop.f32.mrf.mxu0  ;;  %v10972_v57 = vor.u32 %v14648_v23, %v10971_v20  ;;  %v10331_v54 = vld [vmem:[#allocation11 + $0x118] sm:$0xf] }
 0x229   :  { %v12312_v18 = vor.u32 %v14975_v49, %v12309_v59  ;;  %8077 = vmatpush.bf16.msra.mxu2 %v13332_v58  ;;  %v14783_v49 = vld [vmem:[#allocation11 + $0xa94] sm:$0xf]  ;;  %v10523_v58 = vld [vmem:[#allocation11 + $0x298] sm:$0xf]  ;;  %v12056_v11 = vor.u32 %v14911_v44, %v12053_v1 }
 0x22a   :  { %8164 = vmatpush.bf16.msra.mxu1 %v13080_v60  ;;  %v7834_v60 = vadd.f32 %v7833_v29, %v7821_v27  ;;  %v7913_v12 = vpop.f32.mrf.mxu1  ;;  %8090 = vmatpush.bf16.msra.mxu3 %v13844_v2  ;;  %v11605_v29 = vld [vmem:[#allocation11 + $0xb50] sm:$0xf0]  ;;  %v10587_v27 = vld [vmem:[#allocation11 + $0x318] sm:$0xf] }
 0x22b   :  { %v11541_v59 = vld [vmem:[#allocation11 + $0xad0] sm:$0xf0]  ;;  %v14536_v2 = vld [vmem:[#allocation11 + $0x2d4] sm:$0xf0] }
 0x22c   :  { %8152 = vmatpush.bf16.msra.mxu0 %v12504_v17  ;;  %v7847_v13 = vadd.f32 %v15995_v4, %v7834_v60  ;;  %v11669_v17 = vld [vmem:[#allocation11 + $0xbd0] sm:$0xf0]  ;;  %v13780_v4 = vor.u32 %v15351_v3, %v13779_v9  ;;  %v10588_v60 = vor.u32 %v14552_v53, %v10587_v27  ;;  %v14664_v9 = vld [vmem:[#allocation11 + $0x6d4] sm:$0xf0]  ;;  %v11544_v3 = vor.u32 %v14783_v49, %v11541_v59 }
 0x22d   :  { %v11672_v43 = vor.u32 %v14815_v14, %v11669_v17  ;;  %8078 = vmatpush.bf16.msra.mxu2 %v13268_v10  ;;  %v14767_v12 = vld [vmem:[#allocation11 + $0xa14] sm:$0xf]  ;;  %v10524_v14 = vor.u32 %v14536_v2, %v10523_v58  ;;  %v11036_v17 = vor.u32 %v14664_v9, %v11035_v7  ;;  %v14488_v55 = vld [vmem:[#allocation11 + $0x154] sm:$0xf0] }
 0x22e   :  { %8165 = vmatpush.bf16.msra.mxu1 %v13016_v21  ;;  %v14943_v21 = vld [vmem:[#allocation11 + $0xf94] sm:$0xf]  ;;  %v16011_v34 = vadd.f32 %v15997_v28, %v7847_v13  ;;  %v11164_v28 = vor.u32 %v14696_v39, %v11163_v38  ;;  %8091 = vmatpush.bf16.msra.mxu3 %v13780_v4  ;;  %v10332_v2 = vor.u32 %v14488_v55, %v10331_v54 }
 0x22f   :  { %v12184_v46 = vor.u32 %v14943_v21, %v12181_v16  ;;  %v11477_v13 = vld [vmem:[#allocation11 + $0xa50] sm:$0xf0]  ;;  %v14520_v16 = vld [vmem:[#allocation11 + $0x254] sm:$0xf0] }
 0x230   :  { %8153 = vmatpush.bf16.msra.mxu0 %v12440_v42  ;;  %v7822_v42 = vpop.f32.mrf.mxu2  ;;  %8079 = vmatmul.bf16.vlgmr.msra.gmra.mxu2 %v15939_v8  ;;  %v14895_v21 = vld [vmem:[#allocation11 + $0xe14] sm:$0xf]  ;;  %v11480_v24 = vor.u32 %v14767_v12, %v11477_v13 }
 0x231   :  { %8123 = vmatpush.bf16.msrb.mxu2 %v11672_v43  ;;  %8092 = vmatmul.bf16.vlgmr.msra.gmra.mxu3 %v15941_v22  ;;  %v14751_v30 = vld [vmem:[#allocation11 + $0x994] sm:$0xf]  ;;  %v10395_v42 = vld [vmem:[#allocation11 + $0x198] sm:$0xf] }
 0x232   :  { %8166 = vmatpush.bf16.msra.mxu1 %v12952_v41  ;;  %v7835_v41 = vpop.f32.mrf.mxu3  ;;  %8136 = vmatpush.bf16.msrb.mxu3 %v12184_v46  ;;  %v11413_v10 = vld [vmem:[#allocation11 + $0x9d0] sm:$0xf0]  ;;  %v14504_v46 = vld [vmem:[#allocation11 + $0x1d4] sm:$0xf0] }
 0x233   :  { %v14879_v38 = vld [vmem:[#allocation11 + $0xd94] sm:$0xf] }
 0x234   :  { %8154 = vmatpush.bf16.msra.mxu0 %v12376_v0  ;;  %v11608_v0 = vor.u32 %v14799_v48, %v11605_v29  ;;  %v11925_v39 = vld [vmem:[#allocation11 + $0xdd0] sm:$0xf0]  ;;  %v11416_v48 = vor.u32 %v14751_v30, %v11413_v10 }
 0x235   :  { %v11928_v29 = vor.u32 %v14879_v38, %v11925_v39  ;;  %v14863_v27 = vld [vmem:[#allocation11 + $0xd14] sm:$0xf]  ;;  %v10203_v39 = vld [vmem:[#allocation11 + $0x18] sm:$0xf] }
 0x236   :  { %8167 = vmatpush.bf16.msra.mxu1 %v12888_v56  ;;  %v12120_v56 = vor.u32 %v14927_v50, %v12117_v52  ;;  %8124 = vmatpush.bf16.msrb.mxu2 %v11608_v0  ;;  %v10396_v50 = vor.u32 %v14504_v46, %v10395_v42  ;;  %v11861_v53 = vld [vmem:[#allocation11 + $0xd50] sm:$0xf0]  ;;  %v10843_v0 = vld [vmem:[#allocation11 + $0x518] sm:$0xf] }
 0x237   :  { %v11864_v44 = vor.u32 %v14863_v27, %v11861_v53  ;;  %v14719_v1 = vld [vmem:[#allocation11 + $0x894] sm:$0xf]  ;;  %v14456_v42 = vld [vmem:[#allocation11 + $0x54] sm:$0xf0] }
 0x238   :  { %8155 = vmatpush.bf16.msra.mxu0 %v12312_v18  ;;  %8137 = vmatpush.bf16.msrb.mxu3 %v12120_v56  ;;  %v11989_v18 = vld [vmem:[#allocation11 + $0xe50] sm:$0xf0]  ;;  %v14616_v56 = vld [vmem:[#allocation11 + $0x554] sm:$0xf0]  ;;  %v7872_v49 = vpop.f32.mrf.mxu2 }
 0x239   :  { %v11992_v15 = vor.u32 %v14895_v21, %v11989_v18  ;;  %v11285_v58 = vld [vmem:[#allocation11 + $0x8d0] sm:$0xf0]  ;;  %v10844_v7 = vor.u32 %v14616_v56, %v10843_v0  ;;  %v10779_v21 = vld [vmem:[#allocation11 + $0x498] sm:$0xf]  ;;  %v10204_v0 = vor.u32 %v14456_v42, %v10203_v39 }
 0x23a   :  { %8168 = vmatpush.bf16.msra.mxu1 %v12824_v19  ;;  %v10459_v19 = vld [vmem:[#allocation11 + $0x218] sm:$0xf]  ;;  %8125 = vmatpush.bf16.msrb.mxu2 %v11544_v3  ;;  %v7885_v59 = vpop.f32.mrf.mxu3  ;;  %v14847_v9 = vld [vmem:[#allocation11 + $0xc94] sm:$0xf] }
 0x23b   :  { %v10460_v4 = vor.u32 %v14520_v16, %v10459_v19  ;;  %v11797_v3 = vld [vmem:[#allocation11 + $0xcd0] sm:$0xf0]  ;;  %v14600_v18 = vld [vmem:[#allocation11 + $0x4d4] sm:$0xf0] }
 0x23c   :  { %8156 = vmatpush.bf16.msra.mxu0 %v12248_v31  ;;  %8138 = vmatpush.bf16.msrb.mxu3 %v12056_v11  ;;  %v16017_v41 = vpop.f32.mrf.mxu0  ;;  %v10907_v31 = vld [vmem:[#allocation11 + $0x598] sm:$0xf]  ;;  %v14703_v19 = vld [vmem:[#allocation11 + $0x814] sm:$0xf]  ;;  %v11800_v16 = vor.u32 %v14847_v9, %v11797_v3  ;;  %v10780_v30 = vor.u32 %v14600_v18, %v10779_v21 }
 0x23d   :  { %v10267_v11 = vld [vmem:[#allocation11 + $0x98] sm:$0xf]  ;;  %v11221_v20 = vld [vmem:[#allocation11 + $0x850] sm:$0xf0] }
 0x23e   :  { %8169 = vmatpush.bf16.msra.mxu1 %v12760_v32  ;;  %v16019_v43 = vpop.f32.mrf.mxu1  ;;  %v14632_v32 = vld [vmem:[#allocation11 + $0x5d4] sm:$0xf0]  ;;  %8126 = vmatpush.bf16.msrb.mxu2 %v11480_v24  ;;  %v14831_v23 = vld [vmem:[#allocation11 + $0xc14] sm:$0xf] }
 0x23f   :  { %8157 = vmatmul.bf16.vlgmr.msra.gmra.mxu0 %v15907_v36  ;;  %v10908_v52 = vor.u32 %v14632_v32, %v10907_v31  ;;  %v11733_v24 = vld [vmem:[#allocation11 + $0xc50] sm:$0xf0]  ;;  %v10715_v32 = vld [vmem:[#allocation11 + $0x418] sm:$0xf] }
 0x240   :  { %8201 = vmatpush.bf16.msrb.mxu0 %v10652_v51  ;;  %8139 = vmatpush.bf16.msrb.mxu3 %v11992_v15  ;;  %v14735_v51 = vld [vmem:[#allocation11 + $0x914] sm:$0xf]  ;;  %v7874_v46 = vpop.f32.mrf.mxu2  ;;  %v15208_v27 = vld [vmem:[#allocation11 + $0x17d4] sm:$0xf0] }
 0x241   :  { %8170 = vmatmul.bf16.vlgmr.msra.gmra.mxu1 %v15909_v37  ;;  %v15327_v10 = vld [vmem:[#allocation11 + $0x1b94] sm:$0xf]  ;;  %v12507_v39 = vld [vmem:[#allocation11 + $0x1218] sm:$0xf] }
 0x242   :  { %8214 = vmatpush.bf16.msrb.mxu1 %v11164_v28  ;;  %v11349_v28 = vld [vmem:[#allocation11 + $0x950] sm:$0xf0]  ;;  %8127 = vmatpush.bf16.msrb.mxu2 %v11416_v48  ;;  %v7887_v31 = vpop.f32.mrf.mxu3  ;;  %v14584_v48 = vld [vmem:[#allocation11 + $0x454] sm:$0xf0] }
 0x243   :  { %v14229_v38 = vld [vmem:[#allocation11 + $0x1fd0] sm:$0xf0]  ;;  %v10716_v56 = vor.u32 %v14584_v48, %v10715_v32  ;;  %v15032_v42 = vld [vmem:[#allocation11 + $0x1254] sm:$0xf0] }
 0x244   :  { %8202 = vmatpush.bf16.msrb.mxu0 %v10588_v60  ;;  %8140 = vmatpush.bf16.msrb.mxu3 %v11928_v29  ;;  %v7873_v60 = vadd.f32 %v7872_v49, %v16011_v34  ;;  %v7952_v13 = vpop.f32.mrf.mxu0  ;;  %v11288_v34 = vor.u32 %v14719_v1, %v11285_v58  ;;  %v12699_v29 = vld [vmem:[#allocation11 + $0x1398] sm:$0xf]  ;;  %v15311_v55 = vld [vmem:[#allocation11 + $0x1b14] sm:$0xf] }
 0x245   :  { %v13653_v49 = vld [vmem:[#allocation11 + $0x1b50] sm:$0xf0]  ;;  %v12635_v1 = vld [vmem:[#allocation11 + $0x1318] sm:$0xf] }
 0x246   :  { %8215 = vmatpush.bf16.msrb.mxu1 %v11100_v63  ;;  %v11352_v63 = vor.u32 %v14735_v51, %v11349_v28  ;;  %v16022_v12 = vadd.f32 %v7885_v59, %v7873_v60  ;;  %v11224_v51 = vor.u32 %v14703_v19, %v11221_v20  ;;  %v11736_v28 = vor.u32 %v14831_v23, %v11733_v24  ;;  %v15439_v59 = vld [vmem:[#allocation11 + $0x1f14] sm:$0xf]  ;;  %v15064_v58 = vld [vmem:[#allocation11 + $0x1354] sm:$0xf0] }
 0x247   :  { %v14165_v60 = vld [vmem:[#allocation11 + $0x1f50] sm:$0xf0]  ;;  %v13656_v9 = vor.u32 %v15311_v55, %v13653_v49  ;;  %v12636_v21 = vor.u32 %v15064_v58, %v12635_v1  ;;  %v12571_v19 = vld [vmem:[#allocation11 + $0x1298] sm:$0xf] }
 0x248   :  { %8203 = vmatpush.bf16.msrb.mxu0 %v10524_v14  ;;  %v7965_v14 = vpop.f32.mrf.mxu1  ;;  %8128 = vmatpush.bf16.msrb.mxu2 %v11352_v63  ;;  %v14168_v3 = vor.u32 %v15439_v59, %v14165_v60  ;;  %v13589_v13 = vld [vmem:[#allocation11 + $0x1ad0] sm:$0xf0]  ;;  %v15176_v20 = vld [vmem:[#allocation11 + $0x16d4] sm:$0xf0] }
 0x249   :  { %8141 = vmatpush.bf16.msrb.mxu3 %v11864_v44  ;;  %v15423_v14 = vld [vmem:[#allocation11 + $0x1e94] sm:$0xf]  ;;  %v13019_v46 = vld [vmem:[#allocation11 + $0x1618] sm:$0xf] }
 0x24a   :  { %8216 = vmatpush.bf16.msrb.mxu1 %v11036_v17  ;;  %v14472_v17 = vld [vmem:[#allocation11 + $0xd4] sm:$0xf0]  ;;  %v13397_v58 = vld [vmem:[#allocation11 + $0x1950] sm:$0xf0] }
 0x24b   :  { %v10268_v15 = vor.u32 %v14472_v17, %v10267_v11  ;;  %v15295_v11 = vld [vmem:[#allocation11 + $0x1a94] sm:$0xf]  ;;  %v15160_v31 = vld [vmem:[#allocation11 + $0x1654] sm:$0xf0] }
 0x24c   :  { %8204 = vmatpush.bf16.msrb.mxu0 %v10460_v4  ;;  %v13717_v4 = vld [vmem:[#allocation11 + $0x1bd0] sm:$0xf0]  ;;  %8129 = vmatpush.bf16.msrb.mxu2 %v11288_v34  ;;  %v15048_v34 = vld [vmem:[#allocation11 + $0x12d4] sm:$0xf0]  ;;  %v13592_v23 = vor.u32 %v15295_v11, %v13589_v13 }
 0x24d   :  { %8142 = vmatpush.bf16.msrb.mxu3 %v11800_v16  ;;  %v13720_v53 = vor.u32 %v15327_v10, %v13717_v4  ;;  %v14101_v17 = vld [vmem:[#allocation11 + $0x1ed0] sm:$0xf0]  ;;  %v13083_v16 = vld [vmem:[#allocation11 + $0x1698] sm:$0xf] }
 0x24e   :  { %8217 = vmatpush.bf16.msrb.mxu1 %v10972_v57  ;;  %v15455_v57 = vld [vmem:[#allocation11 + $0x1f94] sm:$0xf]  ;;  %v14104_v24 = vor.u32 %v15423_v14, %v14101_v17  ;;  %v12443_v55 = vld [vmem:[#allocation11 + $0x1198] sm:$0xf] }
 0x24f   :  { %v14232_v54 = vor.u32 %v15455_v57, %v14229_v38  ;;  %v15407_v10 = vld [vmem:[#allocation11 + $0x1e14] sm:$0xf]  ;;  %v12572_v57 = vor.u32 %v15048_v34, %v12571_v19  ;;  %v13084_v38 = vor.u32 %v15176_v20, %v13083_v16  ;;  %v15144_v49 = vld [vmem:[#allocation11 + $0x15d4] sm:$0xf0] }
 0x250   :  { %8205 = vmatpush.bf16.msrb.mxu0 %v10396_v50  ;;  %v15080_v50 = vld [vmem:[#allocation11 + $0x13d4] sm:$0xf0]  ;;  %8130 = vmatpush.bf16.msrb.mxu2 %v11224_v51  ;;  %v14037_v4 = vld [vmem:[#allocation11 + $0x1e50] sm:$0xf0] }
 0x251   :  { %v12700_v63 = vor.u32 %v15080_v50, %v12699_v29  ;;  %8143 = vmatpush.bf16.msrb.mxu3 %v11736_v28  ;;  %v14040_v48 = vor.u32 %v15407_v10, %v14037_v4  ;;  %v15263_v29 = vld [vmem:[#allocation11 + $0x1994] sm:$0xf]  ;;  %v12379_v13 = vld [vmem:[#allocation11 + $0x1118] sm:$0xf] }
 0x252   :  { %8218 = vmatpush.bf16.msrb.mxu1 %v10908_v52  ;;  %v13211_v52 = vld [vmem:[#allocation11 + $0x1798] sm:$0xf]  ;;  %v13461_v51 = vld [vmem:[#allocation11 + $0x19d0] sm:$0xf0] }
 0x253   :  { %v13212_v44 = vor.u32 %v15208_v27, %v13211_v52  ;;  %8131 = vmatmul.bf16.vlgmr.msrb.gmra.mxu2 %v15875_v25  ;;  %v15391_v28 = vld [vmem:[#allocation11 + $0x1d94] sm:$0xf]  ;;  %v16028_v52 = vld [vmem:[#allocation12] sm:$0xff]  ;;  %v13464_v59 = vor.u32 %v15263_v29, %v13461_v51  ;;  %v15000_v14 = vld [vmem:[#allocation11 + $0x1154] sm:$0xf0]  ;;  %v7924_v19 = vpop.f32.mrf.mxu2 }
 0x254   :  { %8206 = vmatpush.bf16.msrb.mxu0 %v10332_v2  ;;  %v13147_v2 = vld [vmem:[#allocation11 + $0x1718] sm:$0xf]  ;;  %8175 = vmatpush.bf16.msra.mxu2 %v13720_v53  ;;  %v13973_v50 = vld [vmem:[#allocation11 + $0x1dd0] sm:$0xf0]  ;;  %v2401_v27 = vperm.slane %v16028_v52, 4  ;;  %v12508_v53 = vor.u32 %v15032_v42, %v12507_v39  ;;  %v7937_v34 = vpop.f32.mrf.mxu3  ;;  %v12380_v4 = vor.u32 %v15000_v14, %v12379_v13 }
 0x255   :  { %8188 = vmatpush.bf16.msra.mxu3 %v14232_v54  ;;  %v13020_v54 = vor.u32 %v15160_v31, %v13019_v46  ;;  %v13976_v60 = vor.u32 %v15391_v28, %v13973_v50  ;;  %v12891_v17 = vld [vmem:[#allocation11 + $0x1518] sm:$0xf]  ;;  %v13845_v10 = vld [vmem:[#allocation11 + $0x1cd0] sm:$0xf0] }
 0x256   :  { %8219 = vmatpush.bf16.msrb.mxu1 %v10844_v7  ;;  %v15192_v7 = vld [vmem:[#allocation11 + $0x1754] sm:$0xf0]  ;;  %8144 = vmatmul.bf16.vlgmr.msrb.gmra.mxu3 %v15877_v26  ;;  %v13269_v51 = vld [vmem:[#allocation11 + $0x1850] sm:$0xf0] }
 0x257   :  { %v13148_v18 = vor.u32 %v15192_v7, %v13147_v2  ;;  %v15375_v2 = vld [vmem:[#allocation11 + $0x1d14] sm:$0xf]  ;;  %v14984_v39 = vld [vmem:[#allocation11 + $0x10d4] sm:$0xf0] }
 0x258   :  { %8207 = vmatpush.bf16.msrb.mxu0 %v10268_v15  ;;  %8176 = vmatpush.bf16.msra.mxu2 %v13656_v9  ;;  %v15279_v15 = vld [vmem:[#allocation11 + $0x1a14] sm:$0xf]  ;;  %v12827_v46 = vld [vmem:[#allocation11 + $0x1498] sm:$0xf] }
 0x259   :  { %8189 = vmatpush.bf16.msra.mxu3 %v14168_v3  ;;  %v13909_v7 = vld [vmem:[#allocation11 + $0x1d50] sm:$0xf0]  ;;  %v15112_v31 = vld [vmem:[#allocation11 + $0x14d4] sm:$0xf0] }
 0x25a   :  { %8220 = vmatpush.bf16.msrb.mxu1 %v10780_v30  ;;  %v13525_v30 = vld [vmem:[#allocation11 + $0x1a50] sm:$0xf0]  ;;  %v13912_v20 = vor.u32 %v15375_v2, %v13909_v7 }
 0x25b   :  { %v13528_v32 = vor.u32 %v15279_v15, %v13525_v30  ;;  %v13333_v15 = vld [vmem:[#allocation11 + $0x18d0] sm:$0xf0]  ;;  %v7926_v13 = vpop.f32.mrf.mxu2 }
 0x25c   :  { %8208 = vmatpush.bf16.msrb.mxu0 %v10204_v0  ;;  %8177 = vmatpush.bf16.msra.mxu2 %v13592_v23  ;;  %v15016_v0 = vld [vmem:[#allocation11 + $0x11d4] sm:$0xf0]  ;;  %v15231_v23 = vld [vmem:[#allocation11 + $0x1894] sm:$0xf]  ;;  %v7939_v14 = vpop.f32.mrf.mxu3 }
 0x25d   :  { %8190 = vmatpush.bf16.msra.mxu3 %v14104_v24  ;;  %v12444_v3 = vor.u32 %v15016_v0, %v12443_v55  ;;  %v7925_v24 = vadd.f32 %v7924_v19, %v16006_v33  ;;  %v15359_v30 = vld [vmem:[#allocation11 + $0x1c94] sm:$0xf]  ;;  %v14824_v55 = vld [vmem:[#allocation11 + $0xbd4] sm:$0xf0] }
 0x25e   :  { %8221 = vmatpush.bf16.msrb.mxu1 %v10716_v56  ;;  %v12955_v56 = vld [vmem:[#allocation11 + $0x1598] sm:$0xf]  ;;  %v8015_v1 = vpop.f32.mrf.mxu1  ;;  %v13848_v29 = vor.u32 %v15359_v30, %v13845_v10  ;;  %v15343_v28 = vld [vmem:[#allocation11 + $0x1c14] sm:$0xf]  ;;  %v14544_v30 = vld [vmem:[#allocation11 + $0x31c] sm:$0xf] }
 0x25f   :  { %8209 = vmatmul.bf16.vlgmr.msrb.gmra.mxu0 %v15865_v40  ;;  %v12956_v11 = vor.u32 %v15144_v49, %v12955_v56  ;;  %v7938_v42 = vadd.f32 %v7937_v34, %v7925_v24  ;;  %v13781_v33 = vld [vmem:[#allocation11 + $0x1c50] sm:$0xf0]  ;;  %v12187_v0 = vld [vmem:[#allocation11 + $0xf98] sm:$0xf]  ;;  %v12828_v49 = vor.u32 %v15112_v31, %v12827_v46  ;;  %v10589_v10 = vld [vmem:[#allocation11 + $0x358] sm:$0xf0] }
 0x260   :  { %8253 = vmatpush.bf16.msra.mxu0 %v12700_v63  ;;  %8178 = vmatpush.bf16.msra.mxu2 %v13528_v32  ;;  %v15247_v63 = vld [vmem:[#allocation11 + $0x1914] sm:$0xf]  ;;  %v12123_v24 = vld [vmem:[#allocation11 + $0xf18] sm:$0xf]  ;;  %v10592_v31 = vor.u32 %v14544_v30, %v10589_v10 }
 0x261   :  { %8222 = vmatmul.bf16.vlgmr.msrb.gmra.mxu1 %v15867_v45  ;;  %8191 = vmatpush.bf16.msra.mxu3 %v14040_v48  ;;  %v13400_v16 = vor.u32 %v15247_v63, %v13397_v58  ;;  %v15215_v32 = vld [vmem:[#allocation11 + $0x1814] sm:$0xf]  ;;  %v13336_v48 = vor.u32 %v15231_v23, %v13333_v15  ;;  %v14968_v63 = vld [vmem:[#allocation11 + $0x1054] sm:$0xf0]  ;;  %v14560_v58 = vld [vmem:[#allocation11 + $0x39c] sm:$0xf] }
 0x262   :  { %8266 = vmatpush.bf16.msra.mxu1 %v13212_v44  ;;  %v8002_v44 = vpop.f32.mrf.mxu0  ;;  %v13272_v7 = vor.u32 %v15215_v32, %v13269_v51  ;;  %v14936_v15 = vld [vmem:[#allocation11 + $0xf54] sm:$0xf0]  ;;  %v14528_v51 = vld [vmem:[#allocation11 + $0x29c] sm:$0xf] }
 0x263   :  { %v8003_v9 = vadd.f32 %v8002_v44, %v2401_v27  ;;  %v12763_v44 = vld [vmem:[#allocation11 + $0x1418] sm:$0xf] }
 0x264   :  { %8254 = vmatpush.bf16.msra.mxu0 %v12636_v21  ;;  %v15128_v21 = vld [vmem:[#allocation11 + $0x1554] sm:$0xf0]  ;;  %8179 = vmatpush.bf16.msra.mxu2 %v13464_v59 }
 0x265   :  { %8192 = vmatpush.bf16.msra.mxu3 %v13976_v60  ;;  %v14952_v59 = vld [vmem:[#allocation11 + $0xfd4] sm:$0xf0] }
 0x266   :  { %8267 = vmatpush.bf16.msra.mxu1 %v13148_v18  ;;  %v16031_v18 = vadd.f32 %v8015_v1, %v8003_v9  ;;  %v8017_v27 = vpop.f32.mrf.mxu1  ;;  %v12251_v60 = vld [vmem:[#allocation11 + $0x1018] sm:$0xf]  ;;  %v10653_v9 = vld [vmem:[#allocation11 + $0x3d8] sm:$0xf0] }
 0x267   :  { %v15096_v1 = vld [vmem:[#allocation11 + $0x1454] sm:$0xf0]  ;;  %v12252_v19 = vor.u32 %v14968_v63, %v12251_v60  ;;  %v10656_v23 = vor.u32 %v14560_v58, %v10653_v9  ;;  %v14512_v60 = vld [vmem:[#allocation11 + $0x21c] sm:$0xf] }
 0x268   :  { %8255 = vmatpush.bf16.msra.mxu0 %v12572_v57  ;;  %v12892_v57 = vor.u32 %v15128_v21, %v12891_v17  ;;  %8180 = vmatpush.bf16.msra.mxu2 %v13400_v16  ;;  %v12188_v21 = vor.u32 %v14952_v59, %v12187_v0  ;;  %v12764_v34 = vor.u32 %v15096_v1, %v12763_v44  ;;  %v11611_v16 = vld [vmem:[#allocation11 + $0xb18] sm:$0xf]  ;;  %v10461_v63 = vld [vmem:[#allocation11 + $0x258] sm:$0xf0] }
 0x269   :  { %8193 = vmatpush.bf16.msra.mxu3 %v13912_v20  ;;  %v14808_v20 = vld [vmem:[#allocation11 + $0xb54] sm:$0xf0]  ;;  %v14640_v44 = vld [vmem:[#allocation11 + $0x61c] sm:$0xf] }
 0x26a   :  { %8268 = vmatpush.bf16.msra.mxu1 %v13084_v38  ;;  %v12315_v38 = vld [vmem:[#allocation11 + $0x1098] sm:$0xf]  ;;  %v8004_v50 = vpop.f32.mrf.mxu0  ;;  %v10973_v1 = vld [vmem:[#allocation11 + $0x658] sm:$0xf0] }
 0x26b   :  { %v12316_v56 = vor.u32 %v14984_v39, %v12315_v38  ;;  %v11612_v38 = vor.u32 %v14808_v20, %v11611_v16  ;;  %v12124_v39 = vor.u32 %v14936_v15, %v12123_v24  ;;  %v14792_v46 = vld [vmem:[#allocation11 + $0xad4] sm:$0xf0]  ;;  %v11037_v50 = vld [vmem:[#allocation11 + $0x6d8] sm:$0xf0] }
 0x26c   :  { %8256 = vmatpush.bf16.msra.mxu0 %v12508_v53  ;;  %v7951_v53 = vadd.f32 %v16017_v41, %v7938_v42  ;;  %8181 = vmatpush.bf16.msra.mxu2 %v13336_v48  ;;  %v13784_v41 = vor.u32 %v15343_v28, %v13781_v33  ;;  %v11547_v42 = vld [vmem:[#allocation11 + $0xa98] sm:$0xf]  ;;  %v10525_v28 = vld [vmem:[#allocation11 + $0x2d8] sm:$0xf0] }
 0x26d   :  { %8194 = vmatpush.bf16.msra.mxu3 %v13848_v29  ;;  %v12059_v48 = vld [vmem:[#allocation11 + $0xe98] sm:$0xf]  ;;  %v14656_v33 = vld [vmem:[#allocation11 + $0x69c] sm:$0xf]  ;;  %v11548_v27 = vor.u32 %v14792_v46, %v11547_v42  ;;  %v10528_v0 = vor.u32 %v14528_v51, %v10525_v28 }
 0x26e   :  { %8269 = vmatpush.bf16.msra.mxu1 %v13020_v54  ;;  %v11675_v54 = vld [vmem:[#allocation11 + $0xb98] sm:$0xf]  ;;  %v16036_v2 = vadd.f32 %v16019_v43, %v7951_v53  ;;  %v14624_v16 = vld [vmem:[#allocation11 + $0x59c] sm:$0xf] }
 0x26f   :  { %v11676_v17 = vor.u32 %v14824_v55, %v11675_v54  ;;  %v14920_v29 = vld [vmem:[#allocation11 + $0xed4] sm:$0xf0]  ;;  %v10909_v20 = vld [vmem:[#allocation11 + $0x5d8] sm:$0xf0] }
 0x270   :  { %8257 = vmatpush.bf16.msra.mxu0 %v12444_v3  ;;  %v14688_v3 = vld [vmem:[#allocation11 + $0x79c] sm:$0xf]  ;;  %8182 = vmatpush.bf16.msra.mxu2 %v13272_v7  ;;  %v12060_v53 = vor.u32 %v14920_v29, %v12059_v48  ;;  %v11483_v54 = vld [vmem:[#allocation11 + $0xa18] sm:$0xf]  ;;  %v10912_v10 = vor.u32 %v14624_v16, %v10909_v20 }
 0x271   :  { %8195 = vmatpush.bf16.msra.mxu3 %v13784_v41  ;;  %v14776_v55 = vld [vmem:[#allocation11 + $0xa54] sm:$0xf0]  ;;  %v14608_v42 = vld [vmem:[#allocation11 + $0x51c] sm:$0xf] }
 0x272   :  { %8270 = vmatpush.bf16.msra.mxu1 %v12956_v11  ;;  %v11165_v11 = vld [vmem:[#allocation11 + $0x7d8] sm:$0xf0]  ;;  %v14904_v59 = vld [vmem:[#allocation11 + $0xe54] sm:$0xf0]  ;;  %v11484_v58 = vor.u32 %v14776_v55, %v11483_v54 }
 0x273   :  { %v11168_v43 = vor.u32 %v14688_v3, %v11165_v11  ;;  %8183 = vmatmul.bf16.vlgmr.msra.gmra.mxu2 %v15939_v8  ;;  %v11419_v41 = vld [vmem:[#allocation11 + $0x998] sm:$0xf]  ;;  %v10464_v3 = vor.u32 %v14512_v60, %v10461_v63  ;;  %v10976_v11 = vor.u32 %v14640_v44, %v10973_v1  ;;  %v10845_v46 = vld [vmem:[#allocation11 + $0x558] sm:$0xf0] }
 0x274   :  { %8258 = vmatpush.bf16.msra.mxu0 %v12380_v4  ;;  %v14672_v4 = vld [vmem:[#allocation11 + $0x71c] sm:$0xf]  ;;  %8227 = vmatpush.bf16.msrb.mxu2 %v11676_v17  ;;  %v14760_v9 = vld [vmem:[#allocation11 + $0x9d4] sm:$0xf0] }
 0x275   :  { %8240 = vmatpush.bf16.msrb.mxu3 %v12188_v21  ;;  %v11931_v13 = vld [vmem:[#allocation11 + $0xd98] sm:$0xf]  ;;  %v14496_v17 = vld [vmem:[#allocation11 + $0x19c] sm:$0xf] }
 0x276   :  { %8271 = vmatpush.bf16.msra.mxu1 %v12892_v57  ;;  %v11101_v57 = vld [vmem:[#allocation11 + $0x758] sm:$0xf0]  ;;  %8196 = vmatmul.bf16.vlgmr.msra.gmra.mxu3 %v15941_v22  ;;  %v14888_v14 = vld [vmem:[#allocation11 + $0xdd4] sm:$0xf0] }
 0x277   :  { %v11104_v32 = vor.u32 %v14672_v4, %v11101_v57  ;;  %v11355_v24 = vld [vmem:[#allocation11 + $0x918] sm:$0xf]  ;;  %v14464_v55 = vld [vmem:[#allocation11 + $0x9c] sm:$0xf] }
 0x278   :  { %8259 = vmatpush.bf16.msra.mxu0 %v12316_v56  ;;  %8228 = vmatpush.bf16.msrb.mxu2 %v11612_v38  ;;  %v11040_v56 = vor.u32 %v14656_v33, %v11037_v50  ;;  %v14744_v15 = vld [vmem:[#allocation11 + $0x954] sm:$0xf0]  ;;  %v14480_v38 = vld [vmem:[#allocation11 + $0x11c] sm:$0xf] }
 0x279   :  { %8241 = vmatpush.bf16.msrb.mxu3 %v12124_v39  ;;  %v11867_v4 = vld [vmem:[#allocation11 + $0xd18] sm:$0xf]  ;;  %v10333_v39 = vld [vmem:[#allocation11 + $0x158] sm:$0xf0]  ;;  %v11356_v29 = vor.u32 %v14744_v15, %v11355_v24 }
 0x27a   :  { %8272 = vmatpush.bf16.msra.mxu1 %v12828_v49  ;;  %v11995_v49 = vld [vmem:[#allocation11 + $0xe18] sm:$0xf]  ;;  %v10336_v50 = vor.u32 %v14480_v38, %v10333_v39  ;;  %v14592_v60 = vld [vmem:[#allocation11 + $0x49c] sm:$0xf] }
 0x27b   :  { %v11996_v7 = vor.u32 %v14904_v59, %v11995_v49  ;;  %v14872_v57 = vld [vmem:[#allocation11 + $0xd54] sm:$0xf0]  ;;  %v10269_v59 = vld [vmem:[#allocation11 + $0xd8] sm:$0xf0] }
 0x27c   :  { %8260 = vmatpush.bf16.msra.mxu0 %v12252_v19  ;;  %8229 = vmatpush.bf16.msrb.mxu2 %v11548_v27  ;;  %v16042_v21 = vpop.f32.mrf.mxu0  ;;  %v11868_v51 = vor.u32 %v14872_v57, %v11867_v4  ;;  %v11291_v28 = vld [vmem:[#allocation11 + $0x898] sm:$0xf]  ;;  %v10848_v27 = vor.u32 %v14608_v42, %v10845_v46  ;;  %v10781_v63 = vld [vmem:[#allocation11 + $0x4d8] sm:$0xf0] }
 0x27d   :  { %8242 = vmatpush.bf16.msrb.mxu3 %v12060_v53  ;;  %v14728_v33 = vld [vmem:[#allocation11 + $0x8d4] sm:$0xf0]  ;;  %v10205_v16 = vld [vmem:[#allocation11 + $0x58] sm:$0xf0] }
 0x27e   :  { %8273 = vmatpush.bf16.msra.mxu1 %v12764_v34  ;;  %v16044_v19 = vpop.f32.mrf.mxu1  ;;  %v10397_v34 = vld [vmem:[#allocation11 + $0x1d8] sm:$0xf0]  ;;  %v11803_v53 = vld [vmem:[#allocation11 + $0xc98] sm:$0xf] }
 0x27f   :  { %8261 = vmatmul.bf16.vlgmr.msra.gmra.mxu0 %v15907_v36  ;;  %v10400_v30 = vor.u32 %v14496_v17, %v10397_v34  ;;  %v14856_v54 = vld [vmem:[#allocation11 + $0xcd4] sm:$0xf0]  ;;  %v14448_v34 = vld [vmem:[#allocation11 + $0x1c] sm:$0xf] }
 0x280   :  { %8305 = vmatpush.bf16.msrb.mxu0 %v10656_v23  ;;  %8230 = vmatpush.bf16.msrb.mxu2 %v11484_v58  ;;  %v11420_v23 = vor.u32 %v14760_v9, %v11419_v41  ;;  %v11227_v44 = vld [vmem:[#allocation11 + $0x818] sm:$0xf]  ;;  %v11804_v1 = vor.u32 %v14856_v54, %v11803_v53  ;;  %v10272_v9 = vor.u32 %v14464_v55, %v10269_v59  ;;  %v10717_v24 = vld [vmem:[#allocation11 + $0x458] sm:$0xf0] }
 0x281   :  { %8274 = vmatmul.bf16.vlgmr.msra.gmra.mxu1 %v15909_v37  ;;  %8243 = vmatpush.bf16.msrb.mxu3 %v11996_v7  ;;  %v14712_v58 = vld [vmem:[#allocation11 + $0x854] sm:$0xf0]  ;;  %v15072_v15 = vld [vmem:[#allocation11 + $0x139c] sm:$0xf] }
 0x282   :  { %8318 = vmatpush.bf16.msrb.mxu1 %v11168_v43  ;;  %v11932_v43 = vor.u32 %v14888_v14, %v11931_v13  ;;  %v11739_v7 = vld [vmem:[#allocation11 + $0xc18] sm:$0xf]  ;;  %v12701_v4 = vld [vmem:[#allocation11 + $0x13d8] sm:$0xf0] }
 0x283   :  { %v14840_v41 = vld [vmem:[#allocation11 + $0xc54] sm:$0xf0]  ;;  %v15200_v57 = vld [vmem:[#allocation11 + $0x179c] sm:$0xf] }
 0x284   :  { %8306 = vmatpush.bf16.msrb.mxu0 %v10592_v31  ;;  %v7976_v31 = vpop.f32.mrf.mxu2  ;;  %8231 = vmatpush.bf16.msrb.mxu2 %v11420_v23  ;;  %v15336_v13 = vld [vmem:[#allocation11 + $0x1bd4] sm:$0xf0]  ;;  %v13213_v38 = vld [vmem:[#allocation11 + $0x17d8] sm:$0xf0] }
 0x285   :  { %8244 = vmatpush.bf16.msrb.mxu3 %v11932_v43  ;;  %v7977_v48 = vadd.f32 %v7976_v31, %v16036_v2  ;;  %v11292_v2 = vor.u32 %v14728_v33, %v11291_v28  ;;  %v14235_v14 = vld [vmem:[#allocation11 + $0x1f98] sm:$0xf]  ;;  %v14576_v43 = vld [vmem:[#allocation11 + $0x41c] sm:$0xf]  ;;  %v10208_v31 = vor.u32 %v14448_v34, %v10205_v16  ;;  %v12704_v28 = vor.u32 %v15072_v15, %v12701_v4 }
 0x286   :  { %8319 = vmatpush.bf16.msrb.mxu1 %v11104_v32  ;;  %v7989_v32 = vpop.f32.mrf.mxu3  ;;  %v8069_v49 = vpop.f32.mrf.mxu1  ;;  %v15464_v17 = vld [vmem:[#allocation11 + $0x1fd4] sm:$0xf0]  ;;  %v13216_v33 = vor.u32 %v15200_v57, %v13213_v38  ;;  %v15184_v53 = vld [vmem:[#allocation11 + $0x171c] sm:$0xf] }
 0x287   :  { %v14236_v42 = vor.u32 %v15464_v17, %v14235_v14  ;;  %v13659_v46 = vld [vmem:[#allocation11 + $0x1b18] sm:$0xf]  ;;  %v13149_v54 = vld [vmem:[#allocation11 + $0x1758] sm:$0xf0] }
 0x288   :  { %8307 = vmatpush.bf16.msrb.mxu0 %v10528_v0  ;;  %v16047_v0 = vadd.f32 %v7989_v32, %v7977_v48  ;;  %8232 = vmatpush.bf16.msrb.mxu2 %v11356_v29  ;;  %v10720_v32 = vor.u32 %v14576_v43, %v10717_v24  ;;  %v15320_v48 = vld [vmem:[#allocation11 + $0x1b54] sm:$0xf0]  ;;  %v15152_v43 = vld [vmem:[#allocation11 + $0x161c] sm:$0xf] }
 0x289   :  { %8245 = vmatpush.bf16.msrb.mxu3 %v11868_v51  ;;  %v14171_v29 = vld [vmem:[#allocation11 + $0x1f18] sm:$0xf]  ;;  %v13660_v55 = vor.u32 %v15320_v48, %v13659_v46  ;;  %v13021_v24 = vld [vmem:[#allocation11 + $0x1658] sm:$0xf0] }
 0x28a   :  { %8320 = vmatpush.bf16.msrb.mxu1 %v11040_v56  ;;  %v8056_v56 = vpop.f32.mrf.mxu0  ;;  %v15448_v51 = vld [vmem:[#allocation11 + $0x1f54] sm:$0xf0]  ;;  %v13024_v46 = vor.u32 %v15152_v43, %v13021_v24  ;;  %v15136_v48 = vld [vmem:[#allocation11 + $0x159c] sm:$0xf] }
 0x28b   :  { %v14172_v56 = vor.u32 %v15448_v51, %v14171_v29  ;;  %v13595_v49 = vld [vmem:[#allocation11 + $0x1a98] sm:$0xf]  ;;  %v12957_v29 = vld [vmem:[#allocation11 + $0x15d8] sm:$0xf0] }
 0x28c   :  { %8308 = vmatpush.bf16.msrb.mxu0 %v10464_v3  ;;  %v10784_v3 = vor.u32 %v14592_v60, %v10781_v63  ;;  %v7978_v20 = vpop.f32.mrf.mxu2  ;;  %8233 = vmatpush.bf16.msrb.mxu2 %v11292_v2  ;;  %v15304_v59 = vld [vmem:[#allocation11 + $0x1ad4] sm:$0xf0]  ;;  %v13152_v2 = vor.u32 %v15184_v53, %v13149_v54  ;;  %v15104_v43 = vld [vmem:[#allocation11 + $0x149c] sm:$0xf] }
 0x28d   :  { %8246 = vmatpush.bf16.msrb.mxu3 %v11804_v1  ;;  %v14107_v60 = vld [vmem:[#allocation11 + $0x1e98] sm:$0xf]  ;;  %v15040_v1 = vld [vmem:[#allocation11 + $0x129c] sm:$0xf] }
 0x28e   :  { %8321 = vmatpush.bf16.msrb.mxu1 %v10976_v11  ;;  %v13723_v11 = vld [vmem:[#allocation11 + $0x1b98] sm:$0xf]  ;;  %v7991_v23 = vpop.f32.mrf.mxu3  ;;  %v15024_v20 = vld [vmem:[#allocation11 + $0x121c] sm:$0xf] }
 0x28f   :  { %v13724_v39 = vor.u32 %v15336_v13, %v13723_v11  ;;  %v15432_v63 = vld [vmem:[#allocation11 + $0x1ed4] sm:$0xf0]  ;;  %v12509_v23 = vld [vmem:[#allocation11 + $0x1258] sm:$0xf0] }
 0x290   :  { %8309 = vmatpush.bf16.msrb.mxu0 %v10400_v30  ;;  %v11228_v30 = vor.u32 %v14712_v58, %v11227_v44  ;;  %v12573_v58 = vld [vmem:[#allocation11 + $0x12d8] sm:$0xf0]  ;;  %v13531_v11 = vld [vmem:[#allocation11 + $0x1a18] sm:$0xf] }
 0x291   :  { %v15288_v13 = vld [vmem:[#allocation11 + $0x1a54] sm:$0xf0]  ;;  %v12576_v34 = vor.u32 %v15040_v1, %v12573_v58  ;;  %v12829_v24 = vld [vmem:[#allocation11 + $0x14d8] sm:$0xf0] }
 0x292   :  { %8322 = vmatpush.bf16.msrb.mxu1 %v10912_v10  ;;  %v11740_v10 = vor.u32 %v14840_v41, %v11739_v7  ;;  %8234 = vmatpush.bf16.msrb.mxu2 %v11228_v30  ;;  %v15168_v7 = vld [vmem:[#allocation11 + $0x169c] sm:$0xf]  ;;  %v14043_v14 = vld [vmem:[#allocation11 + $0x1e18] sm:$0xf]  ;;  %v13532_v15 = vor.u32 %v15288_v13, %v13531_v11 }
 0x293   :  { %v13085_v41 = vld [vmem:[#allocation11 + $0x16d8] sm:$0xf0]  ;;  %v15416_v17 = vld [vmem:[#allocation11 + $0x1e54] sm:$0xf0] }
 0x294   :  { %8310 = vmatpush.bf16.msrb.mxu0 %v10336_v50  ;;  %v15056_v50 = vld [vmem:[#allocation11 + $0x131c] sm:$0xf]  ;;  %8247 = vmatpush.bf16.msrb.mxu3 %v11740_v10  ;;  %v13088_v16 = vor.u32 %v15168_v7, %v13085_v41  ;;  %v14044_v30 = vor.u32 %v15416_v17, %v14043_v14  ;;  %v13467_v10 = vld [vmem:[#allocation11 + $0x1998] sm:$0xf]  ;;  %v8028_v1 = vpop.f32.mrf.mxu2 }
 0x295   :  { %8235 = vmatmul.bf16.vlgmr.msrb.gmra.mxu2 %v15875_v25  ;;  %v15272_v4 = vld [vmem:[#allocation11 + $0x19d4] sm:$0xf0] }
 0x296   :  { %8323 = vmatpush.bf16.msrb.mxu1 %v10848_v27  ;;  %v12637_v27 = vld [vmem:[#allocation11 + $0x1358] sm:$0xf0]  ;;  %8279 = vmatpush.bf16.msra.mxu2 %v13724_v39  ;;  %v13979_v57 = vld [vmem:[#allocation11 + $0x1d98] sm:$0xf]  ;;  %v2402_v39 = vperm.slane %v16028_v52, 5  ;;  %v13468_v51 = vor.u32 %v15272_v4, %v13467_v10  ;;  %v8041_v58 = vpop.f32.mrf.mxu3 }
 0x297   :  { %v12640_v44 = vor.u32 %v15056_v50, %v12637_v27  ;;  %8248 = vmatmul.bf16.vlgmr.msrb.gmra.mxu3 %v15877_v26  ;;  %v15400_v38 = vld [vmem:[#allocation11 + $0x1dd4] sm:$0xf0] }
 0x298   :  { %8311 = vmatpush.bf16.msrb.mxu0 %v10272_v9  ;;  %8292 = vmatpush.bf16.msra.mxu3 %v14236_v42  ;;  %v13596_v9 = vor.u32 %v15304_v59, %v13595_v49  ;;  %v12512_v42 = vor.u32 %v15024_v20, %v12509_v23  ;;  %v15256_v53 = vld [vmem:[#allocation11 + $0x1954] sm:$0xf0]  ;;  %v12960_v49 = vor.u32 %v15136_v48, %v12957_v29  ;;  %v14992_v59 = vld [vmem:[#allocation11 + $0x111c] sm:$0xf] }
 0x299   :  { %v13915_v54 = vld [vmem:[#allocation11 + $0x1d18] sm:$0xf]  ;;  %v12317_v20 = vld [vmem:[#allocation11 + $0x10d8] sm:$0xf0]  ;;  %v12832_v29 = vor.u32 %v15104_v43, %v12829_v24 }
 0x29a   :  { %8324 = vmatpush.bf16.msrb.mxu1 %v10784_v3  ;;  %8280 = vmatpush.bf16.msra.mxu2 %v13660_v55  ;;  %v14108_v3 = vor.u32 %v15432_v63, %v14107_v60  ;;  %v15384_v55 = vld [vmem:[#allocation11 + $0x1d54] sm:$0xf0]  ;;  %v12381_v60 = vld [vmem:[#allocation11 + $0x1158] sm:$0xf0] }
 0x29b   :  { %v15120_v63 = vld [vmem:[#allocation11 + $0x151c] sm:$0xf]  ;;  %v13916_v41 = vor.u32 %v15384_v55, %v13915_v54  ;;  %v15240_v11 = vld [vmem:[#allocation11 + $0x18d4] sm:$0xf0]  ;;  %v12384_v17 = vor.u32 %v14992_v59, %v12381_v60 }
 0x29c   :  { %8312 = vmatpush.bf16.msrb.mxu0 %v10208_v31  ;;  %8293 = vmatpush.bf16.msra.mxu3 %v14172_v56  ;;  %v15008_v31 = vld [vmem:[#allocation11 + $0x119c] sm:$0xf]  ;;  %v8106_v50 = vpop.f32.mrf.mxu0  ;;  %v13851_v13 = vld [vmem:[#allocation11 + $0x1c98] sm:$0xf]  ;;  %v8030_v59 = vpop.f32.mrf.mxu2 }
 0x29d   :  { %v8107_v56 = vadd.f32 %v8106_v50, %v2402_v39  ;;  %v15368_v14 = vld [vmem:[#allocation11 + $0x1cd4] sm:$0xf0]  ;;  %v15088_v50 = vld [vmem:[#allocation11 + $0x141c] sm:$0xf] }
 0x29e   :  { %8325 = vmatpush.bf16.msrb.mxu1 %v10720_v32  ;;  %8281 = vmatpush.bf16.msra.mxu2 %v13596_v9  ;;  %v12445_v32 = vld [vmem:[#allocation11 + $0x11d8] sm:$0xf0]  ;;  %v8119_v27 = vpop.f32.mrf.mxu1  ;;  %v13339_v9 = vld [vmem:[#allocation11 + $0x1898] sm:$0xf]  ;;  %v13852_v10 = vor.u32 %v15368_v14, %v13851_v13  ;;  %v8043_v60 = vpop.f32.mrf.mxu3  ;;  %v10595_v13 = vld [vmem:[#allocation11 + $0x320] sm:$0xf] }
 0x29f   :  { %8313 = vmatmul.bf16.vlgmr.msrb.gmra.mxu0 %v15865_v40  ;;  %v12448_v52 = vor.u32 %v15008_v31, %v12445_v32  ;;  %v15224_v4 = vld [vmem:[#allocation11 + $0x1854] sm:$0xf0]  ;;  %v11677_v31 = vld [vmem:[#allocation11 + $0xbd8] sm:$0xf0]  ;;  %v14553_v14 = vld [vmem:[#allocation11 + $0x35c] sm:$0xf0] }
 0x2a0   :  { %8357 = vmatpush.bf16.msra.mxu0 %v12704_v28  ;;  %8294 = vmatpush.bf16.msra.mxu3 %v14108_v3  ;;  %v13980_v28 = vor.u32 %v15400_v38, %v13979_v57  ;;  %v8029_v3 = vadd.f32 %v8028_v1, %v16031_v18  ;;  %v13787_v57 = vld [vmem:[#allocation11 + $0x1c18] sm:$0xf]  ;;  %v14944_v32 = vld [vmem:[#allocation11 + $0xf9c] sm:$0xf]  ;;  %v10596_v24 = vor.u32 %v14553_v14, %v10595_v13 }
 0x2a1   :  { %8326 = vmatmul.bf16.vlgmr.msrb.gmra.mxu1 %v15867_v45  ;;  %v15352_v18 = vld [vmem:[#allocation11 + $0x1c54] sm:$0xf0]  ;;  %v11549_v43 = vld [vmem:[#allocation11 + $0xad8] sm:$0xf0] }
 0x2a2   :  { %8370 = vmatpush.bf16.msra.mxu1 %v13216_v33  ;;  %8282 = vmatpush.bf16.msra.mxu2 %v13532_v15  ;;  %v13403_v33 = vld [vmem:[#allocation11 + $0x1918] sm:$0xf]  ;;  %v8042_v23 = vadd.f32 %v8041_v58, %v8029_v3  ;;  %v14928_v3 = vld [vmem:[#allocation11 + $0xf1c] sm:$0xf] }
 0x2a3   :  { %v13404_v7 = vor.u32 %v15256_v53, %v13403_v33  ;;  %v13275_v15 = vld [vmem:[#allocation11 + $0x1818] sm:$0xf]  ;;  %v12253_v33 = vld [vmem:[#allocation11 + $0x1058] sm:$0xf0]  ;;  %v10659_v53 = vld [vmem:[#allocation11 + $0x3a0] sm:$0xf] }
 0x2a4   :  { %8358 = vmatpush.bf16.msra.mxu0 %v12640_v44  ;;  %8295 = vmatpush.bf16.msra.mxu3 %v14044_v30  ;;  %v12893_v44 = vld [vmem:[#allocation11 + $0x1558] sm:$0xf0]  ;;  %v13340_v30 = vor.u32 %v15240_v11, %v13339_v9  ;;  %v8108_v38 = vpop.f32.mrf.mxu0  ;;  %v13276_v55 = vor.u32 %v15224_v4, %v13275_v15  ;;  %v10531_v4 = vld [vmem:[#allocation11 + $0x2a0] sm:$0xf] }
 0x2a5   :  { %v12125_v11 = vld [vmem:[#allocation11 + $0xf58] sm:$0xf0]  ;;  %v14665_v38 = vld [vmem:[#allocation11 + $0x6dc] sm:$0xf0] }
 0x2a6   :  { %8371 = vmatpush.bf16.msra.mxu1 %v13152_v2  ;;  %v16054_v2 = vadd.f32 %v8119_v27, %v8107_v56  ;;  %8283 = vmatpush.bf16.msra.mxu2 %v13468_v51  ;;  %v8121_v39 = vpop.f32.mrf.mxu1  ;;  %v12189_v51 = vld [vmem:[#allocation11 + $0xfd8] sm:$0xf0]  ;;  %v14569_v56 = vld [vmem:[#allocation11 + $0x3dc] sm:$0xf0] }
 0x2a7   :  { %v12765_v27 = vld [vmem:[#allocation11 + $0x1458] sm:$0xf0]  ;;  %v10660_v9 = vor.u32 %v14569_v56, %v10659_v53 }
 0x2a8   :  { %8359 = vmatpush.bf16.msra.mxu0 %v12576_v34  ;;  %8296 = vmatpush.bf16.msra.mxu3 %v13980_v28  ;;  %v12896_v34 = vor.u32 %v15120_v63, %v12893_v44  ;;  %v14960_v28 = vld [vmem:[#allocation11 + $0x101c] sm:$0xf]  ;;  %v12192_v44 = vor.u32 %v14944_v32, %v12189_v51  ;;  %v12768_v58 = vor.u32 %v15088_v50, %v12765_v27  ;;  %v10979_v50 = vld [vmem:[#allocation11 + $0x620] sm:$0xf] }
 0x2a9   :  { %v12256_v1 = vor.u32 %v14960_v28, %v12253_v33  ;;  %v11997_v51 = vld [vmem:[#allocation11 + $0xe58] sm:$0xf0]  ;;  %v10467_v28 = vld [vmem:[#allocation11 + $0x220] sm:$0xf] }
 0x2aa   :  { %8372 = vmatpush.bf16.msra.mxu1 %v13088_v16  ;;  %v14976_v16 = vld [vmem:[#allocation11 + $0x109c] sm:$0xf]  ;;  %8284 = vmatpush.bf16.msra.mxu2 %v13404_v7  ;;  %v14521_v33 = vld [vmem:[#allocation11 + $0x25c] sm:$0xf0] }
 0x2ab   :  { %v12320_v48 = vor.u32 %v14976_v16, %v12317_v20  ;;  %v14800_v7 = vld [vmem:[#allocation11 + $0xb1c] sm:$0xf]  ;;  %v12128_v20 = vor.u32 %v14928_v3, %v12125_v11  ;;  %v14649_v27 = vld [vmem:[#allocation11 + $0x65c] sm:$0xf0] }
 0x2ac   :  { %8360 = vmatpush.bf16.msra.mxu0 %v12512_v42  ;;  %8297 = vmatpush.bf16.msra.mxu3 %v13916_v41  ;;  %v8055_v42 = vadd.f32 %v16042_v21, %v8042_v23  ;;  %v13788_v21 = vor.u32 %v15352_v18, %v13787_v57  ;;  %v11613_v41 = vld [vmem:[#allocation11 + $0xb58] sm:$0xf0]  ;;  %v14537_v57 = vld [vmem:[#allocation11 + $0x2dc] sm:$0xf0] }
 0x2ad   :  { %v11616_v16 = vor.u32 %v14800_v7, %v11613_v41  ;;  %v14784_v23 = vld [vmem:[#allocation11 + $0xa9c] sm:$0xf]  ;;  %v11043_v18 = vld [vmem:[#allocation11 + $0x6a0] sm:$0xf]  ;;  %v10532_v32 = vor.u32 %v14537_v57, %v10531_v4 }
 0x2ae   :  { %8373 = vmatpush.bf16.msra.mxu1 %v13024_v46  ;;  %v14816_v46 = vld [vmem:[#allocation11 + $0xb9c] sm:$0xf]  ;;  %v16059_v54 = vadd.f32 %v16044_v19, %v8055_v42  ;;  %8285 = vmatpush.bf16.msra.mxu2 %v13340_v30  ;;  %v11552_v39 = vor.u32 %v14784_v23, %v11549_v43  ;;  %v10915_v7 = vld [vmem:[#allocation11 + $0x5a0] sm:$0xf] }
 0x2af   :  { %v11680_v63 = vor.u32 %v14816_v46, %v11677_v31  ;;  %v14912_v30 = vld [vmem:[#allocation11 + $0xe9c] sm:$0xf]  ;;  %v14633_v41 = vld [vmem:[#allocation11 + $0x5dc] sm:$0xf0] }
 0x2b0   :  { %8361 = vmatpush.bf16.msra.mxu0 %v12448_v52  ;;  %8298 = vmatpush.bf16.msra.mxu3 %v13852_v10  ;;  %v11171_v52 = vld [vmem:[#allocation11 + $0x7a0] sm:$0xf]  ;;  %v12061_v10 = vld [vmem:[#allocation11 + $0xed8] sm:$0xf0]  ;;  %v10916_v14 = vor.u32 %v14633_v41, %v10915_v7 }
 0x2b1   :  { %v12064_v42 = vor.u32 %v14912_v30, %v12061_v10  ;;  %v14768_v46 = vld [vmem:[#allocation11 + $0xa1c] sm:$0xf]  ;;  %v10851_v23 = vld [vmem:[#allocation11 + $0x520] sm:$0xf] }
 0x2b2   :  { %8374 = vmatpush.bf16.msra.mxu1 %v12960_v49  ;;  %v14697_v49 = vld [vmem:[#allocation11 + $0x7dc] sm:$0xf0]  ;;  %8286 = vmatpush.bf16.msra.mxu2 %v13276_v55  ;;  %v11485_v31 = vld [vmem:[#allocation11 + $0xa58] sm:$0xf0] }
 0x2b3   :  { %v11172_v19 = vor.u32 %v14697_v49, %v11171_v52  ;;  %v11488_v53 = vor.u32 %v14768_v46, %v11485_v31  ;;  %v11421_v56 = vld [vmem:[#allocation11 + $0x9d8] sm:$0xf0]  ;;  %v10468_v52 = vor.u32 %v14521_v33, %v10467_v28  ;;  %v10980_v49 = vor.u32 %v14649_v27, %v10979_v50  ;;  %v14617_v43 = vld [vmem:[#allocation11 + $0x55c] sm:$0xf0] }
 0x2b4   :  { %8362 = vmatpush.bf16.msra.mxu0 %v12384_v17  ;;  %8299 = vmatpush.bf16.msra.mxu3 %v13788_v21  ;;  %v11107_v17 = vld [vmem:[#allocation11 + $0x720] sm:$0xf]  ;;  %v14752_v21 = vld [vmem:[#allocation11 + $0x99c] sm:$0xf] }
 0x2b5   :  { %8287 = vmatmul.bf16.vlgmr.msra.gmra.mxu2 %v15939_v8  ;;  %v14880_v59 = vld [vmem:[#allocation11 + $0xd9c] sm:$0xf]  ;;  %v10275_v31 = vld [vmem:[#allocation11 + $0xa0] sm:$0xf] }
 0x2b6   :  { %8375 = vmatpush.bf16.msra.mxu1 %v12896_v34  ;;  %v14681_v34 = vld [vmem:[#allocation11 + $0x75c] sm:$0xf0]  ;;  %8331 = vmatpush.bf16.msrb.mxu2 %v11680_v63  ;;  %v11933_v60 = vld [vmem:[#allocation11 + $0xdd8] sm:$0xf0] }
 0x2b7   :  { %v11108_v15 = vor.u32 %v14681_v34, %v11107_v17  ;;  %8300 = vmatmul.bf16.vlgmr.msra.gmra.mxu3 %v15941_v22  ;;  %v10403_v63 = vld [vmem:[#allocation11 + $0x1a0] sm:$0xf]  ;;  %v14736_v3 = vld [vmem:[#allocation11 + $0x91c] sm:$0xf] }
 0x2b8   :  { %8363 = vmatpush.bf16.msra.mxu0 %v12320_v48  ;;  %8344 = vmatpush.bf16.msrb.mxu3 %v12192_v44  ;;  %v11044_v48 = vor.u32 %v14665_v38, %v11043_v18  ;;  %v11357_v11 = vld [vmem:[#allocation11 + $0x958] sm:$0xf0]  ;;  %v10787_v28 = vld [vmem:[#allocation11 + $0x4a0] sm:$0xf] }
 0x2b9   :  { %v14864_v17 = vld [vmem:[#allocation11 + $0xd1c] sm:$0xf]  ;;  %v11360_v10 = vor.u32 %v14736_v3, %v11357_v11  ;;  %v14601_v33 = vld [vmem:[#allocation11 + $0x4dc] sm:$0xf0] }
 0x2ba   :  { %8376 = vmatpush.bf16.msra.mxu1 %v12832_v29  ;;  %8332 = vmatpush.bf16.msrb.mxu2 %v11616_v16  ;;  %v14896_v29 = vld [vmem:[#allocation11 + $0xe1c] sm:$0xf]  ;;  %v10339_v16 = vld [vmem:[#allocation11 + $0x120] sm:$0xf] }
 0x2bb   :  { %v12000_v55 = vor.u32 %v14896_v29, %v11997_v51  ;;  %v11869_v34 = vld [vmem:[#allocation11 + $0xd58] sm:$0xf0]  ;;  %v14473_v51 = vld [vmem:[#allocation11 + $0xdc] sm:$0xf0] }
 0x2bc   :  { %8364 = vmatpush.bf16.msra.mxu0 %v12256_v1  ;;  %8345 = vmatpush.bf16.msrb.mxu3 %v12128_v20  ;;  %v16065_v44 = vpop.f32.mrf.mxu0  ;;  %v14489_v20 = vld [vmem:[#allocation11 + $0x15c] sm:$0xf0]  ;;  %v11872_v4 = vor.u32 %v14864_v17, %v11869_v34  ;;  %v14720_v57 = vld [vmem:[#allocation11 + $0x89c] sm:$0xf] }
 0x2bd   :  { %v11293_v18 = vld [vmem:[#allocation11 + $0x8d8] sm:$0xf0]  ;;  %v10340_v38 = vor.u32 %v14489_v20, %v10339_v16  ;;  %v14457_v7 = vld [vmem:[#allocation11 + $0x5c] sm:$0xf0] }
 0x2be   :  { %8377 = vmatpush.bf16.msra.mxu1 %v12768_v58  ;;  %8333 = vmatpush.bf16.msrb.mxu2 %v11552_v39  ;;  %v16067_v1 = vpop.f32.mrf.mxu1  ;;  %v14505_v58 = vld [vmem:[#allocation11 + $0x1dc] sm:$0xf0]  ;;  %v10852_v39 = vor.u32 %v14617_v43, %v10851_v23  ;;  %v11805_v46 = vld [vmem:[#allocation11 + $0xcd8] sm:$0xf0] }
 0x2bf   :  { %8365 = vmatmul.bf16.vlgmr.msra.gmra.mxu0 %v15907_v36  ;;  %v10404_v13 = vor.u32 %v14505_v58, %v10403_v63  ;;  %v14704_v50 = vld [vmem:[#allocation11 + $0x81c] sm:$0xf]  ;;  %v10211_v58 = vld [vmem:[#allocation11 + $0x20] sm:$0xf] }
 0x2c0   :  { %8409 = vmatpush.bf16.msrb.mxu0 %v10660_v9  ;;  %8346 = vmatpush.bf16.msrb.mxu3 %v12064_v42  ;;  %v11424_v9 = vor.u32 %v14752_v21, %v11421_v56  ;;  %v14848_v42 = vld [vmem:[#allocation11 + $0xc9c] sm:$0xf]  ;;  %v10276_v56 = vor.u32 %v14473_v51, %v10275_v31  ;;  %v14585_v3 = vld [vmem:[#allocation11 + $0x45c] sm:$0xf0] }
 0x2c1   :  { %8378 = vmatmul.bf16.vlgmr.msra.gmra.mxu1 %v15909_v37  ;;  %v11808_v27 = vor.u32 %v14848_v42, %v11805_v46  ;;  %v11741_v21 = vld [vmem:[#allocation11 + $0xc58] sm:$0xf0]  ;;  %v12707_v11 = vld [vmem:[#allocation11 + $0x13a0] sm:$0xf] }
 0x2c2   :  { %8422 = vmatpush.bf16.msrb.mxu1 %v11172_v19  ;;  %8334 = vmatpush.bf16.msrb.mxu2 %v11488_v53  ;;  %v11936_v19 = vor.u32 %v14880_v59, %v11933_v60  ;;  %v11229_v53 = vld [vmem:[#allocation11 + $0x858] sm:$0xf0]  ;;  %v15081_v17 = vld [vmem:[#allocation11 + $0x13dc] sm:$0xf0] }
 0x2c3   :  { %v13725_v59 = vld [vmem:[#allocation11 + $0x1bd8] sm:$0xf0]  ;;  %v13219_v34 = vld [vmem:[#allocation11 + $0x17a0] sm:$0xf] }
 0x2c4   :  { %8410 = vmatpush.bf16.msrb.mxu0 %v10596_v24  ;;  %8347 = vmatpush.bf16.msrb.mxu3 %v12000_v55  ;;  %v8080_v24 = vpop.f32.mrf.mxu2  ;;  %v14832_v55 = vld [vmem:[#allocation11 + $0xc1c] sm:$0xf]  ;;  %v15209_v16 = vld [vmem:[#allocation11 + $0x17dc] sm:$0xf0] }
 0x2c5   :  { %v8081_v30 = vadd.f32 %v8080_v24, %v16059_v54  ;;  %v11296_v54 = vor.u32 %v14720_v57, %v11293_v18  ;;  %v15456_v60 = vld [vmem:[#allocation11 + $0x1f9c] sm:$0xf]  ;;  %v10212_v24 = vor.u32 %v14457_v7, %v10211_v58  ;;  %v12708_v57 = vor.u32 %v15081_v17, %v12707_v11  ;;  %v13155_v42 = vld [vmem:[#allocation11 + $0x1720] sm:$0xf] }
 0x2c6   :  { %8423 = vmatpush.bf16.msrb.mxu1 %v11108_v15  ;;  %v8093_v15 = vpop.f32.mrf.mxu3  ;;  %8335 = vmatpush.bf16.msrb.mxu2 %v11424_v9  ;;  %v8173_v29 = vpop.f32.mrf.mxu1  ;;  %v14237_v63 = vld [vmem:[#allocation11 + $0x1fd8] sm:$0xf0]  ;;  %v13220_v18 = vor.u32 %v15209_v16, %v13219_v34  ;;  %v15193_v46 = vld [vmem:[#allocation11 + $0x175c] sm:$0xf0] }
 0x2c7   :  { %v14240_v23 = vor.u32 %v15456_v60, %v14237_v63  ;;  %v15312_v43 = vld [vmem:[#allocation11 + $0x1b1c] sm:$0xf] }
 0x2c8   :  { %8411 = vmatpush.bf16.msrb.mxu0 %v10532_v32  ;;  %8348 = vmatpush.bf16.msrb.mxu3 %v11936_v19  ;;  %v16070_v32 = vadd.f32 %v8093_v15, %v8081_v30  ;;  %v10723_v19 = vld [vmem:[#allocation11 + $0x420] sm:$0xf]  ;;  %v13661_v30 = vld [vmem:[#allocation11 + $0x1b58] sm:$0xf0] }
 0x2c9   :  { %v10724_v15 = vor.u32 %v14585_v3, %v10723_v19  ;;  %v13664_v31 = vor.u32 %v15312_v43, %v13661_v30  ;;  %v15296_v29 = vld [vmem:[#allocation11 + $0x1a9c] sm:$0xf]  ;;  %v13027_v19 = vld [vmem:[#allocation11 + $0x1620] sm:$0xf] }
 0x2ca   :  { %8424 = vmatpush.bf16.msrb.mxu1 %v11044_v48  ;;  %v8160_v48 = vpop.f32.mrf.mxu0  ;;  %8336 = vmatpush.bf16.msrb.mxu2 %v11360_v10  ;;  %v15440_v10 = vld [vmem:[#allocation11 + $0x1f1c] sm:$0xf]  ;;  %v15161_v3 = vld [vmem:[#allocation11 + $0x165c] sm:$0xf0] }
 0x2cb   :  { %v13597_v51 = vld [vmem:[#allocation11 + $0x1ad8] sm:$0xf0]  ;;  %v15017_v30 = vld [vmem:[#allocation11 + $0x11dc] sm:$0xf0] }
 0x2cc   :  { %8412 = vmatpush.bf16.msrb.mxu0 %v10468_v52  ;;  %8349 = vmatpush.bf16.msrb.mxu3 %v11872_v4  ;;  %v10788_v52 = vor.u32 %v14601_v33, %v10787_v28  ;;  %v8082_v41 = vpop.f32.mrf.mxu2  ;;  %v14173_v4 = vld [vmem:[#allocation11 + $0x1f58] sm:$0xf0] }
 0x2cd   :  { %v14176_v48 = vor.u32 %v15440_v10, %v14173_v4  ;;  %v15424_v28 = vld [vmem:[#allocation11 + $0x1e9c] sm:$0xf]  ;;  %v12515_v41 = vld [vmem:[#allocation11 + $0x1220] sm:$0xf] }
 0x2ce   :  { %8425 = vmatpush.bf16.msrb.mxu1 %v10980_v49  ;;  %v15328_v49 = vld [vmem:[#allocation11 + $0x1b9c] sm:$0xf]  ;;  %v8095_v9 = vpop.f32.mrf.mxu3  ;;  %8337 = vmatpush.bf16.msrb.mxu2 %v11296_v54  ;;  %v13156_v54 = vor.u32 %v15193_v46, %v13155_v42  ;;  %v12963_v10 = vld [vmem:[#allocation11 + $0x15a0] sm:$0xf] }
 0x2cf   :  { %v13728_v20 = vor.u32 %v15328_v49, %v13725_v59  ;;  %v14109_v33 = vld [vmem:[#allocation11 + $0x1ed8] sm:$0xf0]  ;;  %v15033_v9 = vld [vmem:[#allocation11 + $0x125c] sm:$0xf0] }
 0x2d0   :  { %8413 = vmatpush.bf16.msrb.mxu0 %v10404_v13  ;;  %8350 = vmatpush.bf16.msrb.mxu3 %v11808_v27  ;;  %v11232_v13 = vor.u32 %v14704_v50, %v11229_v53  ;;  %v12579_v27 = vld [vmem:[#allocation11 + $0x12a0] sm:$0xf]  ;;  %v15280_v49 = vld [vmem:[#allocation11 + $0x1a1c] sm:$0xf]  ;;  %v12516_v43 = vor.u32 %v15033_v9, %v12515_v41 }
 0x2d1   :  { %v15049_v53 = vld [vmem:[#allocation11 + $0x12dc] sm:$0xf0]  ;;  %v13533_v59 = vld [vmem:[#allocation11 + $0x1a58] sm:$0xf0] }
 0x2d2   :  { %8426 = vmatpush.bf16.msrb.mxu1 %v10916_v14  ;;  %v11744_v14 = vor.u32 %v14832_v55, %v11741_v21  ;;  %8338 = vmatpush.bf16.msrb.mxu2 %v11232_v13  ;;  %v13091_v55 = vld [vmem:[#allocation11 + $0x16a0] sm:$0xf]  ;;  %v15408_v60 = vld [vmem:[#allocation11 + $0x1e1c] sm:$0xf]  ;;  %v12580_v58 = vor.u32 %v15049_v53, %v12579_v27  ;;  %v13536_v11 = vor.u32 %v15280_v49, %v13533_v59 }
 0x2d3   :  { %v15177_v21 = vld [vmem:[#allocation11 + $0x16dc] sm:$0xf0]  ;;  %v14045_v63 = vld [vmem:[#allocation11 + $0x1e58] sm:$0xf0] }
 0x2d4   :  { %8414 = vmatpush.bf16.msrb.mxu0 %v10340_v38  ;;  %v12643_v38 = vld [vmem:[#allocation11 + $0x1320] sm:$0xf]  ;;  %8351 = vmatpush.bf16.msrb.mxu3 %v11744_v14  ;;  %v13092_v7 = vor.u32 %v15177_v21, %v13091_v55  ;;  %v14048_v13 = vor.u32 %v15408_v60, %v14045_v63  ;;  %v15264_v14 = vld [vmem:[#allocation11 + $0x199c] sm:$0xf] }
 0x2d5   :  { %8339 = vmatmul.bf16.vlgmr.msrb.gmra.mxu2 %v15875_v25  ;;  %v13469_v17 = vld [vmem:[#allocation11 + $0x19d8] sm:$0xf0]  ;;  %v15145_v4 = vld [vmem:[#allocation11 + $0x15dc] sm:$0xf0] }
 0x2d6   :  { %8427 = vmatpush.bf16.msrb.mxu1 %v10852_v39  ;;  %v15065_v39 = vld [vmem:[#allocation11 + $0x135c] sm:$0xf0]  ;;  %8383 = vmatpush.bf16.msra.mxu2 %v13728_v20  ;;  %v15392_v34 = vld [vmem:[#allocation11 + $0x1d9c] sm:$0xf]  ;;  %v8132_v55 = vpop.f32.mrf.mxu2 }
 0x2d7   :  { %v12644_v50 = vor.u32 %v15065_v39, %v12643_v38  ;;  %8352 = vmatmul.bf16.vlgmr.msrb.gmra.mxu3 %v15877_v26  ;;  %v13981_v16 = vld [vmem:[#allocation11 + $0x1dd8] sm:$0xf0]  ;;  %v16076_v20 = vld [vmem:[#allocation12] sm:$0xff]  ;;  %v8133_v59 = vadd.f32 %v8132_v55, %v16054_v2 }
 0x2d8   :  { %8415 = vmatpush.bf16.msrb.mxu0 %v10276_v56  ;;  %8396 = vmatpush.bf16.msra.mxu3 %v14240_v23  ;;  %v13600_v56 = vor.u32 %v15296_v29, %v13597_v51  ;;  %v2403_v23 = vperm.slane %v16076_v20, 6  ;;  %v15248_v38 = vld [vmem:[#allocation11 + $0x191c] sm:$0xf]  ;;  %v15129_v27 = vld [vmem:[#allocation11 + $0x155c] sm:$0xf0] }
 0x2d9   :  { %v13405_v46 = vld [vmem:[#allocation11 + $0x1958] sm:$0xf0]  ;;  %v8145_v21 = vpop.f32.mrf.mxu3  ;;  %v12323_v9 = vld [vmem:[#allocation11 + $0x10a0] sm:$0xf] }
 0x2da   :  { %8428 = vmatpush.bf16.msrb.mxu1 %v10788_v52  ;;  %8384 = vmatpush.bf16.msra.mxu2 %v13664_v31  ;;  %v14112_v52 = vor.u32 %v15424_v28, %v14109_v33  ;;  %v15376_v31 = vld [vmem:[#allocation11 + $0x1d1c] sm:$0xf]  ;;  %v12964_v28 = vor.u32 %v15145_v4, %v12963_v10  ;;  %v12387_v33 = vld [vmem:[#allocation11 + $0x1120] sm:$0xf] }
 0x2db   :  { %v15232_v49 = vld [vmem:[#allocation11 + $0x189c] sm:$0xf]  ;;  %v14825_v10 = vld [vmem:[#allocation11 + $0xbdc] sm:$0xf0] }
 0x2dc   :  { %8416 = vmatpush.bf16.msrb.mxu0 %v10212_v24  ;;  %8397 = vmatpush.bf16.msra.mxu3 %v14176_v48  ;;  %v13028_v24 = vor.u32 %v15161_v3, %v13027_v19  ;;  %v8210_v39 = vpop.f32.mrf.mxu0  ;;  %v13917_v48 = vld [vmem:[#allocation11 + $0x1d58] sm:$0xf0]  ;;  %v14985_v19 = vld [vmem:[#allocation11 + $0x10dc] sm:$0xf0]  ;;  %v8146_v3 = vadd.f32 %v8145_v21, %v8133_v59 }
 0x2dd   :  { %v8211_v29 = vadd.f32 %v8210_v39, %v2403_v23  ;;  %v13341_v60 = vld [vmem:[#allocation11 + $0x18d8] sm:$0xf0]  ;;  %v12195_v4 = vld [vmem:[#allocation11 + $0xfa0] sm:$0xf] }
 0x2de   :  { %8429 = vmatpush.bf16.msrb.mxu1 %v10724_v15  ;;  %8385 = vmatpush.bf16.msra.mxu2 %v13600_v56  ;;  %v12451_v15 = vld [vmem:[#allocation11 + $0x11a0] sm:$0xf]  ;;  %v8223_v42 = vpop.f32.mrf.mxu1  ;;  %v13408_v56 = vor.u32 %v15248_v38, %v13405_v46  ;;  %v15360_v63 = vld [vmem:[#allocation11 + $0x1c9c] sm:$0xf] }
 0x2df   :  { %8417 = vmatmul.bf16.vlgmr.msrb.gmra.mxu0 %v15865_v40  ;;  %v12452_v51 = vor.u32 %v15017_v30, %v12451_v15  ;;  %v16079_v53 = vadd.f32 %v8223_v42, %v8211_v29  ;;  %v15344_v23 = vld [vmem:[#allocation11 + $0x1c1c] sm:$0xf]  ;;  %v8159_v15 = vadd.f32 %v16065_v44, %v8146_v3  ;;  %v11683_v30 = vld [vmem:[#allocation11 + $0xba0] sm:$0xf] }
 0x2e0   :  { %8461 = vmatpush.bf16.msra.mxu0 %v12708_v57  ;;  %8398 = vmatpush.bf16.msra.mxu3 %v14112_v52  ;;  %v13472_v57 = vor.u32 %v15264_v14, %v13469_v17  ;;  %v13920_v52 = vor.u32 %v15376_v31, %v13917_v48  ;;  %v15216_v14 = vld [vmem:[#allocation11 + $0x181c] sm:$0xf]  ;;  %v13344_v17 = vor.u32 %v15232_v49, %v13341_v60  ;;  %v14953_v38 = vld [vmem:[#allocation11 + $0xfdc] sm:$0xf0]  ;;  %v14561_v48 = vld [vmem:[#allocation11 + $0x3a4] sm:$0xf] }
 0x2e1   :  { %8430 = vmatmul.bf16.vlgmr.msrb.gmra.mxu1 %v15867_v45  ;;  %v13789_v2 = vld [vmem:[#allocation11 + $0x1c58] sm:$0xf0]  ;;  %v12259_v39 = vld [vmem:[#allocation11 + $0x1020] sm:$0xf]  ;;  %v16084_v29 = vadd.f32 %v16067_v1, %v8159_v15  ;;  %v11684_v55 = vor.u32 %v14825_v10, %v11683_v30  ;;  %v12196_v21 = vor.u32 %v14953_v38, %v12195_v4  ;;  %v11045_v15 = vld [vmem:[#allocation11 + $0x6e0] sm:$0xf0] }
 0x2e2   :  { %8474 = vmatpush.bf16.msra.mxu1 %v13220_v18  ;;  %8386 = vmatpush.bf16.msra.mxu2 %v13536_v11  ;;  %v13984_v18 = vor.u32 %v15392_v34, %v13981_v16  ;;  %v12835_v11 = vld [vmem:[#allocation11 + $0x14a0] sm:$0xf]  ;;  %v13277_v16 = vld [vmem:[#allocation11 + $0x1858] sm:$0xf0]  ;;  %v13792_v44 = vor.u32 %v15344_v23, %v13789_v2  ;;  %v14529_v2 = vld [vmem:[#allocation11 + $0x2a4] sm:$0xf] }
 0x2e3   :  { %v14969_v42 = vld [vmem:[#allocation11 + $0x105c] sm:$0xf0] }
 0x2e4   :  { %8462 = vmatpush.bf16.msra.mxu0 %v12644_v50  ;;  %8399 = vmatpush.bf16.msra.mxu3 %v14048_v13  ;;  %v15001_v50 = vld [vmem:[#allocation11 + $0x115c] sm:$0xf0] }
 0x2e5   :  { %v15113_v13 = vld [vmem:[#allocation11 + $0x14dc] sm:$0xf0] }
 0x2e6   :  { %8475 = vmatpush.bf16.msra.mxu1 %v13156_v54  ;;  %v12899_v54 = vld [vmem:[#allocation11 + $0x1520] sm:$0xf]  ;;  %8387 = vmatpush.bf16.msra.mxu2 %v13472_v57  ;;  %v12324_v57 = vor.u32 %v14985_v19, %v12323_v9  ;;  %v14673_v9 = vld [vmem:[#allocation11 + $0x724] sm:$0xf] }
 0x2e7   :  { %v12900_v41 = vor.u32 %v15129_v27, %v12899_v54  ;;  %v12771_v46 = vld [vmem:[#allocation11 + $0x1420] sm:$0xf]  ;;  %v8134_v54 = vpop.f32.mrf.mxu2  ;;  %v8147_v27 = vpop.f32.mrf.mxu3  ;;  %v11109_v19 = vld [vmem:[#allocation11 + $0x760] sm:$0xf0] }
 0x2e8   :  { %8463 = vmatpush.bf16.msra.mxu0 %v12580_v58  ;;  %8400 = vmatpush.bf16.msra.mxu3 %v13984_v18  ;;  %v13853_v58 = vld [vmem:[#allocation11 + $0x1cd8] sm:$0xf0]  ;;  %v12836_v18 = vor.u32 %v15113_v13, %v12835_v11  ;;  %v15097_v31 = vld [vmem:[#allocation11 + $0x145c] sm:$0xf0] }
 0x2e9   :  { %v13856_v34 = vor.u32 %v15360_v63, %v13853_v58  ;;  %v11619_v49 = vld [vmem:[#allocation11 + $0xb20] sm:$0xf] }
 0x2ea   :  { %8476 = vmatpush.bf16.msra.mxu1 %v13092_v7  ;;  %v12388_v7 = vor.u32 %v15001_v50, %v12387_v33  ;;  %8388 = vmatpush.bf16.msra.mxu2 %v13408_v56  ;;  %v14689_v33 = vld [vmem:[#allocation11 + $0x7a4] sm:$0xf]  ;;  %v12260_v56 = vor.u32 %v14969_v42, %v12259_v39  ;;  %v14809_v59 = vld [vmem:[#allocation11 + $0xb5c] sm:$0xf0] }
 0x2eb   :  { %v11173_v50 = vld [vmem:[#allocation11 + $0x7e0] sm:$0xf0]  ;;  %v12131_v63 = vld [vmem:[#allocation11 + $0xf20] sm:$0xf]  ;;  %v11620_v3 = vor.u32 %v14809_v59, %v11619_v49 }
 0x2ec   :  { %8464 = vmatpush.bf16.msra.mxu0 %v12516_v43  ;;  %8401 = vmatpush.bf16.msra.mxu3 %v13920_v52  ;;  %v8212_v43 = vpop.f32.mrf.mxu0  ;;  %v12772_v52 = vor.u32 %v15097_v31, %v12771_v46  ;;  %v11176_v1 = vor.u32 %v14689_v33, %v11173_v50  ;;  %v14937_v58 = vld [vmem:[#allocation11 + $0xf5c] sm:$0xf0]  ;;  %v14513_v46 = vld [vmem:[#allocation11 + $0x224] sm:$0xf] }
 0x2ed   :  { %v12132_v11 = vor.u32 %v14937_v58, %v12131_v63  ;;  %v11555_v13 = vld [vmem:[#allocation11 + $0xaa0] sm:$0xf]  ;;  %v10533_v43 = vld [vmem:[#allocation11 + $0x2e0] sm:$0xf0] }
 0x2ee   :  { %8477 = vmatpush.bf16.msra.mxu1 %v13028_v24  ;;  %v8225_v24 = vpop.f32.mrf.mxu1  ;;  %8389 = vmatpush.bf16.msra.mxu2 %v13344_v17  ;;  %v14921_v23 = vld [vmem:[#allocation11 + $0xedc] sm:$0xf0]  ;;  %v10469_v31 = vld [vmem:[#allocation11 + $0x260] sm:$0xf0] }
 0x2ef   :  { %v14657_v24 = vld [vmem:[#allocation11 + $0x6a4] sm:$0xf]  ;;  %v11491_v4 = vld [vmem:[#allocation11 + $0xa20] sm:$0xf]  ;;  %v10472_v54 = vor.u32 %v14513_v46, %v10469_v31 }
 0x2f0   :  { %8465 = vmatpush.bf16.msra.mxu0 %v12452_v51  ;;  %8402 = vmatpush.bf16.msra.mxu3 %v13856_v34  ;;  %v13280_v51 = vor.u32 %v15216_v14, %v13277_v16  ;;  %v14793_v14 = vld [vmem:[#allocation11 + $0xadc] sm:$0xf0]  ;;  %v11112_v34 = vor.u32 %v14673_v9, %v11109_v19  ;;  %v11048_v38 = vor.u32 %v14657_v24, %v11045_v15  ;;  %v10405_v59 = vld [vmem:[#allocation11 + $0x1e0] sm:$0xf0] }
 0x2f1   :  { %v12067_v16 = vld [vmem:[#allocation11 + $0xea0] sm:$0xf]  ;;  %v11556_v30 = vor.u32 %v14793_v14, %v11555_v13  ;;  %v14481_v13 = vld [vmem:[#allocation11 + $0x124] sm:$0xf] }
 0x2f2   :  { %8478 = vmatpush.bf16.msra.mxu1 %v12964_v28  ;;  %v10661_v28 = vld [vmem:[#allocation11 + $0x3e0] sm:$0xf0]  ;;  %8390 = vmatpush.bf16.msra.mxu2 %v13280_v51  ;;  %v12068_v10 = vor.u32 %v14921_v23, %v12067_v16  ;;  %v12003_v39 = vld [vmem:[#allocation11 + $0xe20] sm:$0xf] }
 0x2f3   :  { %v10664_v60 = vor.u32 %v14561_v48, %v10661_v28  ;;  %v14905_v42 = vld [vmem:[#allocation11 + $0xe5c] sm:$0xf0]  ;;  %v14641_v48 = vld [vmem:[#allocation11 + $0x624] sm:$0xf] }
 0x2f4   :  { %8466 = vmatpush.bf16.msra.mxu0 %v12388_v7  ;;  %v14545_v7 = vld [vmem:[#allocation11 + $0x324] sm:$0xf]  ;;  %8403 = vmatpush.bf16.msra.mxu3 %v13792_v44  ;;  %v12004_v28 = vor.u32 %v14905_v42, %v12003_v39  ;;  %v11427_v33 = vld [vmem:[#allocation11 + $0x9a0] sm:$0xf] }
 0x2f5   :  { %8391 = vmatmul.bf16.vlgmr.msra.gmra.mxu2 %v15939_v8  ;;  %v10981_v51 = vld [vmem:[#allocation11 + $0x660] sm:$0xf0]  ;;  %v14761_v50 = vld [vmem:[#allocation11 + $0x9dc] sm:$0xf0] }
 0x2f6   :  { %8479 = vmatpush.bf16.msra.mxu1 %v12900_v41  ;;  %v10597_v41 = vld [vmem:[#allocation11 + $0x360] sm:$0xf0]  ;;  %8435 = vmatpush.bf16.msrb.mxu2 %v11684_v55  ;;  %v10984_v27 = vor.u32 %v14641_v48, %v10981_v51  ;;  %v11939_v55 = vld [vmem:[#allocation11 + $0xda0] sm:$0xf]  ;;  %v11428_v63 = vor.u32 %v14761_v50, %v11427_v33  ;;  %v8184_v16 = vpop.f32.mrf.mxu2 }
 0x2f7   :  { %v10600_v17 = vor.u32 %v14545_v7, %v10597_v41  ;;  %8404 = vmatmul.bf16.vlgmr.msra.gmra.mxu3 %v15941_v22  ;;  %v11363_v7 = vld [vmem:[#allocation11 + $0x920] sm:$0xf]  ;;  %v10341_v14 = vld [vmem:[#allocation11 + $0x160] sm:$0xf0] }
 0x2f8   :  { %8467 = vmatpush.bf16.msra.mxu0 %v12324_v57  ;;  %8448 = vmatpush.bf16.msrb.mxu3 %v12196_v21  ;;  %v14777_v57 = vld [vmem:[#allocation11 + $0xa5c] sm:$0xf0]  ;;  %v10277_v31 = vld [vmem:[#allocation11 + $0xe0] sm:$0xf0] }
 0x2f9   :  { %v11492_v44 = vor.u32 %v14777_v57, %v11491_v4  ;;  %v14889_v21 = vld [vmem:[#allocation11 + $0xddc] sm:$0xf0]  ;;  %v8197_v23 = vpop.f32.mrf.mxu3  ;;  %v14593_v48 = vld [vmem:[#allocation11 + $0x4a4] sm:$0xf] }
 0x2fa   :  { %8480 = vmatpush.bf16.msra.mxu1 %v12836_v18  ;;  %8436 = vmatpush.bf16.msrb.mxu2 %v11620_v3  ;;  %v10536_v18 = vor.u32 %v14529_v2, %v10533_v43  ;;  %v11940_v58 = vor.u32 %v14889_v21, %v11939_v55  ;;  %v14745_v41 = vld [vmem:[#allocation11 + $0x95c] sm:$0xf0]  ;;  %v8185_v2 = vadd.f32 %v8184_v16, %v16084_v29  ;;  %v10789_v51 = vld [vmem:[#allocation11 + $0x4e0] sm:$0xf0] }
 0x2fb   :  { %v11875_v3 = vld [vmem:[#allocation11 + $0xd20] sm:$0xf]  ;;  %v11364_v43 = vor.u32 %v14745_v41, %v11363_v7  ;;  %v10792_v55 = vor.u32 %v14593_v48, %v10789_v51  ;;  %v14577_v41 = vld [vmem:[#allocation11 + $0x424] sm:$0xf] }
 0x2fc   :  { %8468 = vmatpush.bf16.msra.mxu0 %v12260_v56  ;;  %8449 = vmatpush.bf16.msrb.mxu3 %v12132_v11  ;;  %v14497_v56 = vld [vmem:[#allocation11 + $0x1a4] sm:$0xf]  ;;  %v14873_v11 = vld [vmem:[#allocation11 + $0xd5c] sm:$0xf0]  ;;  %v16095_v39 = vadd.f32 %v8197_v23, %v8185_v2 }
 0x2fd   :  { %v10408_v9 = vor.u32 %v14497_v56, %v10405_v59  ;;  %v11876_v24 = vor.u32 %v14873_v11, %v11875_v3  ;;  %v11299_v15 = vld [vmem:[#allocation11 + $0x8a0] sm:$0xf] }
 0x2fe   :  { %8481 = vmatpush.bf16.msra.mxu1 %v12772_v52  ;;  %8437 = vmatpush.bf16.msrb.mxu2 %v11556_v30  ;;  %v16090_v52 = vpop.f32.mrf.mxu0  ;;  %v16092_v49 = vpop.f32.mrf.mxu1  ;;  %v14729_v30 = vld [vmem:[#allocation11 + $0x8dc] sm:$0xf0] }
 0x2ff   :  { %8469 = vmatmul.bf16.vlgmr.msra.gmra.mxu0 %v15907_v36  ;;  %v11811_v57 = vld [vmem:[#allocation11 + $0xca0] sm:$0xf]  ;;  %v11300_v29 = vor.u32 %v14729_v30, %v11299_v15 }
 0x300   :  { %8513 = vmatpush.bf16.msrb.mxu0 %v10664_v60  ;;  %8450 = vmatpush.bf16.msrb.mxu3 %v12068_v10  ;;  %v14625_v60 = vld [vmem:[#allocation11 + $0x5a4] sm:$0xf]  ;;  %v10344_v10 = vor.u32 %v14481_v13, %v10341_v14  ;;  %v14713_v33 = vld [vmem:[#allocation11 + $0x85c] sm:$0xf0] }
 0x301   :  { %8482 = vmatmul.bf16.vlgmr.msra.gmra.mxu1 %v15909_v37  ;;  %v11747_v50 = vld [vmem:[#allocation11 + $0xc20] sm:$0xf]  ;;  %v8199_v7 = vpop.f32.mrf.mxu3  ;;  %v12709_v13 = vld [vmem:[#allocation11 + $0x13e0] sm:$0xf0] }
 0x302   :  { %8526 = vmatpush.bf16.msrb.mxu1 %v11176_v1  ;;  %v10917_v1 = vld [vmem:[#allocation11 + $0x5e0] sm:$0xf0]  ;;  %8438 = vmatpush.bf16.msrb.mxu2 %v11492_v44  ;;  %v11235_v44 = vld [vmem:[#allocation11 + $0x820] sm:$0xf] }
 0x303   :  { %v10920_v19 = vor.u32 %v14625_v60, %v10917_v1  ;;  %v13731_v21 = vld [vmem:[#allocation11 + $0x1ba0] sm:$0xf]  ;;  %v14449_v1 = vld [vmem:[#allocation11 + $0x24] sm:$0xf]  ;;  %v11236_v3 = vor.u32 %v14713_v33, %v11235_v44 }
 0x304   :  { %8514 = vmatpush.bf16.msrb.mxu0 %v10600_v17  ;;  %8451 = vmatpush.bf16.msrb.mxu3 %v12004_v28  ;;  %v14609_v17 = vld [vmem:[#allocation11 + $0x524] sm:$0xf]  ;;  %v15337_v56 = vld [vmem:[#allocation11 + $0x1bdc] sm:$0xf0] }
 0x305   :  { %v14243_v59 = vld [vmem:[#allocation11 + $0x1fa0] sm:$0xf]  ;;  %v15201_v14 = vld [vmem:[#allocation11 + $0x17a4] sm:$0xf] }
 0x306   :  { %8527 = vmatpush.bf16.msrb.mxu1 %v11112_v34  ;;  %v10853_v34 = vld [vmem:[#allocation11 + $0x560] sm:$0xf0]  ;;  %8439 = vmatpush.bf16.msrb.mxu2 %v11428_v63  ;;  %v8264_v42 = vpop.f32.mrf.mxu0  ;;  %v8277_v46 = vpop.f32.mrf.mxu1  ;;  %v15465_v60 = vld [vmem:[#allocation11 + $0x1fdc] sm:$0xf0] }
 0x307   :  { %v10856_v4 = vor.u32 %v14609_v17, %v10853_v34  ;;  %v10213_v63 = vld [vmem:[#allocation11 + $0x60] sm:$0xf0]  ;;  %v13732_v34 = vor.u32 %v15337_v56, %v13731_v21  ;;  %v14244_v16 = vor.u32 %v15465_v60, %v14243_v59  ;;  %v13667_v23 = vld [vmem:[#allocation11 + $0x1b20] sm:$0xf] }
 0x308   :  { %8515 = vmatpush.bf16.msrb.mxu0 %v10536_v18  ;;  %8452 = vmatpush.bf16.msrb.mxu3 %v11940_v58  ;;  %v14857_v18 = vld [vmem:[#allocation11 + $0xcdc] sm:$0xf0]  ;;  %v8186_v58 = vpop.f32.mrf.mxu2  ;;  %v13221_v17 = vld [vmem:[#allocation11 + $0x17e0] sm:$0xf0]  ;;  %v10216_v2 = vor.u32 %v14449_v1, %v10213_v63 }
 0x309   :  { %v11812_v28 = vor.u32 %v14857_v18, %v11811_v57  ;;  %v14179_v15 = vld [vmem:[#allocation11 + $0x1f20] sm:$0xf]  ;;  %v15057_v57 = vld [vmem:[#allocation11 + $0x1324] sm:$0xf] }
 0x30a   :  { %8528 = vmatpush.bf16.msrb.mxu1 %v11048_v38  ;;  %v14465_v38 = vld [vmem:[#allocation11 + $0xa4] sm:$0xf]  ;;  %8440 = vmatpush.bf16.msrb.mxu2 %v11364_v43  ;;  %v15449_v30 = vld [vmem:[#allocation11 + $0x1f5c] sm:$0xf0] }
 0x30b   :  { %v12645_v18 = vld [vmem:[#allocation11 + $0x1360] sm:$0xf0]  ;;  %v13603_v48 = vld [vmem:[#allocation11 + $0x1aa0] sm:$0xf] }
 0x30c   :  { %8516 = vmatpush.bf16.msrb.mxu0 %v10472_v54  ;;  %8453 = vmatpush.bf16.msrb.mxu3 %v11876_v24  ;;  %v14841_v54 = vld [vmem:[#allocation11 + $0xc5c] sm:$0xf0]  ;;  %v13157_v42 = vld [vmem:[#allocation11 + $0x1760] sm:$0xf0] }
 0x30d   :  { %v11748_v11 = vor.u32 %v14841_v54, %v11747_v50  ;;  %v15321_v24 = vld [vmem:[#allocation11 + $0x1b5c] sm:$0xf0]  ;;  %v15041_v50 = vld [vmem:[#allocation11 + $0x12a4] sm:$0xf] }
 0x30e   :  { %8529 = vmatpush.bf16.msrb.mxu1 %v10984_v27  ;;  %v10280_v27 = vor.u32 %v14465_v38, %v10277_v31  ;;  %8441 = vmatpush.bf16.msrb.mxu2 %v11300_v29  ;;  %v15185_v38 = vld [vmem:[#allocation11 + $0x1724] sm:$0xf]  ;;  %v13668_v46 = vor.u32 %v15321_v24, %v13667_v23  ;;  %v14180_v31 = vor.u32 %v15449_v30, %v14179_v15  ;;  %v15305_v51 = vld [vmem:[#allocation11 + $0x1adc] sm:$0xf0]  ;;  %v2404_v23 = vperm.slane %v16076_v20, 7 }
 0x30f   :  { %v14115_v44 = vld [vmem:[#allocation11 + $0x1ea0] sm:$0xf]  ;;  %v13160_v33 = vor.u32 %v15185_v38, %v13157_v42  ;;  %v12581_v54 = vld [vmem:[#allocation11 + $0x12e0] sm:$0xf0]  ;;  %v13604_v21 = vor.u32 %v15305_v51, %v13603_v48 }
 0x310   :  { %8517 = vmatpush.bf16.msrb.mxu0 %v10408_v9  ;;  %v10725_v9 = vld [vmem:[#allocation11 + $0x460] sm:$0xf0]  ;;  %8454 = vmatpush.bf16.msrb.mxu3 %v11812_v28  ;;  %v15433_v29 = vld [vmem:[#allocation11 + $0x1edc] sm:$0xf0]  ;;  %v12648_v28 = vor.u32 %v15057_v57, %v12645_v18  ;;  %v12584_v58 = vor.u32 %v15041_v50, %v12581_v54 }
 0x311   :  { %v10728_v43 = vor.u32 %v14577_v41, %v10725_v9  ;;  %v14116_v56 = vor.u32 %v15433_v29, %v14115_v44  ;;  %v13539_v59 = vld [vmem:[#allocation11 + $0x1a20] sm:$0xf]  ;;  %v15025_v41 = vld [vmem:[#allocation11 + $0x1224] sm:$0xf] }
 0x312   :  { %8530 = vmatpush.bf16.msrb.mxu1 %v10920_v19  ;;  %v15073_v19 = vld [vmem:[#allocation11 + $0x13a4] sm:$0xf]  ;;  %8442 = vmatpush.bf16.msrb.mxu2 %v11236_v3  ;;  %v15289_v60 = vld [vmem:[#allocation11 + $0x1a5c] sm:$0xf0] }
 0x313   :  { %v14051_v1 = vld [vmem:[#allocation11 + $0x1e20] sm:$0xf]  ;;  %v12517_v9 = vld [vmem:[#allocation11 + $0x1260] sm:$0xf0] }
 0x314   :  { %8518 = vmatpush.bf16.msrb.mxu0 %v10344_v10  ;;  %v12712_v10 = vor.u32 %v15073_v19, %v12709_v13  ;;  %8455 = vmatpush.bf16.msrb.mxu3 %v11748_v11  ;;  %v15417_v63 = vld [vmem:[#allocation11 + $0x1e5c] sm:$0xf0]  ;;  %v15153_v19 = vld [vmem:[#allocation11 + $0x1624] sm:$0xf]  ;;  %v13540_v11 = vor.u32 %v15289_v60, %v13539_v59 }
 0x315   :  { %8443 = vmatmul.bf16.vlgmr.msrb.gmra.mxu2 %v15875_v25  ;;  %v13029_v3 = vld [vmem:[#allocation11 + $0x1660] sm:$0xf0]  ;;  %v14052_v13 = vor.u32 %v15417_v63, %v14051_v1  ;;  %v13411_v18 = vld [vmem:[#allocation11 + $0x1920] sm:$0xf] }
 0x316   :  { %8531 = vmatpush.bf16.msrb.mxu1 %v10856_v4  ;;  %v13224_v4 = vor.u32 %v15201_v14, %v13221_v17  ;;  %8487 = vmatpush.bf16.msra.mxu2 %v13732_v34  ;;  %v13475_v14 = vld [vmem:[#allocation11 + $0x19a0] sm:$0xf]  ;;  %v15009_v24 = vld [vmem:[#allocation11 + $0x11a4] sm:$0xf] }
 0x317   :  { %8456 = vmatmul.bf16.vlgmr.msrb.gmra.mxu3 %v15877_v26  ;;  %v15273_v17 = vld [vmem:[#allocation11 + $0x19dc] sm:$0xf0]  ;;  %v12453_v15 = vld [vmem:[#allocation11 + $0x11e0] sm:$0xf0] }
 0x318   :  { %8519 = vmatpush.bf16.msrb.mxu0 %v10280_v27  ;;  %8500 = vmatpush.bf16.msra.mxu3 %v14244_v16  ;;  %v15169_v27 = vld [vmem:[#allocation11 + $0x16a4] sm:$0xf]  ;;  %v13987_v34 = vld [vmem:[#allocation11 + $0x1da0] sm:$0xf]  ;;  %v12456_v20 = vor.u32 %v15009_v24, %v12453_v15 }
 0x319   :  { %v15401_v16 = vld [vmem:[#allocation11 + $0x1ddc] sm:$0xf0]  ;;  %v15137_v30 = vld [vmem:[#allocation11 + $0x15a4] sm:$0xf] }
 0x31a   :  { %8532 = vmatpush.bf16.msrb.mxu1 %v10792_v55  ;;  %v13093_v55 = vld [vmem:[#allocation11 + $0x16e0] sm:$0xf0]  ;;  %8488 = vmatpush.bf16.msra.mxu2 %v13668_v46  ;;  %v13988_v57 = vor.u32 %v15401_v16, %v13987_v34  ;;  %v15257_v46 = vld [vmem:[#allocation11 + $0x195c] sm:$0xf0] }
 0x31b   :  { %v13096_v7 = vor.u32 %v15169_v27, %v13093_v55  ;;  %v15385_v48 = vld [vmem:[#allocation11 + $0x1d5c] sm:$0xf0]  ;;  %v14993_v29 = vld [vmem:[#allocation11 + $0x1124] sm:$0xf]  ;;  %v8236_v27 = vpop.f32.mrf.mxu2  ;;  %v8249_v55 = vpop.f32.mrf.mxu3 }
 0x31c   :  { %8520 = vmatpush.bf16.msrb.mxu0 %v10216_v2  ;;  %8501 = vmatpush.bf16.msra.mxu3 %v14180_v31  ;;  %v12520_v2 = vor.u32 %v15025_v41, %v12517_v9  ;;  %v8314_v38 = vpop.f32.mrf.mxu0  ;;  %v13923_v31 = vld [vmem:[#allocation11 + $0x1d20] sm:$0xf]  ;;  %v12901_v50 = vld [vmem:[#allocation11 + $0x1560] sm:$0xf0]  ;;  %v8237_v60 = vadd.f32 %v8236_v27, %v16079_v53 }
 0x31d   :  { %v8315_v51 = vadd.f32 %v8314_v38, %v2404_v23  ;;  %v13347_v59 = vld [vmem:[#allocation11 + $0x18a0] sm:$0xf]  ;;  %v14977_v9 = vld [vmem:[#allocation11 + $0x10a4] sm:$0xf] }
 0x31e   :  { %8533 = vmatpush.bf16.msrb.mxu1 %v10728_v43  ;;  %8489 = vmatpush.bf16.msra.mxu2 %v13604_v21  ;;  %v13032_v43 = vor.u32 %v15153_v19, %v13029_v3  ;;  %v8327_v42 = vpop.f32.mrf.mxu1  ;;  %v13412_v21 = vor.u32 %v15257_v46, %v13411_v18  ;;  %v15241_v1 = vld [vmem:[#allocation11 + $0x18dc] sm:$0xf0]  ;;  %v12325_v19 = vld [vmem:[#allocation11 + $0x10e0] sm:$0xf0]  ;;  %v8250_v3 = vadd.f32 %v8249_v55, %v8237_v60 }
 0x31f   :  { %8521 = vmatmul.bf16.vlgmr.msrb.gmra.mxu0 %v15865_v40  ;;  %v16102_v54 = vadd.f32 %v8327_v42, %v8315_v51  ;;  %v13859_v63 = vld [vmem:[#allocation11 + $0x1ca0] sm:$0xf]  ;;  %v14817_v15 = vld [vmem:[#allocation11 + $0xba4] sm:$0xf] }
 0x320   :  { %8565 = vmatpush.bf16.msra.mxu0 %v12712_v10  ;;  %8502 = vmatpush.bf16.msra.mxu3 %v14116_v56  ;;  %v12965_v10 = vld [vmem:[#allocation11 + $0x15e0] sm:$0xf0]  ;;  %v13924_v56 = vor.u32 %v15385_v48, %v13923_v31  ;;  %v15225_v16 = vld [vmem:[#allocation11 + $0x185c] sm:$0xf0]  ;;  %v8263_v24 = vadd.f32 %v16090_v52, %v8250_v3  ;;  %v10667_v48 = vld [vmem:[#allocation11 + $0x3a8] sm:$0xf] }
 0x321   :  { %8534 = vmatmul.bf16.vlgmr.msrb.gmra.mxu1 %v15867_v45  ;;  %v12968_v44 = vor.u32 %v15137_v30, %v12965_v10  ;;  %v13795_v23 = vld [vmem:[#allocation11 + $0x1c20] sm:$0xf]  ;;  %v11685_v30 = vld [vmem:[#allocation11 + $0xbe0] sm:$0xf0] }
 0x322   :  { %8578 = vmatpush.bf16.msra.mxu1 %v13224_v4  ;;  %8490 = vmatpush.bf16.msra.mxu2 %v13540_v11  ;;  %v13476_v4 = vor.u32 %v15273_v17, %v13475_v14  ;;  %v15105_v11 = vld [vmem:[#allocation11 + $0x14a4] sm:$0xf]  ;;  %v13283_v14 = vld [vmem:[#allocation11 + $0x1820] sm:$0xf]  ;;  %v13348_v17 = vor.u32 %v15241_v1, %v13347_v59  ;;  %v16107_v51 = vadd.f32 %v16092_v49, %v8263_v24  ;;  %v14666_v24 = vld [vmem:[#allocation11 + $0x6e4] sm:$0xf0] }
 0x323   :  { %v15353_v53 = vld [vmem:[#allocation11 + $0x1c5c] sm:$0xf0]  ;;  %v14945_v10 = vld [vmem:[#allocation11 + $0xfa4] sm:$0xf]  ;;  %v11688_v27 = vor.u32 %v14817_v15, %v11685_v30 }
 0x324   :  { %8566 = vmatpush.bf16.msra.mxu0 %v12648_v28  ;;  %8503 = vmatpush.bf16.msra.mxu3 %v14052_v13  ;;  %v12389_v28 = vld [vmem:[#allocation11 + $0x1160] sm:$0xf0]  ;;  %v13796_v52 = vor.u32 %v15353_v53, %v13795_v23  ;;  %v10539_v53 = vld [vmem:[#allocation11 + $0x2a8] sm:$0xf] }
 0x325   :  { %v12837_v13 = vld [vmem:[#allocation11 + $0x14e0] sm:$0xf0] }
 0x326   :  { %8579 = vmatpush.bf16.msra.mxu1 %v13160_v33  ;;  %v15121_v33 = vld [vmem:[#allocation11 + $0x1524] sm:$0xf]  ;;  %8491 = vmatpush.bf16.msra.mxu2 %v13476_v4  ;;  %v12328_v4 = vor.u32 %v14977_v9, %v12325_v19  ;;  %v11115_v9 = vld [vmem:[#allocation11 + $0x728] sm:$0xf] }
 0x327   :  { %v12904_v41 = vor.u32 %v15121_v33, %v12901_v50  ;;  %v12197_v18 = vld [vmem:[#allocation11 + $0xfe0] sm:$0xf0]  ;;  %v8238_v33 = vpop.f32.mrf.mxu2  ;;  %v8251_v50 = vpop.f32.mrf.mxu3  ;;  %v14682_v19 = vld [vmem:[#allocation11 + $0x764] sm:$0xf0] }
 0x328   :  { %8567 = vmatpush.bf16.msra.mxu0 %v12584_v58  ;;  %8504 = vmatpush.bf16.msra.mxu3 %v13988_v57  ;;  %v15369_v58 = vld [vmem:[#allocation11 + $0x1cdc] sm:$0xf0]  ;;  %v12840_v57 = vor.u32 %v15105_v11, %v12837_v13  ;;  %v14961_v38 = vld [vmem:[#allocation11 + $0x1024] sm:$0xf]  ;;  %v12200_v55 = vor.u32 %v14945_v10, %v12197_v18 }
 0x329   :  { %v13860_v34 = vor.u32 %v15369_v58, %v13859_v63  ;;  %v12261_v42 = vld [vmem:[#allocation11 + $0x1060] sm:$0xf0] }
 0x32a   :  { %8580 = vmatpush.bf16.msra.mxu1 %v13096_v7  ;;  %v12392_v7 = vor.u32 %v14993_v29, %v12389_v28  ;;  %8492 = vmatpush.bf16.msra.mxu2 %v13412_v21  ;;  %v15089_v46 = vld [vmem:[#allocation11 + $0x1424] sm:$0xf]  ;;  %v11179_v29 = vld [vmem:[#allocation11 + $0x7a8] sm:$0xf]  ;;  %v12264_v21 = vor.u32 %v14961_v38, %v12261_v42 }
 0x32b   :  { %v12773_v31 = vld [vmem:[#allocation11 + $0x1460] sm:$0xf0]  ;;  %v14698_v28 = vld [vmem:[#allocation11 + $0x7e4] sm:$0xf0] }
 0x32c   :  { %8568 = vmatpush.bf16.msra.mxu0 %v12520_v2  ;;  %8505 = vmatpush.bf16.msra.mxu3 %v13924_v56  ;;  %v8316_v2 = vpop.f32.mrf.mxu0  ;;  %v12776_v56 = vor.u32 %v15089_v46, %v12773_v31  ;;  %v14801_v59 = vld [vmem:[#allocation11 + $0xb24] sm:$0xf]  ;;  %v11180_v49 = vor.u32 %v14698_v28, %v11179_v29  ;;  %v10475_v46 = vld [vmem:[#allocation11 + $0x228] sm:$0xf] }
 0x32d   :  { %v11621_v60 = vld [vmem:[#allocation11 + $0xb60] sm:$0xf0]  ;;  %v14538_v2 = vld [vmem:[#allocation11 + $0x2e4] sm:$0xf0] }
 0x32e   :  { %8581 = vmatpush.bf16.msra.mxu1 %v13032_v43  ;;  %v8329_v43 = vpop.f32.mrf.mxu1  ;;  %8493 = vmatpush.bf16.msra.mxu2 %v13348_v17  ;;  %v14929_v63 = vld [vmem:[#allocation11 + $0xf24] sm:$0xf]  ;;  %v11624_v3 = vor.u32 %v14801_v59, %v11621_v60  ;;  %v14522_v31 = vld [vmem:[#allocation11 + $0x264] sm:$0xf0] }
 0x32f   :  { %v12133_v58 = vld [vmem:[#allocation11 + $0xf60] sm:$0xf0]  ;;  %v11051_v43 = vld [vmem:[#allocation11 + $0x6a8] sm:$0xf]  ;;  %v10476_v33 = vor.u32 %v14522_v31, %v10475_v46 }
 0x330   :  { %8569 = vmatpush.bf16.msra.mxu0 %v12456_v20  ;;  %8506 = vmatpush.bf16.msra.mxu3 %v13860_v34  ;;  %v13284_v20 = vor.u32 %v15225_v16, %v13283_v14  ;;  %v12136_v11 = vor.u32 %v14929_v63, %v12133_v58  ;;  %v14785_v13 = vld [vmem:[#allocation11 + $0xaa4] sm:$0xf]  ;;  %v11116_v34 = vor.u32 %v14682_v19, %v11115_v9  ;;  %v14506_v60 = vld [vmem:[#allocation11 + $0x1e4] sm:$0xf0] }
 0x331   :  { %v11557_v14 = vld [vmem:[#allocation11 + $0xae0] sm:$0xf0]  ;;  %v11052_v18 = vor.u32 %v14666_v24, %v11051_v43  ;;  %v14474_v31 = vld [vmem:[#allocation11 + $0xe4] sm:$0xf0] }
 0x332   :  { %8582 = vmatpush.bf16.msra.mxu1 %v12968_v44  ;;  %v14570_v44 = vld [vmem:[#allocation11 + $0x3e4] sm:$0xf0]  ;;  %8494 = vmatpush.bf16.msra.mxu2 %v13284_v20  ;;  %v14913_v16 = vld [vmem:[#allocation11 + $0xea4] sm:$0xf]  ;;  %v11560_v15 = vor.u32 %v14785_v13, %v11557_v14 }
 0x333   :  { %v10668_v1 = vor.u32 %v14570_v44, %v10667_v48  ;;  %v12069_v23 = vld [vmem:[#allocation11 + $0xee0] sm:$0xf0]  ;;  %v10987_v48 = vld [vmem:[#allocation11 + $0x628] sm:$0xf] }
 0x334   :  { %8570 = vmatpush.bf16.msra.mxu0 %v12392_v7  ;;  %v10603_v7 = vld [vmem:[#allocation11 + $0x328] sm:$0xf]  ;;  %8507 = vmatpush.bf16.msra.mxu3 %v13796_v52  ;;  %v12072_v30 = vor.u32 %v14913_v16, %v12069_v23  ;;  %v14769_v10 = vld [vmem:[#allocation11 + $0xa24] sm:$0xf] }
 0x335   :  { %8495 = vmatmul.bf16.vlgmr.msra.gmra.mxu2 %v15939_v8  ;;  %v14897_v38 = vld [vmem:[#allocation11 + $0xe24] sm:$0xf]  ;;  %v14650_v20 = vld [vmem:[#allocation11 + $0x664] sm:$0xf0] }
 0x336   :  { %8583 = vmatpush.bf16.msra.mxu1 %v12904_v41  ;;  %v14554_v41 = vld [vmem:[#allocation11 + $0x364] sm:$0xf0]  ;;  %8539 = vmatpush.bf16.msrb.mxu2 %v11688_v27  ;;  %v12005_v42 = vld [vmem:[#allocation11 + $0xe60] sm:$0xf0]  ;;  %v10988_v50 = vor.u32 %v14650_v20, %v10987_v48 }
 0x337   :  { %v10604_v17 = vor.u32 %v14554_v41, %v10603_v7  ;;  %8508 = vmatmul.bf16.vlgmr.msra.gmra.mxu3 %v15941_v22  ;;  %v12008_v44 = vor.u32 %v14897_v38, %v12005_v42  ;;  %v14753_v29 = vld [vmem:[#allocation11 + $0x9a4] sm:$0xf]  ;;  %v10347_v13 = vld [vmem:[#allocation11 + $0x128] sm:$0xf] }
 0x338   :  { %8571 = vmatpush.bf16.msra.mxu0 %v12328_v4  ;;  %8552 = vmatpush.bf16.msrb.mxu3 %v12200_v55  ;;  %v11493_v4 = vld [vmem:[#allocation11 + $0xa60] sm:$0xf0]  ;;  %v14490_v14 = vld [vmem:[#allocation11 + $0x164] sm:$0xf0]  ;;  %v8288_v16 = vpop.f32.mrf.mxu2 }
 0x339   :  { %v11496_v52 = vor.u32 %v14769_v10, %v11493_v4  ;;  %v11429_v28 = vld [vmem:[#allocation11 + $0x9e0] sm:$0xf0]  ;;  %v10795_v48 = vld [vmem:[#allocation11 + $0x4a8] sm:$0xf] }
 0x33a   :  { %8584 = vmatpush.bf16.msra.mxu1 %v12840_v57  ;;  %8540 = vmatpush.bf16.msrb.mxu2 %v11624_v3  ;;  %v10540_v57 = vor.u32 %v14538_v2, %v10539_v53  ;;  %v14881_v27 = vld [vmem:[#allocation11 + $0xda4] sm:$0xf]  ;;  %v11432_v63 = vor.u32 %v14753_v29, %v11429_v28  ;;  %v8301_v23 = vpop.f32.mrf.mxu3  ;;  %v8289_v53 = vadd.f32 %v8288_v16, %v16107_v51  ;;  %v14602_v20 = vld [vmem:[#allocation11 + $0x4e4] sm:$0xf0] }
 0x33b   :  { %v11941_v55 = vld [vmem:[#allocation11 + $0xde0] sm:$0xf0] }
 0x33c   :  { %8572 = vmatpush.bf16.msra.mxu0 %v12264_v21  ;;  %8553 = vmatpush.bf16.msrb.mxu3 %v12136_v11  ;;  %v10411_v21 = vld [vmem:[#allocation11 + $0x1a8] sm:$0xf]  ;;  %v11944_v58 = vor.u32 %v14881_v27, %v11941_v55  ;;  %v14737_v7 = vld [vmem:[#allocation11 + $0x924] sm:$0xf]  ;;  %v16118_v38 = vadd.f32 %v8301_v23, %v8289_v53  ;;  %v10796_v27 = vor.u32 %v14602_v20, %v10795_v48 }
 0x33d   :  { %v11365_v41 = vld [vmem:[#allocation11 + $0x960] sm:$0xf0]  ;;  %v10412_v9 = vor.u32 %v14506_v60, %v10411_v21 }
 0x33e   :  { %8585 = vmatpush.bf16.msra.mxu1 %v12776_v56  ;;  %8541 = vmatpush.bf16.msrb.mxu2 %v11560_v15  ;;  %v16113_v56 = vpop.f32.mrf.mxu0  ;;  %v16115_v59 = vpop.f32.mrf.mxu1  ;;  %v14865_v3 = vld [vmem:[#allocation11 + $0xd24] sm:$0xf]  ;;  %v11368_v2 = vor.u32 %v14737_v7, %v11365_v41  ;;  %v10731_v41 = vld [vmem:[#allocation11 + $0x428] sm:$0xf] }
 0x33f   :  { %8573 = vmatmul.bf16.vlgmr.msra.gmra.mxu0 %v15907_v36  ;;  %v11877_v11 = vld [vmem:[#allocation11 + $0xd60] sm:$0xf0] }
 0x340   :  { %8617 = vmatpush.bf16.msrb.mxu0 %v10668_v1  ;;  %8554 = vmatpush.bf16.msrb.mxu3 %v12072_v30  ;;  %v10923_v1 = vld [vmem:[#allocation11 + $0x5a8] sm:$0xf]  ;;  %v11880_v43 = vor.u32 %v14865_v3, %v11877_v11  ;;  %v14721_v24 = vld [vmem:[#allocation11 + $0x8a4] sm:$0xf]  ;;  %v10348_v30 = vor.u32 %v14490_v14, %v10347_v13 }
 0x341   :  { %8586 = vmatmul.bf16.vlgmr.msra.gmra.mxu1 %v15909_v37  ;;  %v11301_v15 = vld [vmem:[#allocation11 + $0x8e0] sm:$0xf0]  ;;  %v15082_v13 = vld [vmem:[#allocation11 + $0x13e4] sm:$0xf0] }
 0x342   :  { %8630 = vmatpush.bf16.msrb.mxu1 %v11180_v49  ;;  %v14634_v49 = vld [vmem:[#allocation11 + $0x5e4] sm:$0xf0]  ;;  %8542 = vmatpush.bf16.msrb.mxu2 %v11496_v52  ;;  %v14849_v4 = vld [vmem:[#allocation11 + $0xca4] sm:$0xf]  ;;  %v11304_v51 = vor.u32 %v14721_v24, %v11301_v15  ;;  %v8303_v7 = vpop.f32.mrf.mxu3 }
 0x343   :  { %v10924_v19 = vor.u32 %v14634_v49, %v10923_v1  ;;  %v14705_v52 = vld [vmem:[#allocation11 + $0x824] sm:$0xf]  ;;  %v10219_v49 = vld [vmem:[#allocation11 + $0x28] sm:$0xf] }
 0x344   :  { %8618 = vmatpush.bf16.msrb.mxu0 %v10604_v17  ;;  %8555 = vmatpush.bf16.msrb.mxu3 %v12008_v44  ;;  %v10859_v17 = vld [vmem:[#allocation11 + $0x528] sm:$0xf]  ;;  %v11237_v29 = vld [vmem:[#allocation11 + $0x860] sm:$0xf0] }
 0x345   :  { %v14833_v28 = vld [vmem:[#allocation11 + $0xc24] sm:$0xf]  ;;  %v11240_v3 = vor.u32 %v14705_v52, %v11237_v29  ;;  %v13227_v14 = vld [vmem:[#allocation11 + $0x17a8] sm:$0xf] }
 0x346   :  { %8631 = vmatpush.bf16.msrb.mxu1 %v11116_v34  ;;  %v14618_v34 = vld [vmem:[#allocation11 + $0x564] sm:$0xf0]  ;;  %8543 = vmatpush.bf16.msrb.mxu2 %v11432_v63  ;;  %v8368_v42 = vpop.f32.mrf.mxu0  ;;  %v8381_v46 = vpop.f32.mrf.mxu1  ;;  %v15329_v55 = vld [vmem:[#allocation11 + $0x1ba4] sm:$0xf] }
 0x347   :  { %v10860_v10 = vor.u32 %v14618_v34, %v10859_v17  ;;  %v13733_v21 = vld [vmem:[#allocation11 + $0x1be0] sm:$0xf0]  ;;  %v14458_v63 = vld [vmem:[#allocation11 + $0x64] sm:$0xf0] }
 0x348   :  { %8619 = vmatpush.bf16.msrb.mxu0 %v10540_v57  ;;  %8556 = vmatpush.bf16.msrb.mxu3 %v11944_v58  ;;  %v11813_v57 = vld [vmem:[#allocation11 + $0xce0] sm:$0xf0]  ;;  %v8290_v58 = vpop.f32.mrf.mxu2  ;;  %v15210_v17 = vld [vmem:[#allocation11 + $0x17e4] sm:$0xf0]  ;;  %v13736_v34 = vor.u32 %v15329_v55, %v13733_v21  ;;  %v10220_v53 = vor.u32 %v14458_v63, %v10219_v49 }
 0x349   :  { %v11816_v44 = vor.u32 %v14849_v4, %v11813_v57  ;;  %v15457_v60 = vld [vmem:[#allocation11 + $0x1fa4] sm:$0xf]  ;;  %v12651_v4 = vld [vmem:[#allocation11 + $0x1328] sm:$0xf] }
 0x34a   :  { %8632 = vmatpush.bf16.msrb.mxu1 %v11052_v18  ;;  %v10283_v18 = vld [vmem:[#allocation11 + $0xa8] sm:$0xf]  ;;  %8544 = vmatpush.bf16.msrb.mxu2 %v11368_v2  ;;  %v14245_v1 = vld [vmem:[#allocation11 + $0x1fe0] sm:$0xf0] }
 0x34b   :  { %v14248_v16 = vor.u32 %v15457_v60, %v14245_v1  ;;  %v15313_v23 = vld [vmem:[#allocation11 + $0x1b24] sm:$0xf]  ;;  %v15066_v57 = vld [vmem:[#allocation11 + $0x1364] sm:$0xf0] }
 0x34c   :  { %8620 = vmatpush.bf16.msrb.mxu0 %v10476_v33  ;;  %8557 = vmatpush.bf16.msrb.mxu3 %v11880_v43  ;;  %v11749_v33 = vld [vmem:[#allocation11 + $0xc60] sm:$0xf0]  ;;  %v15194_v42 = vld [vmem:[#allocation11 + $0x1764] sm:$0xf0] }
 0x34d   :  { %v11752_v11 = vor.u32 %v14833_v28, %v11749_v33  ;;  %v13669_v43 = vld [vmem:[#allocation11 + $0x1b60] sm:$0xf0]  ;;  %v12587_v28 = vld [vmem:[#allocation11 + $0x12a8] sm:$0xf] }
 0x34e   :  { %8633 = vmatpush.bf16.msrb.mxu1 %v10988_v50  ;;  %v10284_v50 = vor.u32 %v14474_v31, %v10283_v18  ;;  %8545 = vmatpush.bf16.msrb.mxu2 %v11304_v51  ;;  %v15441_v24 = vld [vmem:[#allocation11 + $0x1f24] sm:$0xf]  ;;  %v13163_v18 = vld [vmem:[#allocation11 + $0x1728] sm:$0xf]  ;;  %v13672_v46 = vor.u32 %v15313_v23, %v13669_v43 }
 0x34f   :  { %v14181_v15 = vld [vmem:[#allocation11 + $0x1f60] sm:$0xf0]  ;;  %v13164_v29 = vor.u32 %v15194_v42, %v13163_v18  ;;  %v15050_v33 = vld [vmem:[#allocation11 + $0x12e4] sm:$0xf0] }
 0x350   :  { %8621 = vmatpush.bf16.msrb.mxu0 %v10412_v9  ;;  %v14586_v9 = vld [vmem:[#allocation11 + $0x464] sm:$0xf0]  ;;  %8558 = vmatpush.bf16.msrb.mxu3 %v11816_v44  ;;  %v14184_v31 = vor.u32 %v15441_v24, %v14181_v15  ;;  %v15297_v48 = vld [vmem:[#allocation11 + $0x1aa4] sm:$0xf]  ;;  %v12652_v44 = vor.u32 %v15066_v57, %v12651_v4  ;;  %v12588_v58 = vor.u32 %v15050_v33, %v12587_v28 }
 0x351   :  { %v10732_v2 = vor.u32 %v14586_v9, %v10731_v41  ;;  %v13605_v20 = vld [vmem:[#allocation11 + $0x1ae0] sm:$0xf0]  ;;  %v12523_v41 = vld [vmem:[#allocation11 + $0x1228] sm:$0xf] }
 0x352   :  { %8634 = vmatpush.bf16.msrb.mxu1 %v10924_v19  ;;  %v12715_v19 = vld [vmem:[#allocation11 + $0x13a8] sm:$0xf]  ;;  %8546 = vmatpush.bf16.msrb.mxu2 %v11240_v3  ;;  %v15425_v52 = vld [vmem:[#allocation11 + $0x1ea4] sm:$0xf]  ;;  %v13608_v55 = vor.u32 %v15297_v48, %v13605_v20 }
 0x353   :  { %v14117_v51 = vld [vmem:[#allocation11 + $0x1ee0] sm:$0xf0]  ;;  %v16124_v9 = vld [vmem:[#allocation12 + $0x8] sm:$0xff] }
 0x354   :  { %8622 = vmatpush.bf16.msrb.mxu0 %v10348_v30  ;;  %v12716_v30 = vor.u32 %v15082_v13, %v12715_v19  ;;  %8559 = vmatpush.bf16.msrb.mxu3 %v11752_v11  ;;  %v14120_v21 = vor.u32 %v15425_v52, %v14117_v51  ;;  %v15281_v60 = vld [vmem:[#allocation11 + $0x1a24] sm:$0xf]  ;;  %v15034_v19 = vld [vmem:[#allocation11 + $0x1264] sm:$0xf0] }
 0x355   :  { %8547 = vmatmul.bf16.vlgmr.msrb.gmra.mxu2 %v15875_v25  ;;  %v13541_v1 = vld [vmem:[#allocation11 + $0x1a60] sm:$0xf0]  ;;  %v13035_v3 = vld [vmem:[#allocation11 + $0x1628] sm:$0xf] }
 0x356   :  { %8635 = vmatpush.bf16.msrb.mxu1 %v10860_v10  ;;  %v13228_v10 = vor.u32 %v15210_v17, %v13227_v14  ;;  %8591 = vmatpush.bf16.msra.mxu2 %v13736_v34  ;;  %v15409_v49 = vld [vmem:[#allocation11 + $0x1e24] sm:$0xf]  ;;  %v15162_v11 = vld [vmem:[#allocation11 + $0x1664] sm:$0xf0]  ;;  %v13544_v13 = vor.u32 %v15281_v60, %v13541_v1 }
 0x357   :  { %8560 = vmatmul.bf16.vlgmr.msrb.gmra.mxu3 %v15877_v26  ;;  %v14053_v63 = vld [vmem:[#allocation11 + $0x1e60] sm:$0xf0]  ;;  %v13036_v43 = vor.u32 %v15162_v11, %v13035_v3  ;;  %v12459_v24 = vld [vmem:[#allocation11 + $0x11a8] sm:$0xf] }
 0x358   :  { %8623 = vmatpush.bf16.msrb.mxu0 %v10284_v50  ;;  %8604 = vmatpush.bf16.msra.mxu3 %v14248_v16  ;;  %v13099_v50 = vld [vmem:[#allocation11 + $0x16a8] sm:$0xf]  ;;  %v14056_v14 = vor.u32 %v15409_v49, %v14053_v63  ;;  %v15265_v17 = vld [vmem:[#allocation11 + $0x19a4] sm:$0xf] }
 0x359   :  { %v13477_v34 = vld [vmem:[#allocation11 + $0x19e0] sm:$0xf0]  ;;  %v15018_v15 = vld [vmem:[#allocation11 + $0x11e4] sm:$0xf0] }
 0x35a   :  { %8636 = vmatpush.bf16.msrb.mxu1 %v10796_v27  ;;  %v15178_v27 = vld [vmem:[#allocation11 + $0x16e4] sm:$0xf0]  ;;  %8592 = vmatpush.bf16.msra.mxu2 %v13672_v46  ;;  %v15393_v16 = vld [vmem:[#allocation11 + $0x1da4] sm:$0xf]  ;;  %v13480_v4 = vor.u32 %v15265_v17, %v13477_v34  ;;  %v12460_v51 = vor.u32 %v15018_v15, %v12459_v24 }
 0x35b   :  { %v13100_v7 = vor.u32 %v15178_v27, %v13099_v50  ;;  %v13989_v23 = vld [vmem:[#allocation11 + $0x1de0] sm:$0xf0]  ;;  %v15002_v28 = vld [vmem:[#allocation11 + $0x1164] sm:$0xf0] }
 0x35c   :  { %8624 = vmatpush.bf16.msrb.mxu0 %v10220_v53  ;;  %8605 = vmatpush.bf16.msra.mxu3 %v14184_v31  ;;  %v2405_v53 = vperm.slane %v16124_v9, 0  ;;  %v13992_v57 = vor.u32 %v15393_v16, %v13989_v23  ;;  %v15249_v18 = vld [vmem:[#allocation11 + $0x1924] sm:$0xf]  ;;  %v8418_v42 = vpop.f32.mrf.mxu0  ;;  %v12907_v33 = vld [vmem:[#allocation11 + $0x1528] sm:$0xf] }
 0x35d   :  { %v13413_v31 = vld [vmem:[#allocation11 + $0x1960] sm:$0xf0]  ;;  %v15130_v50 = vld [vmem:[#allocation11 + $0x1564] sm:$0xf0] }
 0x35e   :  { %8637 = vmatpush.bf16.msrb.mxu1 %v10732_v2  ;;  %8593 = vmatpush.bf16.msra.mxu2 %v13608_v55  ;;  %v12524_v2 = vor.u32 %v15034_v19, %v12523_v41  ;;  %v8431_v46 = vpop.f32.mrf.mxu1  ;;  %v15377_v48 = vld [vmem:[#allocation11 + $0x1d24] sm:$0xf]  ;;  %v8419_v52 = vadd.f32 %v8418_v42, %v2405_v53  ;;  %v8340_v55 = vpop.f32.mrf.mxu2  ;;  %v13416_v60 = vor.u32 %v15249_v18, %v13413_v31  ;;  %v12331_v11 = vld [vmem:[#allocation11 + $0x10a8] sm:$0xf] }
 0x35f   :  { %8625 = vmatmul.bf16.vlgmr.msrb.gmra.mxu0 %v15865_v40  ;;  %v13925_v20 = vld [vmem:[#allocation11 + $0x1d60] sm:$0xf0]  ;;  %v8341_v63 = vadd.f32 %v8340_v55, %v16102_v54  ;;  %v12908_v3 = vor.u32 %v15130_v50, %v12907_v33  ;;  %v12843_v17 = vld [vmem:[#allocation11 + $0x14a8] sm:$0xf]  ;;  %v14690_v33 = vld [vmem:[#allocation11 + $0x7ac] sm:$0xf] }
 0x360   :  { %8669 = vmatpush.bf16.msra.mxu0 %v12716_v30  ;;  %8606 = vmatpush.bf16.msra.mxu3 %v14120_v21  ;;  %v12971_v30 = vld [vmem:[#allocation11 + $0x15a8] sm:$0xf]  ;;  %v16127_v27 = vadd.f32 %v8431_v46, %v8419_v52  ;;  %v8353_v21 = vpop.f32.mrf.mxu3  ;;  %v13928_v1 = vor.u32 %v15377_v48, %v13925_v20  ;;  %v15233_v49 = vld [vmem:[#allocation11 + $0x18a4] sm:$0xf]  ;;  %v11181_v50 = vld [vmem:[#allocation11 + $0x7e8] sm:$0xf0] }
 0x361   :  { %8638 = vmatmul.bf16.vlgmr.msrb.gmra.mxu1 %v15867_v45  ;;  %v13861_v41 = vld [vmem:[#allocation11 + $0x1ce0] sm:$0xf0]  ;;  %v15114_v34 = vld [vmem:[#allocation11 + $0x14e4] sm:$0xf0] }
 0x362   :  { %8682 = vmatpush.bf16.msra.mxu1 %v13228_v10  ;;  %v15146_v10 = vld [vmem:[#allocation11 + $0x15e4] sm:$0xf0]  ;;  %8594 = vmatpush.bf16.msra.mxu2 %v13544_v13  ;;  %v15217_v16 = vld [vmem:[#allocation11 + $0x1824] sm:$0xf]  ;;  %v12844_v42 = vor.u32 %v15114_v34, %v12843_v17  ;;  %v11117_v17 = vld [vmem:[#allocation11 + $0x768] sm:$0xf0] }
 0x363   :  { %v14986_v13 = vld [vmem:[#allocation11 + $0x10e4] sm:$0xf0]  ;;  %v13797_v54 = vld [vmem:[#allocation11 + $0x1c60] sm:$0xf0] }
 0x364   :  { %8670 = vmatpush.bf16.msra.mxu0 %v12652_v44  ;;  %8607 = vmatpush.bf16.msra.mxu3 %v14056_v14  ;;  %v12972_v44 = vor.u32 %v15146_v10, %v12971_v30  ;;  %v8354_v14 = vadd.f32 %v8353_v21, %v8341_v63  ;;  %v8420_v24 = vpop.f32.mrf.mxu0  ;;  %v11691_v10 = vld [vmem:[#allocation11 + $0xba8] sm:$0xf]  ;;  %v12332_v18 = vor.u32 %v14986_v13, %v12331_v11  ;;  %v14546_v11 = vld [vmem:[#allocation11 + $0x32c] sm:$0xf] }
 0x365   :  { %v14954_v46 = vld [vmem:[#allocation11 + $0xfe4] sm:$0xf0]  ;;  %v10605_v13 = vld [vmem:[#allocation11 + $0x368] sm:$0xf0] }
 0x366   :  { %8683 = vmatpush.bf16.msra.mxu1 %v13164_v29  ;;  %v12395_v29 = vld [vmem:[#allocation11 + $0x1128] sm:$0xf]  ;;  %8595 = vmatpush.bf16.msra.mxu2 %v13480_v4  ;;  %v8433_v15 = vpop.f32.mrf.mxu1  ;;  %v8367_v30 = vadd.f32 %v16113_v56, %v8354_v14  ;;  %v8342_v55 = vpop.f32.mrf.mxu2  ;;  %v14674_v14 = vld [vmem:[#allocation11 + $0x72c] sm:$0xf] }
 0x367   :  { %v12396_v19 = vor.u32 %v15002_v28, %v12395_v29  ;;  %v14826_v4 = vld [vmem:[#allocation11 + $0xbe4] sm:$0xf0]  ;;  %v10669_v28 = vld [vmem:[#allocation11 + $0x3e8] sm:$0xf0] }
 0x368   :  { %8671 = vmatpush.bf16.msra.mxu0 %v12588_v58  ;;  %8608 = vmatpush.bf16.msra.mxu3 %v13992_v57  ;;  %v13349_v58 = vld [vmem:[#allocation11 + $0x18e0] sm:$0xf0]  ;;  %v12203_v57 = vld [vmem:[#allocation11 + $0xfa8] sm:$0xf]  ;;  %v8355_v21 = vpop.f32.mrf.mxu3  ;;  %v14530_v15 = vld [vmem:[#allocation11 + $0x2ac] sm:$0xf] }
 0x369   :  { %v13352_v23 = vor.u32 %v15233_v49, %v13349_v58  ;;  %v12267_v31 = vld [vmem:[#allocation11 + $0x1028] sm:$0xf] }
 0x36a   :  { %8684 = vmatpush.bf16.msra.mxu1 %v13100_v7  ;;  %v15361_v7 = vld [vmem:[#allocation11 + $0x1ca4] sm:$0xf]  ;;  %8596 = vmatpush.bf16.msra.mxu2 %v13416_v60  ;;  %v14970_v48 = vld [vmem:[#allocation11 + $0x1064] sm:$0xf0]  ;;  %v11692_v60 = vor.u32 %v14826_v4, %v11691_v10  ;;  %v14658_v10 = vld [vmem:[#allocation11 + $0x6ac] sm:$0xf] }
 0x36b   :  { %v13864_v53 = vor.u32 %v15361_v7, %v13861_v41  ;;  %v12779_v20 = vld [vmem:[#allocation11 + $0x1428] sm:$0xf]  ;;  %v12268_v49 = vor.u32 %v14970_v48, %v12267_v31  ;;  %v11053_v4 = vld [vmem:[#allocation11 + $0x6e8] sm:$0xf0] }
 0x36c   :  { %8672 = vmatpush.bf16.msra.mxu0 %v12524_v2  ;;  %8609 = vmatpush.bf16.msra.mxu3 %v13928_v1  ;;  %v13285_v2 = vld [vmem:[#allocation11 + $0x1860] sm:$0xf0]  ;;  %v15098_v52 = vld [vmem:[#allocation11 + $0x1464] sm:$0xf0]  ;;  %v12204_v1 = vor.u32 %v14954_v46, %v12203_v57  ;;  %v11056_v48 = vor.u32 %v14658_v10, %v11053_v4 }
 0x36d   :  { %v13288_v29 = vor.u32 %v15217_v16, %v13285_v2  ;;  %v12780_v63 = vor.u32 %v15098_v52, %v12779_v20  ;;  %v11627_v58 = vld [vmem:[#allocation11 + $0xb28] sm:$0xf]  ;;  %v10608_v2 = vor.u32 %v14546_v11, %v10605_v13 }
 0x36e   :  { %8685 = vmatpush.bf16.msra.mxu1 %v13036_v43  ;;  %v15345_v43 = vld [vmem:[#allocation11 + $0x1c24] sm:$0xf]  ;;  %8597 = vmatpush.bf16.msra.mxu2 %v13352_v23  ;;  %v14810_v7 = vld [vmem:[#allocation11 + $0xb64] sm:$0xf0] }
 0x36f   :  { %v13800_v56 = vor.u32 %v15345_v43, %v13797_v54  ;;  %v11628_v34 = vor.u32 %v14810_v7, %v11627_v58  ;;  %v11563_v23 = vld [vmem:[#allocation11 + $0xaa8] sm:$0xf]  ;;  %v11120_v43 = vor.u32 %v14674_v14, %v11117_v17  ;;  %v14498_v58 = vld [vmem:[#allocation11 + $0x1ac] sm:$0xf] }
 0x370   :  { %8673 = vmatpush.bf16.msra.mxu0 %v12460_v51  ;;  %v14562_v51 = vld [vmem:[#allocation11 + $0x3ac] sm:$0xf]  ;;  %8610 = vmatpush.bf16.msra.mxu3 %v13864_v53  ;;  %v14794_v53 = vld [vmem:[#allocation11 + $0xae4] sm:$0xf0] }
 0x371   :  { %v10672_v41 = vor.u32 %v14562_v51, %v10669_v28  ;;  %v12075_v54 = vld [vmem:[#allocation11 + $0xea8] sm:$0xf]  ;;  %v11564_v57 = vor.u32 %v14794_v53, %v11563_v23  ;;  %v14514_v51 = vld [vmem:[#allocation11 + $0x22c] sm:$0xf] }
 0x372   :  { %8686 = vmatpush.bf16.msra.mxu1 %v12972_v44  ;;  %v16132_v44 = vadd.f32 %v16115_v59, %v8367_v30  ;;  %v11184_v59 = vor.u32 %v14690_v33, %v11181_v50  ;;  %8598 = vmatpush.bf16.msra.mxu2 %v13288_v29  ;;  %v14922_v24 = vld [vmem:[#allocation11 + $0xee4] sm:$0xf0]  ;;  %v10541_v30 = vld [vmem:[#allocation11 + $0x2e8] sm:$0xf0] }
 0x373   :  { %v14778_v46 = vld [vmem:[#allocation11 + $0xa64] sm:$0xf0]  ;;  %v10544_v31 = vor.u32 %v14530_v15, %v10541_v30  ;;  %v10477_v29 = vld [vmem:[#allocation11 + $0x268] sm:$0xf0] }
 0x374   :  { %8674 = vmatpush.bf16.msra.mxu0 %v12396_v19  ;;  %v12139_v19 = vld [vmem:[#allocation11 + $0xf28] sm:$0xf]  ;;  %8611 = vmatpush.bf16.msra.mxu3 %v13800_v56  ;;  %v14642_v56 = vld [vmem:[#allocation11 + $0x62c] sm:$0xf] }
 0x375   :  { %8599 = vmatmul.bf16.vlgmr.msra.gmra.mxu2 %v15939_v8  ;;  %v12011_v20 = vld [vmem:[#allocation11 + $0xe28] sm:$0xf]  ;;  %v10989_v28 = vld [vmem:[#allocation11 + $0x668] sm:$0xf0] }
 0x376   :  { %8687 = vmatpush.bf16.msra.mxu1 %v12908_v3  ;;  %v14938_v3 = vld [vmem:[#allocation11 + $0xf64] sm:$0xf0]  ;;  %8643 = vmatpush.bf16.msrb.mxu2 %v11692_v60  ;;  %v10480_v60 = vor.u32 %v14514_v51, %v10477_v29 }
 0x377   :  { %v12140_v16 = vor.u32 %v14938_v3, %v12139_v19  ;;  %8612 = vmatmul.bf16.vlgmr.msra.gmra.mxu3 %v15941_v22  ;;  %v14906_v52 = vld [vmem:[#allocation11 + $0xe64] sm:$0xf0]  ;;  %v14626_v19 = vld [vmem:[#allocation11 + $0x5ac] sm:$0xf] }
 0x378   :  { %8675 = vmatpush.bf16.msra.mxu0 %v12332_v18  ;;  %8656 = vmatpush.bf16.msrb.mxu3 %v12204_v1  ;;  %v12076_v18 = vor.u32 %v14922_v24, %v12075_v54  ;;  %v12012_v50 = vor.u32 %v14906_v52, %v12011_v20  ;;  %v11435_v55 = vld [vmem:[#allocation11 + $0x9a8] sm:$0xf]  ;;  %v10992_v1 = vor.u32 %v14642_v56, %v10989_v28  ;;  %v10925_v3 = vld [vmem:[#allocation11 + $0x5e8] sm:$0xf0]  ;;  %v8392_v15 = vpop.f32.mrf.mxu2 }
 0x379   :  { %v14762_v21 = vld [vmem:[#allocation11 + $0x9e4] sm:$0xf0]  ;;  %v14610_v54 = vld [vmem:[#allocation11 + $0x52c] sm:$0xf]  ;;  %v8393_v10 = vadd.f32 %v8392_v15, %v16132_v44 }
 0x37a   :  { %8688 = vmatpush.bf16.msra.mxu1 %v12844_v42  ;;  %8644 = vmatpush.bf16.msrb.mxu2 %v11628_v34  ;;  %v11499_v42 = vld [vmem:[#allocation11 + $0xa28] sm:$0xf]  ;;  %v11436_v11 = vor.u32 %v14762_v21, %v11435_v55  ;;  %v10861_v24 = vld [vmem:[#allocation11 + $0x568] sm:$0xf0]  ;;  %v8405_v30 = vpop.f32.mrf.mxu3 }
 0x37b   :  { %v11500_v33 = vor.u32 %v14778_v46, %v11499_v42  ;;  %v11371_v14 = vld [vmem:[#allocation11 + $0x928] sm:$0xf]  ;;  %v14466_v52 = vld [vmem:[#allocation11 + $0xac] sm:$0xf]  ;;  %v16143_v51 = vadd.f32 %v8405_v30, %v8393_v10 }
 0x37c   :  { %8676 = vmatpush.bf16.msra.mxu0 %v12268_v49  ;;  %8657 = vmatpush.bf16.msrb.mxu3 %v12140_v16  ;;  %v11947_v49 = vld [vmem:[#allocation11 + $0xda8] sm:$0xf]  ;;  %v16138_v7 = vpop.f32.mrf.mxu0  ;;  %v10928_v16 = vor.u32 %v14626_v19, %v10925_v3  ;;  %v10285_v28 = vld [vmem:[#allocation11 + $0xe8] sm:$0xf0] }
 0x37d   :  { %v14746_v17 = vld [vmem:[#allocation11 + $0x964] sm:$0xf0]  ;;  %v13229_v15 = vld [vmem:[#allocation11 + $0x17e8] sm:$0xf0] }
 0x37e   :  { %8689 = vmatpush.bf16.msra.mxu1 %v12780_v63  ;;  %8645 = vmatpush.bf16.msrb.mxu2 %v11564_v57  ;;  %v14890_v63 = vld [vmem:[#allocation11 + $0xde4] sm:$0xf0]  ;;  %v11372_v4 = vor.u32 %v14746_v17, %v11371_v14  ;;  %v10221_v14 = vld [vmem:[#allocation11 + $0x68] sm:$0xf0] }
 0x37f   :  { %8677 = vmatmul.bf16.vlgmr.msra.gmra.mxu0 %v15907_v36  ;;  %v11948_v13 = vor.u32 %v14890_v63, %v11947_v49  ;;  %v11883_v23 = vld [vmem:[#allocation11 + $0xd28] sm:$0xf]  ;;  %v10288_v63 = vor.u32 %v14466_v52, %v10285_v28  ;;  %v15058_v52 = vld [vmem:[#allocation11 + $0x132c] sm:$0xf] }
 0x380   :  { %8721 = vmatpush.bf16.msrb.mxu0 %v10672_v41  ;;  %8658 = vmatpush.bf16.msrb.mxu3 %v12076_v18  ;;  %v16140_v41 = vpop.f32.mrf.mxu1  ;;  %v14874_v53 = vld [vmem:[#allocation11 + $0xd64] sm:$0xf0]  ;;  %v8394_v17 = vpop.f32.mrf.mxu2  ;;  %v13165_v28 = vld [vmem:[#allocation11 + $0x1768] sm:$0xf0] }
 0x381   :  { %8690 = vmatmul.bf16.vlgmr.msra.gmra.mxu1 %v15909_v37  ;;  %v11884_v57 = vor.u32 %v14874_v53, %v11883_v23  ;;  %v11307_v18 = vld [vmem:[#allocation11 + $0x8a8] sm:$0xf]  ;;  %v10733_v23 = vld [vmem:[#allocation11 + $0x468] sm:$0xf0] }
 0x382   :  { %8734 = vmatpush.bf16.msrb.mxu1 %v11184_v59  ;;  %v10413_v59 = vld [vmem:[#allocation11 + $0x1e8] sm:$0xf0]  ;;  %8646 = vmatpush.bf16.msrb.mxu2 %v11500_v33  ;;  %v14730_v42 = vld [vmem:[#allocation11 + $0x8e4] sm:$0xf0] }
 0x383   :  { %v10416_v34 = vor.u32 %v14498_v58, %v10413_v59  ;;  %v14858_v20 = vld [vmem:[#allocation11 + $0xce4] sm:$0xf0]  ;;  %v14594_v33 = vld [vmem:[#allocation11 + $0x4ac] sm:$0xf]  ;;  %v11308_v44 = vor.u32 %v14730_v42, %v11307_v18 }
 0x384   :  { %8722 = vmatpush.bf16.msrb.mxu0 %v10608_v2  ;;  %8659 = vmatpush.bf16.msrb.mxu3 %v12012_v50  ;;  %v14482_v2 = vld [vmem:[#allocation11 + $0x12c] sm:$0xf]  ;;  %v8472_v29 = vpop.f32.mrf.mxu0  ;;  %v11243_v55 = vld [vmem:[#allocation11 + $0x828] sm:$0xf] }
 0x385   :  { %v10797_v50 = vld [vmem:[#allocation11 + $0x4e8] sm:$0xf0]  ;;  %v14842_v49 = vld [vmem:[#allocation11 + $0xc64] sm:$0xf0] }
 0x386   :  { %8735 = vmatpush.bf16.msrb.mxu1 %v11120_v43  ;;  %v10349_v43 = vld [vmem:[#allocation11 + $0x168] sm:$0xf0]  ;;  %8647 = vmatpush.bf16.msrb.mxu2 %v11436_v11  ;;  %v10800_v58 = vor.u32 %v14594_v33, %v10797_v50  ;;  %v13739_v59 = vld [vmem:[#allocation11 + $0x1ba8] sm:$0xf] }
 0x387   :  { %v10352_v46 = vor.u32 %v14482_v2, %v10349_v43  ;;  %v15338_v19 = vld [vmem:[#allocation11 + $0x1be4] sm:$0xf0]  ;;  %v15074_v53 = vld [vmem:[#allocation11 + $0x13ac] sm:$0xf] }
 0x388   :  { %8723 = vmatpush.bf16.msrb.mxu0 %v10544_v31  ;;  %8660 = vmatpush.bf16.msrb.mxu3 %v11948_v13  ;;  %v10864_v31 = vor.u32 %v14610_v54, %v10861_v24  ;;  %v8485_v56 = vpop.f32.mrf.mxu1  ;;  %v14251_v3 = vld [vmem:[#allocation11 + $0x1fa8] sm:$0xf]  ;;  %v14450_v13 = vld [vmem:[#allocation11 + $0x2c] sm:$0xf]  ;;  %v13740_v30 = vor.u32 %v15338_v19, %v13739_v59 }
 0x389   :  { %v15466_v11 = vld [vmem:[#allocation11 + $0x1fe4] sm:$0xf0]  ;;  %v12717_v54 = vld [vmem:[#allocation11 + $0x13e8] sm:$0xf0] }
 0x38a   :  { %8736 = vmatpush.bf16.msrb.mxu1 %v11056_v48  ;;  %v11819_v48 = vld [vmem:[#allocation11 + $0xca8] sm:$0xf]  ;;  %8648 = vmatpush.bf16.msrb.mxu2 %v11372_v4  ;;  %v15202_v24 = vld [vmem:[#allocation11 + $0x17ac] sm:$0xf]  ;;  %v14252_v10 = vor.u32 %v15466_v11, %v14251_v3  ;;  %v14273_v3 = vmul.f32 -1.442695, %v15984_v61 }
 0x38b   :  { %v11820_v21 = vor.u32 %v14858_v20, %v11819_v48  ;;  %v13675_v4 = vld [vmem:[#allocation11 + $0x1b28] sm:$0xf]  ;;  %v12720_v48 = vor.u32 %v15074_v53, %v12717_v54  ;;  %v13232_v20 = vor.u32 %v15202_v24, %v13229_v15  ;;  %v12653_v29 = vld [vmem:[#allocation11 + $0x1368] sm:$0xf0]  ;;  %v14277_v11 = vmul.f32 -1.442695, %v16070_v32 }
 0x38c   :  { %8724 = vmatpush.bf16.msrb.mxu0 %v10480_v60  ;;  %8661 = vmatpush.bf16.msrb.mxu3 %v11884_v57  ;;  %v14714_v60 = vld [vmem:[#allocation11 + $0x864] sm:$0xf0]  ;;  %v10224_v57 = vor.u32 %v14450_v13, %v10221_v14  ;;  %v15186_v56 = vld [vmem:[#allocation11 + $0x172c] sm:$0xf]  ;;  %15481 = vpow2.f32 %v14273_v3 }
 0x38d   :  { %v11244_v2 = vor.u32 %v14714_v60, %v11243_v55  ;;  %v15322_v42 = vld [vmem:[#allocation11 + $0x1b64] sm:$0xf0]  ;;  %v15170_v59 = vld [vmem:[#allocation11 + $0x16ac] sm:$0xf]  ;;  %15483 = vpow2.f32 %v14277_v11 }
 0x38e   :  { %8737 = vmatpush.bf16.msrb.mxu1 %v10992_v1  ;;  %v11755_v1 = vld [vmem:[#allocation11 + $0xc28] sm:$0xf]  ;;  %8649 = vmatpush.bf16.msrb.mxu2 %v11308_v44  ;;  %v13676_v33 = vor.u32 %v15322_v42, %v13675_v4  ;;  %v13101_v19 = vld [vmem:[#allocation11 + $0x16e8] sm:$0xf0] }
 0x38f   :  { %v11756_v43 = vor.u32 %v14842_v49, %v11755_v1  ;;  %v13611_v55 = vld [vmem:[#allocation11 + $0x1aa8] sm:$0xf]  ;;  %v12656_v1 = vor.u32 %v15058_v52, %v12653_v29  ;;  %v13168_v49 = vor.u32 %v15186_v56, %v13165_v28  ;;  %v12525_v61 = vld [vmem:[#allocation11 + $0x1268] sm:$0xf0] }
 0x390   :  { %8725 = vmatpush.bf16.msrb.mxu0 %v10416_v34  ;;  %v8407_v34 = vpop.f32.mrf.mxu3  ;;  %8662 = vmatpush.bf16.msrb.mxu3 %v11820_v21  ;;  %v15306_v44 = vld [vmem:[#allocation11 + $0x1ae4] sm:$0xf0]  ;;  %v15154_v54 = vld [vmem:[#allocation11 + $0x162c] sm:$0xf] }
 0x391   :  { %v14123_v21 = vld [vmem:[#allocation11 + $0x1ea8] sm:$0xf]  ;;  %v13612_v13 = vor.u32 %v15306_v44, %v13611_v55  ;;  %v13037_v32 = vld [vmem:[#allocation11 + $0x1668] sm:$0xf0] }
 0x392   :  { %8738 = vmatpush.bf16.msrb.mxu1 %v10928_v16  ;;  %v14578_v16 = vld [vmem:[#allocation11 + $0x42c] sm:$0xf]  ;;  %8650 = vmatpush.bf16.msrb.mxu2 %v11244_v2  ;;  %v15434_v60 = vld [vmem:[#allocation11 + $0x1ee4] sm:$0xf0]  ;;  %v13104_v2 = vor.u32 %v15170_v59, %v13101_v19 }
 0x393   :  { %v10736_v18 = vor.u32 %v14578_v16, %v10733_v23  ;;  %v14124_v14 = vor.u32 %v15434_v60, %v14123_v21  ;;  %v13547_v17 = vld [vmem:[#allocation11 + $0x1a28] sm:$0xf]  ;;  %v12973_v52 = vld [vmem:[#allocation11 + $0x15e8] sm:$0xf0] }
 0x394   :  { %8726 = vmatpush.bf16.msrb.mxu0 %v10352_v46  ;;  %v14187_v46 = vld [vmem:[#allocation11 + $0x1f28] sm:$0xf]  ;;  %8663 = vmatpush.bf16.msrb.mxu3 %v11756_v43  ;;  %v15026_v43 = vld [vmem:[#allocation11 + $0x122c] sm:$0xf] }
 0x395   :  { %8651 = vmatmul.bf16.vlgmr.msrb.gmra.mxu2 %v15875_v25  ;;  %v15290_v34 = vld [vmem:[#allocation11 + $0x1a64] sm:$0xf0]  ;;  %v12528_v42 = vor.u32 %v15026_v43, %v12525_v61  ;;  %v12397_v59 = vld [vmem:[#allocation11 + $0x1168] sm:$0xf0] }
 0x396   :  { %8739 = vmatpush.bf16.msrb.mxu1 %v10864_v31  ;;  %v15450_v31 = vld [vmem:[#allocation11 + $0x1f64] sm:$0xf0]  ;;  %8695 = vmatpush.bf16.msra.mxu2 %v13740_v30  ;;  %v13548_v24 = vor.u32 %v15290_v34, %v13547_v17  ;;  %v15122_v19 = vld [vmem:[#allocation11 + $0x152c] sm:$0xf] }
 0x397   :  { %v14188_v50 = vor.u32 %v15450_v31, %v14187_v46  ;;  %8664 = vmatmul.bf16.vlgmr.msrb.gmra.mxu3 %v15877_v26  ;;  %v14059_v16 = vld [vmem:[#allocation11 + $0x1e28] sm:$0xf]  ;;  %v13040_v46 = vor.u32 %v15154_v54, %v13037_v32  ;;  %v15010_v31 = vld [vmem:[#allocation11 + $0x11ac] sm:$0xf] }
 0x398   :  { %8727 = vmatpush.bf16.msrb.mxu0 %v10288_v63  ;;  %8708 = vmatpush.bf16.msra.mxu3 %v14252_v10  ;;  %v15042_v63 = vld [vmem:[#allocation11 + $0x12ac] sm:$0xf]  ;;  %v15418_v23 = vld [vmem:[#allocation11 + $0x1e64] sm:$0xf0] }
 0x399   :  { %v14060_v15 = vor.u32 %v15418_v23, %v14059_v16  ;;  %v13483_v30 = vld [vmem:[#allocation11 + $0x19a8] sm:$0xf]  ;;  %v12909_v3 = vld [vmem:[#allocation11 + $0x1568] sm:$0xf0] }
 0x39a   :  { %8740 = vmatpush.bf16.msrb.mxu1 %v10800_v58  ;;  %v12589_v58 = vld [vmem:[#allocation11 + $0x12e8] sm:$0xf0]  ;;  %8696 = vmatpush.bf16.msra.mxu2 %v13676_v33  ;;  %v15274_v10 = vld [vmem:[#allocation11 + $0x19e4] sm:$0xf0]  ;;  %v12912_v32 = vor.u32 %v15122_v19, %v12909_v3 }
 0x39b   :  { %v12592_v53 = vor.u32 %v15042_v63, %v12589_v58  ;;  %v13995_v4 = vld [vmem:[#allocation11 + $0x1da8] sm:$0xf]  ;;  %v13484_v29 = vor.u32 %v15274_v10, %v13483_v30  ;;  %v14994_v63 = vld [vmem:[#allocation11 + $0x112c] sm:$0xf] }
 0x39c   :  { %8728 = vmatpush.bf16.msrb.mxu0 %v10224_v57  ;;  %8709 = vmatpush.bf16.msra.mxu3 %v14188_v50  ;;  %v15402_v57 = vld [vmem:[#allocation11 + $0x1de4] sm:$0xf0]  ;;  %v8522_v33 = vpop.f32.mrf.mxu0  ;;  %v12400_v54 = vor.u32 %v14994_v63, %v12397_v59  ;;  %v15106_v30 = vld [vmem:[#allocation11 + $0x14ac] sm:$0xf]  ;;  %v14571_v63 = vld [vmem:[#allocation11 + $0x3ec] sm:$0xf0] }
 0x39d   :  { %v13996_v56 = vor.u32 %v15402_v57, %v13995_v4  ;;  %v13419_v28 = vld [vmem:[#allocation11 + $0x1928] sm:$0xf]  ;;  %v12845_v10 = vld [vmem:[#allocation11 + $0x14e8] sm:$0xf0]  ;;  %v14699_v59 = vld [vmem:[#allocation11 + $0x7ec] sm:$0xf0] }
 0x39e   :  { %8741 = vmatpush.bf16.msrb.mxu1 %v10736_v18  ;;  %8697 = vmatpush.bf16.msra.mxu2 %v13612_v13  ;;  %v2406_v18 = vperm.slane %v16124_v9, 1  ;;  %v8535_v50 = vpop.f32.mrf.mxu1  ;;  %v15258_v55 = vld [vmem:[#allocation11 + $0x1964] sm:$0xf0]  ;;  %v15482_v9 = vpop.eup %15481 }
 0x39f   :  { %8729 = vmatmul.bf16.vlgmr.msrb.gmra.mxu0 %v15865_v40  ;;  %v13931_v44 = vld [vmem:[#allocation11 + $0x1d28] sm:$0xf]  ;;  %v15484_v58 = vpop.eup %15483  ;;  %v16154_v13 = vpop.f32.mrf.mxu2  ;;  %v13420_v17 = vor.u32 %v15258_v55, %v13419_v28  ;;  %v16158_v43 = vadd.f32 1.0, %v15482_v9  ;;  %v14962_v55 = vld [vmem:[#allocation11 + $0x102c] sm:$0xf] }
 0x3a0   :  { %8773 = vmatpush.bf16.msra.mxu0 %v12720_v48  ;;  %8710 = vmatpush.bf16.msra.mxu3 %v14124_v14  ;;  %v12461_v48 = vld [vmem:[#allocation11 + $0x11e8] sm:$0xf0]  ;;  %v15386_v21 = vld [vmem:[#allocation11 + $0x1d64] sm:$0xf0]  ;;  %v8523_v60 = vadd.f32 %v8522_v33, %v2406_v18  ;;  %v16156_v14 = vpop.f32.mrf.mxu3  ;;  %v16160_v61 = vadd.f32 1.0, %v15484_v58  ;;  %v12848_v33 = vor.u32 %v15106_v30, %v12845_v10 }
 0x3a1   :  { %8742 = vmatmul.bf16.vlgmr.msrb.gmra.mxu1 %v15867_v45  ;;  %v13932_v34 = vor.u32 %v15386_v21, %v13931_v44  ;;  %v13355_v16 = vld [vmem:[#allocation11 + $0x18a8] sm:$0xf]  ;;  %v12269_v44 = vld [vmem:[#allocation11 + $0x1068] sm:$0xf0]  ;;  %v10675_v9 = vld [vmem:[#allocation11 + $0x3b0] sm:$0xf]  ;;  %vm9262_vm1 = vweird.f32 %v16158_v43 }
 0x3a2   :  { %8786 = vmatpush.bf16.msra.mxu1 %v13232_v20  ;;  %v15138_v20 = vld [vmem:[#allocation11 + $0x15ac] sm:$0xf]  ;;  %8698 = vmatpush.bf16.msra.mxu2 %v13548_v24  ;;  %v16152_v11 = vadd.f32 %v8535_v50, %v8523_v60  ;;  %v15242_v23 = vld [vmem:[#allocation11 + $0x18e4] sm:$0xf0]  ;;  %v11187_v58 = vld [vmem:[#allocation11 + $0x7b0] sm:$0xf]  ;;  %15485 = vrcp.f32 %v16160_v61  ;;  %vm9338_vm4 = vweird.f32 %v16160_v61 }
 0x3a3   :  { %v14978_v24 = vld [vmem:[#allocation11 + $0x10ac] sm:$0xf]  ;;  %v13291_v4 = vld [vmem:[#allocation11 + $0x1828] sm:$0xf]  ;;  %v13356_v57 = vor.u32 %v15242_v23, %v13355_v16  ;;  %v12272_v16 = vor.u32 %v14962_v55, %v12269_v44  ;;  %v10611_v30 = vld [vmem:[#allocation11 + $0x330] sm:$0xf]  ;;  %15487 = vrcp.f32 %v16158_v43 }
 0x3a4   :  { %8774 = vmatpush.bf16.msra.mxu0 %v12656_v1  ;;  %8711 = vmatpush.bf16.msra.mxu3 %v14060_v15  ;;  %v12464_v1 = vor.u32 %v15010_v31, %v12461_v48  ;;  %v12333_v15 = vld [vmem:[#allocation11 + $0x10e8] sm:$0xf0]  ;;  %v15354_v31 = vld [vmem:[#allocation11 + $0x1c64] sm:$0xf0]  ;;  %v8524_v48 = vpop.f32.mrf.mxu0  ;;  %v14555_v10 = vld [vmem:[#allocation11 + $0x36c] sm:$0xf0] }
 0x3a5   :  { %v12336_v28 = vor.u32 %v14978_v24, %v12333_v15  ;;  %v12205_v50 = vld [vmem:[#allocation11 + $0xfe8] sm:$0xf0]  ;;  %v11059_v55 = vld [vmem:[#allocation11 + $0x6b0] sm:$0xf] }
 0x3a6   :  { %8787 = vmatpush.bf16.msra.mxu1 %v13168_v49  ;;  %v12976_v49 = vor.u32 %v15138_v20, %v12973_v52  ;;  %8699 = vmatpush.bf16.msra.mxu2 %v13484_v29  ;;  %v8537_v20 = vpop.f32.mrf.mxu1  ;;  %v14818_v52 = vld [vmem:[#allocation11 + $0xbac] sm:$0xf]  ;;  %v14667_v44 = vld [vmem:[#allocation11 + $0x6ec] sm:$0xf0] }
 0x3a7   :  { %v11693_v29 = vld [vmem:[#allocation11 + $0xbe8] sm:$0xf0]  ;;  %v8446_v19 = vpop.f32.mrf.mxu2  ;;  %v10612_v20 = vor.u32 %v14555_v10, %v10611_v30 }
 0x3a8   :  { %8775 = vmatpush.bf16.msra.mxu0 %v12592_v53  ;;  %8712 = vmatpush.bf16.msra.mxu3 %v13996_v56  ;;  %v13867_v53 = vld [vmem:[#allocation11 + $0x1ca8] sm:$0xf]  ;;  %v14946_v56 = vld [vmem:[#allocation11 + $0xfac] sm:$0xf]  ;;  %v8459_v3 = vpop.f32.mrf.mxu3  ;;  %v16164_v48 = vpop.eup %15485  ;;  %v10483_v19 = vld [vmem:[#allocation11 + $0x230] sm:$0xf] }
 0x3a9   :  { %v15090_v21 = vld [vmem:[#allocation11 + $0x142c] sm:$0xf]  ;;  %vm9339_vm2 = vweird.f32 %v16164_v48 }
 0x3aa   :  { %8788 = vmatpush.bf16.msra.mxu1 %v13104_v2  ;;  %v15370_v2 = vld [vmem:[#allocation11 + $0x1ce4] sm:$0xf0]  ;;  %8700 = vmatpush.bf16.msra.mxu2 %v13420_v17  ;;  %v12781_v60 = vld [vmem:[#allocation11 + $0x1468] sm:$0xf0]  ;;  %v11696_v17 = vor.u32 %v14818_v52, %v11693_v29  ;;  %vm16204_vm5 = vmor %vm9338_vm4, %vm9339_vm2 }
 0x3ab   :  { %v13868_v18 = vor.u32 %v15370_v2, %v13867_v53  ;;  %v12784_v23 = vor.u32 %v15090_v21, %v12781_v60  ;;  %v14802_v53 = vld [vmem:[#allocation11 + $0xb2c] sm:$0xf]  ;;  %v16172_v21 = vpop.eup %15487  ;;  %v9334_v60 = vmul.f32 %v16164_v48, %v16160_v61 }
 0x3ac   :  { %8776 = vmatpush.bf16.msra.mxu0 %v12528_v42  ;;  %8713 = vmatpush.bf16.msra.mxu3 %v13932_v34  ;;  %v15226_v42 = vld [vmem:[#allocation11 + $0x1864] sm:$0xf0]  ;;  %v12208_v34 = vor.u32 %v14946_v56, %v12205_v50  ;;  %v11629_v2 = vld [vmem:[#allocation11 + $0xb68] sm:$0xf0]  ;;  %v14539_v50 = vld [vmem:[#allocation11 + $0x2ec] sm:$0xf0]  ;;  %vm9263_vm0 = vweird.f32 %v16172_v21 }
 0x3ad   :  { %v14930_v24 = vld [vmem:[#allocation11 + $0xf2c] sm:$0xf]  ;;  %vm16196_vm3 = vmor %vm9262_vm1, %vm9263_vm0 }
 0x3ae   :  { %8789 = vmatpush.bf16.msra.mxu1 %v13040_v46  ;;  %v13803_v46 = vld [vmem:[#allocation11 + $0x1c28] sm:$0xf]  ;;  %8701 = vmatpush.bf16.msra.mxu2 %v13356_v57  ;;  %v12141_v15 = vld [vmem:[#allocation11 + $0xf68] sm:$0xf0]  ;;  %v14683_v57 = vld [vmem:[#allocation11 + $0x76c] sm:$0xf0] }
 0x3af   :  { %v14914_v29 = vld [vmem:[#allocation11 + $0xeac] sm:$0xf] }
 0x3b0   :  { %8777 = vmatpush.bf16.msra.mxu0 %v12464_v1  ;;  %8714 = vmatpush.bf16.msra.mxu3 %v13868_v18  ;;  %v13292_v1 = vor.u32 %v15226_v42, %v13291_v4  ;;  %v11123_v4 = vld [vmem:[#allocation11 + $0x730] sm:$0xf]  ;;  %v11632_v18 = vor.u32 %v14802_v53, %v11629_v2  ;;  %v12144_v42 = vor.u32 %v14930_v24, %v12141_v15  ;;  %v12077_v56 = vld [vmem:[#allocation11 + $0xee8] sm:$0xf0]  ;;  %v9335_v53 = vsub.f32 1.0, %v9334_v60 }
 0x3b1   :  { %v11124_v52 = vor.u32 %v14683_v57, %v11123_v4  ;;  %v11437_v24 = vld [vmem:[#allocation11 + $0x9e8] sm:$0xf0] }
 0x3b2   :  { %8790 = vmatpush.bf16.msra.mxu1 %v12976_v49  ;;  %v13804_v49 = vor.u32 %v15354_v31, %v13803_v46  ;;  %8702 = vmatpush.bf16.msra.mxu2 %v13292_v1  ;;  %v14786_v46 = vld [vmem:[#allocation11 + $0xaac] sm:$0xf] }
 0x3b3   :  { %v11565_v31 = vld [vmem:[#allocation11 + $0xae8] sm:$0xf0] }
 0x3b4   :  { %8778 = vmatpush.bf16.msra.mxu0 %v12400_v54  ;;  %v10676_v54 = vor.u32 %v14571_v63, %v10675_v9  ;;  %8715 = vmatpush.bf16.msra.mxu3 %v13804_v49  ;;  %v11568_v9 = vor.u32 %v14786_v46, %v11565_v31  ;;  %v11501_v1 = vld [vmem:[#allocation11 + $0xa68] sm:$0xf0]  ;;  %v11060_v63 = vor.u32 %v14667_v44, %v11059_v55  ;;  %v14507_v46 = vld [vmem:[#allocation11 + $0x1ec] sm:$0xf0] }
 0x3b5   :  { %8703 = vmatmul.bf16.vlgmr.msra.gmra.mxu2 %v15939_v8  ;;  %v14882_v10 = vld [vmem:[#allocation11 + $0xdac] sm:$0xf]  ;;  %v10931_v31 = vld [vmem:[#allocation11 + $0x5b0] sm:$0xf]  ;;  %v9336_v55 = vmul.f32 %v16164_v48, %v9335_v53 }
 0x3b6   :  { %8791 = vmatpush.bf16.msra.mxu1 %v12912_v32  ;;  %v11188_v32 = vor.u32 %v14699_v59, %v11187_v58  ;;  %8747 = vmatpush.bf16.msrb.mxu2 %v11696_v17  ;;  %v14898_v58 = vld [vmem:[#allocation11 + $0xe2c] sm:$0xf]  ;;  %v14523_v17 = vld [vmem:[#allocation11 + $0x26c] sm:$0xf0] }
 0x3b7   :  { %8716 = vmatmul.bf16.vlgmr.msra.gmra.mxu3 %v15941_v22  ;;  %v12013_v59 = vld [vmem:[#allocation11 + $0xe68] sm:$0xf0]  ;;  %v10484_v15 = vor.u32 %v14523_v17, %v10483_v19  ;;  %v9268_v17 = vand.u32 2147483648, %v16158_v43 }
 0x3b8   :  { %8779 = vmatpush.bf16.msra.mxu0 %v12336_v28  ;;  %8760 = vmatpush.bf16.msrb.mxu3 %v12208_v34  ;;  %v10547_v28 = vld [vmem:[#allocation11 + $0x2b0] sm:$0xf]  ;;  %v11949_v4 = vld [vmem:[#allocation11 + $0xde8] sm:$0xf0] }
 0x3b9   :  { %v10548_v49 = vor.u32 %v14539_v50, %v10547_v28  ;;  %v10995_v34 = vld [vmem:[#allocation11 + $0x630] sm:$0xf]  ;;  %v9266_v28 = vand.u32 2147483647, %v16158_v43  ;;  %v11373_v50 = vld [vmem:[#allocation11 + $0x968] sm:$0xf0] }
 0x3ba   :  { %8792 = vmatpush.bf16.msra.mxu1 %v12848_v33  ;;  %v8445_v33 = vadd.f32 %v16154_v13, %v16127_v27  ;;  %8748 = vmatpush.bf16.msrb.mxu2 %v11632_v18  ;;  %v12080_v27 = vor.u32 %v14914_v29, %v12077_v56  ;;  %v14770_v13 = vld [vmem:[#allocation11 + $0xa2c] sm:$0xf]  ;;  %v11952_v56 = vor.u32 %v14882_v10, %v11949_v4  ;;  %v8509_v19 = vpop.f32.mrf.mxu3  ;;  %v10291_v4 = vld [vmem:[#allocation11 + $0xb0] sm:$0xf] }
 0x3bb   :  { %v11504_v2 = vor.u32 %v14770_v13, %v11501_v1  ;;  %v14866_v60 = vld [vmem:[#allocation11 + $0xd2c] sm:$0xf]  ;;  %v14491_v1 = vld [vmem:[#allocation11 + $0x16c] sm:$0xf0]  ;;  %vm9267_vm7 = vcmp.eq.f32.partialorder %v9266_v28, 8.507059e+37 }
 0x3bc   :  { %8780 = vmatpush.bf16.msra.mxu0 %v12272_v16  ;;  %8761 = vmatpush.bf16.msrb.mxu3 %v12144_v42  ;;  %v8458_v3 = vadd.f32 %v16156_v14, %v8445_v33  ;;  %v14651_v16 = vld [vmem:[#allocation11 + $0x66c] sm:$0xf0]  ;;  %v16180_v18 = vpop.f32.mrf.mxu0  ;;  %v14738_v33 = vld [vmem:[#allocation11 + $0x92c] sm:$0xf] }
 0x3bd   :  { %v10996_v30 = vor.u32 %v14651_v16, %v10995_v34  ;;  %v10419_v14 = vld [vmem:[#allocation11 + $0x1b0] sm:$0xf]  ;;  %v9342_v34 = vand.u32 2147483647, %v16160_v61  ;;  %v11821_v10 = vld [vmem:[#allocation11 + $0xce8] sm:$0xf0] }
 0x3be   :  { %8793 = vmatpush.bf16.msra.mxu1 %v12784_v23  ;;  %v9258_v23 = vmul.f32 %v16172_v21, %v16158_v43  ;;  %8749 = vmatpush.bf16.msrb.mxu2 %v11568_v9  ;;  %v8471_v57 = vadd.f32 %v16138_v7, %v8458_v3  ;;  %v16182_v42 = vpop.f32.mrf.mxu1  ;;  %v10420_v7 = vor.u32 %v14507_v46, %v10419_v14  ;;  %v11885_v9 = vld [vmem:[#allocation11 + $0xd68] sm:$0xf0]  ;;  %v15067_v43 = vld [vmem:[#allocation11 + $0x136c] sm:$0xf0] }
 0x3bf   :  { %8781 = vmatmul.bf16.vlgmr.msra.gmra.mxu0 %v15907_v36  ;;  %v11888_v53 = vor.u32 %v14866_v60, %v11885_v9  ;;  %vm16209_vm6 = vcmp.eq.f32.partialorder %v9342_v34, 8.507059e+37  ;;  %v11245_v60 = vld [vmem:[#allocation11 + $0x868] sm:$0xf0]  ;;  %v13171_v28 = vld [vmem:[#allocation11 + $0x1730] sm:$0xf] }
 0x3c0   :  { %8825 = vmatpush.bf16.msrb.mxu0 %v10676_v54  ;;  %8762 = vmatpush.bf16.msrb.mxu3 %v12080_v27  ;;  %v12016_v54 = vor.u32 %v14898_v58, %v12013_v59  ;;  %v10355_v27 = vld [vmem:[#allocation11 + $0x130] sm:$0xf]  ;;  %v8484_v13 = vadd.f32 %v16140_v41, %v8471_v57  ;;  %v9344_v58 = vand.u32 2147483648, %v16160_v61  ;;  %v8496_v59 = vpop.f32.mrf.mxu2  ;;  %v14706_v61 = vld [vmem:[#allocation11 + $0x82c] sm:$0xf] }
 0x3c1   :  { %8794 = vmatmul.bf16.vlgmr.msra.gmra.mxu1 %v15909_v37  ;;  %v14834_v9 = vld [vmem:[#allocation11 + $0xc2c] sm:$0xf] }
 0x3c2   :  { %8838 = vmatpush.bf16.msrb.mxu1 %v11188_v32  ;;  %v14754_v32 = vld [vmem:[#allocation11 + $0x9ac] sm:$0xf]  ;;  %8750 = vmatpush.bf16.msrb.mxu2 %v11504_v2  ;;  %v8497_v41 = vadd.f32 %v8496_v59, %v8484_v13 }
 0x3c3   :  { %v11440_v29 = vor.u32 %v14754_v32, %v11437_v24  ;;  %v14722_v2 = vld [vmem:[#allocation11 + $0x8ac] sm:$0xf]  ;;  %v9337_v32 = vadd.f32 %v16164_v48, %v9336_v55  ;;  %v10356_v24 = vor.u32 %v14491_v1, %v10355_v27 }
 0x3c4   :  { %8826 = vmatpush.bf16.msrb.mxu0 %v10612_v20  ;;  %v14635_v20 = vld [vmem:[#allocation11 + $0x5ec] sm:$0xf0]  ;;  %8763 = vmatpush.bf16.msrb.mxu3 %v12016_v54  ;;  %v11309_v54 = vld [vmem:[#allocation11 + $0x8e8] sm:$0xf0]  ;;  %v8510_v14 = vadd.f32 %v8509_v19, %v8497_v41  ;;  %v8576_v57 = vpop.f32.mrf.mxu0 }
 0x3c5   :  { %v10932_v44 = vor.u32 %v14635_v20, %v10931_v31  ;;  %v14475_v31 = vld [vmem:[#allocation11 + $0xec] sm:$0xf0]  ;;  %v11757_v27 = vld [vmem:[#allocation11 + $0xc68] sm:$0xf0]  ;;  %v9341_v13 = vsel %vm16204_vm5, %v16164_v48, %v9337_v32  ;;  %v11248_v32 = vor.u32 %v14706_v61, %v11245_v60 }
 0x3c6   :  { %8839 = vmatpush.bf16.msrb.mxu1 %v11124_v52  ;;  %v9259_v52 = vsub.f32 1.0, %v9258_v23  ;;  %8751 = vmatpush.bf16.msrb.mxu2 %v11440_v29  ;;  %v11376_v23 = vor.u32 %v14738_v33, %v11373_v50  ;;  %v8589_v46 = vpop.f32.mrf.mxu1  ;;  %v10803_v20 = vld [vmem:[#allocation11 + $0x4b0] sm:$0xf]  ;;  %v9269_v50 = vor.u32 1.1754944e-38, %v9268_v17  ;;  %15489 = vtanh.f32 %v8510_v14  ;;  %v15458_v59 = vld [vmem:[#allocation11 + $0x1fac] sm:$0xf] }
 0x3c7   :  { %v10292_v1 = vor.u32 %v14475_v31, %v10291_v4  ;;  %v14253_v19 = vld [vmem:[#allocation11 + $0x1fe8] sm:$0xf0]  ;;  %v14459_v17 = vld [vmem:[#allocation11 + $0x6c] sm:$0xf0] }
 0x3c8   :  { %8827 = vmatpush.bf16.msrb.mxu0 %v10548_v49  ;;  %v10867_v49 = vld [vmem:[#allocation11 + $0x530] sm:$0xf]  ;;  %v9260_v3 = vmul.f32 %v16172_v21, %v9259_v52  ;;  %8764 = vmatpush.bf16.msrb.mxu3 %v11952_v56  ;;  %v9345_v56 = vor.u32 1.1754944e-38, %v9344_v58  ;;  %v13741_v58 = vld [vmem:[#allocation11 + $0x1be8] sm:$0xf0]  ;;  %v8498_v41 = vpop.f32.mrf.mxu2  ;;  %v14256_v16 = vor.u32 %v15458_v59, %v14253_v19 }
 0x3c9   :  { %v14603_v52 = vld [vmem:[#allocation11 + $0x4ec] sm:$0xf0]  ;;  %v15314_v4 = vld [vmem:[#allocation11 + $0x1b2c] sm:$0xf] }
 0x3ca   :  { %8840 = vmatpush.bf16.msrb.mxu1 %v11060_v63  ;;  %v14619_v63 = vld [vmem:[#allocation11 + $0x56c] sm:$0xf0]  ;;  %v9261_v33 = vadd.f32 %v16172_v21, %v9260_v3  ;;  %8752 = vmatpush.bf16.msrb.mxu2 %v11376_v23  ;;  %v8511_v23 = vpop.f32.mrf.mxu3  ;;  %v9346_v48 = vsel %vm16209_vm6, %v9345_v56, %v9341_v13  ;;  %v14189_v29 = vld [vmem:[#allocation11 + $0x1f68] sm:$0xf0] }
 0x3cb   :  { %v10227_v3 = vld [vmem:[#allocation11 + $0x30] sm:$0xf]  ;;  %v9473_v56 = vmul.f32 %v9346_v48, %v15897_v5  ;;  %v13613_v13 = vld [vmem:[#allocation11 + $0x1ae8] sm:$0xf0] }
 0x3cc   :  { %8828 = vmatpush.bf16.msrb.mxu0 %v10484_v15  ;;  %v10868_v15 = vor.u32 %v14619_v63, %v10867_v49  ;;  %8765 = vmatpush.bf16.msrb.mxu3 %v11888_v53  ;;  %v10804_v49 = vor.u32 %v14603_v52, %v10803_v20  ;;  %v15330_v63 = vld [vmem:[#allocation11 + $0x1bac] sm:$0xf]  ;;  %v9265_v34 = vsel %vm16196_vm3, %v16172_v21, %v9261_v33  ;;  %v10739_v53 = vld [vmem:[#allocation11 + $0x430] sm:$0xf]  ;;  %v15490_v14 = vpop.eup %15489 }
 0x3cd   :  { %v13744_v21 = vor.u32 %v15330_v63, %v13741_v58  ;;  %v9270_v57 = vsel %vm9267_vm7, %v9269_v50, %v9265_v34  ;;  %v10228_v46 = vor.u32 %v14459_v17, %v10227_v3  ;;  %v13677_v20 = vld [vmem:[#allocation11 + $0x1b68] sm:$0xf0]  ;;  %v12595_v58 = vld [vmem:[#allocation11 + $0x12b0] sm:$0xf]  ;;  %v14274_v17 = vmul.f32 -1.442695, %v15999_v47 }
 0x3ce   :  { %8841 = vmatpush.bf16.msrb.mxu1 %v10996_v30  ;;  %v14850_v30 = vld [vmem:[#allocation11 + $0xcac] sm:$0xf]  ;;  %v9477_v33 = vmul.f32 %v15490_v14, %v9270_v57  ;;  %v13680_v50 = vor.u32 %v15314_v4, %v13677_v20  ;;  %v15051_v59 = vld [vmem:[#allocation11 + $0x12ec] sm:$0xf0]  ;;  %v14278_v34 = vmul.f32 -1.442695, %v16095_v39 }
 0x3cf   :  { %v15442_v52 = vld [vmem:[#allocation11 + $0x1f2c] sm:$0xf]  ;;  %v13107_v19 = vld [vmem:[#allocation11 + $0x16b0] sm:$0xf]  ;;  %15491 = vpow2.f32 %v14274_v17 }
 0x3d0   :  { %8829 = vmatpush.bf16.msrb.mxu0 %v10420_v7  ;;  %v11312_v7 = vor.u32 %v14722_v2, %v11309_v54  ;;  %v14587_v2 = vld [vmem:[#allocation11 + $0x46c] sm:$0xf0]  ;;  %v9481_v60 = vadd.f32 %v9477_v33, %v9473_v56  ;;  %v14125_v5 = vld [vmem:[#allocation11 + $0x1ee8] sm:$0xf0]  ;;  %15493 = vpow2.f32 %v14278_v34 }
 0x3d1   :  { %v12723_v54 = vld [vmem:[#allocation11 + $0x13b0] sm:$0xf]  ;;  %v10740_v31 = vor.u32 %v14587_v2, %v10739_v53  ;;  %v15282_v53 = vld [vmem:[#allocation11 + $0x1a2c] sm:$0xf] }
 0x3d2   :  { %8842 = vmatpush.bf16.msrb.mxu1 %v10932_v44  ;;  %v11824_v44 = vor.u32 %v14850_v30, %v11821_v10  ;;  %8753 = vmatpush.bf16.msrb.mxu2 %v11312_v7  ;;  %v13235_v30 = vld [vmem:[#allocation11 + $0x17b0] sm:$0xf]  ;;  %9497 = vst [vmem:[#allocation15] sm:$0xff] %v9481_v60  ;;  %v13549_v2 = vld [vmem:[#allocation11 + $0x1a68] sm:$0xf0] }
 0x3d3   :  { %v15211_v10 = vld [vmem:[#allocation11 + $0x17ec] sm:$0xf0]  ;;  %v14061_v48 = vld [vmem:[#allocation11 + $0x1e68] sm:$0xf0] }
 0x3d4   :  { %8830 = vmatpush.bf16.msrb.mxu0 %v10356_v24  ;;  %8766 = vmatpush.bf16.msrb.mxu3 %v11824_v44  ;;  %v11760_v24 = vor.u32 %v14834_v9, %v11757_v27  ;;  %v13236_v61 = vor.u32 %v15211_v10, %v13235_v30  ;;  %v12659_v7 = vld [vmem:[#allocation11 + $0x1330] sm:$0xf]  ;;  %v14192_v9 = vor.u32 %v15442_v52, %v14189_v29  ;;  %v15298_v27 = vld [vmem:[#allocation11 + $0x1aac] sm:$0xf] }
 0x3d5   :  { %v15195_v44 = vld [vmem:[#allocation11 + $0x176c] sm:$0xf0]  ;;  %v13616_v41 = vor.u32 %v15298_v27, %v13613_v13  ;;  %v13552_v10 = vor.u32 %v15282_v53, %v13549_v2  ;;  %v13485_v4 = vld [vmem:[#allocation11 + $0x19e8] sm:$0xf0]  ;;  %v15492_v13 = vpop.eup %15491 }
 0x3d6   :  { %8843 = vmatpush.bf16.msrb.mxu1 %v10868_v15  ;;  %v15083_v15 = vld [vmem:[#allocation11 + $0x13ec] sm:$0xf0]  ;;  %8754 = vmatpush.bf16.msrb.mxu2 %v11248_v32  ;;  %v13172_v63 = vor.u32 %v15195_v44, %v13171_v28  ;;  %v12596_v32 = vor.u32 %v15051_v59, %v12595_v58  ;;  %v15394_v14 = vld [vmem:[#allocation11 + $0x1dac] sm:$0xf] }
 0x3d7   :  { %v12724_v55 = vor.u32 %v15083_v15, %v12723_v54  ;;  %v15179_v3 = vld [vmem:[#allocation11 + $0x16ec] sm:$0xf0]  ;;  %v15410_v54 = vld [vmem:[#allocation11 + $0x1e2c] sm:$0xf] }
 0x3d8   :  { %8831 = vmatpush.bf16.msrb.mxu0 %v10292_v1  ;;  %8767 = vmatpush.bf16.msrb.mxu3 %v11760_v24  ;;  %v15426_v1 = vld [vmem:[#allocation11 + $0x1eac] sm:$0xf]  ;;  %v13108_v24 = vor.u32 %v15179_v3, %v13107_v19  ;;  %v12531_v15 = vld [vmem:[#allocation11 + $0x1230] sm:$0xf]  ;;  %v16235_v17 = vpop.f32.mrf.mxu2 }
 0x3d9   :  { %8755 = vmatmul.bf16.vlgmr.msrb.gmra.mxu2 %v15875_v25  ;;  %v14128_v23 = vor.u32 %v15426_v1, %v14125_v5  ;;  %v15035_v47 = vld [vmem:[#allocation11 + $0x126c] sm:$0xf0]  ;;  %v13997_v57 = vld [vmem:[#allocation11 + $0x1de8] sm:$0xf0] }
 0x3da   :  { %8844 = vmatpush.bf16.msrb.mxu1 %v10804_v49  ;;  %8799 = vmatpush.bf16.msra.mxu2 %v13744_v21  ;;  %v12660_v49 = vor.u32 %v15067_v43, %v12659_v7  ;;  %v13043_v30 = vld [vmem:[#allocation11 + $0x1630] sm:$0xf]  ;;  %v14064_v21 = vor.u32 %v15410_v54, %v14061_v48  ;;  %v12532_v20 = vor.u32 %v15035_v47, %v12531_v15  ;;  %v15250_v43 = vld [vmem:[#allocation11 + $0x192c] sm:$0xf]  ;;  %v16237_v34 = vpop.f32.mrf.mxu3 }
 0x3db   :  { %8768 = vmatmul.bf16.vlgmr.msrb.gmra.mxu3 %v15877_v26  ;;  %v15163_v39 = vld [vmem:[#allocation11 + $0x166c] sm:$0xf0]  ;;  %v14000_v7 = vor.u32 %v15394_v14, %v13997_v57  ;;  %v13421_v60 = vld [vmem:[#allocation11 + $0x1968] sm:$0xf0] }
 0x3dc   :  { %8812 = vmatpush.bf16.msra.mxu3 %v14256_v16  ;;  %8832 = vmatpush.bf16.msrb.mxu0 %v10228_v46  ;;  %v15266_v16 = vld [vmem:[#allocation11 + $0x19ac] sm:$0xf]  ;;  %v13044_v52 = vor.u32 %v15163_v39, %v13043_v30  ;;  %v12467_v29 = vld [vmem:[#allocation11 + $0x11b0] sm:$0xf]  ;;  %v8626_v28 = vpop.f32.mrf.mxu0 }
 0x3dd   :  { %v16230_v46 = vld [vmem:[#allocation12 + $0x8] sm:$0xff]  ;;  %v15019_v56 = vld [vmem:[#allocation11 + $0x11ec] sm:$0xf0] }
 0x3de   :  { %8845 = vmatpush.bf16.msrb.mxu1 %v10740_v31  ;;  %8800 = vmatpush.bf16.msra.mxu2 %v13680_v50  ;;  %v2407_v31 = vperm.slane %v16230_v46, 2  ;;  %v12979_v33 = vld [vmem:[#allocation11 + $0x15b0] sm:$0xf]  ;;  %v8639_v44 = vpop.f32.mrf.mxu1  ;;  %v15378_v50 = vld [vmem:[#allocation11 + $0x1d2c] sm:$0xf]  ;;  %v12468_v1 = vor.u32 %v15019_v56, %v12467_v29 }
 0x3df   :  { %8833 = vmatmul.bf16.vlgmr.msrb.gmra.mxu0 %v15865_v40  ;;  %v15003_v58 = vld [vmem:[#allocation11 + $0x116c] sm:$0xf0]  ;;  %v15234_v53 = vld [vmem:[#allocation11 + $0x18ac] sm:$0xf] }
 0x3e0   :  { %8877 = vmatpush.bf16.msra.mxu0 %v12724_v55  ;;  %8813 = vmatpush.bf16.msra.mxu3 %v14192_v9  ;;  %v15147_v55 = vld [vmem:[#allocation11 + $0x15ec] sm:$0xf0]  ;;  %v13933_v9 = vld [vmem:[#allocation11 + $0x1d68] sm:$0xf0]  ;;  %v8627_v27 = vadd.f32 %v8626_v28, %v2407_v31 }
 0x3e1   :  { %8846 = vmatmul.bf16.vlgmr.msrb.gmra.mxu1 %v15867_v45  ;;  %v12980_v5 = vor.u32 %v15147_v55, %v12979_v33  ;;  %v12915_v59 = vld [vmem:[#allocation11 + $0x1530] sm:$0xf]  ;;  %v13357_v2 = vld [vmem:[#allocation11 + $0x18e8] sm:$0xf0] }
 0x3e2   :  { %8890 = vmatpush.bf16.msra.mxu1 %v13236_v61  ;;  %8801 = vmatpush.bf16.msra.mxu2 %v13616_v41  ;;  %v13488_v61 = vor.u32 %v15266_v16, %v13485_v4  ;;  %v15131_v19 = vld [vmem:[#allocation11 + $0x156c] sm:$0xf0]  ;;  %v16233_v3 = vadd.f32 %v8639_v44, %v8627_v27  ;;  %v13424_v41 = vor.u32 %v15250_v43, %v13421_v60  ;;  %v15362_v54 = vld [vmem:[#allocation11 + $0x1cac] sm:$0xf] }
 0x3e3   :  { %v13869_v48 = vld [vmem:[#allocation11 + $0x1ce8] sm:$0xf0]  ;;  %v12916_v47 = vor.u32 %v15131_v19, %v12915_v59  ;;  %v12339_v30 = vld [vmem:[#allocation11 + $0x10b0] sm:$0xf]  ;;  %v13360_v4 = vor.u32 %v15234_v53, %v13357_v2 }
 0x3e4   :  { %8878 = vmatpush.bf16.msra.mxu0 %v12660_v49  ;;  %8814 = vmatpush.bf16.msra.mxu3 %v14128_v23  ;;  %v12403_v49 = vld [vmem:[#allocation11 + $0x1130] sm:$0xf]  ;;  %v13936_v23 = vor.u32 %v15378_v50, %v13933_v9  ;;  %v15218_v16 = vld [vmem:[#allocation11 + $0x182c] sm:$0xf]  ;;  %v13872_v14 = vor.u32 %v15362_v54, %v13869_v48  ;;  %v14563_v9 = vld [vmem:[#allocation11 + $0x3b4] sm:$0xf] }
 0x3e5   :  { %v12404_v15 = vor.u32 %v15003_v58, %v12403_v49  ;;  %v14987_v39 = vld [vmem:[#allocation11 + $0x10ec] sm:$0xf0]  ;;  %v13293_v57 = vld [vmem:[#allocation11 + $0x1868] sm:$0xf0]  ;;  %v11189_v49 = vld [vmem:[#allocation11 + $0x7f0] sm:$0xf0]  ;;  %v8563_v58 = vpop.f32.mrf.mxu3 }
 0x3e6   :  { %8891 = vmatpush.bf16.msra.mxu1 %v13172_v63  ;;  %8802 = vmatpush.bf16.msra.mxu2 %v13552_v10  ;;  %v15494_v63 = vpop.eup %15493  ;;  %v12851_v10 = vld [vmem:[#allocation11 + $0x14b0] sm:$0xf]  ;;  %v15346_v31 = vld [vmem:[#allocation11 + $0x1c2c] sm:$0xf]  ;;  %v8641_v29 = vpop.f32.mrf.mxu1  ;;  %v13296_v27 = vor.u32 %v15218_v16, %v13293_v57  ;;  %v14643_v58 = vld [vmem:[#allocation11 + $0x634] sm:$0xf] }
 0x3e7   :  { %v11699_v56 = vld [vmem:[#allocation11 + $0xbb0] sm:$0xf] }
 0x3e8   :  { %8879 = vmatpush.bf16.msra.mxu0 %v12596_v32  ;;  %8815 = vmatpush.bf16.msra.mxu3 %v14064_v21  ;;  %v16239_v32 = vadd.f32 1.0, %v15492_v13  ;;  %v15115_v21 = vld [vmem:[#allocation11 + $0x14ec] sm:$0xf0] }
 0x3e9   :  { %v14827_v33 = vld [vmem:[#allocation11 + $0xbec] sm:$0xf0] }
 0x3ea   :  { %8892 = vmatpush.bf16.msra.mxu1 %v13108_v24  ;;  %8803 = vmatpush.bf16.msra.mxu2 %v13488_v61  ;;  %v16241_v24 = vadd.f32 1.0, %v15494_v63  ;;  %v12211_v55 = vld [vmem:[#allocation11 + $0xfb0] sm:$0xf]  ;;  %v12340_v61 = vor.u32 %v14987_v39, %v12339_v30  ;;  %v8550_v63 = vpop.f32.mrf.mxu2  ;;  %v11700_v59 = vor.u32 %v14827_v33, %v11699_v56  ;;  %v14547_v30 = vld [vmem:[#allocation11 + $0x334] sm:$0xf]  ;;  %vm9277_vm9 = vweird.f32 %v16239_v32 }
 0x3eb   :  { %v14955_v43 = vld [vmem:[#allocation11 + $0xfec] sm:$0xf0]  ;;  %v10613_v39 = vld [vmem:[#allocation11 + $0x370] sm:$0xf0] }
 0x3ec   :  { %8880 = vmatpush.bf16.msra.mxu0 %v12532_v20  ;;  %8816 = vmatpush.bf16.msra.mxu3 %v14000_v7  ;;  %v13805_v20 = vld [vmem:[#allocation11 + $0x1c68] sm:$0xf0]  ;;  %v12852_v7 = vor.u32 %v15115_v21, %v12851_v10  ;;  %v12275_v28 = vld [vmem:[#allocation11 + $0x1030] sm:$0xf]  ;;  %15495 = vrcp.f32 %v16241_v24  ;;  %v12212_v19 = vor.u32 %v14955_v43, %v12211_v55  ;;  %v14675_v10 = vld [vmem:[#allocation11 + $0x734] sm:$0xf]  ;;  %v8549_v55 = vadd.f32 %v16235_v17, %v16152_v11 }
 0x3ed   :  { %v14971_v44 = vld [vmem:[#allocation11 + $0x106c] sm:$0xf0]  ;;  %v13808_v13 = vor.u32 %v15346_v31, %v13805_v20  ;;  %15497 = vrcp.f32 %v16239_v32  ;;  %v11125_v21 = vld [vmem:[#allocation11 + $0x770] sm:$0xf0]  ;;  %v10616_v20 = vor.u32 %v14547_v30, %v10613_v39  ;;  %vm9353_vm12 = vweird.f32 %v16241_v24 }
 0x3ee   :  { %8893 = vmatpush.bf16.msra.mxu1 %v13044_v52  ;;  %8804 = vmatpush.bf16.msra.mxu2 %v13424_v41  ;;  %v8628_v52 = vpop.f32.mrf.mxu0  ;;  %v12787_v60 = vld [vmem:[#allocation11 + $0x1430] sm:$0xf]  ;;  %v12276_v41 = vor.u32 %v14971_v44, %v12275_v28  ;;  %v14531_v33 = vld [vmem:[#allocation11 + $0x2b4] sm:$0xf] }
 0x3ef   :  { %v15099_v50 = vld [vmem:[#allocation11 + $0x146c] sm:$0xf0]  ;;  %v11128_v52 = vor.u32 %v14675_v10, %v11125_v21  ;;  %v11061_v43 = vld [vmem:[#allocation11 + $0x6f0] sm:$0xf0] }
 0x3f0   :  { %8881 = vmatpush.bf16.msra.mxu0 %v12468_v1  ;;  %8817 = vmatpush.bf16.msra.mxu3 %v13936_v23  ;;  %v10677_v1 = vld [vmem:[#allocation11 + $0x3f0] sm:$0xf0]  ;;  %v12788_v23 = vor.u32 %v15099_v50, %v12787_v60  ;;  %v11635_v53 = vld [vmem:[#allocation11 + $0xb30] sm:$0xf] }
 0x3f1   :  { %v14811_v2 = vld [vmem:[#allocation11 + $0xb6c] sm:$0xf0]  ;;  %v10680_v54 = vor.u32 %v14563_v9, %v10677_v1  ;;  %v10485_v63 = vld [vmem:[#allocation11 + $0x270] sm:$0xf0] }
 0x3f2   :  { %8894 = vmatpush.bf16.msra.mxu1 %v12980_v5  ;;  %8805 = vmatpush.bf16.msra.mxu2 %v13360_v4  ;;  %v14691_v5 = vld [vmem:[#allocation11 + $0x7b4] sm:$0xf]  ;;  %v11636_v16 = vor.u32 %v14811_v2, %v11635_v53  ;;  %v14795_v57 = vld [vmem:[#allocation11 + $0xaec] sm:$0xf0]  ;;  %v16245_v31 = vpop.eup %15495 }
 0x3f3   :  { %v11192_v48 = vor.u32 %v14691_v5, %v11189_v49  ;;  %v12083_v29 = vld [vmem:[#allocation11 + $0xeb0] sm:$0xf]  ;;  %v16253_v28 = vpop.eup %15497  ;;  %v9349_v44 = vmul.f32 %v16245_v31, %v16241_v24  ;;  %v14515_v5 = vld [vmem:[#allocation11 + $0x234] sm:$0xf]  ;;  %v8562_v49 = vadd.f32 %v16237_v34, %v8549_v55  ;;  %vm9354_vm10 = vweird.f32 %v16245_v31 }
 0x3f4   :  { %8882 = vmatpush.bf16.msra.mxu0 %v12404_v15  ;;  %8818 = vmatpush.bf16.msra.mxu3 %v13872_v14  ;;  %v12147_v15 = vld [vmem:[#allocation11 + $0xf30] sm:$0xf]  ;;  %v14499_v34 = vld [vmem:[#allocation11 + $0x1b4] sm:$0xf]  ;;  %vm9278_vm8 = vweird.f32 %v16253_v28  ;;  %vm16285_vm13 = vmor %vm9353_vm12, %vm9354_vm10 }
 0x3f5   :  { %v11571_v14 = vld [vmem:[#allocation11 + $0xab0] sm:$0xf]  ;;  %v8575_v39 = vadd.f32 %v16180_v18, %v8562_v49  ;;  %v9357_v49 = vand.u32 2147483647, %v16241_v24  ;;  %vm16277_vm11 = vmor %vm9277_vm9, %vm9278_vm8 }
 0x3f6   :  { %8895 = vmatpush.bf16.msra.mxu1 %v12916_v47  ;;  %v14939_v47 = vld [vmem:[#allocation11 + $0xf6c] sm:$0xf0]  ;;  %8806 = vmatpush.bf16.msra.mxu2 %v13296_v27  ;;  %v11572_v60 = vor.u32 %v14795_v57, %v11571_v14  ;;  %v10933_v14 = vld [vmem:[#allocation11 + $0x5f0] sm:$0xf0] }
 0x3f7   :  { %v12148_v4 = vor.u32 %v14939_v47, %v12147_v15  ;;  %v14923_v56 = vld [vmem:[#allocation11 + $0xeec] sm:$0xf0]  ;;  %vm16290_vm14 = vcmp.eq.f32.partialorder %v9357_v49, 8.507059e+37 }
 0x3f8   :  { %8883 = vmatpush.bf16.msra.mxu0 %v12340_v61  ;;  %8819 = vmatpush.bf16.msra.mxu3 %v13808_v13  ;;  %v10549_v61 = vld [vmem:[#allocation11 + $0x2f0] sm:$0xf0]  ;;  %v12084_v11 = vor.u32 %v14923_v56, %v12083_v29  ;;  %v11507_v17 = vld [vmem:[#allocation11 + $0xa30] sm:$0xf]  ;;  %v9281_v29 = vand.u32 2147483647, %v16239_v32 }
 0x3f9   :  { %8807 = vmatmul.bf16.vlgmr.msra.gmra.mxu2 %v15939_v8  ;;  %v14779_v50 = vld [vmem:[#allocation11 + $0xa6c] sm:$0xf0]  ;;  %v10552_v9 = vor.u32 %v14531_v33, %v10549_v61 }
 0x3fa   :  { %8896 = vmatpush.bf16.msra.mxu1 %v12852_v7  ;;  %8851 = vmatpush.bf16.msrb.mxu2 %v11700_v59  ;;  %v14659_v7 = vld [vmem:[#allocation11 + $0x6b4] sm:$0xf]  ;;  %v12019_v13 = vld [vmem:[#allocation11 + $0xe30] sm:$0xf]  ;;  %vm9282_vm15 = vcmp.eq.f32.partialorder %v9281_v29, 8.507059e+37 }
 0x3fb   :  { %8820 = vmatmul.bf16.vlgmr.msra.gmra.mxu3 %v15941_v22  ;;  %v11064_v27 = vor.u32 %v14659_v7, %v11061_v43  ;;  %v14907_v1 = vld [vmem:[#allocation11 + $0xe6c] sm:$0xf0]  ;;  %v10997_v59 = vld [vmem:[#allocation11 + $0x670] sm:$0xf0] }
 0x3fc   :  { %8864 = vmatpush.bf16.msrb.mxu3 %v12212_v19  ;;  %8884 = vmatpush.bf16.msra.mxu0 %v12276_v41  ;;  %v9273_v19 = vmul.f32 %v16253_v28, %v16239_v32  ;;  %v9350_v41 = vsub.f32 1.0, %v9349_v44  ;;  %v12020_v53 = vor.u32 %v14907_v1, %v12019_v13  ;;  %v11443_v2 = vld [vmem:[#allocation11 + $0x9b0] sm:$0xf]  ;;  %v11000_v15 = vor.u32 %v14643_v58, %v10997_v59  ;;  %v16261_v10 = vpop.f32.mrf.mxu0  ;;  %v14483_v44 = vld [vmem:[#allocation11 + $0x134] sm:$0xf]  ;;  %v8613_v13 = vpop.f32.mrf.mxu3 }
 0x3fd   :  { %v11955_v47 = vld [vmem:[#allocation11 + $0xdb0] sm:$0xf]  ;;  %v15187_v29 = vld [vmem:[#allocation11 + $0x1734] sm:$0xf] }
 0x3fe   :  { %8897 = vmatpush.bf16.msra.mxu1 %v12788_v23  ;;  %8852 = vmatpush.bf16.msrb.mxu2 %v11636_v16  ;;  %v11508_v23 = vor.u32 %v14779_v50, %v11507_v17  ;;  %v14891_v30 = vld [vmem:[#allocation11 + $0xdec] sm:$0xf0]  ;;  %v16263_v21 = vpop.f32.mrf.mxu1  ;;  %v10421_v16 = vld [vmem:[#allocation11 + $0x1f0] sm:$0xf0]  ;;  %v9274_v57 = vsub.f32 1.0, %v9273_v19  ;;  %v9351_v55 = vmul.f32 %v16245_v31, %v9350_v41 }
 0x3ff   :  { %8885 = vmatmul.bf16.vlgmr.msra.gmra.mxu0 %v15907_v36  ;;  %v11379_v56 = vld [vmem:[#allocation11 + $0x930] sm:$0xf]  ;;  %v10424_v18 = vor.u32 %v14499_v34, %v10421_v16  ;;  %v14611_v17 = vld [vmem:[#allocation11 + $0x534] sm:$0xf] }
 0x400   :  { %8929 = vmatpush.bf16.msrb.mxu0 %v10680_v54  ;;  %8865 = vmatpush.bf16.msrb.mxu3 %v12148_v4  ;;  %v14763_v54 = vld [vmem:[#allocation11 + $0x9ec] sm:$0xf0]  ;;  %v14627_v4 = vld [vmem:[#allocation11 + $0x5b4] sm:$0xf]  ;;  %v9275_v1 = vmul.f32 %v16253_v28, %v9274_v57 }
 0x401   :  { %8898 = vmatmul.bf16.vlgmr.msra.gmra.mxu1 %v15909_v37  ;;  %v14747_v33 = vld [vmem:[#allocation11 + $0x96c] sm:$0xf0]  ;;  %v10936_v61 = vor.u32 %v14627_v4, %v10933_v14  ;;  %v10869_v50 = vld [vmem:[#allocation11 + $0x570] sm:$0xf0] }
 0x402   :  { %8942 = vmatpush.bf16.msrb.mxu1 %v11192_v48  ;;  %8853 = vmatpush.bf16.msrb.mxu2 %v11572_v60  ;;  %v10488_v48 = vor.u32 %v14515_v5, %v10485_v63  ;;  %v11891_v7 = vld [vmem:[#allocation11 + $0xd30] sm:$0xf]  ;;  %v8588_v60 = vadd.f32 %v16182_v42, %v8575_v39  ;;  %v9283_v5 = vand.u32 2147483648, %v16239_v32  ;;  %v11380_v58 = vor.u32 %v14747_v33, %v11379_v56  ;;  %v10293_v39 = vld [vmem:[#allocation11 + $0xf0] sm:$0xf0] }
 0x403   :  { %v14875_v43 = vld [vmem:[#allocation11 + $0xd6c] sm:$0xf0]  ;;  %v14595_v16 = vld [vmem:[#allocation11 + $0x4b4] sm:$0xf] }
 0x404   :  { %8930 = vmatpush.bf16.msrb.mxu0 %v10616_v20  ;;  %8866 = vmatpush.bf16.msrb.mxu3 %v12084_v11  ;;  %v11444_v20 = vor.u32 %v14763_v54, %v11443_v2  ;;  %v10357_v11 = vld [vmem:[#allocation11 + $0x170] sm:$0xf0]  ;;  %v11892_v59 = vor.u32 %v14875_v43, %v11891_v7  ;;  %v11315_v19 = vld [vmem:[#allocation11 + $0x8b0] sm:$0xf]  ;;  %v10872_v2 = vor.u32 %v14611_v17, %v10869_v50  ;;  %v8615_v49 = vpop.f32.mrf.mxu3 }
 0x405   :  { %v14731_v41 = vld [vmem:[#allocation11 + $0x8ec] sm:$0xf0]  ;;  %v10805_v4 = vld [vmem:[#allocation11 + $0x4f0] sm:$0xf0] }
 0x406   :  { %8943 = vmatpush.bf16.msrb.mxu1 %v11128_v52  ;;  %8854 = vmatpush.bf16.msrb.mxu2 %v11508_v23  ;;  %v11956_v52 = vor.u32 %v14891_v30, %v11955_v47  ;;  %v9352_v23 = vadd.f32 %v16245_v31, %v9351_v55  ;;  %v11827_v54 = vld [vmem:[#allocation11 + $0xcb0] sm:$0xf]  ;;  %v8680_v30 = vpop.f32.mrf.mxu0  ;;  %v8693_v34 = vpop.f32.mrf.mxu1  ;;  %v11316_v33 = vor.u32 %v14731_v41, %v11315_v19  ;;  %v15059_v56 = vld [vmem:[#allocation11 + $0x1334] sm:$0xf] }
 0x407   :  { %v14843_v7 = vld [vmem:[#allocation11 + $0xc6c] sm:$0xf0]  ;;  %v12661_v32 = vld [vmem:[#allocation11 + $0x1370] sm:$0xf0] }
 0x408   :  { %8931 = vmatpush.bf16.msrb.mxu0 %v10552_v9  ;;  %8867 = vmatpush.bf16.msrb.mxu3 %v12020_v53  ;;  %v9359_v9 = vand.u32 2147483648, %v16241_v24  ;;  %v10360_v53 = vor.u32 %v14483_v44, %v10357_v11  ;;  %v11251_v24 = vld [vmem:[#allocation11 + $0x830] sm:$0xf]  ;;  %v9356_v43 = vsel %vm16285_vm13, %v16245_v31, %v9352_v23  ;;  %v12725_v23 = vld [vmem:[#allocation11 + $0x13f0] sm:$0xf0] }
 0x409   :  { %v13747_v11 = vld [vmem:[#allocation11 + $0x1bb0] sm:$0xf] }
 0x40a   :  { %8944 = vmatpush.bf16.msrb.mxu1 %v11064_v27  ;;  %v8600_v27 = vpop.f32.mrf.mxu2  ;;  %8855 = vmatpush.bf16.msrb.mxu2 %v11444_v20  ;;  %v9360_v57 = vor.u32 1.1754944e-38, %v9359_v9  ;;  %v9276_v20 = vadd.f32 %v16253_v28, %v9275_v1  ;;  %v15339_v17 = vld [vmem:[#allocation11 + $0x1bec] sm:$0xf0] }
 0x40b   :  { %v8601_v42 = vadd.f32 %v8600_v27, %v8588_v60  ;;  %v10808_v60 = vor.u32 %v14595_v16, %v10805_v4  ;;  %v14259_v50 = vld [vmem:[#allocation11 + $0x1fb0] sm:$0xf]  ;;  %v14451_v27 = vld [vmem:[#allocation11 + $0x34] sm:$0xf] }
 0x40c   :  { %8932 = vmatpush.bf16.msrb.mxu0 %v10488_v48  ;;  %8868 = vmatpush.bf16.msrb.mxu3 %v11956_v52  ;;  %v14859_v48 = vld [vmem:[#allocation11 + $0xcec] sm:$0xf0]  ;;  %v9284_v52 = vor.u32 1.1754944e-38, %v9283_v5  ;;  %v9280_v1 = vsel %vm16277_vm11, %v16253_v28, %v9276_v20  ;;  %v9361_v31 = vsel %vm16290_vm14, %v9360_v57, %v9356_v43  ;;  %v13748_v28 = vor.u32 %v15339_v17, %v13747_v11  ;;  %v12597_v11 = vld [vmem:[#allocation11 + $0x12f0] sm:$0xf0] }
 0x40d   :  { %v8614_v47 = vadd.f32 %v8613_v13, %v8601_v42  ;;  %v11828_v55 = vor.u32 %v14859_v48, %v11827_v54  ;;  %v15467_v9 = vld [vmem:[#allocation11 + $0x1fec] sm:$0xf0]  ;;  %v10229_v13 = vld [vmem:[#allocation11 + $0x70] sm:$0xf0]  ;;  %v9474_v4 = vmul.f32 %v9361_v31, %v15899_v6  ;;  %v12664_v43 = vor.u32 %v15059_v56, %v12661_v32 }
 0x40e   :  { %8945 = vmatpush.bf16.msrb.mxu1 %v11000_v15  ;;  %v14467_v15 = vld [vmem:[#allocation11 + $0xb4] sm:$0xf]  ;;  %8856 = vmatpush.bf16.msrb.mxu2 %v11380_v58  ;;  %v14260_v63 = vor.u32 %v15467_v9, %v14259_v50  ;;  %v13683_v54 = vld [vmem:[#allocation11 + $0x1b30] sm:$0xf]  ;;  %v14275_v9 = vmul.f32 -1.442695, %v16022_v12 }
 0x40f   :  { %15499 = vtanh.f32 %v8614_v47  ;;  %v10296_v44 = vor.u32 %v14467_v15, %v10293_v39  ;;  %v14579_v42 = vld [vmem:[#allocation11 + $0x434] sm:$0xf]  ;;  %v9285_v15 = vsel %vm9282_vm15, %v9284_v52, %v9280_v1  ;;  %v10232_v47 = vor.u32 %v14451_v27, %v10229_v13  ;;  %v15323_v34 = vld [vmem:[#allocation11 + $0x1b6c] sm:$0xf0] }
 0x410   :  { %8933 = vmatpush.bf16.msrb.mxu0 %v10424_v18  ;;  %8869 = vmatpush.bf16.msrb.mxu3 %v11892_v59  ;;  %v14715_v18 = vld [vmem:[#allocation11 + $0x86c] sm:$0xf0]  ;;  %v10741_v58 = vld [vmem:[#allocation11 + $0x470] sm:$0xf0]  ;;  %v13684_v52 = vor.u32 %v15323_v34, %v13683_v54  ;;  %v14279_v27 = vmul.f32 -1.442695, %v16118_v38  ;;  %15501 = vpow2.f32 %v14275_v9 }
 0x411   :  { %v15075_v59 = vld [vmem:[#allocation11 + $0x13b4] sm:$0xf]  ;;  %v11252_v19 = vor.u32 %v14715_v18, %v11251_v24  ;;  %v10744_v30 = vor.u32 %v14579_v42, %v10741_v58  ;;  %v14195_v39 = vld [vmem:[#allocation11 + $0x1f30] sm:$0xf] }
 0x412   :  { %8946 = vmatpush.bf16.msrb.mxu1 %v10936_v61  ;;  %v11763_v61 = vld [vmem:[#allocation11 + $0xc30] sm:$0xf]  ;;  %v8602_v5 = vpop.f32.mrf.mxu2  ;;  %8857 = vmatpush.bf16.msrb.mxu2 %v11316_v33  ;;  %v12728_v57 = vor.u32 %v15075_v59, %v12725_v23  ;;  %v13173_v24 = vld [vmem:[#allocation11 + $0x1770] sm:$0xf0]  ;;  %15503 = vpow2.f32 %v14279_v27 }
 0x413   :  { %v11764_v41 = vor.u32 %v14843_v7, %v11763_v61  ;;  %v15451_v16 = vld [vmem:[#allocation11 + $0x1f6c] sm:$0xf0]  ;;  %v15171_v17 = vld [vmem:[#allocation11 + $0x16b4] sm:$0xf] }
 0x414   :  { %8934 = vmatpush.bf16.msrb.mxu0 %v10360_v53  ;;  %8870 = vmatpush.bf16.msrb.mxu3 %v11828_v55  ;;  %v15203_v53 = vld [vmem:[#allocation11 + $0x17b4] sm:$0xf]  ;;  %v14196_v55 = vor.u32 %v15451_v16, %v14195_v39  ;;  %v13619_v18 = vld [vmem:[#allocation11 + $0x1ab0] sm:$0xf] }
 0x415   :  { %v15500_v48 = vpop.eup %15499  ;;  %v15307_v61 = vld [vmem:[#allocation11 + $0x1aec] sm:$0xf0]  ;;  %v13109_v50 = vld [vmem:[#allocation11 + $0x16f0] sm:$0xf0] }
 0x416   :  { %8947 = vmatpush.bf16.msrb.mxu1 %v10872_v2  ;;  %v13237_v2 = vld [vmem:[#allocation11 + $0x17f0] sm:$0xf0]  ;;  %v9478_v14 = vmul.f32 %v15500_v48, %v9285_v15  ;;  %8858 = vmatpush.bf16.msrb.mxu2 %v11252_v19  ;;  %v14131_v7 = vld [vmem:[#allocation11 + $0x1eb0] sm:$0xf]  ;;  %v13620_v13 = vor.u32 %v15307_v61, %v13619_v18  ;;  %v13112_v31 = vor.u32 %v15171_v17, %v13109_v50  ;;  %v2408_v48 = vperm.slane %v16230_v46, 3  ;;  %v15502_v46 = vpop.eup %15501 }
 0x417   :  { %v13240_v20 = vor.u32 %v15203_v53, %v13237_v2  ;;  %v15435_v6 = vld [vmem:[#allocation11 + $0x1eec] sm:$0xf0]  ;;  %v15027_v19 = vld [vmem:[#allocation11 + $0x1234] sm:$0xf] }
 0x418   :  { %8935 = vmatpush.bf16.msrb.mxu0 %v10296_v44  ;;  %8871 = vmatpush.bf16.msrb.mxu3 %v11764_v41  ;;  %v9482_v33 = vadd.f32 %v9478_v14, %v9474_v4  ;;  %v13176_v44 = vor.u32 %v15187_v29, %v13173_v24  ;;  %v14132_v1 = vor.u32 %v15435_v6, %v14131_v7  ;;  %v13555_v5 = vld [vmem:[#allocation11 + $0x1a30] sm:$0xf]  ;;  %v12533_v12 = vld [vmem:[#allocation11 + $0x1270] sm:$0xf0]  ;;  %v15504_v61 = vpop.eup %15503 }
 0x419   :  { %8859 = vmatmul.bf16.vlgmr.msrb.gmra.mxu2 %v15875_v25  ;;  %v15291_v49 = vld [vmem:[#allocation11 + $0x1a6c] sm:$0xf0]  ;;  %v15155_v41 = vld [vmem:[#allocation11 + $0x1634] sm:$0xf]  ;;  %v12536_v15 = vor.u32 %v15027_v19, %v12533_v12 }
 0x41a   :  { %8948 = vmatpush.bf16.msrb.mxu1 %v10808_v60  ;;  %8903 = vmatpush.bf16.msra.mxu2 %v13748_v28  ;;  %9498 = vst [vmem:[#allocation15 + $0x8] sm:$0xff] %v9482_v33  ;;  %v15043_v60 = vld [vmem:[#allocation11 + $0x12b4] sm:$0xf]  ;;  %v14067_v42 = vld [vmem:[#allocation11 + $0x1e30] sm:$0xf]  ;;  %v13556_v23 = vor.u32 %v15291_v49, %v13555_v5  ;;  %v16318_v5 = vadd.f32 1.0, %v15502_v46 }
 0x41b   :  { %8872 = vmatmul.bf16.vlgmr.msrb.gmra.mxu3 %v15877_v26  ;;  %v15419_v58 = vld [vmem:[#allocation11 + $0x1e6c] sm:$0xf0]  ;;  %v12600_v59 = vor.u32 %v15043_v60, %v12597_v11  ;;  %v13045_v38 = vld [vmem:[#allocation11 + $0x1670] sm:$0xf0]  ;;  %v16314_v60 = vpop.f32.mrf.mxu2  ;;  %v16316_v11 = vpop.f32.mrf.mxu3  ;;  %v16320_v49 = vadd.f32 1.0, %v15504_v61 }
 0x41c   :  { %8916 = vmatpush.bf16.msra.mxu3 %v14260_v63  ;;  %8936 = vmatpush.bf16.msrb.mxu0 %v10232_v47  ;;  %v14068_v53 = vor.u32 %v15419_v58, %v14067_v42  ;;  %v13491_v2 = vld [vmem:[#allocation11 + $0x19b0] sm:$0xf]  ;;  %v13048_v47 = vor.u32 %v15155_v41, %v13045_v38  ;;  %v12469_v34 = vld [vmem:[#allocation11 + $0x11f0] sm:$0xf0]  ;;  %vm9292_vm1 = vweird.f32 %v16318_v5 }
 0x41d   :  { %v15275_v28 = vld [vmem:[#allocation11 + $0x19ec] sm:$0xf0]  ;;  %v15139_v39 = vld [vmem:[#allocation11 + $0x15b4] sm:$0xf]  ;;  %15505 = vrcp.f32 %v16320_v49  ;;  %vm9368_vm4 = vweird.f32 %v16320_v49 }
 0x41e   :  { %8949 = vmatpush.bf16.msrb.mxu1 %v10744_v30  ;;  %8904 = vmatpush.bf16.msra.mxu2 %v13684_v52  ;;  %v14003_v63 = vld [vmem:[#allocation11 + $0x1db0] sm:$0xf]  ;;  %v15011_v30 = vld [vmem:[#allocation11 + $0x11b4] sm:$0xf]  ;;  %v13492_v4 = vor.u32 %v15275_v28, %v13491_v2  ;;  %v8743_v56 = vpop.f32.mrf.mxu1  ;;  %15507 = vrcp.f32 %v16318_v5 }
 0x41f   :  { %8937 = vmatmul.bf16.vlgmr.msrb.gmra.mxu0 %v15865_v40  ;;  %v15403_v54 = vld [vmem:[#allocation11 + $0x1dec] sm:$0xf0]  ;;  %v12981_v16 = vld [vmem:[#allocation11 + $0x15f0] sm:$0xf0]  ;;  %v12472_v52 = vor.u32 %v15011_v30, %v12469_v34 }
 0x420   :  { %8981 = vmatpush.bf16.msra.mxu0 %v12728_v57  ;;  %8917 = vmatpush.bf16.msra.mxu3 %v14196_v55  ;;  %v14004_v14 = vor.u32 %v15403_v54, %v14003_v63  ;;  %v13427_v57 = vld [vmem:[#allocation11 + $0x1930] sm:$0xf]  ;;  %v12984_v55 = vor.u32 %v15139_v39, %v12981_v16  ;;  %v14995_v18 = vld [vmem:[#allocation11 + $0x1134] sm:$0xf] }
 0x421   :  { %8950 = vmatmul.bf16.vlgmr.msrb.gmra.mxu1 %v15867_v45  ;;  %v15259_v32 = vld [vmem:[#allocation11 + $0x196c] sm:$0xf0]  ;;  %v12405_v7 = vld [vmem:[#allocation11 + $0x1170] sm:$0xf0] }
 0x422   :  { %8994 = vmatpush.bf16.msra.mxu1 %v13240_v20  ;;  %8905 = vmatpush.bf16.msra.mxu2 %v13620_v13  ;;  %v8730_v20 = vpop.f32.mrf.mxu0  ;;  %v13939_v29 = vld [vmem:[#allocation11 + $0x1d30] sm:$0xf]  ;;  %v15123_v6 = vld [vmem:[#allocation11 + $0x1534] sm:$0xf]  ;;  %v13428_v17 = vor.u32 %v15259_v32, %v13427_v57  ;;  %v12408_v42 = vor.u32 %v14995_v18, %v12405_v7 }
 0x423   :  { %v15387_v24 = vld [vmem:[#allocation11 + $0x1d6c] sm:$0xf0]  ;;  %v8731_v33 = vadd.f32 %v8730_v20, %v2408_v48  ;;  %v15107_v19 = vld [vmem:[#allocation11 + $0x14b4] sm:$0xf]  ;;  %v10683_v20 = vld [vmem:[#allocation11 + $0x3b8] sm:$0xf]  ;;  %v8654_v46 = vpop.f32.mrf.mxu2 }
 0x424   :  { %8982 = vmatpush.bf16.msra.mxu0 %v12664_v43  ;;  %8918 = vmatpush.bf16.msra.mxu3 %v14132_v1  ;;  %v12917_v43 = vld [vmem:[#allocation11 + $0x1570] sm:$0xf0]  ;;  %v13940_v50 = vor.u32 %v15387_v24, %v13939_v29  ;;  %v13363_v9 = vld [vmem:[#allocation11 + $0x18b0] sm:$0xf]  ;;  %v14572_v29 = vld [vmem:[#allocation11 + $0x3f4] sm:$0xf0] }
 0x425   :  { %v15243_v27 = vld [vmem:[#allocation11 + $0x18ec] sm:$0xf0]  ;;  %v12920_v58 = vor.u32 %v15123_v6, %v12917_v43  ;;  %v12853_v12 = vld [vmem:[#allocation11 + $0x14f0] sm:$0xf0]  ;;  %v11195_v24 = vld [vmem:[#allocation11 + $0x7b8] sm:$0xf] }
 0x426   :  { %8995 = vmatpush.bf16.msra.mxu1 %v13176_v44  ;;  %8906 = vmatpush.bf16.msra.mxu2 %v13556_v23  ;;  %v16312_v44 = vadd.f32 %v8743_v56, %v8731_v33  ;;  %v13875_v13 = vld [vmem:[#allocation11 + $0x1cb0] sm:$0xf]  ;;  %v13364_v38 = vor.u32 %v15243_v27, %v13363_v9  ;;  %v8745_v54 = vpop.f32.mrf.mxu1  ;;  %v14819_v48 = vld [vmem:[#allocation11 + $0xbb4] sm:$0xf]  ;;  %v12856_v34 = vor.u32 %v15107_v19, %v12853_v12  ;;  %v14700_v33 = vld [vmem:[#allocation11 + $0x7f4] sm:$0xf0] }
 0x427   :  { %v15371_v1 = vld [vmem:[#allocation11 + $0x1cec] sm:$0xf0]  ;;  %v12213_v39 = vld [vmem:[#allocation11 + $0xff0] sm:$0xf0]  ;;  %v14540_v54 = vld [vmem:[#allocation11 + $0x2f4] sm:$0xf0] }
 0x428   :  { %8983 = vmatpush.bf16.msra.mxu0 %v12600_v59  ;;  %8919 = vmatpush.bf16.msra.mxu3 %v14068_v53  ;;  %v14979_v59 = vld [vmem:[#allocation11 + $0x10b4] sm:$0xf]  ;;  %v13299_v41 = vld [vmem:[#allocation11 + $0x1830] sm:$0xf]  ;;  %v13876_v23 = vor.u32 %v15371_v1, %v13875_v13  ;;  %v10619_v13 = vld [vmem:[#allocation11 + $0x338] sm:$0xf] }
 0x429   :  { %v15227_v53 = vld [vmem:[#allocation11 + $0x186c] sm:$0xf0]  ;;  %v14963_v16 = vld [vmem:[#allocation11 + $0x1034] sm:$0xf]  ;;  %v14556_v1 = vld [vmem:[#allocation11 + $0x374] sm:$0xf0] }
 0x42a   :  { %8996 = vmatpush.bf16.msra.mxu1 %v13112_v31  ;;  %8907 = vmatpush.bf16.msra.mxu2 %v13492_v4  ;;  %v12341_v31 = vld [vmem:[#allocation11 + $0x10f0] sm:$0xf0]  ;;  %v13811_v2 = vld [vmem:[#allocation11 + $0x1c30] sm:$0xf]  ;;  %v8732_v63 = vpop.f32.mrf.mxu0  ;;  %v13300_v56 = vor.u32 %v15227_v53, %v13299_v41  ;;  %v16324_v41 = vpop.eup %15505 }
 0x42b   :  { %v15355_v28 = vld [vmem:[#allocation11 + $0x1c6c] sm:$0xf0]  ;;  %v12344_v30 = vor.u32 %v14979_v59, %v12341_v31  ;;  %v12277_v4 = vld [vmem:[#allocation11 + $0x1070] sm:$0xf0]  ;;  %v8653_v63 = vadd.f32 %v16314_v60, %v16233_v3  ;;  %vm9369_vm2 = vweird.f32 %v16324_v41 }
 0x42c   :  { %8984 = vmatpush.bf16.msra.mxu0 %v12536_v15  ;;  %8920 = vmatpush.bf16.msra.mxu3 %v14004_v14  ;;  %v11701_v15 = vld [vmem:[#allocation11 + $0xbf0] sm:$0xf0]  ;;  %v13812_v32 = vor.u32 %v15355_v28, %v13811_v2  ;;  %v12280_v61 = vor.u32 %v14963_v16, %v12277_v4  ;;  %v10555_v28 = vld [vmem:[#allocation11 + $0x2b8] sm:$0xf]  ;;  %vm16364_vm5 = vmor %vm9368_vm4, %vm9369_vm2 }
 0x42d   :  { %v15091_v14 = vld [vmem:[#allocation11 + $0x1434] sm:$0xf]  ;;  %v10556_v16 = vor.u32 %v14540_v54, %v10555_v28 }
 0x42e   :  { %8997 = vmatpush.bf16.msra.mxu1 %v13048_v47  ;;  %8908 = vmatpush.bf16.msra.mxu2 %v13428_v17  ;;  %v14947_v47 = vld [vmem:[#allocation11 + $0xfb4] sm:$0xf]  ;;  %v10684_v17 = vor.u32 %v14572_v29, %v10683_v20  ;;  %v10491_v20 = vld [vmem:[#allocation11 + $0x238] sm:$0xf] }
 0x42f   :  { %v12789_v57 = vld [vmem:[#allocation11 + $0x1470] sm:$0xf0]  ;;  %v12216_v18 = vor.u32 %v14947_v47, %v12213_v39  ;;  %v16332_v47 = vpop.eup %15507  ;;  %v11003_v29 = vld [vmem:[#allocation11 + $0x638] sm:$0xf] }
 0x430   :  { %8985 = vmatpush.bf16.msra.mxu0 %v12472_v52  ;;  %8921 = vmatpush.bf16.msra.mxu3 %v13940_v50  ;;  %v8667_v52 = vpop.f32.mrf.mxu3  ;;  %v12792_v7 = vor.u32 %v15091_v14, %v12789_v57  ;;  %v14803_v6 = vld [vmem:[#allocation11 + $0xb34] sm:$0xf]  ;;  %v11196_v50 = vor.u32 %v14700_v33, %v11195_v24  ;;  %v14652_v24 = vld [vmem:[#allocation11 + $0x674] sm:$0xf0]  ;;  %v9288_v33 = vmul.f32 %v16332_v47, %v16318_v5  ;;  %vm9293_vm0 = vweird.f32 %v16332_v47 }
 0x431   :  { %v11637_v43 = vld [vmem:[#allocation11 + $0xb70] sm:$0xf0]  ;;  %vm16356_vm3 = vmor %vm9292_vm1, %vm9293_vm0 }
 0x432   :  { %8998 = vmatpush.bf16.msra.mxu1 %v12984_v55  ;;  %8909 = vmatpush.bf16.msra.mxu2 %v13364_v38  ;;  %v11704_v55 = vor.u32 %v14819_v48, %v11701_v15  ;;  %v14931_v9 = vld [vmem:[#allocation11 + $0xf34] sm:$0xf]  ;;  %v11640_v59 = vor.u32 %v14803_v6, %v11637_v43  ;;  %v10620_v38 = vor.u32 %v14556_v1, %v10619_v13  ;;  %v11067_v48 = vld [vmem:[#allocation11 + $0x6b8] sm:$0xf] }
 0x433   :  { %v12149_v27 = vld [vmem:[#allocation11 + $0xf70] sm:$0xf0]  ;;  %v14668_v15 = vld [vmem:[#allocation11 + $0x6f4] sm:$0xf0]  ;;  %v11004_v6 = vor.u32 %v14652_v24, %v11003_v29 }
 0x434   :  { %8986 = vmatpush.bf16.msra.mxu0 %v12408_v42  ;;  %8922 = vmatpush.bf16.msra.mxu3 %v13876_v23  ;;  %v11131_v42 = vld [vmem:[#allocation11 + $0x738] sm:$0xf]  ;;  %v12152_v31 = vor.u32 %v14931_v9, %v12149_v27  ;;  %v14787_v19 = vld [vmem:[#allocation11 + $0xab4] sm:$0xf]  ;;  %v11068_v4 = vor.u32 %v14668_v15, %v11067_v48 }
 0x435   :  { %v11573_v12 = vld [vmem:[#allocation11 + $0xaf0] sm:$0xf0]  ;;  %v14508_v13 = vld [vmem:[#allocation11 + $0x1f4] sm:$0xf0] }
 0x436   :  { %8999 = vmatpush.bf16.msra.mxu1 %v12920_v58  ;;  %8910 = vmatpush.bf16.msra.mxu2 %v13300_v56  ;;  %v14684_v58 = vld [vmem:[#allocation11 + $0x774] sm:$0xf0]  ;;  %v14915_v53 = vld [vmem:[#allocation11 + $0xeb4] sm:$0xf]  ;;  %v8666_v56 = vadd.f32 %v16316_v11, %v8653_v63 }
 0x437   :  { %v11132_v23 = vor.u32 %v14684_v58, %v11131_v42  ;;  %v12085_v2 = vld [vmem:[#allocation11 + $0xef0] sm:$0xf0]  ;;  %v10427_v11 = vld [vmem:[#allocation11 + $0x1b8] sm:$0xf]  ;;  %v9289_v58 = vsub.f32 1.0, %v9288_v33 }
 0x438   :  { %8987 = vmatpush.bf16.msra.mxu0 %v12344_v30  ;;  %8923 = vmatpush.bf16.msra.mxu3 %v13812_v32  ;;  %v9364_v30 = vmul.f32 %v16324_v41, %v16320_v49  ;;  %v12088_v3 = vor.u32 %v14915_v53, %v12085_v2  ;;  %v14771_v60 = vld [vmem:[#allocation11 + $0xa34] sm:$0xf]  ;;  %v14524_v32 = vld [vmem:[#allocation11 + $0x274] sm:$0xf0] }
 0x439   :  { %8911 = vmatmul.bf16.vlgmr.msra.gmra.mxu2 %v15939_v8  ;;  %v11509_v39 = vld [vmem:[#allocation11 + $0xa70] sm:$0xf0]  ;;  %v10939_v1 = vld [vmem:[#allocation11 + $0x5b8] sm:$0xf] }
 0x43a   :  { %9000 = vmatpush.bf16.msra.mxu1 %v12856_v34  ;;  %8955 = vmatpush.bf16.msrb.mxu2 %v11704_v55  ;;  %v11576_v34 = vor.u32 %v14787_v19, %v11573_v12  ;;  %v14899_v14 = vld [vmem:[#allocation11 + $0xe34] sm:$0xf]  ;;  %v9365_v46 = vsub.f32 1.0, %v9364_v30  ;;  %v11512_v52 = vor.u32 %v14771_v60, %v11509_v39  ;;  %v14636_v42 = vld [vmem:[#allocation11 + $0x5f4] sm:$0xf0]  ;;  %v8717_v60 = vpop.f32.mrf.mxu3  ;;  %v9290_v39 = vmul.f32 %v16332_v47, %v9289_v58 }
 0x43b   :  { %8924 = vmatmul.bf16.vlgmr.msra.gmra.mxu3 %v15941_v22  ;;  %v12021_v57 = vld [vmem:[#allocation11 + $0xe70] sm:$0xf0]  ;;  %v9296_v19 = vand.u32 2147483647, %v16318_v5  ;;  %v10940_v53 = vor.u32 %v14636_v42, %v10939_v1  ;;  %v10363_v63 = vld [vmem:[#allocation11 + $0x138] sm:$0xf] }
 0x43c   :  { %8968 = vmatpush.bf16.msrb.mxu3 %v12216_v18  ;;  %8988 = vmatpush.bf16.msra.mxu0 %v12280_v61  ;;  %v12024_v55 = vor.u32 %v14899_v14, %v12021_v57  ;;  %v14755_v18 = vld [vmem:[#allocation11 + $0x9b4] sm:$0xf]  ;;  %v16340_v9 = vpop.f32.mrf.mxu0  ;;  %v14492_v48 = vld [vmem:[#allocation11 + $0x174] sm:$0xf0] }
 0x43d   :  { %v11445_v61 = vld [vmem:[#allocation11 + $0x9f0] sm:$0xf0]  ;;  %v10875_v15 = vld [vmem:[#allocation11 + $0x538] sm:$0xf]  ;;  %v10364_v24 = vor.u32 %v14492_v48, %v10363_v63  ;;  %vm9297_vm7 = vcmp.eq.f32.partialorder %v9296_v19, 8.507059e+37 }
 0x43e   :  { %9001 = vmatpush.bf16.msra.mxu1 %v12792_v7  ;;  %8956 = vmatpush.bf16.msrb.mxu2 %v11640_v59  ;;  %v10492_v7 = vor.u32 %v14524_v32, %v10491_v20  ;;  %v14883_v43 = vld [vmem:[#allocation11 + $0xdb4] sm:$0xf]  ;;  %v16342_v27 = vpop.f32.mrf.mxu1  ;;  %v11448_v59 = vor.u32 %v14755_v18, %v11445_v61  ;;  %v14620_v30 = vld [vmem:[#allocation11 + $0x574] sm:$0xf0] }
 0x43f   :  { %8989 = vmatmul.bf16.vlgmr.msra.gmra.mxu0 %v15907_v36  ;;  %v14739_v12 = vld [vmem:[#allocation11 + $0x934] sm:$0xf]  ;;  %v10876_v33 = vor.u32 %v14620_v30, %v10875_v15  ;;  %v10235_v48 = vld [vmem:[#allocation11 + $0x38] sm:$0xf] }
 0x440   :  { %9033 = vmatpush.bf16.msrb.mxu0 %v10684_v17  ;;  %8969 = vmatpush.bf16.msrb.mxu3 %v12152_v31  ;;  %v11957_v17 = vld [vmem:[#allocation11 + $0xdf0] sm:$0xf0]  ;;  %v14460_v15 = vld [vmem:[#allocation11 + $0x74] sm:$0xf0] }
 0x441   :  { %9002 = vmatmul.bf16.vlgmr.msra.gmra.mxu1 %v15909_v37  ;;  %v11960_v31 = vor.u32 %v14883_v43, %v11957_v17  ;;  %v14867_v2 = vld [vmem:[#allocation11 + $0xd34] sm:$0xf]  ;;  %v10811_v43 = vld [vmem:[#allocation11 + $0x4b8] sm:$0xf] }
 0x442   :  { %9046 = vmatpush.bf16.msrb.mxu1 %v11196_v50  ;;  %8957 = vmatpush.bf16.msrb.mxu2 %v11576_v34  ;;  %v8679_v50 = vadd.f32 %v16261_v10, %v8666_v56  ;;  %v10428_v10 = vor.u32 %v14508_v13, %v10427_v11  ;;  %v11893_v28 = vld [vmem:[#allocation11 + $0xd70] sm:$0xf0]  ;;  %v9374_v34 = vand.u32 2147483648, %v16320_v49  ;;  %v14604_v17 = vld [vmem:[#allocation11 + $0x4f4] sm:$0xf0]  ;;  %v9291_v13 = vadd.f32 %v16332_v47, %v9290_v39 }
 0x443   :  { %v11896_v20 = vor.u32 %v14867_v2, %v11893_v28  ;;  %v14723_v56 = vld [vmem:[#allocation11 + $0x8b4] sm:$0xf]  ;;  %v14588_v39 = vld [vmem:[#allocation11 + $0x474] sm:$0xf0] }
 0x444   :  { %9034 = vmatpush.bf16.msrb.mxu0 %v10620_v38  ;;  %8970 = vmatpush.bf16.msrb.mxu3 %v12088_v3  ;;  %v11381_v38 = vld [vmem:[#allocation11 + $0x970] sm:$0xf0]  ;;  %v8692_v54 = vadd.f32 %v16263_v21, %v8679_v50  ;;  %v8704_v3 = vpop.f32.mrf.mxu2  ;;  %v8784_v61 = vpop.f32.mrf.mxu0  ;;  %v9375_v50 = vor.u32 1.1754944e-38, %v9374_v34  ;;  %v9295_v30 = vsel %vm16356_vm3, %v16332_v47, %v9291_v13  ;;  %v13179_v19 = vld [vmem:[#allocation11 + $0x1738] sm:$0xf] }
 0x445   :  { %v11384_v57 = vor.u32 %v14739_v12, %v11381_v38  ;;  %v11317_v32 = vld [vmem:[#allocation11 + $0x8f0] sm:$0xf0]  ;;  %v15196_v11 = vld [vmem:[#allocation11 + $0x1774] sm:$0xf0] }
 0x446   :  { %9047 = vmatpush.bf16.msrb.mxu1 %v11132_v23  ;;  %8958 = vmatpush.bf16.msrb.mxu2 %v11512_v52  ;;  %v9366_v23 = vmul.f32 %v16324_v41, %v9365_v46  ;;  %v8705_v21 = vadd.f32 %v8704_v3, %v8692_v54  ;;  %v14851_v46 = vld [vmem:[#allocation11 + $0xcb4] sm:$0xf]  ;;  %v11320_v58 = vor.u32 %v14723_v56, %v11317_v32  ;;  %v8719_v3 = vpop.f32.mrf.mxu3  ;;  %v15212_v56 = vld [vmem:[#allocation11 + $0x17f4] sm:$0xf0] }
 0x447   :  { %v11829_v52 = vld [vmem:[#allocation11 + $0xcf0] sm:$0xf0] }
 0x448   :  { %9035 = vmatpush.bf16.msrb.mxu0 %v10556_v16  ;;  %8971 = vmatpush.bf16.msrb.mxu3 %v12024_v55  ;;  %v9298_v16 = vand.u32 2147483648, %v16318_v5  ;;  %v9367_v29 = vadd.f32 %v16324_v41, %v9366_v23  ;;  %v10299_v55 = vld [vmem:[#allocation11 + $0xb8] sm:$0xf]  ;;  %v8718_v18 = vadd.f32 %v8717_v60, %v8705_v21  ;;  %v14835_v12 = vld [vmem:[#allocation11 + $0xc34] sm:$0xf] }
 0x449   :  { %v11765_v38 = vld [vmem:[#allocation11 + $0xc70] sm:$0xf0]  ;;  %v10747_v60 = vld [vmem:[#allocation11 + $0x438] sm:$0xf] }
 0x44a   :  { %9048 = vmatpush.bf16.msrb.mxu1 %v11068_v4  ;;  %v9372_v4 = vand.u32 2147483647, %v16320_v49  ;;  %8959 = vmatpush.bf16.msrb.mxu2 %v11448_v59  ;;  %v9299_v1 = vor.u32 1.1754944e-38, %v9298_v16  ;;  %v14707_v49 = vld [vmem:[#allocation11 + $0x834] sm:$0xf]  ;;  %15509 = vtanh.f32 %v8718_v18  ;;  %v11832_v59 = vor.u32 %v14851_v46, %v11829_v52 }
 0x44b   :  { %v9371_v23 = vsel %vm16364_vm5, %v16324_v41, %v9367_v29  ;;  %v15331_v2 = vld [vmem:[#allocation11 + $0x1bb4] sm:$0xf]  ;;  %v12731_v16 = vld [vmem:[#allocation11 + $0x13b8] sm:$0xf]  ;;  %v11768_v21 = vor.u32 %v14835_v12, %v11765_v38  ;;  %v10748_v46 = vor.u32 %v14588_v39, %v10747_v60 }
 0x44c   :  { %9036 = vmatpush.bf16.msrb.mxu0 %v10492_v7  ;;  %8972 = vmatpush.bf16.msrb.mxu3 %v11960_v31  ;;  %v8797_v7 = vpop.f32.mrf.mxu1  ;;  %vm16369_vm6 = vcmp.eq.f32.partialorder %v9372_v4, 8.507059e+37  ;;  %v11253_v31 = vld [vmem:[#allocation11 + $0x870] sm:$0xf0]  ;;  %v8706_v34 = vpop.f32.mrf.mxu2  ;;  %v15068_v5 = vld [vmem:[#allocation11 + $0x1374] sm:$0xf0] }
 0x44d   :  { %v13749_v28 = vld [vmem:[#allocation11 + $0x1bf0] sm:$0xf0]  ;;  %v9376_v41 = vsel %vm16369_vm6, %v9375_v50, %v9371_v23  ;;  %v11256_v4 = vor.u32 %v14707_v49, %v11253_v31  ;;  %v13180_v31 = vor.u32 %v15196_v11, %v13179_v19  ;;  %v12603_v12 = vld [vmem:[#allocation11 + $0x12b8] sm:$0xf] }
 0x44e   :  { %9049 = vmatpush.bf16.msrb.mxu1 %v11004_v6  ;;  %v14476_v6 = vld [vmem:[#allocation11 + $0xf4] sm:$0xf0]  ;;  %8960 = vmatpush.bf16.msrb.mxu2 %v11384_v57  ;;  %v15459_v63 = vld [vmem:[#allocation11 + $0x1fb4] sm:$0xf]  ;;  %v13752_v47 = vor.u32 %v15331_v2, %v13749_v28  ;;  %v9475_v61 = vmul.f32 %v9376_v41, %v15933_v35  ;;  %v14280_v2 = vmul.f32 -1.442695, %v16143_v51 }
 0x44f   :  { %v14261_v54 = vld [vmem:[#allocation11 + $0x1ff0] sm:$0xf0]  ;;  %v15084_v57 = vld [vmem:[#allocation11 + $0x13f4] sm:$0xf0] }
 0x450   :  { %9037 = vmatpush.bf16.msrb.mxu0 %v10428_v10  ;;  %8973 = vmatpush.bf16.msrb.mxu3 %v11896_v20  ;;  %v10300_v10 = vor.u32 %v14476_v6, %v10299_v55  ;;  %v13243_v20 = vld [vmem:[#allocation11 + $0x17b8] sm:$0xf]  ;;  %v14264_v14 = vor.u32 %v15459_v63, %v14261_v54  ;;  %v15315_v32 = vld [vmem:[#allocation11 + $0x1b34] sm:$0xf]  ;;  %v15510_v29 = vpop.eup %15509  ;;  %v12732_v6 = vor.u32 %v15084_v57, %v12731_v16 }
 0x451   :  { %v13685_v52 = vld [vmem:[#allocation11 + $0x1b70] sm:$0xf0]  ;;  %v15052_v38 = vld [vmem:[#allocation11 + $0x12f4] sm:$0xf0] }
 0x452   :  { %9050 = vmatpush.bf16.msrb.mxu1 %v10940_v53  ;;  %v10812_v53 = vor.u32 %v14604_v17, %v10811_v43  ;;  %8961 = vmatpush.bf16.msrb.mxu2 %v11320_v58  ;;  %v15443_v55 = vld [vmem:[#allocation11 + $0x1f34] sm:$0xf]  ;;  %v13244_v43 = vor.u32 %v15212_v56, %v13243_v20  ;;  %v12667_v17 = vld [vmem:[#allocation11 + $0x1338] sm:$0xf]  ;;  %v13688_v13 = vor.u32 %v15315_v32, %v13685_v52  ;;  %v16393_v56 = vld [vmem:[#allocation12 + $0x8] sm:$0xff] }
 0x453   :  { %v14197_v18 = vld [vmem:[#allocation11 + $0x1f70] sm:$0xf0]  ;;  %v13115_v23 = vld [vmem:[#allocation11 + $0x16b8] sm:$0xf]  ;;  %v12604_v34 = vor.u32 %v15052_v38, %v12603_v12 }
 0x454   :  { %9038 = vmatpush.bf16.msrb.mxu0 %v10364_v24  ;;  %8974 = vmatpush.bf16.msrb.mxu3 %v11832_v59  ;;  %v9300_v24 = vsel %vm9297_vm7, %v9299_v1, %v9295_v30  ;;  %v14200_v1 = vor.u32 %v15443_v55, %v14197_v18  ;;  %v15299_v42 = vld [vmem:[#allocation11 + $0x1ab4] sm:$0xf]  ;;  %v12668_v59 = vor.u32 %v15068_v5, %v12667_v17  ;;  %v12539_v60 = vld [vmem:[#allocation11 + $0x1238] sm:$0xf] }
 0x455   :  { %v9479_v7 = vmul.f32 %v15510_v29, %v9300_v24  ;;  %v13621_v49 = vld [vmem:[#allocation11 + $0x1af0] sm:$0xf0]  ;;  %v13051_v39 = vld [vmem:[#allocation11 + $0x1638] sm:$0xf] }
 0x456   :  { %9051 = vmatpush.bf16.msrb.mxu1 %v10876_v33  ;;  %v10236_v33 = vor.u32 %v14460_v15, %v10235_v48  ;;  %8962 = vmatpush.bf16.msrb.mxu2 %v11256_v4  ;;  %v15427_v35 = vld [vmem:[#allocation11 + $0x1eb4] sm:$0xf]  ;;  %v13624_v28 = vor.u32 %v15299_v42, %v13621_v49  ;;  %v15164_v51 = vld [vmem:[#allocation11 + $0x1674] sm:$0xf0] }
 0x457   :  { %v16384_v50 = vadd.f32 %v9479_v7, %v9475_v61  ;;  %v14133_v58 = vld [vmem:[#allocation11 + $0x1ef0] sm:$0xf0]  ;;  %v13052_v32 = vor.u32 %v15164_v51, %v13051_v39  ;;  %v12475_v29 = vld [vmem:[#allocation11 + $0x11b8] sm:$0xf] }
 0x458   :  { %9039 = vmatpush.bf16.msrb.mxu0 %v10300_v10  ;;  %8975 = vmatpush.bf16.msrb.mxu3 %v11768_v21  ;;  %v15180_v10 = vld [vmem:[#allocation11 + $0x16f4] sm:$0xf0]  ;;  %v14136_v63 = vor.u32 %v15427_v35, %v14133_v58  ;;  %v15283_v54 = vld [vmem:[#allocation11 + $0x1a34] sm:$0xf] }
 0x459   :  { %9499 = vst [vmem:[#allocation15 + $0x10] sm:$0xff] %v16384_v50  ;;  %8963 = vmatmul.bf16.vlgmr.msrb.gmra.mxu2 %v15875_v25  ;;  %v13557_v48 = vld [vmem:[#allocation11 + $0x1a70] sm:$0xf0]  ;;  %v13116_v3 = vor.u32 %v15180_v10, %v13115_v23  ;;  %v15020_v24 = vld [vmem:[#allocation11 + $0x11f4] sm:$0xf0] }
 0x45a   :  { %9052 = vmatpush.bf16.msrb.mxu1 %v10812_v53  ;;  %9007 = vmatpush.bf16.msra.mxu2 %v13752_v47  ;;  %v14276_v53 = vmul.f32 -1.442695, %v16047_v0  ;;  %v15411_v15 = vld [vmem:[#allocation11 + $0x1e34] sm:$0xf]  ;;  %v15036_v0 = vld [vmem:[#allocation11 + $0x1274] sm:$0xf0]  ;;  %v13560_v16 = vor.u32 %v15283_v54, %v13557_v48  ;;  %v12476_v11 = vor.u32 %v15020_v24, %v12475_v29 }
 0x45b   :  { %8976 = vmatmul.bf16.vlgmr.msrb.gmra.mxu3 %v15877_v26  ;;  %v14069_v30 = vld [vmem:[#allocation11 + $0x1e70] sm:$0xf0]  ;;  %v2409_v47 = vperm.slane %v16393_v56, 4  ;;  %v15004_v49 = vld [vmem:[#allocation11 + $0x1174] sm:$0xf0] }
 0x45c   :  { %9020 = vmatpush.bf16.msra.mxu3 %v14264_v14  ;;  %9040 = vmatpush.bf16.msrb.mxu0 %v10236_v33  ;;  %15511 = vpow2.f32 %v14276_v53  ;;  %v14072_v41 = vor.u32 %v15411_v15, %v14069_v30  ;;  %v15267_v4 = vld [vmem:[#allocation11 + $0x19b4] sm:$0xf]  ;;  %v12540_v14 = vor.u32 %v15036_v0, %v12539_v60  ;;  %v12987_v33 = vld [vmem:[#allocation11 + $0x15b8] sm:$0xf]  ;;  %v8834_v61 = vpop.f32.mrf.mxu0 }
 0x45d   :  { %v13493_v21 = vld [vmem:[#allocation11 + $0x19f0] sm:$0xf0]  ;;  %15513 = vpow2.f32 %v14280_v2  ;;  %v8835_v5 = vadd.f32 %v8834_v61, %v2409_v47  ;;  %v12923_v35 = vld [vmem:[#allocation11 + $0x1538] sm:$0xf] }
 0x45e   :  { %9053 = vmatpush.bf16.msrb.mxu1 %v10748_v46  ;;  %9008 = vmatpush.bf16.msra.mxu2 %v13688_v13  ;;  %v15395_v57 = vld [vmem:[#allocation11 + $0x1db4] sm:$0xf]  ;;  %v15148_v46 = vld [vmem:[#allocation11 + $0x15f4] sm:$0xf0]  ;;  %v13496_v52 = vor.u32 %v15267_v4, %v13493_v21  ;;  %v8847_v7 = vpop.f32.mrf.mxu1  ;;  %v16400_v12 = vpop.f32.mrf.mxu3 }
 0x45f   :  { %9041 = vmatmul.bf16.vlgmr.msrb.gmra.mxu0 %v15865_v40  ;;  %v14005_v20 = vld [vmem:[#allocation11 + $0x1df0] sm:$0xf0]  ;;  %v12988_v13 = vor.u32 %v15148_v46, %v12987_v33  ;;  %v15132_v58 = vld [vmem:[#allocation11 + $0x1574] sm:$0xf0] }
 0x460   :  { %9085 = vmatpush.bf16.msra.mxu0 %v12732_v6  ;;  %9021 = vmatpush.bf16.msra.mxu3 %v14200_v1  ;;  %v14008_v55 = vor.u32 %v15395_v57, %v14005_v20  ;;  %v15251_v18 = vld [vmem:[#allocation11 + $0x1934] sm:$0xf]  ;;  %v12411_v1 = vld [vmem:[#allocation11 + $0x1138] sm:$0xf]  ;;  %v12924_v15 = vor.u32 %v15132_v58, %v12923_v35 }
 0x461   :  { %9054 = vmatmul.bf16.vlgmr.msrb.gmra.mxu1 %v15867_v45  ;;  %v13429_v6 = vld [vmem:[#allocation11 + $0x1970] sm:$0xf0]  ;;  %v12412_v48 = vor.u32 %v15004_v49, %v12411_v1  ;;  %v12347_v30 = vld [vmem:[#allocation11 + $0x10b8] sm:$0xf] }
 0x462   :  { %9098 = vmatpush.bf16.msra.mxu1 %v13244_v43  ;;  %9009 = vmatpush.bf16.msra.mxu2 %v13624_v28  ;;  %v15379_v43 = vld [vmem:[#allocation11 + $0x1d34] sm:$0xf]  ;;  %v15512_v19 = vpop.eup %15511  ;;  %v13432_v38 = vor.u32 %v15251_v18, %v13429_v6  ;;  %v15116_v60 = vld [vmem:[#allocation11 + $0x14f4] sm:$0xf0]  ;;  %v14564_v18 = vld [vmem:[#allocation11 + $0x3bc] sm:$0xf] }
 0x463   :  { %v13941_v17 = vld [vmem:[#allocation11 + $0x1d70] sm:$0xf0]  ;;  %v15514_v42 = vpop.eup %15513  ;;  %v11707_v20 = vld [vmem:[#allocation11 + $0xbb8] sm:$0xf]  ;;  %v10685_v6 = vld [vmem:[#allocation11 + $0x3f8] sm:$0xf0] }
 0x464   :  { %9086 = vmatpush.bf16.msra.mxu0 %v12668_v59  ;;  %9022 = vmatpush.bf16.msra.mxu3 %v14136_v63  ;;  %v16396_v59 = vadd.f32 %v8847_v7, %v8835_v5  ;;  %v13944_v23 = vor.u32 %v15379_v43, %v13941_v17  ;;  %v15235_v10 = vld [vmem:[#allocation11 + $0x18b4] sm:$0xf]  ;;  %v16402_v63 = vadd.f32 1.0, %v15512_v19  ;;  %v16404_v54 = vadd.f32 1.0, %v15514_v42  ;;  %v8836_v21 = vpop.f32.mrf.mxu0  ;;  %v14828_v47 = vld [vmem:[#allocation11 + $0xbf4] sm:$0xf0] }
 0x465   :  { %v13365_v53 = vld [vmem:[#allocation11 + $0x18f0] sm:$0xf0]  ;;  %v14956_v24 = vld [vmem:[#allocation11 + $0xff4] sm:$0xf0]  ;;  %v14692_v43 = vld [vmem:[#allocation11 + $0x7bc] sm:$0xf]  ;;  %v10688_v58 = vor.u32 %v14564_v18, %v10685_v6 }
 0x466   :  { %9099 = vmatpush.bf16.msra.mxu1 %v13180_v31  ;;  %9010 = vmatpush.bf16.msra.mxu2 %v13560_v16  ;;  %v16398_v31 = vpop.f32.mrf.mxu2  ;;  %v15363_v2 = vld [vmem:[#allocation11 + $0x1cb4] sm:$0xf]  ;;  %v13368_v39 = vor.u32 %v15235_v10, %v13365_v53  ;;  %v8849_v57 = vpop.f32.mrf.mxu1  ;;  %v12283_v33 = vld [vmem:[#allocation11 + $0x1038] sm:$0xf]  ;;  %v11197_v17 = vld [vmem:[#allocation11 + $0x7f8] sm:$0xf0]  ;;  %15515 = vrcp.f32 %v16404_v54  ;;  %vm9307_vm9 = vweird.f32 %v16402_v63  ;;  %vm9383_vm12 = vweird.f32 %v16404_v54 }
 0x467   :  { %v13877_v28 = vld [vmem:[#allocation11 + $0x1cf0] sm:$0xf0]  ;;  %v14972_v46 = vld [vmem:[#allocation11 + $0x1074] sm:$0xf0]  ;;  %v8771_v19 = vpop.f32.mrf.mxu3  ;;  %v14548_v53 = vld [vmem:[#allocation11 + $0x33c] sm:$0xf]  ;;  %15517 = vrcp.f32 %v16402_v63 }
 0x468   :  { %9087 = vmatpush.bf16.msra.mxu0 %v12604_v34  ;;  %9023 = vmatpush.bf16.msra.mxu3 %v14072_v41  ;;  %v14988_v34 = vld [vmem:[#allocation11 + $0x10f4] sm:$0xf0]  ;;  %v15219_v0 = vld [vmem:[#allocation11 + $0x1834] sm:$0xf]  ;;  %v13880_v51 = vor.u32 %v15363_v2, %v13877_v28  ;;  %v12284_v1 = vor.u32 %v14972_v46, %v12283_v33  ;;  %v10621_v2 = vld [vmem:[#allocation11 + $0x378] sm:$0xf0] }
 0x469   :  { %v13301_v16 = vld [vmem:[#allocation11 + $0x1870] sm:$0xf0]  ;;  %v11643_v49 = vld [vmem:[#allocation11 + $0xb38] sm:$0xf]  ;;  %v14676_v28 = vld [vmem:[#allocation11 + $0x73c] sm:$0xf] }
 0x46a   :  { %9100 = vmatpush.bf16.msra.mxu1 %v13116_v3  ;;  %9011 = vmatpush.bf16.msra.mxu2 %v13496_v52  ;;  %v12859_v3 = vld [vmem:[#allocation11 + $0x14b8] sm:$0xf]  ;;  %v15347_v41 = vld [vmem:[#allocation11 + $0x1c34] sm:$0xf]  ;;  %v13304_v61 = vor.u32 %v15219_v0, %v13301_v16  ;;  %v10624_v0 = vor.u32 %v14548_v53, %v10621_v2  ;;  %v10557_v21 = vld [vmem:[#allocation11 + $0x2f8] sm:$0xf0] }
 0x46b   :  { %v13813_v4 = vld [vmem:[#allocation11 + $0x1c70] sm:$0xf0]  ;;  %v12860_v29 = vor.u32 %v15116_v60, %v12859_v3  ;;  %v12795_v52 = vld [vmem:[#allocation11 + $0x1438] sm:$0xf]  ;;  %v14660_v57 = vld [vmem:[#allocation11 + $0x6bc] sm:$0xf] }
 0x46c   :  { %9088 = vmatpush.bf16.msra.mxu0 %v12540_v14  ;;  %9024 = vmatpush.bf16.msra.mxu3 %v14008_v55  ;;  %v12219_v14 = vld [vmem:[#allocation11 + $0xfb8] sm:$0xf]  ;;  %v13816_v7 = vor.u32 %v15347_v41, %v13813_v4  ;;  %v16408_v60 = vpop.eup %15515  ;;  %v14532_v41 = vld [vmem:[#allocation11 + $0x2bc] sm:$0xf]  ;;  %v8757_v4 = vadd.f32 %v16398_v31, %v16312_v44 }
 0x46d   :  { %v15100_v55 = vld [vmem:[#allocation11 + $0x1474] sm:$0xf0]  ;;  %v11005_v6 = vld [vmem:[#allocation11 + $0x678] sm:$0xf0]  ;;  %vm9384_vm10 = vweird.f32 %v16408_v60 }
 0x46e   :  { %9101 = vmatpush.bf16.msra.mxu1 %v13052_v32  ;;  %9012 = vmatpush.bf16.msra.mxu2 %v13432_v38  ;;  %v12348_v32 = vor.u32 %v14988_v34, %v12347_v30  ;;  %v8758_v5 = vpop.f32.mrf.mxu2  ;;  %v12796_v42 = vor.u32 %v15100_v55, %v12795_v52  ;;  %v14812_v35 = vld [vmem:[#allocation11 + $0xb74] sm:$0xf0]  ;;  %v11200_v38 = vor.u32 %v14692_v43, %v11197_v17  ;;  %v14516_v55 = vld [vmem:[#allocation11 + $0x23c] sm:$0xf]  ;;  %vm16448_vm13 = vmor %vm9383_vm12, %vm9384_vm10 }
 0x46f   :  { %v14940_v10 = vld [vmem:[#allocation11 + $0xf74] sm:$0xf0]  ;;  %v8770_v18 = vadd.f32 %v16400_v12, %v8757_v4  ;;  %v14500_v12 = vld [vmem:[#allocation11 + $0x1bc] sm:$0xf] }
 0x470   :  { %9089 = vmatpush.bf16.msra.mxu0 %v12476_v11  ;;  %9025 = vmatpush.bf16.msra.mxu3 %v13944_v23  ;;  %v11708_v11 = vor.u32 %v14828_v47, %v11707_v20  ;;  %v12155_v23 = vld [vmem:[#allocation11 + $0xf38] sm:$0xf]  ;;  %v11069_v20 = vld [vmem:[#allocation11 + $0x6f8] sm:$0xf0]  ;;  %v16416_v47 = vpop.eup %15517 }
 0x471   :  { %v12156_v30 = vor.u32 %v14940_v10, %v12155_v23  ;;  %v11579_v34 = vld [vmem:[#allocation11 + $0xab8] sm:$0xf]  ;;  %v11072_v33 = vor.u32 %v14660_v57, %v11069_v20  ;;  %v9303_v43 = vmul.f32 %v16416_v47, %v16402_v63  ;;  %v10429_v10 = vld [vmem:[#allocation11 + $0x1f8] sm:$0xf0]  ;;  %vm9308_vm8 = vweird.f32 %v16416_v47 }
 0x472   :  { %9102 = vmatpush.bf16.msra.mxu1 %v12988_v13  ;;  %9013 = vmatpush.bf16.msra.mxu2 %v13368_v39  ;;  %v12220_v13 = vor.u32 %v14956_v24, %v12219_v14  ;;  %v14796_v3 = vld [vmem:[#allocation11 + $0xaf4] sm:$0xf0]  ;;  %v9379_v14 = vmul.f32 %v16408_v60, %v16404_v54  ;;  %v10560_v24 = vor.u32 %v14532_v41, %v10557_v21  ;;  %v14628_v53 = vld [vmem:[#allocation11 + $0x5bc] sm:$0xf]  ;;  %vm16440_vm11 = vmor %vm9307_vm9, %vm9308_vm8 }
 0x473   :  { %v14924_v16 = vld [vmem:[#allocation11 + $0xef4] sm:$0xf0]  ;;  %v10941_v2 = vld [vmem:[#allocation11 + $0x5f8] sm:$0xf0] }
 0x474   :  { %9090 = vmatpush.bf16.msra.mxu0 %v12412_v48  ;;  %9026 = vmatpush.bf16.msra.mxu3 %v13880_v51  ;;  %v11133_v48 = vld [vmem:[#allocation11 + $0x778] sm:$0xf0]  ;;  %v12091_v51 = vld [vmem:[#allocation11 + $0xeb8] sm:$0xf]  ;;  %v9380_v17 = vsub.f32 1.0, %v9379_v14  ;;  %v9389_v14 = vand.u32 2147483648, %v16404_v54 }
 0x475   :  { %v11136_v39 = vor.u32 %v14676_v28, %v11133_v48  ;;  %v12092_v44 = vor.u32 %v14924_v16, %v12091_v51  ;;  %v11515_v31 = vld [vmem:[#allocation11 + $0xa38] sm:$0xf]  ;;  %v9304_v28 = vsub.f32 1.0, %v9303_v43  ;;  %v14484_v41 = vld [vmem:[#allocation11 + $0x13c] sm:$0xf] }
 0x476   :  { %9103 = vmatpush.bf16.msra.mxu1 %v12924_v15  ;;  %9014 = vmatpush.bf16.msra.mxu2 %v13304_v61  ;;  %v11644_v15 = vor.u32 %v14812_v35, %v11643_v49  ;;  %v12027_v46 = vld [vmem:[#allocation11 + $0xe38] sm:$0xf]  ;;  %v10493_v61 = vld [vmem:[#allocation11 + $0x278] sm:$0xf0] }
 0x477   :  { %v14908_v52 = vld [vmem:[#allocation11 + $0xe74] sm:$0xf0]  ;;  %v10365_v21 = vld [vmem:[#allocation11 + $0x178] sm:$0xf0] }
 0x478   :  { %9091 = vmatpush.bf16.msra.mxu0 %v12348_v32  ;;  %9027 = vmatpush.bf16.msra.mxu3 %v13816_v7  ;;  %v11580_v32 = vor.u32 %v14796_v3, %v11579_v34  ;;  %v14644_v7 = vld [vmem:[#allocation11 + $0x63c] sm:$0xf]  ;;  %v12028_v19 = vor.u32 %v14908_v52, %v12027_v46  ;;  %v11963_v49 = vld [vmem:[#allocation11 + $0xdb8] sm:$0xf] }
 0x479   :  { %9015 = vmatmul.bf16.vlgmr.msra.gmra.mxu2 %v15939_v8  ;;  %v14892_v35 = vld [vmem:[#allocation11 + $0xdf4] sm:$0xf0]  ;;  %v14612_v57 = vld [vmem:[#allocation11 + $0x53c] sm:$0xf] }
 0x47a   :  { %9104 = vmatpush.bf16.msra.mxu1 %v12860_v29  ;;  %9059 = vmatpush.bf16.msrb.mxu2 %v11708_v11  ;;  %v14780_v29 = vld [vmem:[#allocation11 + $0xa74] sm:$0xf0]  ;;  %v10877_v20 = vld [vmem:[#allocation11 + $0x578] sm:$0xf0] }
 0x47b   :  { %9028 = vmatmul.bf16.vlgmr.msra.gmra.mxu3 %v15941_v22  ;;  %v11516_v5 = vor.u32 %v14780_v29, %v11515_v31  ;;  %v11451_v11 = vld [vmem:[#allocation11 + $0x9b8] sm:$0xf]  ;;  %v9305_v31 = vmul.f32 %v16416_v47, %v9304_v28  ;;  %v9313_v29 = vand.u32 2147483648, %v16402_v63 }
 0x47c   :  { %9072 = vmatpush.bf16.msrb.mxu3 %v12220_v13  ;;  %9092 = vmatpush.bf16.msra.mxu0 %v12284_v1  ;;  %v14764_v13 = vld [vmem:[#allocation11 + $0x9f4] sm:$0xf0]  ;;  %v10496_v1 = vor.u32 %v14516_v55, %v10493_v61 }
 0x47d   :  { %v11452_v48 = vor.u32 %v14764_v13, %v11451_v11  ;;  %v11387_v34 = vld [vmem:[#allocation11 + $0x938] sm:$0xf] }
 0x47e   :  { %9105 = vmatpush.bf16.msra.mxu1 %v12796_v42  ;;  %9060 = vmatpush.bf16.msrb.mxu2 %v11644_v15  ;;  %v11008_v42 = vor.u32 %v14644_v7, %v11005_v6  ;;  %v16426_v23 = vpop.f32.mrf.mxu1  ;;  %v11964_v15 = vor.u32 %v14892_v35, %v11963_v49  ;;  %v14748_v3 = vld [vmem:[#allocation11 + $0x974] sm:$0xf0]  ;;  %v10368_v7 = vor.u32 %v14484_v41, %v10365_v21  ;;  %v10813_v49 = vld [vmem:[#allocation11 + $0x4f8] sm:$0xf0] }
 0x47f   :  { %9093 = vmatmul.bf16.vlgmr.msra.gmra.mxu0 %v15907_v36  ;;  %v11899_v51 = vld [vmem:[#allocation11 + $0xd38] sm:$0xf]  ;;  %v11388_v46 = vor.u32 %v14748_v3, %v11387_v34  ;;  %v10880_v6 = vor.u32 %v14612_v57, %v10877_v20  ;;  %v10237_v21 = vld [vmem:[#allocation11 + $0x78] sm:$0xf0] }
 0x480   :  { %9137 = vmatpush.bf16.msrb.mxu0 %v10688_v58  ;;  %9073 = vmatpush.bf16.msrb.mxu3 %v12156_v30  ;;  %v8783_v58 = vadd.f32 %v16340_v9, %v8770_v18  ;;  %v9311_v30 = vand.u32 2147483647, %v16402_v63  ;;  %v10432_v9 = vor.u32 %v14500_v12, %v10429_v10  ;;  %v14876_v16 = vld [vmem:[#allocation11 + $0xd74] sm:$0xf0]  ;;  %v9390_v12 = vor.u32 1.1754944e-38, %v9389_v14 }
 0x481   :  { %9106 = vmatmul.bf16.vlgmr.msra.gmra.mxu1 %v15909_v37  ;;  %v11900_v52 = vor.u32 %v14876_v16, %v11899_v51  ;;  %v11323_v55 = vld [vmem:[#allocation11 + $0x8b8] sm:$0xf]  ;;  %v9314_v10 = vor.u32 1.1754944e-38, %v9313_v29  ;;  %v12669_v63 = vld [vmem:[#allocation11 + $0x1378] sm:$0xf0] }
 0x482   :  { %9150 = vmatpush.bf16.msrb.mxu1 %v11200_v38  ;;  %9061 = vmatpush.bf16.msrb.mxu2 %v11580_v32  ;;  %v16424_v38 = vpop.f32.mrf.mxu0  ;;  %v8796_v4 = vadd.f32 %v16342_v27, %v8783_v58  ;;  %v8808_v32 = vpop.f32.mrf.mxu2  ;;  %v14732_v18 = vld [vmem:[#allocation11 + $0x8f4] sm:$0xf0]  ;;  %v9306_v58 = vadd.f32 %v16416_v47, %v9305_v31  ;;  %v15076_v31 = vld [vmem:[#allocation11 + $0x13bc] sm:$0xf]  ;;  %vm9312_vm15 = vcmp.eq.f32.partialorder %v9311_v30, 8.507059e+37 }
 0x483   :  { %v11835_v43 = vld [vmem:[#allocation11 + $0xcb8] sm:$0xf]  ;;  %v15188_v30 = vld [vmem:[#allocation11 + $0x173c] sm:$0xf] }
 0x484   :  { %9138 = vmatpush.bf16.msrb.mxu0 %v10624_v0  ;;  %9074 = vmatpush.bf16.msrb.mxu3 %v12092_v44  ;;  %v9381_v0 = vmul.f32 %v16408_v60, %v9380_v17  ;;  %v8821_v44 = vpop.f32.mrf.mxu3  ;;  %v8809_v27 = vadd.f32 %v8808_v32, %v8796_v4  ;;  %v14860_v17 = vld [vmem:[#allocation11 + $0xcf4] sm:$0xf0]  ;;  %v14452_v4 = vld [vmem:[#allocation11 + $0x3c] sm:$0xf]  ;;  %v9310_v57 = vsel %vm16440_vm11, %v16416_v47, %v9306_v58 }
 0x485   :  { %v11836_v28 = vor.u32 %v14860_v17, %v11835_v43  ;;  %v14844_v34 = vld [vmem:[#allocation11 + $0xc74] sm:$0xf0]  ;;  %v14580_v32 = vld [vmem:[#allocation11 + $0x43c] sm:$0xf] }
 0x486   :  { %9151 = vmatpush.bf16.msrb.mxu1 %v11136_v39  ;;  %9062 = vmatpush.bf16.msrb.mxu2 %v11516_v5  ;;  %v10944_v39 = vor.u32 %v14628_v53, %v10941_v2  ;;  %v9382_v61 = vadd.f32 %v16408_v60, %v9381_v0  ;;  %v14468_v5 = vld [vmem:[#allocation11 + $0xbc] sm:$0xf]  ;;  %v8901_v13 = vpop.f32.mrf.mxu1  ;;  %v11324_v2 = vor.u32 %v14732_v18, %v11323_v55  ;;  %v15340_v51 = vld [vmem:[#allocation11 + $0x1bf4] sm:$0xf0] }
 0x487   :  { %v14267_v16 = vld [vmem:[#allocation11 + $0x1fb8] sm:$0xf] }
 0x488   :  { %9139 = vmatpush.bf16.msrb.mxu0 %v10560_v24  ;;  %9075 = vmatpush.bf16.msrb.mxu3 %v12028_v19  ;;  %v9387_v24 = vand.u32 2147483647, %v16404_v54  ;;  %v8822_v19 = vadd.f32 %v8821_v44, %v8809_v27  ;;  %v11259_v54 = vld [vmem:[#allocation11 + $0x838] sm:$0xf]  ;;  %v9386_v3 = vsel %vm16448_vm13, %v16408_v60, %v9382_v61  ;;  %v10749_v44 = vld [vmem:[#allocation11 + $0x478] sm:$0xf0]  ;;  %v9315_v61 = vsel %vm9312_vm15, %v9314_v10, %v9310_v57 }
 0x489   :  { %v15468_v41 = vld [vmem:[#allocation11 + $0x1ff4] sm:$0xf0]  ;;  %v12733_v27 = vld [vmem:[#allocation11 + $0x13f8] sm:$0xf0] }
 0x48a   :  { %9152 = vmatpush.bf16.msrb.mxu1 %v11072_v33  ;;  %9063 = vmatpush.bf16.msrb.mxu2 %v11452_v48  ;;  %v8888_v11 = vpop.f32.mrf.mxu0  ;;  %vm16453_vm14 = vcmp.eq.f32.partialorder %v9387_v24, 8.507059e+37  ;;  %15519 = vtanh.f32 %v8822_v19  ;;  %v14716_v48 = vld [vmem:[#allocation11 + $0x874] sm:$0xf0]  ;;  %v8810_v20 = vpop.f32.mrf.mxu2  ;;  %v14268_v33 = vor.u32 %v15468_v41, %v14267_v16  ;;  %v12736_v13 = vor.u32 %v15076_v31, %v12733_v27  ;;  %v15028_v57 = vld [vmem:[#allocation11 + $0x123c] sm:$0xf] }
 0x48b   :  { %v9391_v60 = vsel %vm16453_vm14, %v9390_v12, %v9386_v3  ;;  %v11260_v29 = vor.u32 %v14716_v48, %v11259_v54  ;;  %v13691_v55 = vld [vmem:[#allocation11 + $0x1b38] sm:$0xf]  ;;  %v15044_v48 = vld [vmem:[#allocation11 + $0x12bc] sm:$0xf] }
 0x48c   :  { %9140 = vmatpush.bf16.msrb.mxu0 %v10496_v1  ;;  %9076 = vmatpush.bf16.msrb.mxu3 %v11964_v15  ;;  %v10301_v1 = vld [vmem:[#allocation11 + $0xf8] sm:$0xf0]  ;;  %v11771_v15 = vld [vmem:[#allocation11 + $0xc38] sm:$0xf]  ;;  %v8823_v14 = vpop.f32.mrf.mxu3  ;;  %v9476_v19 = vmul.f32 %v9391_v60, %v15935_v62 }
 0x48d   :  { %v10304_v0 = vor.u32 %v14468_v5, %v10301_v1  ;;  %v11772_v24 = vor.u32 %v14844_v34, %v11771_v15  ;;  %v15324_v43 = vld [vmem:[#allocation11 + $0x1b74] sm:$0xf0]  ;;  %v12605_v15 = vld [vmem:[#allocation11 + $0x12f8] sm:$0xf0] }
 0x48e   :  { %9153 = vmatpush.bf16.msrb.mxu1 %v11008_v42  ;;  %v14596_v42 = vld [vmem:[#allocation11 + $0x4bc] sm:$0xf]  ;;  %9064 = vmatpush.bf16.msrb.mxu2 %v11388_v46  ;;  %v14203_v17 = vld [vmem:[#allocation11 + $0x1f38] sm:$0xf]  ;;  %v13692_v12 = vor.u32 %v15324_v43, %v13691_v55 }
 0x48f   :  { %v15204_v46 = vld [vmem:[#allocation11 + $0x17bc] sm:$0xf]  ;;  %v15452_v5 = vld [vmem:[#allocation11 + $0x1f74] sm:$0xf0] }
 0x490   :  { %9141 = vmatpush.bf16.msrb.mxu0 %v10432_v9  ;;  %9077 = vmatpush.bf16.msrb.mxu3 %v11900_v52  ;;  %v10816_v9 = vor.u32 %v14596_v42, %v10813_v49  ;;  %v13245_v52 = vld [vmem:[#allocation11 + $0x17f8] sm:$0xf0]  ;;  %v15520_v18 = vpop.eup %15519  ;;  %v14204_v58 = vor.u32 %v15452_v5, %v14203_v17  ;;  %v13627_v10 = vld [vmem:[#allocation11 + $0x1ab8] sm:$0xf] }
 0x491   :  { %v9480_v11 = vmul.f32 %v15520_v18, %v9315_v61  ;;  %v13248_v1 = vor.u32 %v15204_v46, %v13245_v52  ;;  %v15060_v42 = vld [vmem:[#allocation11 + $0x133c] sm:$0xf]  ;;  %v15308_v53 = vld [vmem:[#allocation11 + $0x1af4] sm:$0xf0] }
 0x492   :  { %9154 = vmatpush.bf16.msrb.mxu1 %v10944_v39  ;;  %v13755_v39 = vld [vmem:[#allocation11 + $0x1bb8] sm:$0xf]  ;;  %9065 = vmatpush.bf16.msrb.mxu2 %v11324_v2  ;;  %v13181_v49 = vld [vmem:[#allocation11 + $0x1778] sm:$0xf0]  ;;  %v12672_v2 = vor.u32 %v15060_v42, %v12669_v63 }
 0x493   :  { %v13756_v47 = vor.u32 %v15340_v51, %v13755_v39  ;;  %v16468_v35 = vadd.f32 %v9480_v11, %v9476_v19  ;;  %v14139_v62 = vld [vmem:[#allocation11 + $0x1eb8] sm:$0xf]  ;;  %v15172_v34 = vld [vmem:[#allocation11 + $0x16bc] sm:$0xf] }
 0x494   :  { %9142 = vmatpush.bf16.msrb.mxu0 %v10368_v7  ;;  %9078 = vmatpush.bf16.msrb.mxu3 %v11836_v28  ;;  %v10240_v7 = vor.u32 %v14452_v4, %v10237_v21  ;;  %v15436_v54 = vld [vmem:[#allocation11 + $0x1ef4] sm:$0xf0]  ;;  %v13184_v28 = vor.u32 %v15188_v30, %v13181_v49  ;;  %v13117_v3 = vld [vmem:[#allocation11 + $0x16f8] sm:$0xf0]  ;;  %v12608_v4 = vor.u32 %v15044_v48, %v12605_v15 }
 0x495   :  { %9500 = vst [vmem:[#allocation15 + $0x18] sm:$0xff] %v16468_v35  ;;  %v13563_v39 = vld [vmem:[#allocation11 + $0x1a38] sm:$0xf]  ;;  %v13120_v21 = vor.u32 %v15172_v34, %v13117_v3  ;;  %v12541_v20 = vld [vmem:[#allocation11 + $0x1278] sm:$0xf0] }
 0x496   :  { %9155 = vmatpush.bf16.msrb.mxu1 %v10880_v6  ;;  %v10752_v6 = vor.u32 %v14580_v32, %v10749_v44  ;;  %9066 = vmatpush.bf16.msrb.mxu2 %v11260_v29  ;;  %v15292_v51 = vld [vmem:[#allocation11 + $0x1a74] sm:$0xf0]  ;;  %v15156_v14 = vld [vmem:[#allocation11 + $0x163c] sm:$0xf]  ;;  %9522 = dma.vmem_to_hbm [thread:$0]  %s9518_s5, 512, %s9520_s10, [#allocation16]  }
 0x497   :  { %v14075_v16 = vld [vmem:[#allocation11 + $0x1e38] sm:$0xf]  ;;  %v13053_v32 = vld [vmem:[#allocation11 + $0x1678] sm:$0xf0]  ;;  %v13564_v44 = vor.u32 %v15292_v51, %v13563_v39 }
 0x498   :  { %9143 = vmatpush.bf16.msrb.mxu0 %v10304_v0  ;;  %9079 = vmatpush.bf16.msrb.mxu3 %v11772_v24  ;;  %v13628_v0 = vor.u32 %v15308_v53, %v13627_v10  ;;  %v15420_v41 = vld [vmem:[#allocation11 + $0x1e74] sm:$0xf0]  ;;  %v13056_v46 = vor.u32 %v15156_v14, %v13053_v32  ;;  %v15012_v52 = vld [vmem:[#allocation11 + $0x11bc] sm:$0xf] }
 0x499   :  { %9067 = vmatmul.bf16.vlgmr.msrb.gmra.mxu2 %v15875_v25  ;;  %v14076_v31 = vor.u32 %v15420_v41, %v14075_v16  ;;  %v13499_v60 = vld [vmem:[#allocation11 + $0x19b8] sm:$0xf]  ;;  %v12989_v55 = vld [vmem:[#allocation11 + $0x15f8] sm:$0xf0] }
 0x49a   :  { %9156 = vmatpush.bf16.msrb.mxu1 %v10816_v9  ;;  %9111 = vmatpush.bf16.msra.mxu2 %v13756_v47  ;;  %v14140_v9 = vor.u32 %v15436_v54, %v14139_v62  ;;  %v15276_v29 = vld [vmem:[#allocation11 + $0x19f4] sm:$0xf0]  ;;  %v12477_v47 = vld [vmem:[#allocation11 + $0x11f8] sm:$0xf0] }
 0x49b   :  { %9080 = vmatmul.bf16.vlgmr.msrb.gmra.mxu3 %v15877_v26  ;;  %v14011_v24 = vld [vmem:[#allocation11 + $0x1db8] sm:$0xf]  ;;  %v13500_v18 = vor.u32 %v15276_v29, %v13499_v60  ;;  %v12413_v42 = vld [vmem:[#allocation11 + $0x1178] sm:$0xf0] }
 0x49c   :  { %9124 = vmatpush.bf16.msra.mxu3 %v14268_v33  ;;  %9144 = vmatpush.bf16.msrb.mxu0 %v10240_v7  ;;  %v15404_v27 = vld [vmem:[#allocation11 + $0x1df4] sm:$0xf0]  ;;  %v15140_v33 = vld [vmem:[#allocation11 + $0x15bc] sm:$0xf] }
 0x49d   :  { %v14012_v61 = vor.u32 %v15404_v27, %v14011_v24  ;;  %v13435_v7 = vld [vmem:[#allocation11 + $0x1938] sm:$0xf]  ;;  %v15124_v63 = vld [vmem:[#allocation11 + $0x153c] sm:$0xf] }
 0x49e   :  { %9157 = vmatpush.bf16.msrb.mxu1 %v10752_v6  ;;  %9112 = vmatpush.bf16.msra.mxu2 %v13692_v12  ;;  %v8938_v6 = vpop.f32.mrf.mxu0  ;;  %v8951_v43 = vpop.f32.mrf.mxu1  ;;  %v15260_v17 = vld [vmem:[#allocation11 + $0x1974] sm:$0xf0]  ;;  %v12925_v30 = vld [vmem:[#allocation11 + $0x1578] sm:$0xf0] }
 0x49f   :  { %9145 = vmatmul.bf16.vlgmr.msrb.gmra.mxu0 %v15865_v40  ;;  %v2410_v40 = vperm.slane %v16393_v56, 5  ;;  %v13947_v5 = vld [vmem:[#allocation11 + $0x1d38] sm:$0xf]  ;;  %v12480_v56 = vor.u32 %v15012_v52, %v12477_v47  ;;  %v16478_v12 = vpop.f32.mrf.mxu2  ;;  %v13436_v10 = vor.u32 %v15260_v17, %v13435_v7  ;;  %v12928_v15 = vor.u32 %v15124_v63, %v12925_v30  ;;  %v14980_v34 = vld [vmem:[#allocation11 + $0x10bc] sm:$0xf] }
 0x4a0   :  { %9189 = vmatpush.bf16.msra.mxu0 %v12736_v13  ;;  %9125 = vmatpush.bf16.msra.mxu3 %v14204_v58  ;;  %v15388_v19 = vld [vmem:[#allocation11 + $0x1d74] sm:$0xf0]  ;;  %v12992_v13 = vor.u32 %v15140_v33, %v12989_v55  ;;  %v16480_v58 = vpop.f32.mrf.mxu3  ;;  %v12349_v3 = vld [vmem:[#allocation11 + $0x10f8] sm:$0xf0]  ;;  %v8861_v63 = vadd.f32 %v16478_v12, %v16396_v59 }
 0x4a1   :  { %9158 = vmatmul.bf16.vlgmr.msrb.gmra.mxu1 %v15867_v45  ;;  %v12544_v45 = vor.u32 %v15028_v57, %v12541_v20  ;;  %v8939_v11 = vadd.f32 %v8938_v6, %v2410_v40  ;;  %v13948_v53 = vor.u32 %v15388_v19, %v13947_v5  ;;  %v13371_v62 = vld [vmem:[#allocation11 + $0x18b8] sm:$0xf]  ;;  %v14820_v14 = vld [vmem:[#allocation11 + $0xbbc] sm:$0xf] }
 0x4a2   :  { %9202 = vmatpush.bf16.msra.mxu1 %v13248_v1  ;;  %9113 = vmatpush.bf16.msra.mxu2 %v13628_v0  ;;  %v14996_v1 = vld [vmem:[#allocation11 + $0x113c] sm:$0xf]  ;;  %v15244_v54 = vld [vmem:[#allocation11 + $0x18f4] sm:$0xf0] }
 0x4a3   :  { %v16476_v49 = vadd.f32 %v8951_v43, %v8939_v11  ;;  %v12416_v48 = vor.u32 %v14996_v1, %v12413_v42  ;;  %v15108_v0 = vld [vmem:[#allocation11 + $0x14bc] sm:$0xf]  ;;  %v13372_v39 = vor.u32 %v15244_v54, %v13371_v62  ;;  %v13307_v16 = vld [vmem:[#allocation11 + $0x1838] sm:$0xf] }
 0x4a4   :  { %9190 = vmatpush.bf16.msra.mxu0 %v12672_v2  ;;  %9126 = vmatpush.bf16.msra.mxu3 %v14140_v9  ;;  %v13883_v2 = vld [vmem:[#allocation11 + $0x1cb8] sm:$0xf]  ;;  %v12861_v9 = vld [vmem:[#allocation11 + $0x14f8] sm:$0xf0] }
 0x4a5   :  { %v15228_v41 = vld [vmem:[#allocation11 + $0x1874] sm:$0xf0]  ;;  %v11709_v32 = vld [vmem:[#allocation11 + $0xbf8] sm:$0xf0] }
 0x4a6   :  { %9203 = vmatpush.bf16.msra.mxu1 %v13184_v28  ;;  %9114 = vmatpush.bf16.msra.mxu2 %v13564_v44  ;;  %v15372_v28 = vld [vmem:[#allocation11 + $0x1cf4] sm:$0xf0]  ;;  %v8953_v57 = vpop.f32.mrf.mxu1  ;;  %v12352_v44 = vor.u32 %v14980_v34, %v12349_v3  ;;  %v14948_v60 = vld [vmem:[#allocation11 + $0xfbc] sm:$0xf]  ;;  %v11712_v55 = vor.u32 %v14820_v14, %v11709_v32 }
 0x4a7   :  { %v13884_v51 = vor.u32 %v15372_v28, %v13883_v2  ;;  %v15356_v20 = vld [vmem:[#allocation11 + $0x1c74] sm:$0xf0]  ;;  %v12221_v29 = vld [vmem:[#allocation11 + $0xff8] sm:$0xf0]  ;;  %v8862_v47 = vpop.f32.mrf.mxu2  ;;  %v8874_v28 = vadd.f32 %v16480_v58, %v8861_v63 }
 0x4a8   :  { %9191 = vmatpush.bf16.msra.mxu0 %v12608_v4  ;;  %9127 = vmatpush.bf16.msra.mxu3 %v14076_v31  ;;  %v13819_v4 = vld [vmem:[#allocation11 + $0x1c38] sm:$0xf]  ;;  %v12864_v31 = vor.u32 %v15108_v0, %v12861_v9  ;;  %v14964_v24 = vld [vmem:[#allocation11 + $0x103c] sm:$0xf]  ;;  %v8875_v33 = vpop.f32.mrf.mxu3 }
 0x4a9   :  { %v12285_v27 = vld [vmem:[#allocation11 + $0x1078] sm:$0xf0]  ;;  %v13820_v52 = vor.u32 %v15356_v20, %v13819_v4 }
 0x4aa   :  { %9204 = vmatpush.bf16.msra.mxu1 %v13120_v21  ;;  %9115 = vmatpush.bf16.msra.mxu2 %v13500_v18  ;;  %v8940_v21 = vpop.f32.mrf.mxu0  ;;  %v15092_v40 = vld [vmem:[#allocation11 + $0x143c] sm:$0xf]  ;;  %v12224_v18 = vor.u32 %v14948_v60, %v12221_v29 }
 0x4ab   :  { %v14804_v6 = vld [vmem:[#allocation11 + $0xb3c] sm:$0xf] }
 0x4ac   :  { %9192 = vmatpush.bf16.msra.mxu0 %v12544_v45  ;;  %9128 = vmatpush.bf16.msra.mxu3 %v14012_v61  ;;  %v12797_v45 = vld [vmem:[#allocation11 + $0x1478] sm:$0xf0]  ;;  %v12288_v61 = vor.u32 %v14964_v24, %v12285_v27 }
 0x4ad   :  { %v12800_v7 = vor.u32 %v15092_v40, %v12797_v45  ;;  %v11645_v43 = vld [vmem:[#allocation11 + $0xb78] sm:$0xf0] }
 0x4ae   :  { %9205 = vmatpush.bf16.msra.mxu1 %v13056_v46  ;;  %9116 = vmatpush.bf16.msra.mxu2 %v13436_v10  ;;  %v13308_v46 = vor.u32 %v15228_v41, %v13307_v16  ;;  %v14932_v17 = vld [vmem:[#allocation11 + $0xf3c] sm:$0xf]  ;;  %v11648_v19 = vor.u32 %v14804_v6, %v11645_v43 }
 0x4af   :  { %v12157_v5 = vld [vmem:[#allocation11 + $0xf78] sm:$0xf0] }
 0x4b0   :  { %9193 = vmatpush.bf16.msra.mxu0 %v12480_v56  ;;  %9129 = vmatpush.bf16.msra.mxu3 %v13948_v53  ;;  %v12160_v11 = vor.u32 %v14932_v17, %v12157_v5  ;;  %v14788_v56 = vld [vmem:[#allocation11 + $0xabc] sm:$0xf] }
 0x4b1   :  { %v14916_v1 = vld [vmem:[#allocation11 + $0xebc] sm:$0xf] }
 0x4b2   :  { %9206 = vmatpush.bf16.msra.mxu1 %v12992_v13  ;;  %9117 = vmatpush.bf16.msra.mxu2 %v13372_v39  ;;  %v11581_v13 = vld [vmem:[#allocation11 + $0xaf8] sm:$0xf0] }
 0x4b3   :  { %v12093_v42 = vld [vmem:[#allocation11 + $0xef8] sm:$0xf0]  ;;  %v11584_v30 = vor.u32 %v14788_v56, %v11581_v13 }
 0x4b4   :  { %9194 = vmatpush.bf16.msra.mxu0 %v12416_v48  ;;  %9130 = vmatpush.bf16.msra.mxu3 %v13884_v51  ;;  %v12096_v10 = vor.u32 %v14916_v1, %v12093_v42  ;;  %v14772_v53 = vld [vmem:[#allocation11 + $0xa3c] sm:$0xf] }
 0x4b5   :  { %v11517_v62 = vld [vmem:[#allocation11 + $0xa78] sm:$0xf0] }
 0x4b6   :  { %9207 = vmatpush.bf16.msra.mxu1 %v12928_v15  ;;  %9118 = vmatpush.bf16.msra.mxu2 %v13308_v46  ;;  %v14900_v54 = vld [vmem:[#allocation11 + $0xe3c] sm:$0xf]  ;;  %v11520_v48 = vor.u32 %v14772_v53, %v11517_v62 }
 0x4b7   :  { %v12029_v2 = vld [vmem:[#allocation11 + $0xe78] sm:$0xf0] }
 0x4b8   :  { %9195 = vmatpush.bf16.msra.mxu0 %v12352_v44  ;;  %9131 = vmatpush.bf16.msra.mxu3 %v13820_v52  ;;  %v12032_v15 = vor.u32 %v14900_v54, %v12029_v2  ;;  %v14756_v34 = vld [vmem:[#allocation11 + $0x9bc] sm:$0xf] }
 0x4b9   :  { %9119 = vmatmul.bf16.vlgmr.msra.gmra.mxu2 %v15939_v8  ;;  %v11453_v59 = vld [vmem:[#allocation11 + $0x9f8] sm:$0xf0] }
 0x4ba   :  { %9208 = vmatpush.bf16.msra.mxu1 %v12864_v31  ;;  %9163 = vmatpush.bf16.msrb.mxu2 %v11712_v55  ;;  %v14884_v12 = vld [vmem:[#allocation11 + $0xdbc] sm:$0xf]  ;;  %v11456_v9 = vor.u32 %v14756_v34, %v11453_v59 }
 0x4bb   :  { %9132 = vmatmul.bf16.vlgmr.msra.gmra.mxu3 %v15941_v22  ;;  %v14740_v51 = vld [vmem:[#allocation11 + $0x93c] sm:$0xf] }
 0x4bc   :  { %9176 = vmatpush.bf16.msrb.mxu3 %v12224_v18  ;;  %9196 = vmatpush.bf16.msra.mxu0 %v12288_v61  ;;  %v16490_v3 = vpop.f32.mrf.mxu0  ;;  %v11389_v58 = vld [vmem:[#allocation11 + $0x978] sm:$0xf0]  ;;  %v8912_v21 = vpop.f32.mrf.mxu2 }
 0x4bd   :  { %v14868_v16 = vld [vmem:[#allocation11 + $0xd3c] sm:$0xf] }
 0x4be   :  { %9209 = vmatpush.bf16.msra.mxu1 %v12800_v7  ;;  %9164 = vmatpush.bf16.msrb.mxu2 %v11648_v19  ;;  %v16492_v0 = vpop.f32.mrf.mxu1  ;;  %v11901_v41 = vld [vmem:[#allocation11 + $0xd78] sm:$0xf0]  ;;  %v8925_v57 = vpop.f32.mrf.mxu3 }
 0x4bf   :  { %9197 = vmatmul.bf16.vlgmr.msra.gmra.mxu0 %v15907_v36  ;;  %v11965_v36 = vld [vmem:[#allocation11 + $0xdf8] sm:$0xf0]  ;;  %v11904_v14 = vor.u32 %v14868_v16, %v11901_v41 }
 0x4c0   :  { %9177 = vmatpush.bf16.msrb.mxu3 %v12160_v11  ;;  %v11968_v39 = vor.u32 %v14884_v12, %v11965_v36  ;;  %v14724_v32 = vld [vmem:[#allocation11 + $0x8bc] sm:$0xf] }
 0x4c1   :  { %9210 = vmatmul.bf16.vlgmr.msra.gmra.mxu1 %v15909_v37  ;;  %v8887_v37 = vadd.f32 %v16424_v38, %v8874_v28  ;;  %v11392_v38 = vor.u32 %v14740_v51, %v11389_v58  ;;  %v11325_v44 = vld [vmem:[#allocation11 + $0x8f8] sm:$0xf0] }
 0x4c2   :  { %9165 = vmatpush.bf16.msrb.mxu2 %v11584_v30  ;;  %v14852_v31 = vld [vmem:[#allocation11 + $0xcbc] sm:$0xf]  ;;  %v11328_v45 = vor.u32 %v14724_v32, %v11325_v44 }
 0x4c3   :  { %v8900_v4 = vadd.f32 %v16426_v23, %v8887_v37  ;;  %v11837_v60 = vld [vmem:[#allocation11 + $0xcf8] sm:$0xf0] }
 0x4c4   :  { %9178 = vmatpush.bf16.msrb.mxu3 %v12096_v10  ;;  %v8992_v24 = vpop.f32.mrf.mxu0  ;;  %v11840_v46 = vor.u32 %v14852_v31, %v11837_v60  ;;  %v14708_v23 = vld [vmem:[#allocation11 + $0x83c] sm:$0xf]  ;;  %v8914_v6 = vpop.f32.mrf.mxu2 }
 0x4c5   :  { %v8913_v20 = vadd.f32 %v8912_v21, %v8900_v4  ;;  %v11261_v52 = vld [vmem:[#allocation11 + $0x878] sm:$0xf0] }
 0x4c6   :  { %9166 = vmatpush.bf16.msrb.mxu2 %v11520_v48  ;;  %v9005_v27 = vpop.f32.mrf.mxu1  ;;  %v14836_v47 = vld [vmem:[#allocation11 + $0xc3c] sm:$0xf]  ;;  %v8927_v43 = vpop.f32.mrf.mxu3  ;;  %v11264_v17 = vor.u32 %v14708_v23, %v11261_v52 }
 0x4c7   :  { %v8926_v29 = vadd.f32 %v8925_v57, %v8913_v20  ;;  %v11773_v33 = vld [vmem:[#allocation11 + $0xc78] sm:$0xf0]  ;;  %v15551_v57 = vld [vmem:[#allocation15] sm:$0xff] }
 0x4c8   :  { %9179 = vmatpush.bf16.msrb.mxu3 %v12032_v15  ;;  %v15332_v55 = vld [vmem:[#allocation11 + $0x1bbc] sm:$0xf]  ;;  %v11776_v5 = vor.u32 %v14836_v47, %v11773_v33 }
 0x4c9   :  { %v14281_v40 = vmul.f32 -1.442695, %v8926_v29  ;;  %v13757_v18 = vld [vmem:[#allocation11 + $0x1bf8] sm:$0xf0] }
 0x4ca   :  { %9167 = vmatpush.bf16.msrb.mxu2 %v11456_v9  ;;  %v15460_v61 = vld [vmem:[#allocation11 + $0x1fbc] sm:$0xf]  ;;  %v13760_v19 = vor.u32 %v15332_v55, %v13757_v18 }
 0x4cb   :  { %15521 = vpow2.f32 %v14281_v40  ;;  %v14269_v7 = vld [vmem:[#allocation11 + $0x1ff8] sm:$0xf0] }
 0x4cc   :  { %9180 = vmatpush.bf16.msrb.mxu3 %v11968_v39  ;;  %v14272_v11 = vor.u32 %v15460_v61, %v14269_v7  ;;  %v15316_v56 = vld [vmem:[#allocation11 + $0x1b3c] sm:$0xf] }
 0x4cd   :  { %v13693_v13 = vld [vmem:[#allocation11 + $0x1b78] sm:$0xf0] }
 0x4ce   :  { %9168 = vmatpush.bf16.msrb.mxu2 %v11392_v38  ;;  %v15444_v1 = vld [vmem:[#allocation11 + $0x1f3c] sm:$0xf]  ;;  %v13696_v10 = vor.u32 %v15316_v56, %v13693_v13 }
 0x4cf   :  { %v14205_v42 = vld [vmem:[#allocation11 + $0x1f78] sm:$0xf0] }
 0x4d0   :  { %9181 = vmatpush.bf16.msrb.mxu3 %v11904_v14  ;;  %v14208_v53 = vor.u32 %v15444_v1, %v14205_v42  ;;  %v15300_v62 = vld [vmem:[#allocation11 + $0x1abc] sm:$0xf] }
 0x4d1   :  { %v15522_v63 = vpop.eup %15521  ;;  %v13629_v54 = vld [vmem:[#allocation11 + $0x1af8] sm:$0xf0] }
 0x4d2   :  { %9169 = vmatpush.bf16.msrb.mxu2 %v11328_v45  ;;  %v16495_v30 = vadd.f32 1.0, %v15522_v63  ;;  %v15428_v2 = vld [vmem:[#allocation11 + $0x1ebc] sm:$0xf]  ;;  %v13632_v48 = vor.u32 %v15300_v62, %v13629_v54 }
 0x4d3   :  { %v14141_v28 = vld [vmem:[#allocation11 + $0x1ef8] sm:$0xf0] }
 0x4d4   :  { %9182 = vmatpush.bf16.msrb.mxu3 %v11840_v46  ;;  %15523 = vrcp.f32 %v16495_v30  ;;  %v14144_v15 = vor.u32 %v15428_v2, %v14141_v28  ;;  %v15284_v34 = vld [vmem:[#allocation11 + $0x1a3c] sm:$0xf]  ;;  %v9424_v20 = vand.u32 2147483648, %v16495_v30  ;;  %v9422_v24 = vand.u32 2147483647, %v16495_v30 }
 0x4d5   :  { %v13565_v59 = vld [vmem:[#allocation11 + $0x1a78] sm:$0xf0]  ;;  %15525 = vtanh.f32 %v15551_v57  ;;  %vm9418_vm1 = vweird.f32 %v16495_v30 }
 0x4d6   :  { %9170 = vmatpush.bf16.msrb.mxu2 %v11264_v17  ;;  %v15412_v12 = vld [vmem:[#allocation11 + $0x1e3c] sm:$0xf]  ;;  %v13568_v9 = vor.u32 %v15284_v34, %v13565_v59  ;;  %v9425_v47 = vor.u32 1.1754944e-38, %v9424_v20  ;;  %vm9423_vm3 = vcmp.eq.f32.partialorder %v9422_v24, 8.507059e+37 }
 0x4d7   :  { %v14077_v36 = vld [vmem:[#allocation11 + $0x1e78] sm:$0xf0] }
 0x4d8   :  { %9183 = vmatpush.bf16.msrb.mxu3 %v11776_v5  ;;  %v14080_v39 = vor.u32 %v15412_v12, %v14077_v36  ;;  %v15268_v51 = vld [vmem:[#allocation11 + $0x19bc] sm:$0xf] }
 0x4d9   :  { %9171 = vmatmul.bf16.vlgmr.msrb.gmra.mxu2 %v15875_v25  ;;  %v13501_v58 = vld [vmem:[#allocation11 + $0x19f8] sm:$0xf0] }
 0x4da   :  { %9215 = vmatpush.bf16.msra.mxu2 %v13760_v19  ;;  %v15524_v37 = vpop.eup %15523  ;;  %v15396_v25 = vld [vmem:[#allocation11 + $0x1dbc] sm:$0xf]  ;;  %v13504_v38 = vor.u32 %v15268_v51, %v13501_v58 }
 0x4db   :  { %9184 = vmatmul.bf16.vlgmr.msrb.gmra.mxu3 %v15877_v26  ;;  %v9414_v16 = vmul.f32 %v15524_v37, %v16495_v30  ;;  %v14013_v41 = vld [vmem:[#allocation11 + $0x1df8] sm:$0xf0]  ;;  %v16501_v26 = vld [vmem:[#allocation12 + $0x8] sm:$0xff]  ;;  %vm9419_vm0 = vweird.f32 %v15524_v37  ;;  %v15526_v19 = vpop.eup %15525 }
 0x4dc   :  { %9228 = vmatpush.bf16.msra.mxu3 %v14272_v11  ;;  %v2411_v4 = vperm.slane %v16501_v26, 6  ;;  %v14016_v14 = vor.u32 %v15396_v25, %v14013_v41  ;;  %v15252_v32 = vld [vmem:[#allocation11 + $0x193c] sm:$0xf]  ;;  %v9042_v31 = vpop.f32.mrf.mxu0  ;;  %vm16509_vm2 = vmor %vm9418_vm1, %vm9419_vm0  ;;  %v8964_v33 = vpop.f32.mrf.mxu2 }
 0x4dd   :  { %v9415_v21 = vsub.f32 1.0, %v9414_v16  ;;  %v13437_v44 = vld [vmem:[#allocation11 + $0x1978] sm:$0xf0] }
 0x4de   :  { %9216 = vmatpush.bf16.msra.mxu2 %v13696_v10  ;;  %v9055_v60 = vpop.f32.mrf.mxu1  ;;  %v15380_v27 = vld [vmem:[#allocation11 + $0x1d3c] sm:$0xf]  ;;  %v9043_v45 = vadd.f32 %v9042_v31, %v2411_v4  ;;  %v8977_v55 = vpop.f32.mrf.mxu3  ;;  %v13440_v18 = vor.u32 %v15252_v32, %v13437_v44 }
 0x4df   :  { %v9416_v29 = vmul.f32 %v15524_v37, %v9415_v21  ;;  %v13949_v40 = vld [vmem:[#allocation11 + $0x1d78] sm:$0xf0] }
 0x4e0   :  { %9229 = vmatpush.bf16.msra.mxu3 %v14208_v53  ;;  %v16507_v23 = vadd.f32 %v9055_v60, %v9043_v45  ;;  %v13952_v61 = vor.u32 %v15380_v27, %v13949_v40  ;;  %v15236_v7 = vld [vmem:[#allocation11 + $0x18bc] sm:$0xf] }
 0x4e1   :  { %v9417_v46 = vadd.f32 %v15524_v37, %v9416_v29  ;;  %v13373_v6 = vld [vmem:[#allocation11 + $0x18f8] sm:$0xf0] }
 0x4e2   :  { %9217 = vmatpush.bf16.msra.mxu2 %v13632_v48  ;;  %v15364_v43 = vld [vmem:[#allocation11 + $0x1cbc] sm:$0xf]  ;;  %v13376_v13 = vor.u32 %v15236_v7, %v13373_v6 }
 0x4e3   :  { %v13885_v17 = vld [vmem:[#allocation11 + $0x1cf8] sm:$0xf0]  ;;  %v9421_v5 = vsel %vm16509_vm2, %v15524_v37, %v9417_v46 }
 0x4e4   :  { %9230 = vmatpush.bf16.msra.mxu3 %v14144_v15  ;;  %v9426_v11 = vsel %vm9423_vm3, %v9425_v47, %v9421_v5  ;;  %v13888_v1 = vor.u32 %v15364_v43, %v13885_v17  ;;  %v15220_v42 = vld [vmem:[#allocation11 + $0x183c] sm:$0xf]  ;;  %v9044_v30 = vpop.f32.mrf.mxu0  ;;  %v8966_v28 = vpop.f32.mrf.mxu2  ;;  %v8965_v15 = vadd.f32 %v8964_v33, %v16476_v49 }
 0x4e5   :  { %v9489_v56 = vmul.f32 %v15526_v19, %v9426_v11  ;;  %v13309_v63 = vld [vmem:[#allocation11 + $0x1878] sm:$0xf0] }
 0x4e6   :  { %9218 = vmatpush.bf16.msra.mxu2 %v13568_v9  ;;  %v9057_v10 = vpop.f32.mrf.mxu1  ;;  %v15348_v53 = vld [vmem:[#allocation11 + $0x1c3c] sm:$0xf]  ;;  %v13312_v54 = vor.u32 %v15220_v42, %v13309_v63  ;;  %v8979_v48 = vpop.f32.mrf.mxu3  ;;  %v8978_v34 = vadd.f32 %v8977_v55, %v8965_v15 }
 0x4e7   :  { %v13821_v62 = vld [vmem:[#allocation11 + $0x1c78] sm:$0xf0]  ;;  %9493 = vst [vmem:[#allocation14] sm:$0xff] %v9489_v56 }
 0x4e8   :  { %9231 = vmatpush.bf16.msra.mxu3 %v14080_v39  ;;  %v13824_v2 = vor.u32 %v15348_v53, %v13821_v62  ;;  %v8991_v59 = vadd.f32 %v16490_v3, %v8978_v34  ;;  %v2412_v3 = vperm.slane %v16501_v26, 7 }
 0x4ea   :  { %9219 = vmatpush.bf16.msra.mxu2 %v13504_v38  ;;  %v9004_v37 = vadd.f32 %v16492_v0, %v8991_v59  ;;  %v15552_v0 = vld [vmem:[#allocation15 + $0x8] sm:$0xff] }
 0x4ec   :  { %9232 = vmatpush.bf16.msra.mxu3 %v14016_v14 }
 0x4ee   :  { %9220 = vmatpush.bf16.msra.mxu2 %v13440_v18 }
 0x4f0   :  { %9233 = vmatpush.bf16.msra.mxu3 %v13952_v61 }
 0x4f2   :  { %9221 = vmatpush.bf16.msra.mxu2 %v13376_v13 }
 0x4f4   :  { %9234 = vmatpush.bf16.msra.mxu3 %v13888_v1 }
 0x4f6   :  { %9222 = vmatpush.bf16.msra.mxu2 %v13312_v54 }
 0x4f8   :  { %9235 = vmatpush.bf16.msra.mxu3 %v13824_v2 }
 0x4f9   :  { %9223 = vmatmul.bf16.vlgmr.msra.gmra.mxu2 %v15939_v8 }
 0x4fb   :  { %9236 = vmatmul.bf16.vlgmr.msra.gmra.mxu3 %v15941_v22 }
 0x4fc   :  { %v9094_v12 = vpop.f32.mrf.mxu0  ;;  %v9016_v9 = vpop.f32.mrf.mxu2 }
 0x4fd   :  { %v9017_v51 = vadd.f32 %v9016_v9, %v9004_v37 }
 0x4fe   :  { %v9107_v36 = vpop.f32.mrf.mxu1  ;;  %v9029_v39 = vpop.f32.mrf.mxu3 }
 0x4ff   :  { %v9030_v58 = vadd.f32 %v9029_v39, %v9017_v51 }
 0x501   :  { %v14282_v41 = vmul.f32 -1.442695, %v9030_v58 }
 0x503   :  { %15527 = vpow2.f32 %v14282_v41 }
 0x504   :  { %v9096_v16 = vpop.f32.mrf.mxu0  ;;  %v9018_v8 = vpop.f32.mrf.mxu2 }
 0x506   :  { %v9109_v25 = vpop.f32.mrf.mxu1  ;;  %v9031_v4 = vpop.f32.mrf.mxu3 }
 0x509   :  { %v15528_v22 = vpop.eup %15527 }
 0x50a   :  { %v9410_v21 = vadd.f32 1.0, %v15528_v22 }
 0x50c   :  { %15529 = vrcp.f32 %v9410_v21  ;;  %v9439_v38 = vand.u32 2147483648, %v9410_v21  ;;  %v9437_v31 = vand.u32 2147483647, %v9410_v21  ;;  %vm9433_vm5 = vweird.f32 %v9410_v21 }
 0x50d   :  { %15531 = vtanh.f32 %v15552_v0 }
 0x50e   :  { %v9440_v24 = vor.u32 1.1754944e-38, %v9439_v38  ;;  %vm9438_vm7 = vcmp.eq.f32.partialorder %v9437_v31, 8.507059e+37 }
 0x512   :  { %v15530_v49 = vpop.eup %15529 }
 0x513   :  { %v9429_v57 = vmul.f32 %v15530_v49, %v9410_v21  ;;  %vm9434_vm4 = vweird.f32 %v15530_v49  ;;  %v15532_v46 = vpop.eup %15531 }
 0x514   :  { %vm9435_vm6 = vmor %vm9433_vm5, %vm9434_vm4 }
 0x515   :  { %v9430_v20 = vsub.f32 1.0, %v9429_v57 }
 0x517   :  { %v9431_v44 = vmul.f32 %v15530_v49, %v9430_v20 }
 0x519   :  { %v9432_v26 = vadd.f32 %v15530_v49, %v9431_v44 }
 0x51b   :  { %v9436_v45 = vsel %vm9435_vm6, %v15530_v49, %v9432_v26 }
 0x51c   :  { %v9146_v14 = vpop.f32.mrf.mxu0  ;;  %v9068_v27 = vpop.f32.mrf.mxu2  ;;  %v9441_v52 = vsel %vm9438_vm7, %v9440_v24, %v9436_v45 }
 0x51d   :  { %v9147_v60 = vadd.f32 %v9146_v14, %v2412_v3  ;;  %v9490_v47 = vmul.f32 %v15532_v46, %v9441_v52  ;;  %v9069_v7 = vadd.f32 %v9068_v27, %v16507_v23 }
 0x51e   :  { %v9159_v32 = vpop.f32.mrf.mxu1  ;;  %v9081_v40 = vpop.f32.mrf.mxu3 }
 0x51f   :  { %v9160_v29 = vadd.f32 %v9159_v32, %v9147_v60  ;;  %9494 = vst [vmem:[#allocation14 + $0x8] sm:$0xff] %v9490_v47  ;;  %v9082_v6 = vadd.f32 %v9081_v40, %v9069_v7 }
 0x521   :  { %v9095_v43 = vadd.f32 %v9094_v12, %v9082_v6 }
 0x523   :  { %v9108_v19 = vadd.f32 %v9107_v36, %v9095_v43 }
 0x524   :  { %v9148_v33 = vpop.f32.mrf.mxu0  ;;  %v9070_v18 = vpop.f32.mrf.mxu2 }
 0x526   :  { %v9161_v55 = vpop.f32.mrf.mxu1  ;;  %v9083_v61 = vpop.f32.mrf.mxu3 }
 0x53c   :  { %v9198_v17 = vpop.f32.mrf.mxu0  ;;  %v9120_v11 = vpop.f32.mrf.mxu2 }
 0x53d   :  { %v9121_v13 = vadd.f32 %v9120_v11, %v9108_v19 }
 0x53e   :  { %v9211_v5 = vpop.f32.mrf.mxu1  ;;  %v9133_v56 = vpop.f32.mrf.mxu3 }
 0x53f   :  { %v9134_v1 = vadd.f32 %v9133_v56, %v9121_v13 }
 0x541   :  { %v14283_v30 = vmul.f32 -1.442695, %v9134_v1 }
 0x543   :  { %15533 = vpow2.f32 %v14283_v30 }
 0x544   :  { %v9200_v42 = vpop.f32.mrf.mxu0  ;;  %v9122_v10 = vpop.f32.mrf.mxu2 }
 0x546   :  { %v9213_v63 = vpop.f32.mrf.mxu1  ;;  %v9135_v53 = vpop.f32.mrf.mxu3 }
 0x549   :  { %v15534_v62 = vpop.eup %15533 }
 0x54a   :  { %v9411_v54 = vadd.f32 1.0, %v15534_v62 }
 0x54c   :  { %15535 = vrcp.f32 %v9411_v54  ;;  %v9454_v48 = vand.u32 2147483648, %v9411_v54  ;;  %v9452_v34 = vand.u32 2147483647, %v9411_v54  ;;  %vm9448_vm9 = vweird.f32 %v9411_v54 }
 0x54d   :  { %15537 = vtanh.f32 %v16384_v50 }
 0x54e   :  { %v9455_v12 = vor.u32 1.1754944e-38, %v9454_v48  ;;  %vm9453_vm11 = vcmp.eq.f32.partialorder %v9452_v34, 8.507059e+37 }
 0x552   :  { %v15536_v2 = vpop.eup %15535 }
 0x553   :  { %v9444_v23 = vmul.f32 %v15536_v2, %v9411_v54  ;;  %vm9449_vm8 = vweird.f32 %v15536_v2  ;;  %v15538_v39 = vpop.eup %15537 }
 0x554   :  { %vm9450_vm10 = vmor %vm9448_vm9, %vm9449_vm8 }
 0x555   :  { %v9445_v28 = vsub.f32 1.0, %v9444_v23 }
 0x557   :  { %v9446_v15 = vmul.f32 %v15536_v2, %v9445_v28 }
 0x559   :  { %v9447_v59 = vadd.f32 %v15536_v2, %v9446_v15 }
 0x55b   :  { %v9451_v9 = vsel %vm9450_vm10, %v15536_v2, %v9447_v59 }
 0x55c   :  { %v9172_v36 = vpop.f32.mrf.mxu2  ;;  %v9456_v51 = vsel %vm9453_vm11, %v9455_v12, %v9451_v9 }
 0x55d   :  { %v9491_v58 = vmul.f32 %v15538_v39, %v9456_v51  ;;  %v9173_v41 = vadd.f32 %v9172_v36, %v9160_v29 }
 0x55e   :  { %v9185_v37 = vpop.f32.mrf.mxu3 }
 0x55f   :  { %9495 = vst [vmem:[#allocation14 + $0x10] sm:$0xff] %v9491_v58  ;;  %v9186_v50 = vadd.f32 %v9185_v37, %v9173_v41 }
 0x561   :  { %v9199_v8 = vadd.f32 %v9198_v17, %v9186_v50 }
 0x563   :  { %v9212_v4 = vadd.f32 %v9211_v5, %v9199_v8 }
 0x564   :  { %v9174_v16 = vpop.f32.mrf.mxu2 }
 0x566   :  { %v9187_v25 = vpop.f32.mrf.mxu3 }
 0x57c   :  { %v9224_v22 = vpop.f32.mrf.mxu2 }
 0x57d   :  { %v9225_v49 = vadd.f32 %v9224_v22, %v9212_v4 }
 0x57e   :  { %v9237_v21 = vpop.f32.mrf.mxu3 }
 0x57f   :  { %v9238_v57 = vadd.f32 %v9237_v21, %v9225_v49 }
 0x581   :  { %v14284_v3 = vmul.f32 -1.442695, %v9238_v57 }
 0x583   :  { %15539 = vpow2.f32 %v14284_v3 }
 0x584   :  { %v9226_v20 = vpop.f32.mrf.mxu2 }
 0x586   :  { %v9239_v0 = vpop.f32.mrf.mxu3 }
 0x589   :  { %v15540_v38 = vpop.eup %15539 }
 0x58a   :  { %v9412_v14 = vadd.f32 1.0, %v15540_v38 }
 0x58c   :  { %15541 = vrcp.f32 %v9412_v14  ;;  %v9469_v60 = vand.u32 2147483648, %v9412_v14  ;;  %v9467_v29 = vand.u32 2147483647, %v9412_v14  ;;  %vm9463_vm13 = vweird.f32 %v9412_v14 }
 0x58d   :  { %15543 = vtanh.f32 %v16468_v35 }
 0x58e   :  { %v9470_v27 = vor.u32 1.1754944e-38, %v9469_v60  ;;  %vm9468_vm15 = vcmp.eq.f32.partialorder %v9467_v29, 8.507059e+37 }
 0x592   :  { %v15542_v32 = vpop.eup %15541 }
 0x593   :  { %v9459_v44 = vmul.f32 %v15542_v32, %v9412_v14  ;;  %vm9464_vm12 = vweird.f32 %v15542_v32  ;;  %v15544_v45 = vpop.eup %15543 }
 0x594   :  { %vm9465_vm14 = vmor %vm9463_vm13, %vm9464_vm12 }
 0x595   :  { %v9460_v31 = vsub.f32 1.0, %v9459_v44 }
 0x597   :  { %v9461_v26 = vmul.f32 %v15542_v32, %v9460_v31 }
 0x599   :  { %v9462_v24 = vadd.f32 %v15542_v32, %v9461_v26 }
 0x59b   :  { %v9466_v40 = vsel %vm9465_vm14, %v15542_v32, %v9462_v24 }
 0x59c   :  { %v9471_v46 = vsel %vm9468_vm15, %v9470_v27, %v9466_v40 }
 0x59d   :  { %v9492_v52 = vmul.f32 %v15544_v45, %v9471_v46 }
 0x59f   :  { %9496 = vst [vmem:[#allocation14 + $0x18] sm:$0xff] %v9492_v52 }
 0x5a0   :  { %9511 = dma.vmem_to_hbm [thread:$0]  %s9507_s11, 512, %s9509_s1, [#allocation5]  }
 0x5a1   :  { %15753 = dma.done.wait [#allocation5], 512  }
 0x5a2   :  { %15754 = vsyncadd [#allocation5], 4294966784 }
 0x5a3   :  { %15755 = dma.done.wait [#allocation16], 512  }
 0x5a4   :  { %15756 = vsyncadd [#allocation16], 4294966784 }
 0x5a5   :  { %9531 = vsyncpa [#allocation4], 1 }
 0x5a6   :  { %9532 = vsyncpa [#allocation7], 1 }
 0x5a7   :  { %9533 = vsyncpa [#allocation10], 1 }
 0x5a8   :  { %9534 = vsyncpa [#allocation13], 1 }
 0x5a9   :  { %9535 = vsyncpa [#allocation5], 1 }
 0x5aa   :  { %9536 = vsyncpa [#allocation16], 1 }

</bundles_post_ra>
